<compile_context>
chip_gen: v6e
topology: v6e:2x2x1
jax: 0.10.0
libtpu: 0.0.40
codegen_flags: <defaults>
</compile_context>

<pallas_src>
import numpy as np
import jax
import jax.numpy as jnp
from jax import lax
from jax.experimental import pallas as pl
from jax.experimental.pallas import tpu as pltpu

# ----------------------------- configuration (small shapes) ------------------
B = 2              # batch
E = 32             # embed_dim
NF = 8             # num_frames
NH = 4             # num_heads
DH = E // NH       # head dim
NL = 2             # transformer decoder layers
FF = 2048          # dim_feedforward (nn.TransformerDecoderLayer default)
NJ = 22            # num_joints (fixed by adj_matrix)
M = NJ * 3         # motion_per_frame = 66
GH = 32            # gcn_hidden
GL = 2             # gcn_layers (layer 1 folded into u_w; layers 2..GL use K_l)
BNF = B * NF       # stacked rows (batch-major, then frames)
EPS = 1e-5         # LayerNorm eps
NEG = -1e30        # additive causal-mask value

assert NL >= 2 and GL >= 2, "kernel assumes >=2 decoder layers and >=2 GCN layers"


# ----------------------------- in-kernel helpers -----------------------------
def _layernorm(x, w, b):
    mu = jnp.mean(x, axis=-1, keepdims=True)
    var = jnp.mean(jnp.square(x - mu), axis=-1, keepdims=True)
    return (x - mu) * lax.rsqrt(var + EPS) * w + b


def _mha_self(x, w3, b3, wo, bo, mask):
    """Self-attention on stacked (BNF, E) rows with a block-diag causal mask."""
    q = jnp.dot(x, w3[0], preferred_element_type=jnp.float32) + b3[0]
    k = jnp.dot(x, w3[1], preferred_element_type=jnp.float32) + b3[1]
    v = jnp.dot(x, w3[2], preferred_element_type=jnp.float32) + b3[2]
    scale = 1.0 / np.sqrt(DH)
    acc = jnp.zeros((x.shape[0], E), jnp.float32)
    for h in range(NH):
        lo, hi = h * DH, (h + 1) * DH
        s = lax.dot_general(q[:, lo:hi], k[:, lo:hi], (((1,), (1,)), ((), ())),
                            preferred_element_type=jnp.float32) * scale + mask
        m = jnp.max(s, axis=-1, keepdims=True)
        e = jnp.exp(s - m)
        p = e * pl.reciprocal(jnp.sum(e, axis=-1, keepdims=True), approx=True)
        o_h = jnp.dot(p, v[:, lo:hi], preferred_element_type=jnp.float32)
        acc = acc + jnp.dot(o_h, wo[lo:hi, :], preferred_element_type=jnp.float32)
    return acc + bo


# ----------------------------- fused kernel ----------------------------------
def fused_motion_kernel(x_ref, mask_ref, ca_ref, g1_ref, b1_ref,
                        sa_w_ref, sa_b_ref, sa_ow_ref, sa_ob_ref,
                        f1_w_ref, f1_b_ref, f2_w_ref, f2_b_ref,
                        ln_w_ref, ln_b_ref,
                        u_w_ref, u_b_ref, k_hbm_ref, k_b_ref,
                        wo_w_ref, wo_b_ref,
                        out_ref, k_vmem, k_sem):
    # Start streaming the big GCN lane-matrix (kron(adj, Gw_l), bf16) now; it is
    # only needed after the transformer layers, so its DMA overlaps the decoder
    # compute (perf-review: overlap weight streaming with compute).
    k_copy = pltpu.make_async_copy(k_hbm_ref, k_vmem, k_sem.at[0])
    k_copy.start()

    x = x_ref[...]            # (BNF, E): LN(q + SA0(q)) precomputed (params only)
    mask = mask_ref[...]      # (BNF, BNF) block-diagonal causal mask

    # ---- transformer decoder (post-norm, eval mode; layer-0 self-attn hoisted)
    for l in range(NL):
        lnw = ln_w_ref[l]     # (3, 1, E)
        lnb = ln_b_ref[l]
        if l > 0:
            sa = _mha_self(x, sa_w_ref[l - 1], sa_b_ref[l - 1],
                           sa_ow_ref[l - 1], sa_ob_ref[l - 1], mask)
            x = _layernorm(x + sa, lnw[0], lnb[0])
        # cross-attention with a length-1 memory collapses (exactly) to a linear
        # of the text embedding, precomputed per layer in the wrapper.
        x = _layernorm(x + ca_ref[l], lnw[1], lnb[1])
        # FFN: weights stored bf16 in HBM (halves dominant DMA), upcast to f32
        # in VMEM at the dot -> f32 math / accumulation.
        f1w = f1_w_ref[l].astype(jnp.float32)
        f2w = f2_w_ref[l].astype(jnp.float32)
        hdn = jnp.maximum(
            jnp.dot(x, f1w, preferred_element_type=jnp.float32) + f1_b_ref[l], 0.0)
        ff = jnp.dot(hdn, f2w, preferred_element_type=jnp.float32) + f2_b_ref[l]
        x = _layernorm(x + ff, lnw[2], lnb[2])

    # ---- FiLM + text residual (scale/shift precomputed from t in the wrapper)
    y = x * g1_ref[...] + b1_ref[...]                       # (BNF, E)

    # ---- structural-refinement GCN, frame-major (no relayout at all):
    # fc_out + input_proj + GCN-layer-1 (adj mix + Linear) folded into u_w.
    h = jnp.maximum(
        jnp.dot(y, u_w_ref[...], preferred_element_type=jnp.float32) + u_b_ref[...],
        0.0)                                                 # (BNF, NJ*GH)

    k_copy.wait()
    for l in range(GL - 1):                                  # GCN layers 2..GL
        kw = k_vmem[l].astype(jnp.float32)                   # kron(adj, Gw_{l+1})
        h = jnp.maximum(
            jnp.dot(h, kw, preferred_element_type=jnp.float32) + k_b_ref[l], 0.0)

    # output projection (block-diagonal kron(I_NJ, g_wo)) -> (BNF, NJ*3)
    out_ref[...] = (jnp.dot(h, wo_w_ref[...], preferred_element_type=jnp.float32)
                    + wo_b_ref[...])


# ----------------------------- wrapper ---------------------------------------
def _full(shape):
    nd = len(shape)
    return pl.BlockSpec(shape, lambda i, _nd=nd: (0,) * _nd)


def transformer_motion_predictor(text_emb, kp):
    t = text_emb                                             # (B, E)

    # --- text-only precomputes (tiny XLA matmuls on B rows; perf review #5) ---
    ca = jnp.einsum('be,lef->lbf', t, kp['ca_vo_w']) + kp['ca_vo_b']   # (NL,B,E)
    ca_rows = jnp.repeat(ca, NF, axis=1)                                # (NL,BNF,E)
    gamma = t @ kp['gam_w'] + kp['gam_b']                               # (B,E)
    beta = t @ kp['bet_w'] + kp['bet_b']                                # (B,E)
    g1 = jnp.repeat(1.0 + gamma, NF, axis=0)                            # (BNF,E)
    b1 = jnp.repeat(beta + t, NF, axis=0)                               # (BNF,E)

    out = pl.pallas_call(
        fused_motion_kernel,
        out_shape=jax.ShapeDtypeStruct((BNF, NJ * 3), jnp.float32),
        grid_spec=pltpu.PrefetchScalarGridSpec(
            num_scalar_prefetch=0,
            grid=(1,),
            in_specs=[
                _full((BNF, E)), _full((BNF, BNF)), _full((NL, BNF, E)),
                _full((BNF, E)), _full((BNF, E)),
                _full((NL - 1, 3, E, E)), _full((NL - 1, 3, 1, E)),
                _full((NL - 1, E, E)), _full((NL - 1, 1, E)),
                _full((NL, E, FF)), _full((NL, 1, FF)),
                _full((NL, FF, E)), _full((NL, 1, E)),
                _full((NL, 3, 1, E)), _full((NL, 3, 1, E)),
                _full((E, NJ * GH)), _full((1, NJ * GH)),
                pl.BlockSpec(memory_space=pl.ANY),            # big GCN matrix in HBM
                _full((GL - 1, 1, NJ * GH)),
                _full((NJ * GH, NJ * 3)), _full((1, NJ * 3)),
            ],
            out_specs=_full((BNF, NJ * 3)),
            scratch_shapes=[
                pltpu.VMEM((GL - 1, NJ * GH, NJ * GH), jnp.bfloat16),
                pltpu.SemaphoreType.DMA((1,)),
            ],
        ),
        compiler_params=pltpu.CompilerParams(dimension_semantics=("arbitrary",)),
    )(kp['x1'], kp['mask'], ca_rows, g1, b1,
      kp['sa_w'], kp['sa_b'], kp['sa_ow'], kp['sa_ob'],
      kp['f1_w'], kp['f1_b'], kp['f2_w'], kp['f2_b'],
      kp['ln_w'], kp['ln_b'],
      kp['u_w'], kp['u_b'], kp['k_w'], kp['k_b'],
      kp['wo_w'], kp['wo_b'])

    # rows are (b, f) ordered and lanes are (j, c) -> exactly PyTorch's view.
    return out.reshape(B, NF * NJ * 3)


# ----------------------------- host-side helpers ------------------------------
def _host_ln(x, w, b):
    mu = x.mean(-1, keepdims=True)
    var = ((x - mu) ** 2).mean(-1, keepdims=True)
    return (x - mu) / jnp.sqrt(var + EPS) * w + b


def _host_mha_self(x, w3, b3, wo, bo, mask):
    q = x @ w3[0] + b3[0]
    k = x @ w3[1] + b3[1]
    v = x @ w3[2] + b3[2]
    outs = []
    for h in range(NH):
        sl = slice(h * DH, (h + 1) * DH)
        s = (q[:, sl] @ k[:, sl].T) / np.sqrt(DH) + mask
        a = jax.nn.softmax(s, axis=-1)
        outs.append(a @ v[:, sl])
    return jnp.concatenate(outs, -1) @ wo + bo


# ----------------------------- parameter preparation --------------------------
def prepare_kernel_params(p):
    """Derive kernel-side tensors (exact algebraic fusions; plain XLA)."""
    kp = {}

    # block-diagonal causal mask over stacked (b, f) rows
    idx = np.arange(BNF)
    same_b = (idx[:, None] // NF) == (idx[None, :] // NF)
    causal = (idx[:, None] % NF) >= (idx[None, :] % NF)
    kp['mask'] = jnp.asarray(np.where(same_b & causal, 0.0, NEG).astype(np.float32))

    # ---- hoist layer-0 self-attention + norm1 (depends only on parameters) ----
    causal_nf = jnp.asarray(
        np.where(np.tril(np.ones((NF, NF), bool)), 0.0, NEG).astype(np.float32))
    sa0 = _host_mha_self(p['queries'], p['sa_w'][0], p['sa_b'][0],
                         p['sa_ow'][0], p['sa_ob'][0], causal_nf)
    x1 = _host_ln(p['queries'] + sa0, p['ln_w'][0, 0], p['ln_b'][0, 0])   # (NF, E)
    kp['x1'] = jnp.tile(x1, (B, 1))                                        # (BNF, E)

    # self-attention weights for layers 1..NL-1 only (layer 0 hoisted)
    kp['sa_w'] = p['sa_w'][1:]
    kp['sa_b'] = p['sa_b'][1:]
    kp['sa_ow'] = p['sa_ow'][1:]
    kp['sa_ob'] = p['sa_ob'][1:]

    # length-1 cross-attention: softmax over one key == 1, only V+O path survives
    kp['ca_vo_w'] = jnp.einsum('lij,ljk->lik', p['ca_w'][:, 2], p['ca_ow'])
    kp['ca_vo_b'] = jnp.einsum('lij,ljk->lik', p['ca_b'][:, 2], p['ca_ow']) + p['ca_ob']

    # FFN weights: bf16 in HBM (DMA compression), f32 math inside the kernel
    kp['f1_w'] = p['f1_w'].astype(jnp.bfloat16)
    kp['f1_b'] = p['f1_b']
    kp['f2_w'] = p['f2_w'].astype(jnp.bfloat16)
    kp['f2_b'] = p['f2_b']
    kp['ln_w'], kp['ln_b'] = p['ln_w'], p['ln_b']

    # FiLM projections (used by the wrapper, not the kernel)
    kp['gam_w'], kp['gam_b'] = p['gam_w'], p['gam_b']
    kp['bet_w'], kp['bet_b'] = p['bet_w'], p['bet_b']

    adj = p['adj']                                              # (NJ, NJ), symmetric

    # fc_out -> GCN input_proj, per joint k: W_k = fc_w[:, 3k:3k+3] @ g_wi
    Wk = jnp.einsum('ekc,cg->ekg', p['fc_w'].reshape(E, NJ, 3), p['g_wi'])   # (E,NJ,GH)
    bk = jnp.einsum('kc,cg->kg', p['fc_b'].reshape(NJ, 3), p['g_wi']) + p['g_bi']

    # fold GCN layer 1 (adjacency mix + Linear) as well (all linear, exact):
    #   u_w[:, j*GH:] = (sum_k adj[j,k] W_k) @ Gw1
    U = jnp.einsum('jk,ekg->ejg', adj, Wk)
    U = jnp.einsum('ejg,gh->ejh', U, p['g_w'][0])
    kp['u_w'] = U.reshape(E, NJ * GH)
    ub = jnp.einsum('jk,kg->jg', adj, bk)
    ub = ub @ p['g_w'][0] + p['g_b'][0]
    kp['u_b'] = ub.reshape(1, NJ * GH)

    # GCN layers 2..GL: frame-major lane-side matrices K_l = kron(adj, Gw_l)
    Ks, Kbs = [], []
    for l in range(1, GL):
        Ks.append(jnp.kron(adj, p['g_w'][l]))                   # (NJ*GH, NJ*GH)
        Kbs.append(jnp.tile(p['g_b'][l], (1, NJ)))              # (1, NJ*GH)
    kp['k_w'] = jnp.stack(Ks).astype(jnp.bfloat16)              # bf16 in HBM
    kp['k_b'] = jnp.stack(Kbs)

    # output projection per joint block (block-diagonal)
    kp['wo_w'] = jnp.kron(jnp.eye(NJ, dtype=jnp.float32), p['g_wo'])   # (NJ*GH, NJ*3)
    kp['wo_b'] = jnp.tile(p['g_bo'], (1, NJ))                           # (1, NJ*3)
    return kp


# ----------------------------- parameters ------------------------------------
class _KeyGen:
    def __init__(self, key):
        self.key = key
        self.i = 0

    def __call__(self):
        self.i += 1
        return jax.random.fold_in(self.key, self.i)


def _linear(kg, fan_in, fan_out):
    """Returns (W^T, b) in kernel layout: W^T (in,out), b (1,out)."""
    w = jax.random.normal(kg(), (fan_in, fan_out), jnp.float32) / np.sqrt(fan_in)
    b = 0.01 * jax.random.normal(kg(), (1, fan_out), jnp.float32)
    return w, b


def _qkv(kg):
    w = jax.random.normal(kg(), (3, E, E), jnp.float32) / np.sqrt(E)
    b = 0.01 * jax.random.normal(kg(), (3, 1, E), jnp.float32)
    return w, b


def make_adj():
    adj_list = [[0, 2, 5, 8, 11], [0, 1, 4, 7, 10], [0, 3, 6, 9, 12, 15],
                [9, 14, 17, 19, 21], [9, 13, 16, 18, 20]]
    n = max(max(s) for s in adj_list) + 1
    A = np.zeros((n, n), np.float32)
    for s in adj_list:
        for i in range(len(s)):
            for j in range(i + 1, len(s)):
                A[s[i], s[j]] = 1.0
                A[s[j], s[i]] = 1.0
    return jnp.asarray(A)


def make_params(key):
    kg = _KeyGen(key)
    p = {}
    p['query_tokens'] = 0.5 * jax.random.normal(kg(), (NF, E), jnp.float32)
    p['pos_embedding'] = 0.5 * jax.random.normal(kg(), (NF, E), jnp.float32)
    p['queries'] = p['query_tokens'] + p['pos_embedding']

    sa_w, sa_b, sa_ow, sa_ob = [], [], [], []
    ca_w, ca_b, ca_ow, ca_ob = [], [], [], []
    f1_w, f1_b, f2_w, f2_b = [], [], [], []
    for _ in range(NL):
        w, b_ = _qkv(kg); sa_w.append(w); sa_b.append(b_)
        w, b_ = _linear(kg, E, E); sa_ow.append(w); sa_ob.append(b_)
        w, b_ = _qkv(kg); ca_w.append(w); ca_b.append(b_)
        w, b_ = _linear(kg, E, E); ca_ow.append(w); ca_ob.append(b_)
        w, b_ = _linear(kg, E, FF); f1_w.append(w); f1_b.append(b_)
        w, b_ = _linear(kg, FF, E); f2_w.append(w); f2_b.append(b_)
    p['sa_w'] = jnp.stack(sa_w); p['sa_b'] = jnp.stack(sa_b)
    p['sa_ow'] = jnp.stack(sa_ow); p['sa_ob'] = jnp.stack(sa_ob)
    p['ca_w'] = jnp.stack(ca_w); p['ca_b'] = jnp.stack(ca_b)
    p['ca_ow'] = jnp.stack(ca_ow); p['ca_ob'] = jnp.stack(ca_ob)
    p['f1_w'] = jnp.stack(f1_w); p['f1_b'] = jnp.stack(f1_b)
    p['f2_w'] = jnp.stack(f2_w); p['f2_b'] = jnp.stack(f2_b)
    p['ln_w'] = jnp.ones((NL, 3, 1, E), jnp.float32)
    p['ln_b'] = jnp.zeros((NL, 3, 1, E), jnp.float32)

    p['gam_w'], p['gam_b'] = _linear(kg, E, E)
    p['bet_w'], p['bet_b'] = _linear(kg, E, E)
    p['fc_w'], p['fc_b'] = _linear(kg, E, M)

    p['g_wi'], p['g_bi'] = _linear(kg, 3, GH)
    gw, gb = [], []
    for _ in range(GL):
        w, b_ = _linear(kg, GH, GH); gw.append(w); gb.append(b_)
    p['g_w'] = jnp.stack(gw); p['g_b'] = jnp.stack(gb)
    p['g_wo'], p['g_bo'] = _linear(kg, GH, 3)

    p['adj'] = make_adj()
    return p


# ----------------------------- pure-JAX reference ----------------------------
def reference_forward(text_emb, p):
    def mha(xq, xkv, w3, b3, wo, bo, mask):
        q = xq @ w3[0] + b3[0]
        k = xkv @ w3[1] + b3[1]
        v = xkv @ w3[2] + b3[2]
        outs = []
        for h in range(NH):
            sl = slice(h * DH, (h + 1) * DH)
            s = (q[:, sl] @ k[:, sl].T) / np.sqrt(DH)
            if mask is not None:
                s = s + mask
            a = jax.nn.softmax(s, axis=-1)
            outs.append(a @ v[:, sl])
        return jnp.concatenate(outs, -1) @ wo + bo

    def ln(x, w, b):
        mu = x.mean(-1, keepdims=True)
        var = ((x - mu) ** 2).mean(-1, keepdims=True)
        return (x - mu) / jnp.sqrt(var + EPS) * w + b

    causal = jnp.where(jnp.asarray(np.tril(np.ones((NF, NF), bool))), 0.0, NEG)

    def decode_one(t):
        x = p['queries']
        mem = t[None, :]
        for l in range(NL):
            sa = mha(x, x, p['sa_w'][l], p['sa_b'][l], p['sa_ow'][l], p['sa_ob'][l], causal)
            x = ln(x + sa, p['ln_w'][l, 0], p['ln_b'][l, 0])
            ca = mha(x, mem, p['ca_w'][l], p['ca_b'][l], p['ca_ow'][l], p['ca_ob'][l], None)
            x = ln(x + ca, p['ln_w'][l, 1], p['ln_b'][l, 1])
            ff = jnp.maximum(x @ p['f1_w'][l] + p['f1_b'][l], 0.0) @ p['f2_w'][l] + p['f2_b'][l]
            x = ln(x + ff, p['ln_w'][l, 2], p['ln_b'][l, 2])
        gamma = mem @ p['gam_w'] + p['gam_b']
        beta = mem @ p['bet_w'] + p['bet_b']
        x = x * (1.0 + gamma) + beta + mem
        return x @ p['fc_w'] + p['fc_b']

    motion = jax.vmap(decode_one)(text_emb)           # (B, NF, M)
    x3 = motion.reshape(B * NF, NJ, 3)
    h = jnp.einsum('njc,ch->njh', x3, p['g_wi']) + p['g_bi']
    for l in range(GL):
        h = jnp.einsum('jk,nkh->njh', p['adj'], h)
        h = jnp.einsum('njh,hg->njg', h, p['g_w'][l]) + p['g_b'][l]
        h = jnp.maximum(h, 0.0)
    y = jnp.einsum('njh,hc->njc', h, p['g_wo']) + p['g_bo']
    return y.reshape(B, NF * NJ * 3)


# ----------------------------- main -------------------------------------------
if __name__ == "__main__":
    key = jax.random.PRNGKey(0)
    params = make_params(jax.random.fold_in(key, 123))
    kparams = prepare_kernel_params(params)
    text_emb = jax.random.normal(jax.random.fold_in(key, 7), (B, E), jnp.float32)

    forward = jax.jit(transformer_motion_predictor)
    out = jax.block_until_ready(forward(text_emb, kparams))
    assert out.shape == (B, NF * NJ * 3), out.shape

    ref = reference_forward(text_emb, params)
    denom = float(jnp.maximum(jnp.max(jnp.abs(ref)), 1.0))
    rel_err = float(jnp.max(jnp.abs(out - ref))) / denom
    assert rel_err < 5e-3, f"mismatch vs pure-JAX reference: rel_err={rel_err}"

    print("KERNEL_OK")
</pallas_src>

<mosaic_0001>
module attributes {stable_mosaic.version = 11 : i64} {
  func.func @fused_motion_kernel(%arg0: i32, %arg1: memref<16x32xf32, #tpu.memory_space<vmem>>, %arg2: memref<16x16xf32, #tpu.memory_space<vmem>>, %arg3: memref<2x16x32xf32, #tpu.memory_space<vmem>>, %arg4: memref<16x32xf32, #tpu.memory_space<vmem>>, %arg5: memref<16x32xf32, #tpu.memory_space<vmem>>, %arg6: memref<1x3x32x32xf32, #tpu.memory_space<vmem>>, %arg7: memref<1x3x1x32xf32, #tpu.memory_space<vmem>>, %arg8: memref<1x32x32xf32, #tpu.memory_space<vmem>>, %arg9: memref<1x1x32xf32, #tpu.memory_space<vmem>>, %arg10: memref<2x32x2048xbf16, #tpu.memory_space<vmem>>, %arg11: memref<2x1x2048xf32, #tpu.memory_space<vmem>>, %arg12: memref<2x2048x32xbf16, #tpu.memory_space<vmem>>, %arg13: memref<2x1x32xf32, #tpu.memory_space<vmem>>, %arg14: memref<2x3x1x32xf32, #tpu.memory_space<vmem>>, %arg15: memref<2x3x1x32xf32, #tpu.memory_space<vmem>>, %arg16: memref<32x704xf32, #tpu.memory_space<vmem>>, %arg17: memref<1x704xf32, #tpu.memory_space<vmem>>, %arg18: memref<1x704x704xbf16, #tpu.memory_space<any>>, %arg19: memref<1x1x704xf32, #tpu.memory_space<vmem>>, %arg20: memref<704x66xf32, #tpu.memory_space<vmem>>, %arg21: memref<1x66xf32, #tpu.memory_space<vmem>>, %arg22: memref<16x66xf32, #tpu.memory_space<vmem>>, %arg23: memref<1x704x704xbf16, #tpu.memory_space<vmem>>, %arg24: memref<1x!tpu.dma_semaphore, #tpu.memory_space<semaphore_mem>>) attributes {dimension_semantics = [#tpu.dimension_semantics<arbitrary>], iteration_bounds = array<i64: 1>, scalar_prefetch = 0 : i64, scratch_operands = 2 : i64, tpu.core_type = #tpu.core_type<tc>, window_params = [{pipeline_mode = #tpu.pipeline_mode<synchronous>, transform_indices = @transform_0, window_bounds = array<i64: 16, 32>}, {pipeline_mode = #tpu.pipeline_mode<synchronous>, transform_indices = @transform_1, window_bounds = array<i64: 16, 16>}, {pipeline_mode = #tpu.pipeline_mode<synchronous>, transform_indices = @transform_2, window_bounds = array<i64: 2, 16, 32>}, {pipeline_mode = #tpu.pipeline_mode<synchronous>, transform_indices = @transform_3, window_bounds = array<i64: 16, 32>}, {pipeline_mode = #tpu.pipeline_mode<synchronous>, transform_indices = @transform_4, window_bounds = array<i64: 16, 32>}, {pipeline_mode = #tpu.pipeline_mode<synchronous>, transform_indices = @transform_5, window_bounds = array<i64: 1, 3, 32, 32>}, {pipeline_mode = #tpu.pipeline_mode<synchronous>, transform_indices = @transform_6, window_bounds = array<i64: 1, 3, 1, 32>}, {pipeline_mode = #tpu.pipeline_mode<synchronous>, transform_indices = @transform_7, window_bounds = array<i64: 1, 32, 32>}, {pipeline_mode = #tpu.pipeline_mode<synchronous>, transform_indices = @transform_8, window_bounds = array<i64: 1, 1, 32>}, {pipeline_mode = #tpu.pipeline_mode<synchronous>, transform_indices = @transform_9, window_bounds = array<i64: 2, 32, 2048>}, {pipeline_mode = #tpu.pipeline_mode<synchronous>, transform_indices = @transform_10, window_bounds = array<i64: 2, 1, 2048>}, {pipeline_mode = #tpu.pipeline_mode<synchronous>, transform_indices = @transform_11, window_bounds = array<i64: 2, 2048, 32>}, {pipeline_mode = #tpu.pipeline_mode<synchronous>, transform_indices = @transform_12, window_bounds = array<i64: 2, 1, 32>}, {pipeline_mode = #tpu.pipeline_mode<synchronous>, transform_indices = @transform_13, window_bounds = array<i64: 2, 3, 1, 32>}, {pipeline_mode = #tpu.pipeline_mode<synchronous>, transform_indices = @transform_14, window_bounds = array<i64: 2, 3, 1, 32>}, {pipeline_mode = #tpu.pipeline_mode<synchronous>, transform_indices = @transform_15, window_bounds = array<i64: 32, 704>}, {pipeline_mode = #tpu.pipeline_mode<synchronous>, transform_indices = @transform_16, window_bounds = array<i64: 1, 704>}, {}, {pipeline_mode = #tpu.pipeline_mode<synchronous>, transform_indices = @transform_18, window_bounds = array<i64: 1, 1, 704>}, {pipeline_mode = #tpu.pipeline_mode<synchronous>, transform_indices = @transform_19, window_bounds = array<i64: 704, 66>}, {pipeline_mode = #tpu.pipeline_mode<synchronous>, transform_indices = @transform_20, window_bounds = array<i64: 1, 66>}, {pipeline_mode = #tpu.pipeline_mode<synchronous>, transform_indices = @transform_21, window_bounds = array<i64: 16, 66>}]} {
    %c0_i32 = arith.constant 0 : i32
    %0 = tpu.memref_slice %arg24[%c0_i32] : memref<1x!tpu.dma_semaphore, #tpu.memory_space<semaphore_mem>> -> memref<1x!tpu.dma_semaphore, #tpu.memory_space<semaphore_mem>>
    %1 = tpu.memref_squeeze %0 : memref<1x!tpu.dma_semaphore, #tpu.memory_space<semaphore_mem>> -> memref<!tpu.dma_semaphore, #tpu.memory_space<semaphore_mem>>
    tpu.enqueue_dma source(%arg18 : memref<1x704x704xbf16, #tpu.memory_space<any>>) target(%arg23 : memref<1x704x704xbf16, #tpu.memory_space<vmem>>) target_semaphore(%1 : memref<!tpu.dma_semaphore, #tpu.memory_space<semaphore_mem>>)
    %c0 = arith.constant 0 : index
    %c0_0 = arith.constant 0 : index
    %2 = vector.load %arg1[%c0, %c0_0] : memref<16x32xf32, #tpu.memory_space<vmem>>, vector<16x32xf32>
    %c0_1 = arith.constant 0 : index
    %c0_2 = arith.constant 0 : index
    %3 = vector.load %arg2[%c0_1, %c0_2] : memref<16x16xf32, #tpu.memory_space<vmem>>, vector<16x16xf32>
    %c0_3 = arith.constant 0 : index
    %c0_4 = arith.constant 0 : index
    %c0_5 = arith.constant 0 : index
    %c0_6 = arith.constant 0 : index
    %4 = vector.load %arg14[%c0_3, %c0_4, %c0_5, %c0_6] : memref<2x3x1x32xf32, #tpu.memory_space<vmem>>, vector<1x3x1x32xf32>
    %5 = vector.shape_cast %4 : vector<1x3x1x32xf32> to vector<3x1x32xf32>
    %c0_7 = arith.constant 0 : index
    %c0_8 = arith.constant 0 : index
    %c0_9 = arith.constant 0 : index
    %c0_10 = arith.constant 0 : index
    %6 = vector.load %arg15[%c0_7, %c0_8, %c0_9, %c0_10] : memref<2x3x1x32xf32, #tpu.memory_space<vmem>>, vector<1x3x1x32xf32>
    %7 = vector.shape_cast %6 : vector<1x3x1x32xf32> to vector<3x1x32xf32>
    %c0_11 = arith.constant 0 : index
    %c0_12 = arith.constant 0 : index
    %c0_13 = arith.constant 0 : index
    %8 = vector.load %arg3[%c0_11, %c0_12, %c0_13] : memref<2x16x32xf32, #tpu.memory_space<vmem>>, vector<1x16x32xf32>
    %9 = vector.shape_cast %8 : vector<1x16x32xf32> to vector<16x32xf32>
    %10 = arith.addf %2, %9 : vector<16x32xf32>
    %11 = vector.extract_strided_slice %5 {offsets = [1, 0, 0], sizes = [1, 1, 32], strides = [1, 1, 1]} : vector<3x1x32xf32> to vector<1x1x32xf32>
    %12 = vector.shape_cast %11 : vector<1x1x32xf32> to vector<1x32xf32>
    %13 = vector.extract_strided_slice %7 {offsets = [1, 0, 0], sizes = [1, 1, 32], strides = [1, 1, 1]} : vector<3x1x32xf32> to vector<1x1x32xf32>
    %14 = vector.shape_cast %13 : vector<1x1x32xf32> to vector<1x32xf32>
    %cst = arith.constant dense<0.000000e+00> : vector<16xf32>
    %15 = vector.multi_reduction <add>, %10, %cst [1] : vector<16x32xf32> to vector<16xf32>
    %16 = vector.shape_cast %15 : vector<16xf32> to vector<16x1xf32>
    %cst_14 = arith.constant 3.200000e+01 : f32
    %17 = vector.broadcast %cst_14 : f32 to vector<16x1xf32>
    %18 = arith.divf %16, %17 : vector<16x1xf32>
    %19 = vector.broadcast %18 : vector<16x1xf32> to vector<16x32xf32>
    %20 = arith.subf %10, %19 : vector<16x32xf32>
    %21 = arith.mulf %20, %20 : vector<16x32xf32>
    %cst_15 = arith.constant dense<0.000000e+00> : vector<16xf32>
    %22 = vector.multi_reduction <add>, %21, %cst_15 [1] : vector<16x32xf32> to vector<16xf32>
    %23 = vector.shape_cast %22 : vector<16xf32> to vector<16x1xf32>
    %cst_16 = arith.constant 3.200000e+01 : f32
    %24 = vector.broadcast %cst_16 : f32 to vector<16x1xf32>
    %25 = arith.divf %23, %24 : vector<16x1xf32>
    %26 = vector.broadcast %18 : vector<16x1xf32> to vector<16x32xf32>
    %27 = arith.subf %10, %26 : vector<16x32xf32>
    %cst_17 = arith.constant 9.99999974E-6 : f32
    %28 = vector.broadcast %cst_17 : f32 to vector<16x1xf32>
    %29 = arith.addf %25, %28 : vector<16x1xf32>
    %30 = math.rsqrt %29 : vector<16x1xf32>
    %31 = vector.broadcast %30 : vector<16x1xf32> to vector<16x32xf32>
    %32 = arith.mulf %27, %31 : vector<16x32xf32>
    %33 = vector.broadcast %12 : vector<1x32xf32> to vector<16x32xf32>
    %34 = arith.mulf %32, %33 : vector<16x32xf32>
    %35 = vector.broadcast %14 : vector<1x32xf32> to vector<16x32xf32>
    %36 = arith.addf %34, %35 : vector<16x32xf32>
    %c0_18 = arith.constant 0 : index
    %c0_19 = arith.constant 0 : index
    %c0_20 = arith.constant 0 : index
    %37 = vector.load %arg10[%c0_18, %c0_19, %c0_20] : memref<2x32x2048xbf16, #tpu.memory_space<vmem>>, vector<1x32x2048xbf16>
    %38 = vector.shape_cast %37 : vector<1x32x2048xbf16> to vector<32x2048xbf16>
    %39 = arith.extf %38 : vector<32x2048xbf16> to vector<32x2048xf32>
    %c0_21 = arith.constant 0 : index
    %c0_22 = arith.constant 0 : index
    %c0_23 = arith.constant 0 : index
    %40 = vector.load %arg12[%c0_21, %c0_22, %c0_23] : memref<2x2048x32xbf16, #tpu.memory_space<vmem>>, vector<1x2048x32xbf16>
    %41 = vector.shape_cast %40 : vector<1x2048x32xbf16> to vector<2048x32xbf16>
    %42 = arith.extf %41 : vector<2048x32xbf16> to vector<2048x32xf32>
    %cst_24 = arith.constant dense<0.000000e+00> : vector<16x2048xf32>
    %43 = tpu.matmul %36, %39, %cst_24 {dimension_numbers = #tpu.dot_dimension_numbers<[1], [0], [0], [1], [0, 0, 1, 1], [], []>} : vector<16x32xf32>, vector<32x2048xf32>, vector<16x2048xf32> -> vector<16x2048xf32>
    %c0_25 = arith.constant 0 : index
    %c0_26 = arith.constant 0 : index
    %c0_27 = arith.constant 0 : index
    %44 = vector.load %arg11[%c0_25, %c0_26, %c0_27] : memref<2x1x2048xf32, #tpu.memory_space<vmem>>, vector<1x1x2048xf32>
    %45 = vector.shape_cast %44 : vector<1x1x2048xf32> to vector<1x2048xf32>
    %46 = vector.broadcast %45 : vector<1x2048xf32> to vector<16x2048xf32>
    %47 = arith.addf %43, %46 : vector<16x2048xf32>
    %cst_28 = arith.constant 0.000000e+00 : f32
    %48 = vector.broadcast %cst_28 : f32 to vector<16x2048xf32>
    %49 = arith.maximumf %47, %48 : vector<16x2048xf32>
    %cst_29 = arith.constant dense<0.000000e+00> : vector<16x32xf32>
    %50 = tpu.matmul %49, %42, %cst_29 {dimension_numbers = #tpu.dot_dimension_numbers<[1], [0], [0], [1], [0, 0, 1, 1], [], []>} : vector<16x2048xf32>, vector<2048x32xf32>, vector<16x32xf32> -> vector<16x32xf32>
    %c0_30 = arith.constant 0 : index
    %c0_31 = arith.constant 0 : index
    %c0_32 = arith.constant 0 : index
    %51 = vector.load %arg13[%c0_30, %c0_31, %c0_32] : memref<2x1x32xf32, #tpu.memory_space<vmem>>, vector<1x1x32xf32>
    %52 = vector.shape_cast %51 : vector<1x1x32xf32> to vector<1x32xf32>
    %53 = vector.broadcast %52 : vector<1x32xf32> to vector<16x32xf32>
    %54 = arith.addf %50, %53 : vector<16x32xf32>
    %55 = arith.addf %36, %54 : vector<16x32xf32>
    %56 = vector.extract_strided_slice %5 {offsets = [2, 0, 0], sizes = [1, 1, 32], strides = [1, 1, 1]} : vector<3x1x32xf32> to vector<1x1x32xf32>
    %57 = vector.shape_cast %56 : vector<1x1x32xf32> to vector<1x32xf32>
    %58 = vector.extract_strided_slice %7 {offsets = [2, 0, 0], sizes = [1, 1, 32], strides = [1, 1, 1]} : vector<3x1x32xf32> to vector<1x1x32xf32>
    %59 = vector.shape_cast %58 : vector<1x1x32xf32> to vector<1x32xf32>
    %cst_33 = arith.constant dense<0.000000e+00> : vector<16xf32>
    %60 = vector.multi_reduction <add>, %55, %cst_33 [1] : vector<16x32xf32> to vector<16xf32>
    %61 = vector.shape_cast %60 : vector<16xf32> to vector<16x1xf32>
    %cst_34 = arith.constant 3.200000e+01 : f32
    %62 = vector.broadcast %cst_34 : f32 to vector<16x1xf32>
    %63 = arith.divf %61, %62 : vector<16x1xf32>
    %64 = vector.broadcast %63 : vector<16x1xf32> to vector<16x32xf32>
    %65 = arith.subf %55, %64 : vector<16x32xf32>
    %66 = arith.mulf %65, %65 : vector<16x32xf32>
    %cst_35 = arith.constant dense<0.000000e+00> : vector<16xf32>
    %67 = vector.multi_reduction <add>, %66, %cst_35 [1] : vector<16x32xf32> to vector<16xf32>
    %68 = vector.shape_cast %67 : vector<16xf32> to vector<16x1xf32>
    %cst_36 = arith.constant 3.200000e+01 : f32
    %69 = vector.broadcast %cst_36 : f32 to vector<16x1xf32>
    %70 = arith.divf %68, %69 : vector<16x1xf32>
    %71 = vector.broadcast %63 : vector<16x1xf32> to vector<16x32xf32>
    %72 = arith.subf %55, %71 : vector<16x32xf32>
    %cst_37 = arith.constant 9.99999974E-6 : f32
    %73 = vector.broadcast %cst_37 : f32 to vector<16x1xf32>
    %74 = arith.addf %70, %73 : vector<16x1xf32>
    %75 = math.rsqrt %74 : vector<16x1xf32>
    %76 = vector.broadcast %75 : vector<16x1xf32> to vector<16x32xf32>
    %77 = arith.mulf %72, %76 : vector<16x32xf32>
    %78 = vector.broadcast %57 : vector<1x32xf32> to vector<16x32xf32>
    %79 = arith.mulf %77, %78 : vector<16x32xf32>
    %80 = vector.broadcast %59 : vector<1x32xf32> to vector<16x32xf32>
    %81 = arith.addf %79, %80 : vector<16x32xf32>
    %c1 = arith.constant 1 : index
    %c0_38 = arith.constant 0 : index
    %c0_39 = arith.constant 0 : index
    %c0_40 = arith.constant 0 : index
    %82 = vector.load %arg14[%c1, %c0_38, %c0_39, %c0_40] : memref<2x3x1x32xf32, #tpu.memory_space<vmem>>, vector<1x3x1x32xf32>
    %83 = vector.shape_cast %82 : vector<1x3x1x32xf32> to vector<3x1x32xf32>
    %c1_41 = arith.constant 1 : index
    %c0_42 = arith.constant 0 : index
    %c0_43 = arith.constant 0 : index
    %c0_44 = arith.constant 0 : index
    %84 = vector.load %arg15[%c1_41, %c0_42, %c0_43, %c0_44] : memref<2x3x1x32xf32, #tpu.memory_space<vmem>>, vector<1x3x1x32xf32>
    %85 = vector.shape_cast %84 : vector<1x3x1x32xf32> to vector<3x1x32xf32>
    %c0_45 = arith.constant 0 : index
    %c0_46 = arith.constant 0 : index
    %c0_47 = arith.constant 0 : index
    %c0_48 = arith.constant 0 : index
    %86 = vector.load %arg6[%c0_45, %c0_46, %c0_47, %c0_48] : memref<1x3x32x32xf32, #tpu.memory_space<vmem>>, vector<1x3x32x32xf32>
    %87 = vector.shape_cast %86 : vector<1x3x32x32xf32> to vector<3x32x32xf32>
    %c0_49 = arith.constant 0 : index
    %c0_50 = arith.constant 0 : index
    %c0_51 = arith.constant 0 : index
    %c0_52 = arith.constant 0 : index
    %88 = vector.load %arg7[%c0_49, %c0_50, %c0_51, %c0_52] : memref<1x3x1x32xf32, #tpu.memory_space<vmem>>, vector<1x3x1x32xf32>
    %89 = vector.shape_cast %88 : vector<1x3x1x32xf32> to vector<3x1x32xf32>
    %c0_53 = arith.constant 0 : index
    %c0_54 = arith.constant 0 : index
    %c0_55 = arith.constant 0 : index
    %90 = vector.load %arg8[%c0_53, %c0_54, %c0_55] : memref<1x32x32xf32, #tpu.memory_space<vmem>>, vector<1x32x32xf32>
    %91 = vector.shape_cast %90 : vector<1x32x32xf32> to vector<32x32xf32>
    %c0_56 = arith.constant 0 : index
    %c0_57 = arith.constant 0 : index
    %c0_58 = arith.constant 0 : index
    %92 = vector.load %arg9[%c0_56, %c0_57, %c0_58] : memref<1x1x32xf32, #tpu.memory_space<vmem>>, vector<1x1x32xf32>
    %93 = vector.shape_cast %92 : vector<1x1x32xf32> to vector<1x32xf32>
    %94 = vector.extract_strided_slice %87 {offsets = [0, 0, 0], sizes = [1, 32, 32], strides = [1, 1, 1]} : vector<3x32x32xf32> to vector<1x32x32xf32>
    %95 = vector.shape_cast %94 : vector<1x32x32xf32> to vector<32x32xf32>
    %cst_59 = arith.constant dense<0.000000e+00> : vector<16x32xf32>
    %96 = tpu.matmul %81, %95, %cst_59 {dimension_numbers = #tpu.dot_dimension_numbers<[1], [0], [0], [1], [0, 0, 1, 1], [], []>} : vector<16x32xf32>, vector<32x32xf32>, vector<16x32xf32> -> vector<16x32xf32>
    %97 = vector.extract_strided_slice %89 {offsets = [0, 0, 0], sizes = [1, 1, 32], strides = [1, 1, 1]} : vector<3x1x32xf32> to vector<1x1x32xf32>
    %98 = vector.shape_cast %97 : vector<1x1x32xf32> to vector<1x32xf32>
    %99 = vector.broadcast %98 : vector<1x32xf32> to vector<16x32xf32>
    %100 = arith.addf %96, %99 : vector<16x32xf32>
    %101 = vector.extract_strided_slice %87 {offsets = [1, 0, 0], sizes = [1, 32, 32], strides = [1, 1, 1]} : vector<3x32x32xf32> to vector<1x32x32xf32>
    %102 = vector.shape_cast %101 : vector<1x32x32xf32> to vector<32x32xf32>
    %cst_60 = arith.constant dense<0.000000e+00> : vector<16x32xf32>
    %103 = tpu.matmul %81, %102, %cst_60 {dimension_numbers = #tpu.dot_dimension_numbers<[1], [0], [0], [1], [0, 0, 1, 1], [], []>} : vector<16x32xf32>, vector<32x32xf32>, vector<16x32xf32> -> vector<16x32xf32>
    %104 = vector.extract_strided_slice %89 {offsets = [1, 0, 0], sizes = [1, 1, 32], strides = [1, 1, 1]} : vector<3x1x32xf32> to vector<1x1x32xf32>
    %105 = vector.shape_cast %104 : vector<1x1x32xf32> to vector<1x32xf32>
    %106 = vector.broadcast %105 : vector<1x32xf32> to vector<16x32xf32>
    %107 = arith.addf %103, %106 : vector<16x32xf32>
    %108 = vector.extract_strided_slice %87 {offsets = [2, 0, 0], sizes = [1, 32, 32], strides = [1, 1, 1]} : vector<3x32x32xf32> to vector<1x32x32xf32>
    %109 = vector.shape_cast %108 : vector<1x32x32xf32> to vector<32x32xf32>
    %cst_61 = arith.constant dense<0.000000e+00> : vector<16x32xf32>
    %110 = tpu.matmul %81, %109, %cst_61 {dimension_numbers = #tpu.dot_dimension_numbers<[1], [0], [0], [1], [0, 0, 1, 1], [], []>} : vector<16x32xf32>, vector<32x32xf32>, vector<16x32xf32> -> vector<16x32xf32>
    %111 = vector.extract_strided_slice %89 {offsets = [2, 0, 0], sizes = [1, 1, 32], strides = [1, 1, 1]} : vector<3x1x32xf32> to vector<1x1x32xf32>
    %112 = vector.shape_cast %111 : vector<1x1x32xf32> to vector<1x32xf32>
    %113 = vector.broadcast %112 : vector<1x32xf32> to vector<16x32xf32>
    %114 = arith.addf %110, %113 : vector<16x32xf32>
    %cst_62 = arith.constant 0.000000e+00 : f32
    %115 = vector.broadcast %cst_62 : f32 to vector<16x32xf32>
    %116 = vector.extract_strided_slice %100 {offsets = [0, 0], sizes = [16, 8], strides = [1, 1]} : vector<16x32xf32> to vector<16x8xf32>
    %117 = vector.extract_strided_slice %107 {offsets = [0, 0], sizes = [16, 8], strides = [1, 1]} : vector<16x32xf32> to vector<16x8xf32>
    %cst_63 = arith.constant dense<0.000000e+00> : vector<16x16xf32>
    %118 = tpu.matmul %116, %117, %cst_63 {dimension_numbers = #tpu.dot_dimension_numbers<[1], [1], [0], [0], [0, 0, 1, 0], [], []>} : vector<16x8xf32>, vector<16x8xf32>, vector<16x16xf32> -> vector<16x16xf32>
    %cst_64 = arith.constant 0.353553385 : f32
    %119 = vector.broadcast %cst_64 : f32 to vector<16x16xf32>
    %120 = arith.mulf %118, %119 : vector<16x16xf32>
    %121 = arith.addf %120, %3 : vector<16x16xf32>
    %cst_65 = arith.constant dense<0xFF800000> : vector<16xf32>
    %122 = vector.multi_reduction <maximumf>, %121, %cst_65 [1] : vector<16x16xf32> to vector<16xf32>
    %123 = vector.shape_cast %122 : vector<16xf32> to vector<16x1xf32>
    %124 = vector.broadcast %123 : vector<16x1xf32> to vector<16x16xf32>
    %125 = arith.subf %121, %124 : vector<16x16xf32>
    %126 = math.exp %125 : vector<16x16xf32>
    %cst_66 = arith.constant dense<0.000000e+00> : vector<16xf32>
    %127 = vector.multi_reduction <add>, %126, %cst_66 [1] : vector<16x16xf32> to vector<16xf32>
    %128 = vector.shape_cast %127 : vector<16xf32> to vector<16x1xf32>
    %129 = tpu.reciprocal %128 {approx = true} : vector<16x1xf32> -> vector<16x1xf32>
    %130 = vector.broadcast %129 : vector<16x1xf32> to vector<16x16xf32>
    %131 = arith.mulf %126, %130 : vector<16x16xf32>
    %132 = vector.extract_strided_slice %114 {offsets = [0, 0], sizes = [16, 8], strides = [1, 1]} : vector<16x32xf32> to vector<16x8xf32>
    %cst_67 = arith.constant dense<0.000000e+00> : vector<16x8xf32>
    %133 = tpu.matmul %131, %132, %cst_67 {dimension_numbers = #tpu.dot_dimension_numbers<[1], [0], [0], [1], [0, 0, 1, 1], [], []>} : vector<16x16xf32>, vector<16x8xf32>, vector<16x8xf32> -> vector<16x8xf32>
    %134 = vector.extract_strided_slice %91 {offsets = [0, 0], sizes = [8, 32], strides = [1, 1]} : vector<32x32xf32> to vector<8x32xf32>
    %cst_68 = arith.constant dense<0.000000e+00> : vector<16x32xf32>
    %135 = tpu.matmul %133, %134, %cst_68 {dimension_numbers = #tpu.dot_dimension_numbers<[1], [0], [0], [1], [0, 0, 1, 1], [], []>} : vector<16x8xf32>, vector<8x32xf32>, vector<16x32xf32> -> vector<16x32xf32>
    %136 = arith.addf %115, %135 : vector<16x32xf32>
    %137 = vector.extract_strided_slice %100 {offsets = [0, 8], sizes = [16, 8], strides = [1, 1]} : vector<16x32xf32> to vector<16x8xf32>
    %138 = vector.extract_strided_slice %107 {offsets = [0, 8], sizes = [16, 8], strides = [1, 1]} : vector<16x32xf32> to vector<16x8xf32>
    %cst_69 = arith.constant dense<0.000000e+00> : vector<16x16xf32>
    %139 = tpu.matmul %137, %138, %cst_69 {dimension_numbers = #tpu.dot_dimension_numbers<[1], [1], [0], [0], [0, 0, 1, 0], [], []>} : vector<16x8xf32>, vector<16x8xf32>, vector<16x16xf32> -> vector<16x16xf32>
    %cst_70 = arith.constant 0.353553385 : f32
    %140 = vector.broadcast %cst_70 : f32 to vector<16x16xf32>
    %141 = arith.mulf %139, %140 : vector<16x16xf32>
    %142 = arith.addf %141, %3 : vector<16x16xf32>
    %cst_71 = arith.constant dense<0xFF800000> : vector<16xf32>
    %143 = vector.multi_reduction <maximumf>, %142, %cst_71 [1] : vector<16x16xf32> to vector<16xf32>
    %144 = vector.shape_cast %143 : vector<16xf32> to vector<16x1xf32>
    %145 = vector.broadcast %144 : vector<16x1xf32> to vector<16x16xf32>
    %146 = arith.subf %142, %145 : vector<16x16xf32>
    %147 = math.exp %146 : vector<16x16xf32>
    %cst_72 = arith.constant dense<0.000000e+00> : vector<16xf32>
    %148 = vector.multi_reduction <add>, %147, %cst_72 [1] : vector<16x16xf32> to vector<16xf32>
    %149 = vector.shape_cast %148 : vector<16xf32> to vector<16x1xf32>
    %150 = tpu.reciprocal %149 {approx = true} : vector<16x1xf32> -> vector<16x1xf32>
    %151 = vector.broadcast %150 : vector<16x1xf32> to vector<16x16xf32>
    %152 = arith.mulf %147, %151 : vector<16x16xf32>
    %153 = vector.extract_strided_slice %114 {offsets = [0, 8], sizes = [16, 8], strides = [1, 1]} : vector<16x32xf32> to vector<16x8xf32>
    %cst_73 = arith.constant dense<0.000000e+00> : vector<16x8xf32>
    %154 = tpu.matmul %152, %153, %cst_73 {dimension_numbers = #tpu.dot_dimension_numbers<[1], [0], [0], [1], [0, 0, 1, 1], [], []>} : vector<16x16xf32>, vector<16x8xf32>, vector<16x8xf32> -> vector<16x8xf32>
    %155 = vector.extract_strided_slice %91 {offsets = [8, 0], sizes = [8, 32], strides = [1, 1]} : vector<32x32xf32> to vector<8x32xf32>
    %cst_74 = arith.constant dense<0.000000e+00> : vector<16x32xf32>
    %156 = tpu.matmul %154, %155, %cst_74 {dimension_numbers = #tpu.dot_dimension_numbers<[1], [0], [0], [1], [0, 0, 1, 1], [], []>} : vector<16x8xf32>, vector<8x32xf32>, vector<16x32xf32> -> vector<16x32xf32>
    %157 = arith.addf %136, %156 : vector<16x32xf32>
    %158 = vector.extract_strided_slice %100 {offsets = [0, 16], sizes = [16, 8], strides = [1, 1]} : vector<16x32xf32> to vector<16x8xf32>
    %159 = vector.extract_strided_slice %107 {offsets = [0, 16], sizes = [16, 8], strides = [1, 1]} : vector<16x32xf32> to vector<16x8xf32>
    %cst_75 = arith.constant dense<0.000000e+00> : vector<16x16xf32>
    %160 = tpu.matmul %158, %159, %cst_75 {dimension_numbers = #tpu.dot_dimension_numbers<[1], [1], [0], [0], [0, 0, 1, 0], [], []>} : vector<16x8xf32>, vector<16x8xf32>, vector<16x16xf32> -> vector<16x16xf32>
    %cst_76 = arith.constant 0.353553385 : f32
    %161 = vector.broadcast %cst_76 : f32 to vector<16x16xf32>
    %162 = arith.mulf %160, %161 : vector<16x16xf32>
    %163 = arith.addf %162, %3 : vector<16x16xf32>
    %cst_77 = arith.constant dense<0xFF800000> : vector<16xf32>
    %164 = vector.multi_reduction <maximumf>, %163, %cst_77 [1] : vector<16x16xf32> to vector<16xf32>
    %165 = vector.shape_cast %164 : vector<16xf32> to vector<16x1xf32>
    %166 = vector.broadcast %165 : vector<16x1xf32> to vector<16x16xf32>
    %167 = arith.subf %163, %166 : vector<16x16xf32>
    %168 = math.exp %167 : vector<16x16xf32>
    %cst_78 = arith.constant dense<0.000000e+00> : vector<16xf32>
    %169 = vector.multi_reduction <add>, %168, %cst_78 [1] : vector<16x16xf32> to vector<16xf32>
    %170 = vector.shape_cast %169 : vector<16xf32> to vector<16x1xf32>
    %171 = tpu.reciprocal %170 {approx = true} : vector<16x1xf32> -> vector<16x1xf32>
    %172 = vector.broadcast %171 : vector<16x1xf32> to vector<16x16xf32>
    %173 = arith.mulf %168, %172 : vector<16x16xf32>
    %174 = vector.extract_strided_slice %114 {offsets = [0, 16], sizes = [16, 8], strides = [1, 1]} : vector<16x32xf32> to vector<16x8xf32>
    %cst_79 = arith.constant dense<0.000000e+00> : vector<16x8xf32>
    %175 = tpu.matmul %173, %174, %cst_79 {dimension_numbers = #tpu.dot_dimension_numbers<[1], [0], [0], [1], [0, 0, 1, 1], [], []>} : vector<16x16xf32>, vector<16x8xf32>, vector<16x8xf32> -> vector<16x8xf32>
    %176 = vector.extract_strided_slice %91 {offsets = [16, 0], sizes = [8, 32], strides = [1, 1]} : vector<32x32xf32> to vector<8x32xf32>
    %cst_80 = arith.constant dense<0.000000e+00> : vector<16x32xf32>
    %177 = tpu.matmul %175, %176, %cst_80 {dimension_numbers = #tpu.dot_dimension_numbers<[1], [0], [0], [1], [0, 0, 1, 1], [], []>} : vector<16x8xf32>, vector<8x32xf32>, vector<16x32xf32> -> vector<16x32xf32>
    %178 = arith.addf %157, %177 : vector<16x32xf32>
    %179 = vector.extract_strided_slice %100 {offsets = [0, 24], sizes = [16, 8], strides = [1, 1]} : vector<16x32xf32> to vector<16x8xf32>
    %180 = vector.extract_strided_slice %107 {offsets = [0, 24], sizes = [16, 8], strides = [1, 1]} : vector<16x32xf32> to vector<16x8xf32>
    %cst_81 = arith.constant dense<0.000000e+00> : vector<16x16xf32>
    %181 = tpu.matmul %179, %180, %cst_81 {dimension_numbers = #tpu.dot_dimension_numbers<[1], [1], [0], [0], [0, 0, 1, 0], [], []>} : vector<16x8xf32>, vector<16x8xf32>, vector<16x16xf32> -> vector<16x16xf32>
    %cst_82 = arith.constant 0.353553385 : f32
    %182 = vector.broadcast %cst_82 : f32 to vector<16x16xf32>
    %183 = arith.mulf %181, %182 : vector<16x16xf32>
    %184 = arith.addf %183, %3 : vector<16x16xf32>
    %cst_83 = arith.constant dense<0xFF800000> : vector<16xf32>
    %185 = vector.multi_reduction <maximumf>, %184, %cst_83 [1] : vector<16x16xf32> to vector<16xf32>
    %186 = vector.shape_cast %185 : vector<16xf32> to vector<16x1xf32>
    %187 = vector.broadcast %186 : vector<16x1xf32> to vector<16x16xf32>
    %188 = arith.subf %184, %187 : vector<16x16xf32>
    %189 = math.exp %188 : vector<16x16xf32>
    %cst_84 = arith.constant dense<0.000000e+00> : vector<16xf32>
    %190 = vector.multi_reduction <add>, %189, %cst_84 [1] : vector<16x16xf32> to vector<16xf32>
    %191 = vector.shape_cast %190 : vector<16xf32> to vector<16x1xf32>
    %192 = tpu.reciprocal %191 {approx = true} : vector<16x1xf32> -> vector<16x1xf32>
    %193 = vector.broadcast %192 : vector<16x1xf32> to vector<16x16xf32>
    %194 = arith.mulf %189, %193 : vector<16x16xf32>
    %195 = vector.extract_strided_slice %114 {offsets = [0, 24], sizes = [16, 8], strides = [1, 1]} : vector<16x32xf32> to vector<16x8xf32>
    %cst_85 = arith.constant dense<0.000000e+00> : vector<16x8xf32>
    %196 = tpu.matmul %194, %195, %cst_85 {dimension_numbers = #tpu.dot_dimension_numbers<[1], [0], [0], [1], [0, 0, 1, 1], [], []>} : vector<16x16xf32>, vector<16x8xf32>, vector<16x8xf32> -> vector<16x8xf32>
    %197 = vector.extract_strided_slice %91 {offsets = [24, 0], sizes = [8, 32], strides = [1, 1]} : vector<32x32xf32> to vector<8x32xf32>
    %cst_86 = arith.constant dense<0.000000e+00> : vector<16x32xf32>
    %198 = tpu.matmul %196, %197, %cst_86 {dimension_numbers = #tpu.dot_dimension_numbers<[1], [0], [0], [1], [0, 0, 1, 1], [], []>} : vector<16x8xf32>, vector<8x32xf32>, vector<16x32xf32> -> vector<16x32xf32>
    %199 = arith.addf %178, %198 : vector<16x32xf32>
    %200 = vector.broadcast %93 : vector<1x32xf32> to vector<16x32xf32>
    %201 = arith.addf %199, %200 : vector<16x32xf32>
    %202 = arith.addf %81, %201 : vector<16x32xf32>
    %203 = vector.extract_strided_slice %83 {offsets = [0, 0, 0], sizes = [1, 1, 32], strides = [1, 1, 1]} : vector<3x1x32xf32> to vector<1x1x32xf32>
    %204 = vector.shape_cast %203 : vector<1x1x32xf32> to vector<1x32xf32>
    %205 = vector.extract_strided_slice %85 {offsets = [0, 0, 0], sizes = [1, 1, 32], strides = [1, 1, 1]} : vector<3x1x32xf32> to vector<1x1x32xf32>
    %206 = vector.shape_cast %205 : vector<1x1x32xf32> to vector<1x32xf32>
    %cst_87 = arith.constant dense<0.000000e+00> : vector<16xf32>
    %207 = vector.multi_reduction <add>, %202, %cst_87 [1] : vector<16x32xf32> to vector<16xf32>
    %208 = vector.shape_cast %207 : vector<16xf32> to vector<16x1xf32>
    %cst_88 = arith.constant 3.200000e+01 : f32
    %209 = vector.broadcast %cst_88 : f32 to vector<16x1xf32>
    %210 = arith.divf %208, %209 : vector<16x1xf32>
    %211 = vector.broadcast %210 : vector<16x1xf32> to vector<16x32xf32>
    %212 = arith.subf %202, %211 : vector<16x32xf32>
    %213 = arith.mulf %212, %212 : vector<16x32xf32>
    %cst_89 = arith.constant dense<0.000000e+00> : vector<16xf32>
    %214 = vector.multi_reduction <add>, %213, %cst_89 [1] : vector<16x32xf32> to vector<16xf32>
    %215 = vector.shape_cast %214 : vector<16xf32> to vector<16x1xf32>
    %cst_90 = arith.constant 3.200000e+01 : f32
    %216 = vector.broadcast %cst_90 : f32 to vector<16x1xf32>
    %217 = arith.divf %215, %216 : vector<16x1xf32>
    %218 = vector.broadcast %210 : vector<16x1xf32> to vector<16x32xf32>
    %219 = arith.subf %202, %218 : vector<16x32xf32>
    %cst_91 = arith.constant 9.99999974E-6 : f32
    %220 = vector.broadcast %cst_91 : f32 to vector<16x1xf32>
    %221 = arith.addf %217, %220 : vector<16x1xf32>
    %222 = math.rsqrt %221 : vector<16x1xf32>
    %223 = vector.broadcast %222 : vector<16x1xf32> to vector<16x32xf32>
    %224 = arith.mulf %219, %223 : vector<16x32xf32>
    %225 = vector.broadcast %204 : vector<1x32xf32> to vector<16x32xf32>
    %226 = arith.mulf %224, %225 : vector<16x32xf32>
    %227 = vector.broadcast %206 : vector<1x32xf32> to vector<16x32xf32>
    %228 = arith.addf %226, %227 : vector<16x32xf32>
    %c1_92 = arith.constant 1 : index
    %c0_93 = arith.constant 0 : index
    %c0_94 = arith.constant 0 : index
    %229 = vector.load %arg3[%c1_92, %c0_93, %c0_94] : memref<2x16x32xf32, #tpu.memory_space<vmem>>, vector<1x16x32xf32>
    %230 = vector.shape_cast %229 : vector<1x16x32xf32> to vector<16x32xf32>
    %231 = arith.addf %228, %230 : vector<16x32xf32>
    %232 = vector.extract_strided_slice %83 {offsets = [1, 0, 0], sizes = [1, 1, 32], strides = [1, 1, 1]} : vector<3x1x32xf32> to vector<1x1x32xf32>
    %233 = vector.shape_cast %232 : vector<1x1x32xf32> to vector<1x32xf32>
    %234 = vector.extract_strided_slice %85 {offsets = [1, 0, 0], sizes = [1, 1, 32], strides = [1, 1, 1]} : vector<3x1x32xf32> to vector<1x1x32xf32>
    %235 = vector.shape_cast %234 : vector<1x1x32xf32> to vector<1x32xf32>
    %cst_95 = arith.constant dense<0.000000e+00> : vector<16xf32>
    %236 = vector.multi_reduction <add>, %231, %cst_95 [1] : vector<16x32xf32> to vector<16xf32>
    %237 = vector.shape_cast %236 : vector<16xf32> to vector<16x1xf32>
    %cst_96 = arith.constant 3.200000e+01 : f32
    %238 = vector.broadcast %cst_96 : f32 to vector<16x1xf32>
    %239 = arith.divf %237, %238 : vector<16x1xf32>
    %240 = vector.broadcast %239 : vector<16x1xf32> to vector<16x32xf32>
    %241 = arith.subf %231, %240 : vector<16x32xf32>
    %242 = arith.mulf %241, %241 : vector<16x32xf32>
    %cst_97 = arith.constant dense<0.000000e+00> : vector<16xf32>
    %243 = vector.multi_reduction <add>, %242, %cst_97 [1] : vector<16x32xf32> to vector<16xf32>
    %244 = vector.shape_cast %243 : vector<16xf32> to vector<16x1xf32>
    %cst_98 = arith.constant 3.200000e+01 : f32
    %245 = vector.broadcast %cst_98 : f32 to vector<16x1xf32>
    %246 = arith.divf %244, %245 : vector<16x1xf32>
    %247 = vector.broadcast %239 : vector<16x1xf32> to vector<16x32xf32>
    %248 = arith.subf %231, %247 : vector<16x32xf32>
    %cst_99 = arith.constant 9.99999974E-6 : f32
    %249 = vector.broadcast %cst_99 : f32 to vector<16x1xf32>
    %250 = arith.addf %246, %249 : vector<16x1xf32>
    %251 = math.rsqrt %250 : vector<16x1xf32>
    %252 = vector.broadcast %251 : vector<16x1xf32> to vector<16x32xf32>
    %253 = arith.mulf %248, %252 : vector<16x32xf32>
    %254 = vector.broadcast %233 : vector<1x32xf32> to vector<16x32xf32>
    %255 = arith.mulf %253, %254 : vector<16x32xf32>
    %256 = vector.broadcast %235 : vector<1x32xf32> to vector<16x32xf32>
    %257 = arith.addf %255, %256 : vector<16x32xf32>
    %c1_100 = arith.constant 1 : index
    %c0_101 = arith.constant 0 : index
    %c0_102 = arith.constant 0 : index
    %258 = vector.load %arg10[%c1_100, %c0_101, %c0_102] : memref<2x32x2048xbf16, #tpu.memory_space<vmem>>, vector<1x32x2048xbf16>
    %259 = vector.shape_cast %258 : vector<1x32x2048xbf16> to vector<32x2048xbf16>
    %260 = arith.extf %259 : vector<32x2048xbf16> to vector<32x2048xf32>
    %c1_103 = arith.constant 1 : index
    %c0_104 = arith.constant 0 : index
    %c0_105 = arith.constant 0 : index
    %261 = vector.load %arg12[%c1_103, %c0_104, %c0_105] : memref<2x2048x32xbf16, #tpu.memory_space<vmem>>, vector<1x2048x32xbf16>
    %262 = vector.shape_cast %261 : vector<1x2048x32xbf16> to vector<2048x32xbf16>
    %263 = arith.extf %262 : vector<2048x32xbf16> to vector<2048x32xf32>
    %cst_106 = arith.constant dense<0.000000e+00> : vector<16x2048xf32>
    %264 = tpu.matmul %257, %260, %cst_106 {dimension_numbers = #tpu.dot_dimension_numbers<[1], [0], [0], [1], [0, 0, 1, 1], [], []>} : vector<16x32xf32>, vector<32x2048xf32>, vector<16x2048xf32> -> vector<16x2048xf32>
    %c1_107 = arith.constant 1 : index
    %c0_108 = arith.constant 0 : index
    %c0_109 = arith.constant 0 : index
    %265 = vector.load %arg11[%c1_107, %c0_108, %c0_109] : memref<2x1x2048xf32, #tpu.memory_space<vmem>>, vector<1x1x2048xf32>
    %266 = vector.shape_cast %265 : vector<1x1x2048xf32> to vector<1x2048xf32>
    %267 = vector.broadcast %266 : vector<1x2048xf32> to vector<16x2048xf32>
    %268 = arith.addf %264, %267 : vector<16x2048xf32>
    %cst_110 = arith.constant 0.000000e+00 : f32
    %269 = vector.broadcast %cst_110 : f32 to vector<16x2048xf32>
    %270 = arith.maximumf %268, %269 : vector<16x2048xf32>
    %cst_111 = arith.constant dense<0.000000e+00> : vector<16x32xf32>
    %271 = tpu.matmul %270, %263, %cst_111 {dimension_numbers = #tpu.dot_dimension_numbers<[1], [0], [0], [1], [0, 0, 1, 1], [], []>} : vector<16x2048xf32>, vector<2048x32xf32>, vector<16x32xf32> -> vector<16x32xf32>
    %c1_112 = arith.constant 1 : index
    %c0_113 = arith.constant 0 : index
    %c0_114 = arith.constant 0 : index
    %272 = vector.load %arg13[%c1_112, %c0_113, %c0_114] : memref<2x1x32xf32, #tpu.memory_space<vmem>>, vector<1x1x32xf32>
    %273 = vector.shape_cast %272 : vector<1x1x32xf32> to vector<1x32xf32>
    %274 = vector.broadcast %273 : vector<1x32xf32> to vector<16x32xf32>
    %275 = arith.addf %271, %274 : vector<16x32xf32>
    %276 = arith.addf %257, %275 : vector<16x32xf32>
    %277 = vector.extract_strided_slice %83 {offsets = [2, 0, 0], sizes = [1, 1, 32], strides = [1, 1, 1]} : vector<3x1x32xf32> to vector<1x1x32xf32>
    %278 = vector.shape_cast %277 : vector<1x1x32xf32> to vector<1x32xf32>
    %279 = vector.extract_strided_slice %85 {offsets = [2, 0, 0], sizes = [1, 1, 32], strides = [1, 1, 1]} : vector<3x1x32xf32> to vector<1x1x32xf32>
    %280 = vector.shape_cast %279 : vector<1x1x32xf32> to vector<1x32xf32>
    %cst_115 = arith.constant dense<0.000000e+00> : vector<16xf32>
    %281 = vector.multi_reduction <add>, %276, %cst_115 [1] : vector<16x32xf32> to vector<16xf32>
    %282 = vector.shape_cast %281 : vector<16xf32> to vector<16x1xf32>
    %cst_116 = arith.constant 3.200000e+01 : f32
    %283 = vector.broadcast %cst_116 : f32 to vector<16x1xf32>
    %284 = arith.divf %282, %283 : vector<16x1xf32>
    %285 = vector.broadcast %284 : vector<16x1xf32> to vector<16x32xf32>
    %286 = arith.subf %276, %285 : vector<16x32xf32>
    %287 = arith.mulf %286, %286 : vector<16x32xf32>
    %cst_117 = arith.constant dense<0.000000e+00> : vector<16xf32>
    %288 = vector.multi_reduction <add>, %287, %cst_117 [1] : vector<16x32xf32> to vector<16xf32>
    %289 = vector.shape_cast %288 : vector<16xf32> to vector<16x1xf32>
    %cst_118 = arith.constant 3.200000e+01 : f32
    %290 = vector.broadcast %cst_118 : f32 to vector<16x1xf32>
    %291 = arith.divf %289, %290 : vector<16x1xf32>
    %292 = vector.broadcast %284 : vector<16x1xf32> to vector<16x32xf32>
    %293 = arith.subf %276, %292 : vector<16x32xf32>
    %cst_119 = arith.constant 9.99999974E-6 : f32
    %294 = vector.broadcast %cst_119 : f32 to vector<16x1xf32>
    %295 = arith.addf %291, %294 : vector<16x1xf32>
    %296 = math.rsqrt %295 : vector<16x1xf32>
    %297 = vector.broadcast %296 : vector<16x1xf32> to vector<16x32xf32>
    %298 = arith.mulf %293, %297 : vector<16x32xf32>
    %299 = vector.broadcast %278 : vector<1x32xf32> to vector<16x32xf32>
    %300 = arith.mulf %298, %299 : vector<16x32xf32>
    %301 = vector.broadcast %280 : vector<1x32xf32> to vector<16x32xf32>
    %302 = arith.addf %300, %301 : vector<16x32xf32>
    %c0_120 = arith.constant 0 : index
    %c0_121 = arith.constant 0 : index
    %303 = vector.load %arg4[%c0_120, %c0_121] : memref<16x32xf32, #tpu.memory_space<vmem>>, vector<16x32xf32>
    %304 = arith.mulf %302, %303 : vector<16x32xf32>
    %c0_122 = arith.constant 0 : index
    %c0_123 = arith.constant 0 : index
    %305 = vector.load %arg5[%c0_122, %c0_123] : memref<16x32xf32, #tpu.memory_space<vmem>>, vector<16x32xf32>
    %306 = arith.addf %304, %305 : vector<16x32xf32>
    %c0_124 = arith.constant 0 : index
    %c0_125 = arith.constant 0 : index
    %307 = vector.load %arg16[%c0_124, %c0_125] : memref<32x704xf32, #tpu.memory_space<vmem>>, vector<32x704xf32>
    %cst_126 = arith.constant dense<0.000000e+00> : vector<16x704xf32>
    %308 = tpu.matmul %306, %307, %cst_126 {dimension_numbers = #tpu.dot_dimension_numbers<[1], [0], [0], [1], [0, 0, 1, 1], [], []>} : vector<16x32xf32>, vector<32x704xf32>, vector<16x704xf32> -> vector<16x704xf32>
    %c0_127 = arith.constant 0 : index
    %c0_128 = arith.constant 0 : index
    %309 = vector.load %arg17[%c0_127, %c0_128] : memref<1x704xf32, #tpu.memory_space<vmem>>, vector<1x704xf32>
    %310 = vector.broadcast %309 : vector<1x704xf32> to vector<16x704xf32>
    %311 = arith.addf %308, %310 : vector<16x704xf32>
    %cst_129 = arith.constant 0.000000e+00 : f32
    %312 = vector.broadcast %cst_129 : f32 to vector<16x704xf32>
    %313 = arith.maximumf %311, %312 : vector<16x704xf32>
    %c0_i32_130 = arith.constant 0 : i32
    %314 = tpu.memref_slice %arg24[%c0_i32_130] : memref<1x!tpu.dma_semaphore, #tpu.memory_space<semaphore_mem>> -> memref<1x!tpu.dma_semaphore, #tpu.memory_space<semaphore_mem>>
    %315 = tpu.memref_squeeze %314 : memref<1x!tpu.dma_semaphore, #tpu.memory_space<semaphore_mem>> -> memref<!tpu.dma_semaphore, #tpu.memory_space<semaphore_mem>>
    tpu.wait_dma2 semaphore(%315 : memref<!tpu.dma_semaphore, #tpu.memory_space<semaphore_mem>>) src(%arg18 : memref<1x704x704xbf16, #tpu.memory_space<any>>) dst(%arg23 : memref<1x704x704xbf16, #tpu.memory_space<vmem>>)
    %c0_131 = arith.constant 0 : index
    %c0_132 = arith.constant 0 : index
    %c0_133 = arith.constant 0 : index
    %316 = vector.load %arg23[%c0_131, %c0_132, %c0_133] : memref<1x704x704xbf16, #tpu.memory_space<vmem>>, vector<1x704x704xbf16>
    %317 = vector.shape_cast %316 : vector<1x704x704xbf16> to vector<704x704xbf16>
    %318 = arith.extf %317 : vector<704x704xbf16> to vector<704x704xf32>
    %cst_134 = arith.constant dense<0.000000e+00> : vector<16x704xf32>
    %319 = tpu.matmul %313, %318, %cst_134 {dimension_numbers = #tpu.dot_dimension_numbers<[1], [0], [0], [1], [0, 0, 1, 1], [], []>} : vector<16x704xf32>, vector<704x704xf32>, vector<16x704xf32> -> vector<16x704xf32>
    %c0_135 = arith.constant 0 : index
    %c0_136 = arith.constant 0 : index
    %c0_137 = arith.constant 0 : index
    %320 = vector.load %arg19[%c0_135, %c0_136, %c0_137] : memref<1x1x704xf32, #tpu.memory_space<vmem>>, vector<1x1x704xf32>
    %321 = vector.shape_cast %320 : vector<1x1x704xf32> to vector<1x704xf32>
    %322 = vector.broadcast %321 : vector<1x704xf32> to vector<16x704xf32>
    %323 = arith.addf %319, %322 : vector<16x704xf32>
    %cst_138 = arith.constant 0.000000e+00 : f32
    %324 = vector.broadcast %cst_138 : f32 to vector<16x704xf32>
    %325 = arith.maximumf %323, %324 : vector<16x704xf32>
    %c0_139 = arith.constant 0 : index
    %c0_140 = arith.constant 0 : index
    %326 = vector.load %arg20[%c0_139, %c0_140] : memref<704x66xf32, #tpu.memory_space<vmem>>, vector<704x66xf32>
    %cst_141 = arith.constant dense<0.000000e+00> : vector<16x66xf32>
    %327 = tpu.matmul %325, %326, %cst_141 {dimension_numbers = #tpu.dot_dimension_numbers<[1], [0], [0], [1], [0, 0, 1, 1], [], []>} : vector<16x704xf32>, vector<704x66xf32>, vector<16x66xf32> -> vector<16x66xf32>
    %c0_142 = arith.constant 0 : index
    %c0_143 = arith.constant 0 : index
    %328 = vector.load %arg21[%c0_142, %c0_143] : memref<1x66xf32, #tpu.memory_space<vmem>>, vector<1x66xf32>
    %329 = vector.broadcast %328 : vector<1x66xf32> to vector<16x66xf32>
    %330 = arith.addf %327, %329 : vector<16x66xf32>
    %c0_144 = arith.constant 0 : index
    %c0_145 = arith.constant 0 : index
    %331 = vector.load %arg22[%c0_144, %c0_145] : memref<16x66xf32, #tpu.memory_space<vmem>>, vector<16x66xf32>
    tpu.vector_store %arg22[%c0_144, %c0_145], %330 {strides = array<i32>} : memref<16x66xf32, #tpu.memory_space<vmem>>, vector<16x66xf32>,
    return
  }
  func.func @transform_0(%arg0: i32) -> (i32, i32) {
    %c0_i32 = arith.constant 0 : i32
    %c0_i32_0 = arith.constant 0 : i32
    %c0_i32_1 = arith.constant 0 : i32
    return %c0_i32, %c0_i32_0 : i32, i32
  }
  func.func @transform_1(%arg0: i32) -> (i32, i32) {
    %c0_i32 = arith.constant 0 : i32
    %c0_i32_0 = arith.constant 0 : i32
    %c0_i32_1 = arith.constant 0 : i32
    return %c0_i32, %c0_i32_0 : i32, i32
  }
  func.func @transform_2(%arg0: i32) -> (i32, i32, i32) {
    %c0_i32 = arith.constant 0 : i32
    %c0_i32_0 = arith.constant 0 : i32
    %c0_i32_1 = arith.constant 0 : i32
    %c0_i32_2 = arith.constant 0 : i32
    return %c0_i32, %c0_i32_0, %c0_i32_1 : i32, i32, i32
  }
  func.func @transform_3(%arg0: i32) -> (i32, i32) {
    %c0_i32 = arith.constant 0 : i32
    %c0_i32_0 = arith.constant 0 : i32
    %c0_i32_1 = arith.constant 0 : i32
    return %c0_i32, %c0_i32_0 : i32, i32
  }
  func.func @transform_4(%arg0: i32) -> (i32, i32) {
    %c0_i32 = arith.constant 0 : i32
    %c0_i32_0 = arith.constant 0 : i32
    %c0_i32_1 = arith.constant 0 : i32
    return %c0_i32, %c0_i32_0 : i32, i32
  }
  func.func @transform_5(%arg0: i32) -> (i32, i32, i32, i32) {
    %c0_i32 = arith.constant 0 : i32
    %c0_i32_0 = arith.constant 0 : i32
    %c0_i32_1 = arith.constant 0 : i32
    %c0_i32_2 = arith.constant 0 : i32
    %c0_i32_3 = arith.constant 0 : i32
    return %c0_i32, %c0_i32_0, %c0_i32_1, %c0_i32_2 : i32, i32, i32, i32
  }
  func.func @transform_6(%arg0: i32) -> (i32, i32, i32, i32) {
    %c0_i32 = arith.constant 0 : i32
    %c0_i32_0 = arith.constant 0 : i32
    %c0_i32_1 = arith.constant 0 : i32
    %c0_i32_2 = arith.constant 0 : i32
    %c0_i32_3 = arith.constant 0 : i32
    return %c0_i32, %c0_i32_0, %c0_i32_1, %c0_i32_2 : i32, i32, i32, i32
  }
  func.func @transform_7(%arg0: i32) -> (i32, i32, i32) {
    %c0_i32 = arith.constant 0 : i32
    %c0_i32_0 = arith.constant 0 : i32
    %c0_i32_1 = arith.constant 0 : i32
    %c0_i32_2 = arith.constant 0 : i32
    return %c0_i32, %c0_i32_0, %c0_i32_1 : i32, i32, i32
  }
  func.func @transform_8(%arg0: i32) -> (i32, i32, i32) {
    %c0_i32 = arith.constant 0 : i32
    %c0_i32_0 = arith.constant 0 : i32
    %c0_i32_1 = arith.constant 0 : i32
    %c0_i32_2 = arith.constant 0 : i32
    return %c0_i32, %c0_i32_0, %c0_i32_1 : i32, i32, i32
  }
  func.func @transform_9(%arg0: i32) -> (i32, i32, i32) {
    %c0_i32 = arith.constant 0 : i32
    %c0_i32_0 = arith.constant 0 : i32
    %c0_i32_1 = arith.constant 0 : i32
    %c0_i32_2 = arith.constant 0 : i32
    return %c0_i32, %c0_i32_0, %c0_i32_1 : i32, i32, i32
  }
  func.func @transform_10(%arg0: i32) -> (i32, i32, i32) {
    %c0_i32 = arith.constant 0 : i32
    %c0_i32_0 = arith.constant 0 : i32
    %c0_i32_1 = arith.constant 0 : i32
    %c0_i32_2 = arith.constant 0 : i32
    return %c0_i32, %c0_i32_0, %c0_i32_1 : i32, i32, i32
  }
  func.func @transform_11(%arg0: i32) -> (i32, i32, i32) {
    %c0_i32 = arith.constant 0 : i32
    %c0_i32_0 = arith.constant 0 : i32
    %c0_i32_1 = arith.constant 0 : i32
    %c0_i32_2 = arith.constant 0 : i32
    return %c0_i32, %c0_i32_0, %c0_i32_1 : i32, i32, i32
  }
  func.func @transform_12(%arg0: i32) -> (i32, i32, i32) {
    %c0_i32 = arith.constant 0 : i32
    %c0_i32_0 = arith.constant 0 : i32
    %c0_i32_1 = arith.constant 0 : i32
    %c0_i32_2 = arith.constant 0 : i32
    return %c0_i32, %c0_i32_0, %c0_i32_1 : i32, i32, i32
  }
  func.func @transform_13(%arg0: i32) -> (i32, i32, i32, i32) {
    %c0_i32 = arith.constant 0 : i32
    %c0_i32_0 = arith.constant 0 : i32
    %c0_i32_1 = arith.constant 0 : i32
    %c0_i32_2 = arith.constant 0 : i32
    %c0_i32_3 = arith.constant 0 : i32
    return %c0_i32, %c0_i32_0, %c0_i32_1, %c0_i32_2 : i32, i32, i32, i32
  }
  func.func @transform_14(%arg0: i32) -> (i32, i32, i32, i32) {
    %c0_i32 = arith.constant 0 : i32
    %c0_i32_0 = arith.constant 0 : i32
    %c0_i32_1 = arith.constant 0 : i32
    %c0_i32_2 = arith.constant 0 : i32
    %c0_i32_3 = arith.constant 0 : i32
    return %c0_i32, %c0_i32_0, %c0_i32_1, %c0_i32_2 : i32, i32, i32, i32
  }
  func.func @transform_15(%arg0: i32) -> (i32, i32) {
    %c0_i32 = arith.constant 0 : i32
    %c0_i32_0 = arith.constant 0 : i32
    %c0_i32_1 = arith.constant 0 : i32
    return %c0_i32, %c0_i32_0 : i32, i32
  }
  func.func @transform_16(%arg0: i32) -> (i32, i32) {
    %c0_i32 = arith.constant 0 : i32
    %c0_i32_0 = arith.constant 0 : i32
    %c0_i32_1 = arith.constant 0 : i32
    return %c0_i32, %c0_i32_0 : i32, i32
  }
  func.func @transform_18(%arg0: i32) -> (i32, i32, i32) {
    %c0_i32 = arith.constant 0 : i32
    %c0_i32_0 = arith.constant 0 : i32
    %c0_i32_1 = arith.constant 0 : i32
    %c0_i32_2 = arith.constant 0 : i32
    return %c0_i32, %c0_i32_0, %c0_i32_1 : i32, i32, i32
  }
  func.func @transform_19(%arg0: i32) -> (i32, i32) {
    %c0_i32 = arith.constant 0 : i32
    %c0_i32_0 = arith.constant 0 : i32
    %c0_i32_1 = arith.constant 0 : i32
    return %c0_i32, %c0_i32_0 : i32, i32
  }
  func.func @transform_20(%arg0: i32) -> (i32, i32) {
    %c0_i32 = arith.constant 0 : i32
    %c0_i32_0 = arith.constant 0 : i32
    %c0_i32_1 = arith.constant 0 : i32
    return %c0_i32, %c0_i32_0 : i32, i32
  }
  func.func @transform_21(%arg0: i32) -> (i32, i32) {
    %c0_i32 = arith.constant 0 : i32
    %c0_i32_0 = arith.constant 0 : i32
    %c0_i32_1 = arith.constant 0 : i32
    return %c0_i32, %c0_i32_0 : i32, i32
  }
}

</mosaic_0001>

<bundles_post_ra>
// kernel: transformer_motion_predictor.1
= control target key start
LH: loop header
LB: loop body
LE: loop exit
PB: predicated region body
PF: predicated region fallthrough
CT: control target
= control target key end

     0   :  { %vm647_vm0 = vcmask 261120   ;;  %s15046_s0 = inlined_call_operand.vmem [shape: f32[16,32], index: 0, kind: input, shape index: {}]   ;;  %s15047_s1 = inlined_call_operand.vmem [shape: f32[16,16], index: 1, kind: input, shape index: {}]   ;;  %s15048_s2 = inlined_call_operand.vmem [shape: f32[2,16,32], index: 2, kind: input, shape index: {}]   ;;  %s15049_s3 = inlined_call_operand.vmem [shape: f32[16,32], index: 3, kind: input, shape index: {}]   ;;  %s15050_s4 = inlined_call_operand.vmem [shape: f32[16,32], index: 4, kind: input, shape index: {}]   ;;  %s15051_s5 = inlined_call_operand.vmem [shape: f32[1,3,32,32], index: 5, kind: input, shape index: {}]   ;;  %s15052_s6 = inlined_call_operand.vmem [shape: f32[1,3,1,32], index: 6, kind: input, shape index: {}]   ;;  %s15053_s7 = inlined_call_operand.vmem [shape: f32[1,32,32], index: 7, kind: input, shape index: {}]   ;;  %s15054_s8 = inlined_call_operand.vmem [shape: f32[1,1,32], index: 8, kind: input, shape index: {}]   ;;  %s15055_s9 = inlined_call_operand.vmem [shape: bf16[2,32,2048], index: 9, kind: input, shape index: {}]   ;;  %s15056_s10 = inlined_call_operand.vmem [shape: f32[2,1,2048], index: 10, kind: input, shape index: {}]   ;;  %s15057_s11 = inlined_call_operand.vmem [shape: bf16[2,2048,32], index: 11, kind: input, shape index: {}]   ;;  %s15058_s12 = inlined_call_operand.vmem [shape: f32[2,1,32], index: 12, kind: input, shape index: {}]   ;;  %s15059_s13 = inlined_call_operand.vmem [shape: f32[2,3,1,32], index: 13, kind: input, shape index: {}]   ;;  %s15060_s14 = inlined_call_operand.vmem [shape: f32[2,3,1,32], index: 14, kind: input, shape index: {}]   ;;  %s15061_s15 = inlined_call_operand.vmem [shape: f32[32,704], index: 15, kind: input, shape index: {}]   ;;  %s15062_s16 = inlined_call_operand.vmem [shape: f32[1,704], index: 16, kind: input, shape index: {}]   ;;  %s15063_s17 = inlined_call_operand.vmem [shape: bf16[1,704,704], index: 17, kind: input, shape index: {}]   ;;  %s15064_s18 = inlined_call_operand.vmem [shape: f32[1,1,704], index: 18, kind: input, shape index: {}]   ;;  %s15065_s19 = inlined_call_operand.vmem [shape: f32[704,66], index: 19, kind: input, shape index: {}]   ;;  %s15066_s20 = inlined_call_operand.vmem [shape: f32[1,66], index: 20, kind: input, shape index: {}]   ;;  %s15067_s21 = inlined_call_operand.vmem [shape: f32[16,66], index: 21, kind: output, shape index: {}]  }
   0x1   :  { %15328 = sst [smem:[#allocation258_spill]] %s15046_s0  ;;  %v11114_v0 = vld [vmem:[%s15063_s17] sm:$0xff]  ;;  %v11119_v1 = vld [vmem:[%s15063_s17 + $0x8] sm:$0xff]  ;;  %v11124_v2 = vld [vmem:[%s15063_s17 + $0x10] sm:$0xff] }
   0x2   :  { %15329 = sst [smem:[#allocation259_spill]] %s15047_s1  ;;  %15334 = vst [vmem:[#allocation6_spill] sm:$0xff] %v11114_v0  ;;  %15335 = vst [vmem:[#allocation7_spill] sm:$0xff] %v11119_v1  ;;  %v11129_v3 = vld [vmem:[%s15063_s17 + $0x18] sm:$0xff]  ;;  %v11134_v4 = vld [vmem:[%s15063_s17 + $0x20] sm:$0xff] }
   0x3   :  { %15330 = sst [smem:[#allocation260_spill]] %s15048_s2  ;;  %15336 = vst [vmem:[#allocation8_spill] sm:$0xff] %v11124_v2  ;;  %15337 = vst [vmem:[#allocation9_spill] sm:$0xff] %v11129_v3  ;;  %v11139_v5 = vld [vmem:[%s15063_s17 + $0x28] sm:$0xff]  ;;  %v11144_v6 = vld [vmem:[%s15063_s17 + $0x30] sm:$0xff] }
   0x4   :  { %15331 = sst [smem:[#allocation261_spill]] %s15049_s3  ;;  %15338 = vst [vmem:[#allocation10_spill] sm:$0xff] %v11134_v4  ;;  %15339 = vst [vmem:[#allocation11_spill] sm:$0xff] %v11139_v5  ;;  %v11149_v7 = vld [vmem:[%s15063_s17 + $0x38] sm:$0xff]  ;;  %v11154_v8 = vld [vmem:[%s15063_s17 + $0x40] sm:$0xff] }
   0x5   :  { %15332 = sst [smem:[#allocation262_spill]] %s15050_s4  ;;  %15340 = vst [vmem:[#allocation12_spill] sm:$0xff] %v11144_v6  ;;  %15341 = vst [vmem:[#allocation13_spill] sm:$0xff] %v11149_v7  ;;  %v11159_v9 = vld [vmem:[%s15063_s17 + $0x48] sm:$0xff]  ;;  %v11164_v10 = vld [vmem:[%s15063_s17 + $0x50] sm:$0xff] }
   0x6   :  { %15333 = sst [smem:[#allocation263_spill]] %s15051_s5  ;;  %15342 = vst [vmem:[#allocation14_spill] sm:$0xff] %v11154_v8  ;;  %15343 = vst [vmem:[#allocation15_spill] sm:$0xff] %v11159_v9  ;;  %v11169_v11 = vld [vmem:[%s15063_s17 + $0x58] sm:$0xff]  ;;  %v11174_v12 = vld [vmem:[%s15063_s17 + $0x60] sm:$0xff] }
   0x7   :  { %15344 = vst [vmem:[#allocation16_spill] sm:$0xff] %v11164_v10  ;;  %15345 = vst [vmem:[#allocation17_spill] sm:$0xff] %v11169_v11  ;;  %v11179_v13 = vld [vmem:[%s15063_s17 + $0x68] sm:$0xff]  ;;  %v11184_v14 = vld [vmem:[%s15063_s17 + $0x70] sm:$0xff]  ;;  %s15586_s28 = sld [smem:[#allocation258_spill]] }
   0x8   :  { %15346 = vst [vmem:[#allocation18_spill] sm:$0xff] %v11174_v12  ;;  %15347 = vst [vmem:[#allocation19_spill] sm:$0xff] %v11179_v13  ;;  %v11189_v15 = vld [vmem:[%s15063_s17 + $0x78] sm:$0xff]  ;;  %v11194_v16 = vld [vmem:[%s15063_s17 + $0x80] sm:$0xff]  ;;  %s15587_s4 = sld [smem:[#allocation260_spill]] }
   0x9   :  { %15348 = vst [vmem:[#allocation20_spill] sm:$0xff] %v11184_v14  ;;  %15349 = vst [vmem:[#allocation21_spill] sm:$0xff] %v11189_v15  ;;  %v11199_v17 = vld [vmem:[%s15063_s17 + $0x88] sm:$0xff]  ;;  %v11204_v18 = vld [vmem:[%s15063_s17 + $0x90] sm:$0xff] }
   0xa   :  { %15350 = vst [vmem:[#allocation22_spill] sm:$0xff] %v11194_v16  ;;  %15351 = vst [vmem:[#allocation23_spill] sm:$0xff] %v11199_v17  ;;  %v11209_v19 = vld [vmem:[%s15063_s17 + $0x98] sm:$0xff]  ;;  %v11214_v20 = vld [vmem:[%s15063_s17 + $0xa0] sm:$0xff] }
   0xb   :  { %15352 = vst [vmem:[#allocation24_spill] sm:$0xff] %v11204_v18  ;;  %15353 = vst [vmem:[#allocation25_spill] sm:$0xff] %v11209_v19  ;;  %v11219_v21 = vld [vmem:[%s15063_s17 + $0xa8] sm:$0xff]  ;;  %v11224_v22 = vld [vmem:[%s15063_s17 + $0xb0] sm:$0xff] }
   0xc   :  { %15354 = vst [vmem:[#allocation26_spill] sm:$0xff] %v11214_v20  ;;  %15355 = vst [vmem:[#allocation27_spill] sm:$0xff] %v11219_v21  ;;  %v11229_v23 = vld [vmem:[%s15063_s17 + $0xb8] sm:$0xff]  ;;  %v11234_v24 = vld [vmem:[%s15063_s17 + $0xc0] sm:$0xff] }
   0xd   :  { %15356 = vst [vmem:[#allocation28_spill] sm:$0xff] %v11224_v22  ;;  %15357 = vst [vmem:[#allocation29_spill] sm:$0xff] %v11229_v23  ;;  %v11239_v25 = vld [vmem:[%s15063_s17 + $0xc8] sm:$0xff]  ;;  %v11244_v26 = vld [vmem:[%s15063_s17 + $0xd0] sm:$0xff] }
   0xe   :  { %15358 = vst [vmem:[#allocation30_spill] sm:$0xff] %v11234_v24  ;;  %15359 = vst [vmem:[#allocation31_spill] sm:$0xff] %v11239_v25  ;;  %v11249_v27 = vld [vmem:[%s15063_s17 + $0xd8] sm:$0xff]  ;;  %v11254_v28 = vld [vmem:[%s15063_s17 + $0xe0] sm:$0xff] }
   0xf   :  { %15360 = vst [vmem:[#allocation32_spill] sm:$0xff] %v11244_v26  ;;  %15361 = vst [vmem:[#allocation33_spill] sm:$0xff] %v11249_v27  ;;  %v11259_v29 = vld [vmem:[%s15063_s17 + $0xe8] sm:$0xff]  ;;  %v11264_v30 = vld [vmem:[%s15063_s17 + $0xf0] sm:$0xff] }
  0x10   :  { %15362 = vst [vmem:[#allocation34_spill] sm:$0xff] %v11254_v28  ;;  %15363 = vst [vmem:[#allocation35_spill] sm:$0xff] %v11259_v29  ;;  %v11269_v31 = vld [vmem:[%s15063_s17 + $0xf8] sm:$0xff]  ;;  %v11274_v32 = vld [vmem:[%s15063_s17 + $0x100] sm:$0xff] }
  0x11   :  { %15364 = vst [vmem:[#allocation36_spill] sm:$0xff] %v11269_v31  ;;  %15365 = vst [vmem:[#allocation37_spill] sm:$0xff] %v11274_v32  ;;  %v11279_v33 = vld [vmem:[%s15063_s17 + $0x108] sm:$0xff]  ;;  %v11284_v34 = vld [vmem:[%s15063_s17 + $0x110] sm:$0xff] }
  0x12   :  { %15366 = vst [vmem:[#allocation38_spill] sm:$0xff] %v11284_v34  ;;  %v11289_v35 = vld [vmem:[%s15063_s17 + $0x118] sm:$0xff]  ;;  %v11294_v36 = vld [vmem:[%s15063_s17 + $0x120] sm:$0xff]  ;;  %v11299_v37 = vld [vmem:[%s15063_s17 + $0x128] sm:$0xff] }
  0x13   :  { %15367 = vst [vmem:[#allocation39_spill] sm:$0xff] %v11289_v35  ;;  %15368 = vst [vmem:[#allocation40_spill] sm:$0xff] %v11299_v37  ;;  %v11304_v38 = vld [vmem:[%s15063_s17 + $0x130] sm:$0xff]  ;;  %v11309_v39 = vld [vmem:[%s15063_s17 + $0x138] sm:$0xff] }
  0x14   :  { %15369 = vst [vmem:[#allocation41_spill] sm:$0xff] %v11304_v38  ;;  %v11314_v40 = vld [vmem:[%s15063_s17 + $0x140] sm:$0xff]  ;;  %v11319_v41 = vld [vmem:[%s15063_s17 + $0x148] sm:$0xff]  ;;  %v11324_v42 = vld [vmem:[%s15063_s17 + $0x150] sm:$0xff] }
  0x15   :  { %15370 = vst [vmem:[#allocation42_spill] sm:$0xff] %v11314_v40  ;;  %15371 = vst [vmem:[#allocation43_spill] sm:$0xff] %v11319_v41  ;;  %v11329_v43 = vld [vmem:[%s15063_s17 + $0x158] sm:$0xff]  ;;  %v11334_v44 = vld [vmem:[%s15063_s17 + $0x160] sm:$0xff] }
  0x16   :  { %15372 = vst [vmem:[#allocation44_spill] sm:$0xff] %v11329_v43  ;;  %15373 = vst [vmem:[#allocation45_spill] sm:$0xff] %v11334_v44  ;;  %v11339_v45 = vld [vmem:[%s15063_s17 + $0x168] sm:$0xff]  ;;  %v11344_v46 = vld [vmem:[%s15063_s17 + $0x170] sm:$0xff] }
  0x17   :  { %15374 = vst [vmem:[#allocation46_spill] sm:$0xff] %v11344_v46  ;;  %v11349_v47 = vld [vmem:[%s15063_s17 + $0x178] sm:$0xff]  ;;  %v11354_v48 = vld [vmem:[%s15063_s17 + $0x180] sm:$0xff]  ;;  %v11359_v49 = vld [vmem:[%s15063_s17 + $0x188] sm:$0xff] }
  0x18   :  { %15375 = vst [vmem:[#allocation47_spill] sm:$0xff] %v11349_v47  ;;  %15376 = vst [vmem:[#allocation48_spill] sm:$0xff] %v11354_v48  ;;  %v11364_v50 = vld [vmem:[%s15063_s17 + $0x190] sm:$0xff]  ;;  %v11369_v51 = vld [vmem:[%s15063_s17 + $0x198] sm:$0xff] }
  0x19   :  { %15377 = vst [vmem:[#allocation49_spill] sm:$0xff] %v11359_v49  ;;  %15378 = vst [vmem:[#allocation50_spill] sm:$0xff] %v11364_v50  ;;  %v11374_v52 = vld [vmem:[%s15063_s17 + $0x1a0] sm:$0xff]  ;;  %v11379_v53 = vld [vmem:[%s15063_s17 + $0x1a8] sm:$0xff] }
  0x1a   :  { %15379 = vst [vmem:[#allocation51_spill] sm:$0xff] %v11369_v51  ;;  %15380 = vst [vmem:[#allocation52_spill] sm:$0xff] %v11374_v52  ;;  %v11384_v54 = vld [vmem:[%s15063_s17 + $0x1b0] sm:$0xff]  ;;  %v11389_v55 = vld [vmem:[%s15063_s17 + $0x1b8] sm:$0xff] }
  0x1b   :  { %15381 = vst [vmem:[#allocation53_spill] sm:$0xff] %v11379_v53  ;;  %15382 = vst [vmem:[#allocation54_spill] sm:$0xff] %v11384_v54  ;;  %v11394_v56 = vld [vmem:[%s15063_s17 + $0x1c0] sm:$0xff]  ;;  %v11399_v57 = vld [vmem:[%s15063_s17 + $0x1c8] sm:$0xff] }
  0x1c   :  { %15383 = vst [vmem:[#allocation55_spill] sm:$0xff] %v11389_v55  ;;  %15384 = vst [vmem:[#allocation56_spill] sm:$0xff] %v11394_v56  ;;  %v11404_v58 = vld [vmem:[%s15063_s17 + $0x1d0] sm:$0xff]  ;;  %v11409_v59 = vld [vmem:[%s15063_s17 + $0x1d8] sm:$0xff] }
  0x1d   :  { %15385 = vst [vmem:[#allocation57_spill] sm:$0xff] %v11399_v57  ;;  %15386 = vst [vmem:[#allocation58_spill] sm:$0xff] %v11404_v58  ;;  %v11414_v60 = vld [vmem:[%s15063_s17 + $0x1e0] sm:$0xff]  ;;  %v11419_v61 = vld [vmem:[%s15063_s17 + $0x1e8] sm:$0xff] }
  0x1e   :  { %15387 = vst [vmem:[#allocation59_spill] sm:$0xff] %v11409_v59  ;;  %15388 = vst [vmem:[#allocation60_spill] sm:$0xff] %v11414_v60  ;;  %v11424_v62 = vld [vmem:[%s15063_s17 + $0x1f0] sm:$0xff]  ;;  %v11429_v63 = vld [vmem:[%s15063_s17 + $0x1f8] sm:$0xff] }
  0x1f   :  { %15389 = vst [vmem:[#allocation61_spill] sm:$0xff] %v11419_v61  ;;  %15390 = vst [vmem:[#allocation62_spill] sm:$0xff] %v11424_v62  ;;  %v11434_v50 = vld [vmem:[%s15063_s17 + $0x200] sm:$0xff]  ;;  %v11439_v53 = vld [vmem:[%s15063_s17 + $0x208] sm:$0xff] }
  0x20   :  { %15391 = vst [vmem:[#allocation63_spill] sm:$0xff] %v11429_v63  ;;  %15392 = vst [vmem:[#allocation64_spill] sm:$0xff] %v11434_v50  ;;  %v11444_v56 = vld [vmem:[%s15063_s17 + $0x210] sm:$0xff]  ;;  %v11449_v59 = vld [vmem:[%s15063_s17 + $0x218] sm:$0xff] }
  0x21   :  { %15393 = vst [vmem:[#allocation65_spill] sm:$0xff] %v11439_v53  ;;  %15394 = vst [vmem:[#allocation66_spill] sm:$0xff] %v11444_v56  ;;  %v11454_v62 = vld [vmem:[%s15063_s17 + $0x220] sm:$0xff]  ;;  %v11459_v2 = vld [vmem:[%s15063_s17 + $0x228] sm:$0xff] }
  0x22   :  { %15395 = vst [vmem:[#allocation67_spill] sm:$0xff] %v11449_v59  ;;  %15396 = vst [vmem:[#allocation68_spill] sm:$0xff] %v11454_v62  ;;  %v11464_v53 = vld [vmem:[%s15063_s17 + $0x230] sm:$0xff]  ;;  %v11469_v5 = vld [vmem:[%s15063_s17 + $0x238] sm:$0xff] }
  0x23   :  { %15397 = vst [vmem:[#allocation69_spill] sm:$0xff] %v11459_v2  ;;  %15398 = vst [vmem:[#allocation70_spill] sm:$0xff] %v11464_v53  ;;  %v11474_v8 = vld [vmem:[%s15063_s17 + $0x240] sm:$0xff]  ;;  %v11479_v62 = vld [vmem:[%s15063_s17 + $0x248] sm:$0xff] }
  0x24   :  { %15399 = vst [vmem:[#allocation71_spill] sm:$0xff] %v11469_v5  ;;  %15400 = vst [vmem:[#allocation72_spill] sm:$0xff] %v11474_v8  ;;  %v11484_v11 = vld [vmem:[%s15063_s17 + $0x250] sm:$0xff]  ;;  %v11489_v14 = vld [vmem:[%s15063_s17 + $0x258] sm:$0xff] }
  0x25   :  { %15401 = vst [vmem:[#allocation73_spill] sm:$0xff] %v11479_v62  ;;  %15402 = vst [vmem:[#allocation74_spill] sm:$0xff] %v11484_v11  ;;  %v11494_v5 = vld [vmem:[%s15063_s17 + $0x260] sm:$0xff]  ;;  %v11499_v17 = vld [vmem:[%s15063_s17 + $0x268] sm:$0xff] }
  0x26   :  { %15403 = vst [vmem:[#allocation75_spill] sm:$0xff] %v11489_v14  ;;  %15404 = vst [vmem:[#allocation76_spill] sm:$0xff] %v11494_v5  ;;  %v11504_v20 = vld [vmem:[%s15063_s17 + $0x270] sm:$0xff]  ;;  %v11509_v11 = vld [vmem:[%s15063_s17 + $0x278] sm:$0xff] }
  0x27   :  { %15405 = vst [vmem:[#allocation77_spill] sm:$0xff] %v11499_v17  ;;  %15406 = vst [vmem:[#allocation78_spill] sm:$0xff] %v11504_v20  ;;  %v11514_v23 = vld [vmem:[%s15063_s17 + $0x280] sm:$0xff]  ;;  %v11519_v26 = vld [vmem:[%s15063_s17 + $0x288] sm:$0xff] }
  0x28   :  { %15407 = vst [vmem:[#allocation79_spill] sm:$0xff] %v11509_v11  ;;  %15408 = vst [vmem:[#allocation80_spill] sm:$0xff] %v11514_v23  ;;  %v11524_v17 = vld [vmem:[%s15063_s17 + $0x290] sm:$0xff]  ;;  %v11529_v29 = vld [vmem:[%s15063_s17 + $0x298] sm:$0xff] }
  0x29   :  { %15409 = vst [vmem:[#allocation81_spill] sm:$0xff] %v11519_v26  ;;  %15410 = vst [vmem:[#allocation82_spill] sm:$0xff] %v11524_v17  ;;  %v11534_v32 = vld [vmem:[%s15063_s17 + $0x2a0] sm:$0xff]  ;;  %v11539_v23 = vld [vmem:[%s15063_s17 + $0x2a8] sm:$0xff] }
  0x2a   :  { %15411 = vst [vmem:[#allocation83_spill] sm:$0xff] %v11529_v29  ;;  %15412 = vst [vmem:[#allocation84_spill] sm:$0xff] %v11534_v32  ;;  %v11544_v35 = vld [vmem:[%s15063_s17 + $0x2b0] sm:$0xff]  ;;  %v11549_v38 = vld [vmem:[%s15063_s17 + $0x2b8] sm:$0xff] }
  0x2b   :  { %15413 = vst [vmem:[#allocation85_spill] sm:$0xff] %v11539_v23  ;;  %15414 = vst [vmem:[#allocation86_spill] sm:$0xff] %v11544_v35  ;;  %v11554_v29 = vld [vmem:[%s15063_s17 + $0x2c0] sm:$0xff]  ;;  %v11559_v41 = vld [vmem:[%s15063_s17 + $0x2c8] sm:$0xff] }
  0x2c   :  { %15415 = vst [vmem:[#allocation87_spill] sm:$0xff] %v11549_v38  ;;  %15416 = vst [vmem:[#allocation88_spill] sm:$0xff] %v11554_v29  ;;  %v11564_v44 = vld [vmem:[%s15063_s17 + $0x2d0] sm:$0xff]  ;;  %v11569_v35 = vld [vmem:[%s15063_s17 + $0x2d8] sm:$0xff] }
  0x2d   :  { %15417 = vst [vmem:[#allocation89_spill] sm:$0xff] %v11559_v41  ;;  %15418 = vst [vmem:[#allocation90_spill] sm:$0xff] %v11564_v44  ;;  %v11574_v47 = vld [vmem:[%s15063_s17 + $0x2e0] sm:$0xff]  ;;  %v11579_v49 = vld [vmem:[%s15063_s17 + $0x2e8] sm:$0xff] }
  0x2e   :  { %15419 = vst [vmem:[#allocation91_spill] sm:$0xff] %v11569_v35  ;;  %15420 = vst [vmem:[#allocation92_spill] sm:$0xff] %v11574_v47  ;;  %v11584_v41 = vld [vmem:[%s15063_s17 + $0x2f0] sm:$0xff]  ;;  %v11589_v52 = vld [vmem:[%s15063_s17 + $0x2f8] sm:$0xff] }
  0x2f   :  { %15421 = vst [vmem:[#allocation93_spill] sm:$0xff] %v11579_v49  ;;  %15422 = vst [vmem:[#allocation94_spill] sm:$0xff] %v11584_v41  ;;  %v11594_v55 = vld [vmem:[%s15063_s17 + $0x300] sm:$0xff]  ;;  %v11599_v47 = vld [vmem:[%s15063_s17 + $0x308] sm:$0xff] }
  0x30   :  { %15423 = vst [vmem:[#allocation95_spill] sm:$0xff] %v11589_v52  ;;  %15424 = vst [vmem:[#allocation96_spill] sm:$0xff] %v11594_v55  ;;  %v11604_v58 = vld [vmem:[%s15063_s17 + $0x310] sm:$0xff]  ;;  %v11609_v61 = vld [vmem:[%s15063_s17 + $0x318] sm:$0xff] }
  0x31   :  { %15425 = vst [vmem:[#allocation97_spill] sm:$0xff] %v11599_v47  ;;  %15426 = vst [vmem:[#allocation98_spill] sm:$0xff] %v11604_v58  ;;  %v11614_v52 = vld [vmem:[%s15063_s17 + $0x320] sm:$0xff]  ;;  %v11619_v50 = vld [vmem:[%s15063_s17 + $0x328] sm:$0xff] }
  0x32   :  { %15427 = vst [vmem:[#allocation99_spill] sm:$0xff] %v11609_v61  ;;  %15428 = vst [vmem:[#allocation100_spill] sm:$0xff] %v11614_v52  ;;  %v11624_v47 = vld [vmem:[%s15063_s17 + $0x330] sm:$0xff]  ;;  %v11629_v58 = vld [vmem:[%s15063_s17 + $0x338] sm:$0xff] }
  0x33   :  { %15429 = vst [vmem:[#allocation101_spill] sm:$0xff] %v11619_v50  ;;  %15430 = vst [vmem:[#allocation102_spill] sm:$0xff] %v11624_v47  ;;  %v11634_v59 = vld [vmem:[%s15063_s17 + $0x340] sm:$0xff]  ;;  %v11639_v52 = vld [vmem:[%s15063_s17 + $0x348] sm:$0xff] }
  0x34   :  { %15431 = vst [vmem:[#allocation103_spill] sm:$0xff] %v11629_v58  ;;  %15432 = vst [vmem:[#allocation104_spill] sm:$0xff] %v11634_v59  ;;  %v11644_v50 = vld [vmem:[%s15063_s17 + $0x350] sm:$0xff]  ;;  %v11649_v53 = vld [vmem:[%s15063_s17 + $0x358] sm:$0xff] }
  0x35   :  { %15433 = vst [vmem:[#allocation105_spill] sm:$0xff] %v11639_v52  ;;  %15434 = vst [vmem:[#allocation106_spill] sm:$0xff] %v11644_v50  ;;  %v11654_v58 = vld [vmem:[%s15063_s17 + $0x360] sm:$0xff]  ;;  %v11659_v59 = vld [vmem:[%s15063_s17 + $0x368] sm:$0xff] }
  0x36   :  { %15435 = vst [vmem:[#allocation107_spill] sm:$0xff] %v11649_v53  ;;  %15436 = vst [vmem:[#allocation108_spill] sm:$0xff] %v11654_v58  ;;  %v11664_v62 = vld [vmem:[%s15063_s17 + $0x370] sm:$0xff]  ;;  %v11669_v50 = vld [vmem:[%s15063_s17 + $0x378] sm:$0xff] }
  0x37   :  { %15437 = vst [vmem:[#allocation109_spill] sm:$0xff] %v11659_v59  ;;  %15438 = vst [vmem:[#allocation110_spill] sm:$0xff] %v11664_v62  ;;  %v11674_v53 = vld [vmem:[%s15063_s17 + $0x380] sm:$0xff]  ;;  %v11679_v5 = vld [vmem:[%s15063_s17 + $0x388] sm:$0xff] }
  0x38   :  { %15439 = vst [vmem:[#allocation111_spill] sm:$0xff] %v11669_v50  ;;  %15440 = vst [vmem:[#allocation112_spill] sm:$0xff] %v11674_v53  ;;  %v11684_v59 = vld [vmem:[%s15063_s17 + $0x390] sm:$0xff]  ;;  %v11689_v62 = vld [vmem:[%s15063_s17 + $0x398] sm:$0xff] }
  0x39   :  { %15441 = vst [vmem:[#allocation113_spill] sm:$0xff] %v11679_v5  ;;  %15442 = vst [vmem:[#allocation114_spill] sm:$0xff] %v11684_v59  ;;  %v11694_v11 = vld [vmem:[%s15063_s17 + $0x3a0] sm:$0xff]  ;;  %v11699_v53 = vld [vmem:[%s15063_s17 + $0x3a8] sm:$0xff] }
  0x3a   :  { %15443 = vst [vmem:[#allocation115_spill] sm:$0xff] %v11689_v62  ;;  %15444 = vst [vmem:[#allocation116_spill] sm:$0xff] %v11694_v11  ;;  %v11704_v5 = vld [vmem:[%s15063_s17 + $0x3b0] sm:$0xff]  ;;  %v11709_v17 = vld [vmem:[%s15063_s17 + $0x3b8] sm:$0xff] }
  0x3b   :  { %15445 = vst [vmem:[#allocation117_spill] sm:$0xff] %v11699_v53  ;;  %15446 = vst [vmem:[#allocation118_spill] sm:$0xff] %v11704_v5  ;;  %v11714_v62 = vld [vmem:[%s15063_s17 + $0x3c0] sm:$0xff]  ;;  %v11719_v11 = vld [vmem:[%s15063_s17 + $0x3c8] sm:$0xff] }
  0x3c   :  { %15447 = vst [vmem:[#allocation119_spill] sm:$0xff] %v11709_v17  ;;  %15448 = vst [vmem:[#allocation120_spill] sm:$0xff] %v11714_v62  ;;  %v11724_v23 = vld [vmem:[%s15063_s17 + $0x3d0] sm:$0xff]  ;;  %v11729_v5 = vld [vmem:[%s15063_s17 + $0x3d8] sm:$0xff] }
  0x3d   :  { %15449 = vst [vmem:[#allocation121_spill] sm:$0xff] %v11719_v11  ;;  %15450 = vst [vmem:[#allocation122_spill] sm:$0xff] %v11724_v23  ;;  %v11734_v17 = vld [vmem:[%s15063_s17 + $0x3e0] sm:$0xff]  ;;  %v11739_v29 = vld [vmem:[%s15063_s17 + $0x3e8] sm:$0xff] }
  0x3e   :  { %15451 = vst [vmem:[#allocation123_spill] sm:$0xff] %v11729_v5  ;;  %15452 = vst [vmem:[#allocation124_spill] sm:$0xff] %v11734_v17  ;;  %v11744_v11 = vld [vmem:[%s15063_s17 + $0x3f0] sm:$0xff]  ;;  %v11749_v23 = vld [vmem:[%s15063_s17 + $0x3f8] sm:$0xff] }
  0x3f   :  { %15453 = vst [vmem:[#allocation125_spill] sm:$0xff] %v11739_v29  ;;  %15454 = vst [vmem:[#allocation126_spill] sm:$0xff] %v11749_v23  ;;  %v11754_v35 = vld [vmem:[%s15063_s17 + $0x400] sm:$0xff]  ;;  %v11759_v17 = vld [vmem:[%s15063_s17 + $0x408] sm:$0xff] }
  0x40   :  { %15455 = vst [vmem:[#allocation127_spill] sm:$0xff] %v11754_v35  ;;  %v11764_v29 = vld [vmem:[%s15063_s17 + $0x410] sm:$0xff]  ;;  %v11769_v41 = vld [vmem:[%s15063_s17 + $0x418] sm:$0xff]  ;;  %v11774_v23 = vld [vmem:[%s15063_s17 + $0x420] sm:$0xff] }
  0x41   :  { %15456 = vst [vmem:[#allocation128_spill] sm:$0xff] %v11764_v29  ;;  %15457 = vst [vmem:[#allocation129_spill] sm:$0xff] %v11769_v41  ;;  %v11779_v35 = vld [vmem:[%s15063_s17 + $0x428] sm:$0xff]  ;;  %v11784_v1 = vld [vmem:[%s15063_s17 + $0x430] sm:$0xff] }
  0x42   :  { %15458 = vst [vmem:[#allocation130_spill] sm:$0xff] %v11779_v35  ;;  %15459 = vst [vmem:[#allocation131_spill] sm:$0xff] %v11784_v1  ;;  %v11789_v29 = vld [vmem:[%s15063_s17 + $0x438] sm:$0xff]  ;;  %v11794_v41 = vld [vmem:[%s15063_s17 + $0x440] sm:$0xff] }
  0x43   :  { %15460 = vst [vmem:[#allocation132_spill] sm:$0xff] %v11794_v41  ;;  %v11799_v4 = vld [vmem:[%s15063_s17 + $0x448] sm:$0xff]  ;;  %v11804_v35 = vld [vmem:[%s15063_s17 + $0x450] sm:$0xff]  ;;  %v11809_v1 = vld [vmem:[%s15063_s17 + $0x458] sm:$0xff] }
  0x44   :  { %15461 = vst [vmem:[#allocation133_spill] sm:$0xff] %v11799_v4  ;;  %15462 = vst [vmem:[#allocation134_spill] sm:$0xff] %v11809_v1  ;;  %v11814_v7 = vld [vmem:[%s15063_s17 + $0x460] sm:$0xff]  ;;  %v11819_v41 = vld [vmem:[%s15063_s17 + $0x468] sm:$0xff] }
  0x45   :  { %15463 = vst [vmem:[#allocation135_spill] sm:$0xff] %v11814_v7  ;;  %v11824_v4 = vld [vmem:[%s15063_s17 + $0x470] sm:$0xff]  ;;  %v11829_v10 = vld [vmem:[%s15063_s17 + $0x478] sm:$0xff]  ;;  %v11834_v1 = vld [vmem:[%s15063_s17 + $0x480] sm:$0xff] }
  0x46   :  { %15464 = vst [vmem:[#allocation136_spill] sm:$0xff] %v11824_v4  ;;  %15465 = vst [vmem:[#allocation137_spill] sm:$0xff] %v11829_v10  ;;  %v11839_v7 = vld [vmem:[%s15063_s17 + $0x488] sm:$0xff]  ;;  %v11844_v13 = vld [vmem:[%s15063_s17 + $0x490] sm:$0xff] }
  0x47   :  { %15466 = vst [vmem:[#allocation138_spill] sm:$0xff] %v11834_v1  ;;  %15467 = vst [vmem:[#allocation139_spill] sm:$0xff] %v11839_v7  ;;  %v11849_v4 = vld [vmem:[%s15063_s17 + $0x498] sm:$0xff]  ;;  %v11854_v10 = vld [vmem:[%s15063_s17 + $0x4a0] sm:$0xff] }
  0x48   :  { %15468 = vst [vmem:[#allocation140_spill] sm:$0xff] %v11844_v13  ;;  %15469 = vst [vmem:[#allocation141_spill] sm:$0xff] %v11849_v4  ;;  %v11859_v16 = vld [vmem:[%s15063_s17 + $0x4a8] sm:$0xff]  ;;  %v11864_v7 = vld [vmem:[%s15063_s17 + $0x4b0] sm:$0xff] }
  0x49   :  { %15470 = vst [vmem:[#allocation142_spill] sm:$0xff] %v11854_v10  ;;  %15471 = vst [vmem:[#allocation143_spill] sm:$0xff] %v11859_v16  ;;  %v11869_v13 = vld [vmem:[%s15063_s17 + $0x4b8] sm:$0xff]  ;;  %v11874_v19 = vld [vmem:[%s15063_s17 + $0x4c0] sm:$0xff] }
  0x4a   :  { %15472 = vst [vmem:[#allocation144_spill] sm:$0xff] %v11864_v7  ;;  %15473 = vst [vmem:[#allocation145_spill] sm:$0xff] %v11869_v13  ;;  %v11879_v10 = vld [vmem:[%s15063_s17 + $0x4c8] sm:$0xff]  ;;  %v11884_v16 = vld [vmem:[%s15063_s17 + $0x4d0] sm:$0xff] }
  0x4b   :  { %15474 = vst [vmem:[#allocation146_spill] sm:$0xff] %v11874_v19  ;;  %15475 = vst [vmem:[#allocation147_spill] sm:$0xff] %v11879_v10  ;;  %v11889_v22 = vld [vmem:[%s15063_s17 + $0x4d8] sm:$0xff]  ;;  %v11894_v13 = vld [vmem:[%s15063_s17 + $0x4e0] sm:$0xff] }
  0x4c   :  { %15476 = vst [vmem:[#allocation148_spill] sm:$0xff] %v11884_v16  ;;  %15477 = vst [vmem:[#allocation149_spill] sm:$0xff] %v11889_v22  ;;  %v11899_v19 = vld [vmem:[%s15063_s17 + $0x4e8] sm:$0xff]  ;;  %v11904_v25 = vld [vmem:[%s15063_s17 + $0x4f0] sm:$0xff] }
  0x4d   :  { %15478 = vst [vmem:[#allocation150_spill] sm:$0xff] %v11894_v13  ;;  %15479 = vst [vmem:[#allocation151_spill] sm:$0xff] %v11899_v19  ;;  %v11909_v16 = vld [vmem:[%s15063_s17 + $0x4f8] sm:$0xff]  ;;  %v11914_v22 = vld [vmem:[%s15063_s17 + $0x500] sm:$0xff] }
  0x4e   :  { %15480 = vst [vmem:[#allocation152_spill] sm:$0xff] %v11904_v25  ;;  %15481 = vst [vmem:[#allocation153_spill] sm:$0xff] %v11909_v16  ;;  %v11919_v28 = vld [vmem:[%s15063_s17 + $0x508] sm:$0xff]  ;;  %v11924_v19 = vld [vmem:[%s15063_s17 + $0x510] sm:$0xff] }
  0x4f   :  { %15482 = vst [vmem:[#allocation154_spill] sm:$0xff] %v11914_v22  ;;  %15483 = vst [vmem:[#allocation155_spill] sm:$0xff] %v11919_v28  ;;  %v11929_v25 = vld [vmem:[%s15063_s17 + $0x518] sm:$0xff]  ;;  %v11934_v31 = vld [vmem:[%s15063_s17 + $0x520] sm:$0xff] }
  0x50   :  { %15484 = vst [vmem:[#allocation156_spill] sm:$0xff] %v11924_v19  ;;  %15485 = vst [vmem:[#allocation157_spill] sm:$0xff] %v11929_v25  ;;  %v11939_v22 = vld [vmem:[%s15063_s17 + $0x528] sm:$0xff]  ;;  %v11944_v28 = vld [vmem:[%s15063_s17 + $0x530] sm:$0xff] }
  0x51   :  { %15486 = vst [vmem:[#allocation158_spill] sm:$0xff] %v11934_v31  ;;  %15487 = vst [vmem:[#allocation159_spill] sm:$0xff] %v11939_v22  ;;  %v11949_v34 = vld [vmem:[%s15063_s17 + $0x538] sm:$0xff]  ;;  %v11954_v25 = vld [vmem:[%s15063_s17 + $0x540] sm:$0xff] }
  0x52   :  { %15488 = vst [vmem:[#allocation160_spill] sm:$0xff] %v11944_v28  ;;  %15489 = vst [vmem:[#allocation161_spill] sm:$0xff] %v11949_v34  ;;  %v11959_v31 = vld [vmem:[%s15063_s17 + $0x548] sm:$0xff]  ;;  %v11964_v37 = vld [vmem:[%s15063_s17 + $0x550] sm:$0xff] }
  0x53   :  { %15490 = vst [vmem:[#allocation162_spill] sm:$0xff] %v11954_v25  ;;  %15491 = vst [vmem:[#allocation163_spill] sm:$0xff] %v11959_v31  ;;  %v11969_v28 = vld [vmem:[%s15063_s17 + $0x558] sm:$0xff]  ;;  %v11974_v34 = vld [vmem:[%s15063_s17 + $0x560] sm:$0xff] }
  0x54   :  { %15492 = vst [vmem:[#allocation164_spill] sm:$0xff] %v11964_v37  ;;  %15493 = vst [vmem:[#allocation165_spill] sm:$0xff] %v11969_v28  ;;  %v11979_v40 = vld [vmem:[%s15063_s17 + $0x568] sm:$0xff]  ;;  %v11984_v31 = vld [vmem:[%s15063_s17 + $0x570] sm:$0xff] }
  0x55   :  { %15494 = vst [vmem:[#allocation166_spill] sm:$0xff] %v11974_v34  ;;  %15495 = vst [vmem:[#allocation167_spill] sm:$0xff] %v11979_v40  ;;  %v11989_v37 = vld [vmem:[%s15063_s17 + $0x578] sm:$0xff]  ;;  %v11994_v43 = vld [vmem:[%s15063_s17 + $0x580] sm:$0xff] }
  0x56   :  { %15496 = vst [vmem:[#allocation168_spill] sm:$0xff] %v11984_v31  ;;  %15497 = vst [vmem:[#allocation169_spill] sm:$0xff] %v11989_v37  ;;  %v11999_v34 = vld [vmem:[%s15063_s17 + $0x588] sm:$0xff]  ;;  %v12004_v40 = vld [vmem:[%s15063_s17 + $0x590] sm:$0xff] }
  0x57   :  { %15498 = vst [vmem:[#allocation170_spill] sm:$0xff] %v11994_v43  ;;  %15499 = vst [vmem:[#allocation171_spill] sm:$0xff] %v11999_v34  ;;  %v12009_v46 = vld [vmem:[%s15063_s17 + $0x598] sm:$0xff]  ;;  %v12014_v37 = vld [vmem:[%s15063_s17 + $0x5a0] sm:$0xff] }
  0x58   :  { %15500 = vst [vmem:[#allocation172_spill] sm:$0xff] %v12004_v40  ;;  %15501 = vst [vmem:[#allocation173_spill] sm:$0xff] %v12009_v46  ;;  %v12019_v43 = vld [vmem:[%s15063_s17 + $0x5a8] sm:$0xff]  ;;  %v12024_v1 = vld [vmem:[%s15063_s17 + $0x5b0] sm:$0xff] }
  0x59   :  { %15502 = vst [vmem:[#allocation174_spill] sm:$0xff] %v12014_v37  ;;  %15503 = vst [vmem:[#allocation175_spill] sm:$0xff] %v12019_v43  ;;  %v12029_v40 = vld [vmem:[%s15063_s17 + $0x5b8] sm:$0xff]  ;;  %v12034_v46 = vld [vmem:[%s15063_s17 + $0x5c0] sm:$0xff] }
  0x5a   :  { %15504 = vst [vmem:[#allocation176_spill] sm:$0xff] %v12024_v1  ;;  %15505 = vst [vmem:[#allocation177_spill] sm:$0xff] %v12029_v40  ;;  %v12039_v48 = vld [vmem:[%s15063_s17 + $0x5c8] sm:$0xff]  ;;  %v12044_v43 = vld [vmem:[%s15063_s17 + $0x5d0] sm:$0xff] }
  0x5b   :  { %15506 = vst [vmem:[#allocation178_spill] sm:$0xff] %v12034_v46  ;;  %15507 = vst [vmem:[#allocation179_spill] sm:$0xff] %v12039_v48  ;;  %v12049_v1 = vld [vmem:[%s15063_s17 + $0x5d8] sm:$0xff]  ;;  %v12054_v4 = vld [vmem:[%s15063_s17 + $0x5e0] sm:$0xff] }
  0x5c   :  { %15508 = vst [vmem:[#allocation180_spill] sm:$0xff] %v12044_v43  ;;  %15509 = vst [vmem:[#allocation181_spill] sm:$0xff] %v12049_v1  ;;  %v12059_v46 = vld [vmem:[%s15063_s17 + $0x5e8] sm:$0xff]  ;;  %v12064_v48 = vld [vmem:[%s15063_s17 + $0x5f0] sm:$0xff] }
  0x5d   :  { %15510 = vst [vmem:[#allocation182_spill] sm:$0xff] %v12054_v4  ;;  %15511 = vst [vmem:[#allocation183_spill] sm:$0xff] %v12059_v46  ;;  %v12069_v51 = vld [vmem:[%s15063_s17 + $0x5f8] sm:$0xff]  ;;  %v12074_v1 = vld [vmem:[%s15063_s17 + $0x600] sm:$0xff] }
  0x5e   :  { %15512 = vst [vmem:[#allocation184_spill] sm:$0xff] %v12064_v48  ;;  %15513 = vst [vmem:[#allocation185_spill] sm:$0xff] %v12069_v51  ;;  %v12079_v4 = vld [vmem:[%s15063_s17 + $0x608] sm:$0xff]  ;;  %v12084_v7 = vld [vmem:[%s15063_s17 + $0x610] sm:$0xff] }
  0x5f   :  { %15514 = vst [vmem:[#allocation186_spill] sm:$0xff] %v12074_v1  ;;  %15515 = vst [vmem:[#allocation187_spill] sm:$0xff] %v12079_v4  ;;  %v12089_v48 = vld [vmem:[%s15063_s17 + $0x618] sm:$0xff]  ;;  %v12094_v51 = vld [vmem:[%s15063_s17 + $0x620] sm:$0xff] }
  0x60   :  { %15516 = vst [vmem:[#allocation188_spill] sm:$0xff] %v12084_v7  ;;  %15517 = vst [vmem:[#allocation189_spill] sm:$0xff] %v12089_v48  ;;  %v12099_v1 = vld [vmem:[%s15063_s17 + $0x628] sm:$0xff]  ;;  %v12104_v4 = vld [vmem:[%s15063_s17 + $0x630] sm:$0xff] }
  0x61   :  { %15518 = vst [vmem:[#allocation190_spill] sm:$0xff] %v12094_v51  ;;  %15519 = vst [vmem:[#allocation191_spill] sm:$0xff] %v12099_v1  ;;  %v12109_v7 = vld [vmem:[%s15063_s17 + $0x638] sm:$0xff]  ;;  %v12114_v48 = vld [vmem:[%s15063_s17 + $0x640] sm:$0xff] }
  0x62   :  { %15520 = vst [vmem:[#allocation192_spill] sm:$0xff] %v12104_v4  ;;  %15521 = vst [vmem:[#allocation193_spill] sm:$0xff] %v12109_v7  ;;  %v12119_v51 = vld [vmem:[%s15063_s17 + $0x648] sm:$0xff]  ;;  %v12124_v1 = vld [vmem:[%s15063_s17 + $0x650] sm:$0xff] }
  0x63   :  { %15522 = vst [vmem:[#allocation194_spill] sm:$0xff] %v12114_v48  ;;  %15523 = vst [vmem:[#allocation195_spill] sm:$0xff] %v12119_v51  ;;  %v12129_v4 = vld [vmem:[%s15063_s17 + $0x658] sm:$0xff]  ;;  %v12134_v7 = vld [vmem:[%s15063_s17 + $0x660] sm:$0xff] }
  0x64   :  { %15524 = vst [vmem:[#allocation196_spill] sm:$0xff] %v12124_v1  ;;  %15525 = vst [vmem:[#allocation197_spill] sm:$0xff] %v12129_v4  ;;  %v12139_v48 = vld [vmem:[%s15063_s17 + $0x668] sm:$0xff]  ;;  %v12144_v51 = vld [vmem:[%s15063_s17 + $0x670] sm:$0xff] }
  0x65   :  { %15526 = vst [vmem:[#allocation198_spill] sm:$0xff] %v12134_v7  ;;  %15527 = vst [vmem:[#allocation199_spill] sm:$0xff] %v12139_v48  ;;  %v12149_v1 = vld [vmem:[%s15063_s17 + $0x678] sm:$0xff]  ;;  %v12154_v4 = vld [vmem:[%s15063_s17 + $0x680] sm:$0xff] }
  0x66   :  { %15528 = vst [vmem:[#allocation200_spill] sm:$0xff] %v12144_v51  ;;  %15529 = vst [vmem:[#allocation201_spill] sm:$0xff] %v12149_v1  ;;  %v12159_v7 = vld [vmem:[%s15063_s17 + $0x688] sm:$0xff]  ;;  %v12164_v48 = vld [vmem:[%s15063_s17 + $0x690] sm:$0xff] }
  0x67   :  { %15530 = vst [vmem:[#allocation202_spill] sm:$0xff] %v12154_v4  ;;  %15531 = vst [vmem:[#allocation203_spill] sm:$0xff] %v12159_v7  ;;  %v12169_v51 = vld [vmem:[%s15063_s17 + $0x698] sm:$0xff]  ;;  %v12174_v1 = vld [vmem:[%s15063_s17 + $0x6a0] sm:$0xff] }
  0x68   :  { %15532 = vst [vmem:[#allocation204_spill] sm:$0xff] %v12164_v48  ;;  %15533 = vst [vmem:[#allocation205_spill] sm:$0xff] %v12169_v51  ;;  %v12179_v4 = vld [vmem:[%s15063_s17 + $0x6a8] sm:$0xff]  ;;  %v12184_v7 = vld [vmem:[%s15063_s17 + $0x6b0] sm:$0xff] }
  0x69   :  { %15534 = vst [vmem:[#allocation206_spill] sm:$0xff] %v12174_v1  ;;  %15535 = vst [vmem:[#allocation207_spill] sm:$0xff] %v12179_v4  ;;  %v12189_v48 = vld [vmem:[%s15063_s17 + $0x6b8] sm:$0xff]  ;;  %v12194_v51 = vld [vmem:[%s15063_s17 + $0x6c0] sm:$0xff] }
  0x6a   :  { %15536 = vst [vmem:[#allocation208_spill] sm:$0xff] %v12184_v7  ;;  %15537 = vst [vmem:[#allocation209_spill] sm:$0xff] %v12189_v48  ;;  %v12199_v1 = vld [vmem:[%s15063_s17 + $0x6c8] sm:$0xff]  ;;  %v12204_v4 = vld [vmem:[%s15063_s17 + $0x6d0] sm:$0xff] }
  0x6b   :  { %15538 = vst [vmem:[#allocation210_spill] sm:$0xff] %v12194_v51  ;;  %15539 = vst [vmem:[#allocation211_spill] sm:$0xff] %v12199_v1  ;;  %v12209_v7 = vld [vmem:[%s15063_s17 + $0x6d8] sm:$0xff]  ;;  %v12214_v48 = vld [vmem:[%s15063_s17 + $0x6e0] sm:$0xff] }
  0x6c   :  { %15540 = vst [vmem:[#allocation212_spill] sm:$0xff] %v12204_v4  ;;  %15541 = vst [vmem:[#allocation213_spill] sm:$0xff] %v12209_v7  ;;  %v12219_v51 = vld [vmem:[%s15063_s17 + $0x6e8] sm:$0xff]  ;;  %v12224_v1 = vld [vmem:[%s15063_s17 + $0x6f0] sm:$0xff] }
  0x6d   :  { %15542 = vst [vmem:[#allocation214_spill] sm:$0xff] %v12214_v48  ;;  %15543 = vst [vmem:[#allocation215_spill] sm:$0xff] %v12219_v51  ;;  %v12229_v4 = vld [vmem:[%s15063_s17 + $0x6f8] sm:$0xff]  ;;  %v12234_v7 = vld [vmem:[%s15063_s17 + $0x700] sm:$0xff] }
  0x6e   :  { %15544 = vst [vmem:[#allocation216_spill] sm:$0xff] %v12224_v1  ;;  %15545 = vst [vmem:[#allocation217_spill] sm:$0xff] %v12229_v4  ;;  %v12239_v48 = vld [vmem:[%s15063_s17 + $0x708] sm:$0xff]  ;;  %v12244_v51 = vld [vmem:[%s15063_s17 + $0x710] sm:$0xff] }
  0x6f   :  { %15546 = vst [vmem:[#allocation218_spill] sm:$0xff] %v12234_v7  ;;  %15547 = vst [vmem:[#allocation219_spill] sm:$0xff] %v12239_v48  ;;  %v12249_v1 = vld [vmem:[%s15063_s17 + $0x718] sm:$0xff]  ;;  %v12254_v4 = vld [vmem:[%s15063_s17 + $0x720] sm:$0xff] }
  0x70   :  { %15548 = vst [vmem:[#allocation220_spill] sm:$0xff] %v12244_v51  ;;  %15549 = vst [vmem:[#allocation221_spill] sm:$0xff] %v12249_v1  ;;  %v12259_v7 = vld [vmem:[%s15063_s17 + $0x728] sm:$0xff]  ;;  %v12264_v48 = vld [vmem:[%s15063_s17 + $0x730] sm:$0xff] }
  0x71   :  { %15550 = vst [vmem:[#allocation222_spill] sm:$0xff] %v12254_v4  ;;  %15551 = vst [vmem:[#allocation223_spill] sm:$0xff] %v12259_v7  ;;  %v12269_v51 = vld [vmem:[%s15063_s17 + $0x738] sm:$0xff]  ;;  %v12274_v1 = vld [vmem:[%s15063_s17 + $0x740] sm:$0xff] }
  0x72   :  { %15552 = vst [vmem:[#allocation224_spill] sm:$0xff] %v12264_v48  ;;  %15553 = vst [vmem:[#allocation225_spill] sm:$0xff] %v12269_v51  ;;  %v12279_v4 = vld [vmem:[%s15063_s17 + $0x748] sm:$0xff]  ;;  %v12284_v7 = vld [vmem:[%s15063_s17 + $0x750] sm:$0xff] }
  0x73   :  { %15554 = vst [vmem:[#allocation226_spill] sm:$0xff] %v12274_v1  ;;  %15555 = vst [vmem:[#allocation227_spill] sm:$0xff] %v12279_v4  ;;  %v12289_v48 = vld [vmem:[%s15063_s17 + $0x758] sm:$0xff]  ;;  %v12294_v51 = vld [vmem:[%s15063_s17 + $0x760] sm:$0xff] }
  0x74   :  { %15556 = vst [vmem:[#allocation228_spill] sm:$0xff] %v12284_v7  ;;  %15557 = vst [vmem:[#allocation229_spill] sm:$0xff] %v12289_v48  ;;  %v12299_v1 = vld [vmem:[%s15063_s17 + $0x768] sm:$0xff]  ;;  %v12304_v4 = vld [vmem:[%s15063_s17 + $0x770] sm:$0xff] }
  0x75   :  { %15558 = vst [vmem:[#allocation230_spill] sm:$0xff] %v12294_v51  ;;  %15559 = vst [vmem:[#allocation231_spill] sm:$0xff] %v12299_v1  ;;  %v12309_v7 = vld [vmem:[%s15063_s17 + $0x778] sm:$0xff]  ;;  %v12314_v48 = vld [vmem:[%s15063_s17 + $0x780] sm:$0xff] }
  0x76   :  { %15560 = vst [vmem:[#allocation232_spill] sm:$0xff] %v12304_v4  ;;  %15561 = vst [vmem:[#allocation233_spill] sm:$0xff] %v12309_v7  ;;  %v12319_v51 = vld [vmem:[%s15063_s17 + $0x788] sm:$0xff]  ;;  %v12324_v1 = vld [vmem:[%s15063_s17 + $0x790] sm:$0xff] }
  0x77   :  { %15562 = vst [vmem:[#allocation234_spill] sm:$0xff] %v12314_v48  ;;  %15563 = vst [vmem:[#allocation235_spill] sm:$0xff] %v12319_v51  ;;  %v12329_v4 = vld [vmem:[%s15063_s17 + $0x798] sm:$0xff]  ;;  %v12334_v7 = vld [vmem:[%s15063_s17 + $0x7a0] sm:$0xff] }
  0x78   :  { %15564 = vst [vmem:[#allocation236_spill] sm:$0xff] %v12324_v1  ;;  %15565 = vst [vmem:[#allocation237_spill] sm:$0xff] %v12329_v4  ;;  %v12339_v48 = vld [vmem:[%s15063_s17 + $0x7a8] sm:$0xff]  ;;  %v12344_v51 = vld [vmem:[%s15063_s17 + $0x7b0] sm:$0xff] }
  0x79   :  { %15566 = vst [vmem:[#allocation238_spill] sm:$0xff] %v12334_v7  ;;  %15567 = vst [vmem:[#allocation239_spill] sm:$0xff] %v12339_v48  ;;  %v12349_v1 = vld [vmem:[%s15063_s17 + $0x7b8] sm:$0xff]  ;;  %v12354_v4 = vld [vmem:[%s15063_s17 + $0x7c0] sm:$0xff] }
  0x7a   :  { %15568 = vst [vmem:[#allocation240_spill] sm:$0xff] %v12344_v51  ;;  %15569 = vst [vmem:[#allocation241_spill] sm:$0xff] %v12349_v1  ;;  %v12359_v7 = vld [vmem:[%s15063_s17 + $0x7c8] sm:$0xff]  ;;  %v12364_v48 = vld [vmem:[%s15063_s17 + $0x7d0] sm:$0xff] }
  0x7b   :  { %15570 = vst [vmem:[#allocation242_spill] sm:$0xff] %v12354_v4  ;;  %15571 = vst [vmem:[#allocation243_spill] sm:$0xff] %v12359_v7  ;;  %v12369_v51 = vld [vmem:[%s15063_s17 + $0x7d8] sm:$0xff]  ;;  %v12374_v1 = vld [vmem:[%s15063_s17 + $0x7e0] sm:$0xff] }
  0x7c   :  { %15572 = vst [vmem:[#allocation244_spill] sm:$0xff] %v12364_v48  ;;  %15573 = vst [vmem:[#allocation245_spill] sm:$0xff] %v12369_v51  ;;  %v12379_v4 = vld [vmem:[%s15063_s17 + $0x7e8] sm:$0xff]  ;;  %v12384_v7 = vld [vmem:[%s15063_s17 + $0x7f0] sm:$0xff] }
  0x7d   :  { %15574 = vst [vmem:[#allocation246_spill] sm:$0xff] %v12374_v1  ;;  %15575 = vst [vmem:[#allocation247_spill] sm:$0xff] %v12379_v4  ;;  %v12389_v48 = vld [vmem:[%s15063_s17 + $0x7f8] sm:$0xff]  ;;  %v12394_v51 = vld [vmem:[%s15063_s17 + $0x800] sm:$0xff] }
  0x7e   :  { %15576 = vst [vmem:[#allocation248_spill] sm:$0xff] %v12384_v7  ;;  %15577 = vst [vmem:[#allocation249_spill] sm:$0xff] %v12389_v48  ;;  %v12399_v1 = vld [vmem:[%s15063_s17 + $0x808] sm:$0xff]  ;;  %v12404_v4 = vld [vmem:[%s15063_s17 + $0x810] sm:$0xff] }
  0x7f   :  { %15578 = vst [vmem:[#allocation250_spill] sm:$0xff] %v12394_v51  ;;  %15579 = vst [vmem:[#allocation251_spill] sm:$0xff] %v12399_v1  ;;  %v12409_v7 = vld [vmem:[%s15063_s17 + $0x818] sm:$0xff]  ;;  %v12414_v48 = vld [vmem:[%s15063_s17 + $0x820] sm:$0xff] }
  0x80   :  { %15580 = vst [vmem:[#allocation252_spill] sm:$0xff] %v12404_v4  ;;  %15581 = vst [vmem:[#allocation253_spill] sm:$0xff] %v12409_v7  ;;  %v12419_v51 = vld [vmem:[%s15063_s17 + $0x828] sm:$0xff]  ;;  %v12424_v1 = vld [vmem:[%s15063_s17 + $0x830] sm:$0xff] }
  0x81   :  { %15582 = vst [vmem:[#allocation254_spill] sm:$0xff] %v12414_v48  ;;  %15583 = vst [vmem:[#allocation255_spill] sm:$0xff] %v12419_v51  ;;  %v12429_v4 = vld [vmem:[%s15063_s17 + $0x838] sm:$0xff]  ;;  %v635_v7 = vld [vmem:[%s15586_s28] sm:$0xff] }
  0x82   :  { %15584 = vst [vmem:[#allocation256_spill] sm:$0xff] %v12424_v1  ;;  %15585 = vst [vmem:[#allocation257_spill] sm:$0xff] %v12429_v4  ;;  %v643_v48 = vld [vmem:[%s15587_s4] sm:$0xff]  ;;  %v636_v51 = vld [vmem:[%s15586_s28 + $0x8] sm:$0xff] }
  0x83   :  { %v645_v54 = vadd.f32 %v643_v48, %v635_v7  ;;  %v644_v1 = vld [vmem:[%s15587_s4 + $0x8] sm:$0xff] }
  0x84   :  { %634 = vsyncadd [#allocation3], 33792  ;;  %v646_v4 = vadd.f32 %v644_v1, %v636_v51  ;;  %v718_v51 = vld [vmem:[%s15055_s9 + $0xd8] sm:$0xff]  ;;  %v9872_v46 = vld [vmem:[%s15057_s11 + $0x160] sm:$0xff]   ;;  %s15589_s24 = sld [smem:[#allocation263_spill]]  ;;  %vm2965_vm1 = vcmask 64512  }
  0x85   :  { %v648_v10 = vsel %vm647_vm0, %v645_v54, 0.0  ;;  %v8984_v0 = vunpack.c.h.bf16 %v9872_v46  ;;  %v9882_v61 = vld [vmem:[%s15057_s11 + $0x1b0] sm:$0xff]   ;;  %s15590_s28 = sld [smem:[#allocation259_spill]]  ;;  %vm3057_vm2 = vcmask 130048   ;;  %s10999_s30 = smov 112  }
  0x86   :  { %649 = vadd.xlane.f32.xlu0 %v648_v10  ;;  %v651_v57 = vsel %vm647_vm0, %v646_v4, 0.0  ;;  %v9024_v52 = vunpack.c.h.bf16 %v9882_v61  ;;  %s11000_s5 = smov 104   ;;  %s15591_s22 = sld [smem:[#allocation261_spill]] }
  0x87   :  { %s15592_s1 = sld [smem:[#allocation262_spill]] }
  0x8a   :  { %652 = vadd.xlane.f32.xlu0 %v651_v57  ;;  %v777_v57 = vunpack.c.l.bf16 %v718_v51 }
 0x10f   :  { %v650_v13 = vpop.xlane.xlu0 %649 }
 0x110   :  { %v655_v60 = vmul.f32 0.03125, %v650_v13  ;;  %v715_v13 = vld [vmem:[%s15055_s9 + $0xc0] sm:$0xff] }
 0x112   :  { %v12445_v16 = vsub.f32 %v645_v54, %v655_v60  ;;  %v772_v54 = vunpack.c.h.bf16 %v715_v13  ;;  %v710_v60 = vld [vmem:[%s15055_s9 + $0x98] sm:$0xff] }
 0x113   :  { %v653_v63 = vpop.xlane.xlu0 %652 }
 0x114   :  { %v656_v19 = vmul.f32 0.03125, %v653_v63  ;;  %v659_v7 = vmul.f32 %v12445_v16, %v12445_v16  ;;  %1413 = vmatprep.subr.mxu0 %v772_v54 }
 0x116   :  { %v12449_v48 = vsub.f32 %v646_v4, %v656_v19  ;;  %v661_v56 = vsel %vm647_vm0, %v659_v7, 0.0  ;;  %v778_v4 = vunpack.c.h.bf16 %v718_v51  ;;  %v771_v19 = vunpack.c.l.bf16 %v715_v13  ;;  %v702_v51 = vld [vmem:[%s15055_s9 + $0x58] sm:$0xff] }
 0x117   :  { %662 = vadd.xlane.f32.xlu1 %v661_v56  ;;  %v707_v56 = vld [vmem:[%s15055_s9 + $0x80] sm:$0xff]  ;;  %v762_v7 = vunpack.c.h.bf16 %v710_v60  ;;  %v761_v13 = vunpack.c.l.bf16 %v710_v60  ;;  %v746_v2 = vunpack.c.h.bf16 %v702_v51 }
 0x118   :  { %v660_v1 = vmul.f32 %v12449_v48, %v12449_v48  ;;  %1644 = vmatprep.subr.mxu1 %v778_v4  ;;  %v756_v63 = vunpack.c.h.bf16 %v707_v56  ;;  %1414 = vmatpush1.msra.mxu0 %v771_v19  ;;  %v691_v4 = vld [vmem:[%s15055_s9] sm:$0xff]  ;;  %v745_v19 = vunpack.c.l.bf16 %v702_v51 }
 0x119   :  { %1645 = vmatpush1.msra.mxu1 %v777_v57  ;;  %v724_v57 = vunpack.c.h.bf16 %v691_v4 }
 0x11a   :  { %v664_v10 = vsel %vm647_vm0, %v660_v1, 0.0  ;;  %v755_v1 = vunpack.c.l.bf16 %v707_v56  ;;  %1415 = vmatprep.subr.mxu0 %v756_v63  ;;  %1646 = vmatprep.subr.mxu1 %v762_v7  ;;  %v694_v56 = vld [vmem:[%s15055_s9 + $0x18] sm:$0xff]  ;;  %v723_v63 = vunpack.c.l.bf16 %v691_v4  ;;  %v716_v7 = vld [vmem:[%s15055_s9 + $0xc8] sm:$0xff] }
 0x11b   :  { %665 = vadd.xlane.f32.xlu1 %v664_v10  ;;  %v699_v10 = vld [vmem:[%s15055_s9 + $0x40] sm:$0xff]  ;;  %1647 = vmatpush1.msra.mxu1 %v761_v13  ;;  %v730_v60 = vunpack.c.h.bf16 %v694_v56  ;;  %v774_v13 = vunpack.c.h.bf16 %v716_v7 }
 0x11c   :  { %v740_v22 = vunpack.c.h.bf16 %v699_v10  ;;  %1416 = vmatpush1.msra.mxu0 %v755_v1  ;;  %v739_v54 = vunpack.c.l.bf16 %v699_v10  ;;  %1648 = vmatprep.subr.mxu1 %v746_v2  ;;  %v729_v1 = vunpack.c.l.bf16 %v694_v56  ;;  %v720_v10 = vld [vmem:[%s15055_s9 + $0xe8] sm:$0xff]  ;;  %v15291_v2 = vmov 0.0  }
 0x11d   :  { %1649 = vmatpush1.msra.mxu1 %v745_v19  ;;  %v782_v51 = vunpack.c.h.bf16 %v720_v10  ;;  %1453 = vmatprep.mubr.f32.mxu0 %v15291_v2 }
 0x11e   :  { %1417 = vmatprep.subr.mxu0 %v740_v22  ;;  %1650 = vmatprep.subr.mxu1 %v730_v60  ;;  %v8404_v60 = vld [vmem:[%s15059_s13 + $0x1] ss:$0 sm:$0xff] }
 0x11f   :  { %1418 = vmatpush1.msra.mxu0 %v739_v54  ;;  %1651 = vmatpush1.msra.mxu1 %v729_v1  ;;  %v8405_v1 = vld [vmem:[%s15060_s14 + $0x1] ss:$0 sm:$0xff] }
 0x120   :  { %1419 = vmatprep.subr.mxu0 %v724_v57  ;;  %1684 = vmatprep.mubr.f32.mxu1 %v15291_v2 }
 0x121   :  { %1420 = vmatpush1.msra.mxu0 %v723_v63  ;;  %1798 = vmatprep.subr.mxu1 %v782_v51  ;;  %v712_v51 = vld [vmem:[%s15055_s9 + $0xa8] sm:$0xff] }
 0x122   :  { %1490 = vmatprep.subr.mxu0 %v774_v13  ;;  %v708_v13 = vld [vmem:[%s15055_s9 + $0x88] sm:$0xff]  ;;  %v766_v2 = vunpack.c.h.bf16 %v712_v51 }
 0x123   :  { %v757_v8 = vunpack.c.l.bf16 %v708_v13 }
 0x1a0   :  { %v663_v22 = vpop.xlane.xlu1 %662 }
 0x1a1   :  { %v667_v54 = vmul.f32 0.03125, %v663_v22 }
 0x1a3   :  { %v669_v4 = vadd.f32 1e-05, %v667_v54  ;;  %v773_v54 = vunpack.c.l.bf16 %v716_v7 }
 0x1a4   :  { %v666_v19 = vpop.xlane.xlu1 %665 }
 0x1a5   :  { %10943 = vrsqrt.f32 %v669_v4  ;;  %v668_v56 = vmul.f32 0.03125, %v666_v19  ;;  %v781_v4 = vunpack.c.l.bf16 %v720_v10  ;;  %v704_v10 = vld [vmem:[%s15055_s9 + $0x68] sm:$0xff] }
 0x1a7   :  { %v670_v25 = vadd.f32 1e-05, %v668_v56 }
 0x1a9   :  { %10945 = vrsqrt.f32 %v670_v25 }
 0x1b2   :  { %v10944_v57 = vpop.eup %10943 }
 0x1b3   :  { %v673_v63 = vmul.f32 %v10944_v57, %v12445_v16  ;;  %v700_v16 = vld [vmem:[%s15055_s9 + $0x48] sm:$0xff]  ;;  %v758_v57 = vunpack.c.h.bf16 %v708_v13 }
 0x1b4   :  { %v742_v7 = vunpack.c.h.bf16 %v700_v16 }
 0x1b5   :  { %v681_v25 = vmul.f32 %v8404_v60, %v673_v63  ;;  %v692_v63 = vld [vmem:[%s15055_s9 + $0x8] sm:$0xff] }
 0x1b6   :  { %v10946_v22 = vpop.eup %10945  ;;  %v726_v14 = vunpack.c.h.bf16 %v692_v63 }
 0x1b7   :  { %v12503_v19 = vadd.f32 %v8405_v1, %v681_v25  ;;  %v674_v56 = vmul.f32 %v10946_v22, %v12449_v48  ;;  %v765_v48 = vunpack.c.l.bf16 %v712_v51  ;;  %v696_v25 = vld [vmem:[%s15055_s9 + $0x28] sm:$0xff]  ;;  %v15588_v22 = vmov 0.0  }
 0x1b9   :  { %v682_v28 = vmul.f32 %v8404_v60, %v674_v56  ;;  %8406 = vmatmul.mubr.msk.f32.vlgmr.msra.gmra.mxu0 %vm647_vm0, %v12503_v19  ;;  %8412 = vmatmul.mubr.msk.f32.vlgmr.msra.gmra.mxu1 %vm647_vm0, %v12503_v19  ;;  %v741_v60 = vunpack.c.l.bf16 %v700_v16  ;;  %v750_v56 = vunpack.c.h.bf16 %v704_v10  ;;  %v709_v16 = vld [vmem:[%s15055_s9 + $0x90] sm:$0xff] }
 0x1ba   :  { %1491 = vmatpush1.msra.mxu0 %v773_v54  ;;  %1799 = vmatpush1.msra.mxu1 %v781_v4  ;;  %v749_v54 = vunpack.c.l.bf16 %v704_v10  ;;  %v725_v4 = vunpack.c.l.bf16 %v692_v63 }
 0x1bb   :  { %v12516_v13 = vadd.f32 %v8405_v1, %v682_v28  ;;  %1492 = vmatprep.subr.mxu0 %v758_v57  ;;  %1800 = vmatprep.subr.mxu1 %v766_v2  ;;  %v717_v28 = vld [vmem:[%s15055_s9 + $0xd0] sm:$0xff]  ;;  %v734_v2 = vunpack.c.h.bf16 %v696_v25  ;;  %v733_v1 = vunpack.c.l.bf16 %v696_v25  ;;  %v714_v57 = vld [vmem:[%s15055_s9 + $0xb8] sm:$0xff]  ;;  %v759_v25 = vunpack.c.l.bf16 %v709_v16 }
 0x1bc   :  { %1493 = vmatpush1.msra.mxu0 %v757_v8  ;;  %1459 = vmatprep.mubr.f32.mxu0 %v15588_v22  ;;  %v722_v8 = vld [vmem:[%s15055_s9 + $0xf8] sm:$0xff]  ;;  %v776_v51 = vunpack.c.h.bf16 %v717_v28  ;;  %v775_v10 = vunpack.c.l.bf16 %v717_v28  ;;  %v693_v28 = vld [vmem:[%s15055_s9 + $0x10] sm:$0xff] }
 0x1bd   :  { %1494 = vmatprep.subr.mxu0 %v742_v7  ;;  %1690 = vmatprep.mubr.f32.mxu1 %v15588_v22  ;;  %v786_v7 = vunpack.c.h.bf16 %v722_v8  ;;  %v785_v63 = vunpack.c.l.bf16 %v722_v8 }
 0x1be   :  { %1801 = vmatpush1.msra.mxu1 %v765_v48  ;;  %8407 = vmatmul.mubr.msk.f32.gmra.mxu0 %vm647_vm0, %v12516_v13  ;;  %v770_v48 = vunpack.c.h.bf16 %v714_v57 }
 0x1bf   :  { %1495 = vmatpush1.msra.mxu0 %v741_v60  ;;  %8413 = vmatmul.mubr.msk.f32.gmra.mxu1 %vm647_vm0, %v12516_v13  ;;  %v701_v60 = vld [vmem:[%s15055_s9 + $0x50] sm:$0xff] }
 0x1c0   :  { %1802 = vmatprep.subr.mxu1 %v750_v56  ;;  %1496 = vmatprep.subr.mxu0 %v726_v14  ;;  %v760_v14 = vunpack.c.h.bf16 %v709_v16  ;;  %v706_v56 = vld [vmem:[%s15055_s9 + $0x78] sm:$0xff]  ;;  %v728_v16 = vunpack.c.h.bf16 %v693_v28 }
 0x1c1   :  { %1803 = vmatpush1.msra.mxu1 %v749_v54  ;;  %1497 = vmatpush1.msra.mxu0 %v725_v4  ;;  %v769_v54 = vunpack.c.l.bf16 %v714_v57  ;;  %v744_v4 = vunpack.c.h.bf16 %v701_v60  ;;  %v754_v8 = vunpack.c.h.bf16 %v706_v56 }
 0x1c2   :  { %1804 = vmatprep.subr.mxu1 %v734_v2  ;;  %1530 = vmatprep.mubr.f32.mxu0 %v15588_v22  ;;  %v698_v2 = vld [vmem:[%s15055_s9 + $0x38] sm:$0xff] }
 0x1c3   :  { %1805 = vmatpush1.msra.mxu1 %v733_v1  ;;  %1838 = vmatprep.mubr.f32.mxu1 %v15588_v22  ;;  %v743_v1 = vunpack.c.l.bf16 %v701_v60  ;;  %v738_v57 = vunpack.c.h.bf16 %v698_v2 }
 0x1c4   :  { %8408 = vmatmul.mubr.msk.f32.vlgmr.msra.gmra.mxu0 %vm647_vm0, %v12503_v19  ;;  %1567 = vmatprep.subr.mxu0 %v776_v51  ;;  %v753_v51 = vunpack.c.l.bf16 %v706_v56 }
 0x1c5   :  { %8416 = vmatmul.mubr.msk.f32.vlgmr.msra.gmra.mxu1 %vm647_vm0, %v12503_v19  ;;  %1952 = vmatprep.subr.mxu1 %v786_v7  ;;  %v719_v7 = vld [vmem:[%s15055_s9 + $0xe0] sm:$0xff] }
 0x1c6   :  { %1568 = vmatpush1.msra.mxu0 %v775_v10  ;;  %1953 = vmatpush1.msra.mxu1 %v785_v63  ;;  %v727_v10 = vunpack.c.l.bf16 %v693_v28  ;;  %v737_v63 = vunpack.c.l.bf16 %v698_v2  ;;  %v779_v60 = vunpack.c.l.bf16 %v719_v7  ;;  %v9859_v2 = vld [vmem:[%s15057_s11 + $0xf8] sm:$0xff]  }
 0x1c7   :  { %1569 = vmatprep.subr.mxu0 %v760_v14  ;;  %1954 = vmatprep.subr.mxu1 %v770_v48  ;;  %v711_v14 = vld [vmem:[%s15055_s9 + $0xa0] sm:$0xff]  ;;  %v780_v48 = vunpack.c.h.bf16 %v719_v7  ;;  %v8932_v7 = vunpack.c.h.bf16 %v9859_v2 }
 0x1c8   :  { %1536 = vmatprep.mubr.f32.mxu0 %v15588_v22  ;;  %1570 = vmatpush1.msra.mxu0 %v759_v25  ;;  %v703_v25 = vld [vmem:[%s15055_s9 + $0x60] sm:$0xff]  ;;  %v764_v56 = vunpack.c.h.bf16 %v711_v14 }
 0x1c9   :  { %1844 = vmatprep.mubr.f32.mxu1 %v15588_v22  ;;  %1955 = vmatpush1.msra.mxu1 %v769_v54  ;;  %v763_v54 = vunpack.c.l.bf16 %v711_v14  ;;  %v748_v28 = vunpack.c.h.bf16 %v703_v25 }
 0x1ca   :  { %8409 = vmatmul.mubr.msk.f32.gmra.mxu0 %vm647_vm0, %v12516_v13  ;;  %1571 = vmatprep.subr.mxu0 %v744_v4  ;;  %v695_v4 = vld [vmem:[%s15055_s9 + $0x20] sm:$0xff] }
 0x1cb   :  { %8417 = vmatmul.mubr.msk.f32.gmra.mxu1 %vm647_vm0, %v12516_v13  ;;  %1956 = vmatprep.subr.mxu1 %v754_v8  ;;  %v747_v8 = vunpack.c.l.bf16 %v703_v25 }
 0x1cc   :  { %1572 = vmatpush1.msra.mxu0 %v743_v1  ;;  %1957 = vmatpush1.msra.mxu1 %v753_v51  ;;  %v721_v1 = vld [vmem:[%s15055_s9 + $0xf0] sm:$0xff]  ;;  %v732_v51 = vunpack.c.h.bf16 %v695_v4 }
 0x1cd   :  { %1573 = vmatprep.subr.mxu0 %v728_v16  ;;  %1958 = vmatprep.subr.mxu1 %v738_v57  ;;  %v731_v16 = vunpack.c.l.bf16 %v695_v4  ;;  %v713_v57 = vld [vmem:[%s15055_s9 + $0xb0] sm:$0xff]  ;;  %v783_v14 = vunpack.c.l.bf16 %v721_v1  ;;  %v8931_v4 = vunpack.c.l.bf16 %v9859_v2  ;;  %v9835_v2 = vld [vmem:[%s15057_s11 + $0x38] sm:$0xff]  }
 0x1ce   :  { %1574 = vmatpush1.msra.mxu0 %v727_v10  ;;  %1607 = vmatprep.mubr.f32.mxu0 %v15588_v22  ;;  %v9851_v10 = vld [vmem:[%s15057_s11 + $0xb8] sm:$0xff]  }
 0x1cf   :  { %1959 = vmatpush1.msra.mxu1 %v737_v63  ;;  %1992 = vmatprep.mubr.f32.mxu1 %v15588_v22  ;;  %v784_v63 = vunpack.c.h.bf16 %v721_v1  ;;  %v8900_v25 = vunpack.c.h.bf16 %v9851_v10 }
 0x1d0   :  { %8410 = vmatmul.mubr.msk.f32.vlgmr.msra.gmra.mxu0 %vm647_vm0, %v12503_v19  ;;  %1721 = vmatprep.subr.mxu0 %v780_v48  ;;  %v705_v48 = vld [vmem:[%s15055_s9 + $0x70] sm:$0xff] }
 0x1d1   :  { %8420 = vmatmul.mubr.msk.f32.vlgmr.msra.gmra.mxu1 %vm647_vm0, %v12503_v19  ;;  %1722 = vmatpush1.msra.mxu0 %v779_v60  ;;  %v768_v60 = vunpack.c.h.bf16 %v713_v57  ;;  %v751_v1 = vunpack.c.l.bf16 %v705_v48 }
 0x1d2   :  { %1723 = vmatprep.subr.mxu0 %v764_v56  ;;  %1613 = vmatprep.mubr.f32.mxu0 %v15588_v22  ;;  %v767_v56 = vunpack.c.l.bf16 %v713_v57  ;;  %v8899_v57 = vunpack.c.l.bf16 %v9851_v10  ;;  %v9842_v10 = vld [vmem:[%s15057_s11 + $0x70] sm:$0xff]  }
 0x1d3   :  { %1724 = vmatpush1.msra.mxu0 %v763_v54  ;;  %1998 = vmatprep.mubr.f32.mxu1 %v15588_v22  ;;  %v697_v54 = vld [vmem:[%s15055_s9 + $0x30] sm:$0xff] }
 0x1d4   :  { %8411 = vmatmul.mubr.msk.f32.gmra.mxu0 %vm647_vm0, %v12516_v13  ;;  %1725 = vmatprep.subr.mxu0 %v748_v28  ;;  %v752_v28 = vunpack.c.h.bf16 %v705_v48 }
 0x1d5   :  { %8421 = vmatmul.mubr.msk.f32.gmra.mxu1 %vm647_vm0, %v12516_v13  ;;  %1726 = vmatpush1.msra.mxu0 %v747_v8  ;;  %v9858_v8 = vld [vmem:[%s15057_s11 + $0xf0] sm:$0xff]  }
 0x1d6   :  { %1727 = vmatprep.subr.mxu0 %v732_v51  ;;  %1761 = vmatprep.mubr.f32.mxu0 %v15588_v22  ;;  %v9843_v51 = vld [vmem:[%s15057_s11 + $0x78] sm:$0xff]  }
 0x1d7   :  { %1728 = vmatpush1.msra.mxu0 %v731_v16  ;;  %10122 = vmatprep.subr.mxu1 %v8932_v7  ;;  %v736_v16 = vunpack.c.h.bf16 %v697_v54  ;;  %v735_v7 = vunpack.c.l.bf16 %v697_v54  ;;  %v8868_v48 = vunpack.c.h.bf16 %v9843_v51 }
 0x1d8   :  { %8414 = vmatmul.mubr.msk.f32.vlgmr.msra.gmra.mxu0 %vm647_vm0, %v12503_v19  ;;  %1875 = vmatprep.subr.mxu0 %v784_v63  ;;  %v8928_v63 = vunpack.c.h.bf16 %v9858_v8 }
 0x1d9   :  { %1876 = vmatpush1.msra.mxu0 %v783_v14  ;;  %1767 = vmatprep.mubr.f32.mxu0 %v15588_v22  ;;  %v9850_v14 = vld [vmem:[%s15057_s11 + $0xb0] sm:$0xff]  }
 0x1da   :  { %1877 = vmatprep.subr.mxu0 %v768_v60  ;;  %10123 = vmatpush3.msra.mxu1 %v8900_v25  ;;  %v8836_v60 = vunpack.c.h.bf16 %v9835_v2  ;;  %v8867_v25 = vunpack.c.l.bf16 %v9843_v51  ;;  %v8896_v54 = vunpack.c.h.bf16 %v9850_v14  ;;  %v9849_v51 = vld [vmem:[%s15057_s11 + $0xa8] sm:$0xff]  }
 0x1db   :  { %1878 = vmatpush1.msra.mxu0 %v767_v56  ;;  %10124 = vmatprep.subr.mxu1 %v8931_v4  ;;  %v9834_v56 = vld [vmem:[%s15057_s11 + $0x30] sm:$0xff]   ;;  %v8835_v4 = vunpack.c.l.bf16 %v9835_v2  ;;  %v8895_v2 = vunpack.c.l.bf16 %v9850_v14  ;;  %v8892_v20 = vunpack.c.h.bf16 %v9849_v51 }
 0x1dc   :  { %8415 = vmatmul.mubr.msk.f32.gmra.mxu0 %vm647_vm0, %v12516_v13  ;;  %1879 = vmatprep.subr.mxu0 %v752_v28  ;;  %v8927_v28 = vunpack.c.l.bf16 %v9858_v8  ;;  %v9841_v8 = vld [vmem:[%s15057_s11 + $0x68] sm:$0xff]   ;;  %v8831_v31 = vunpack.c.l.bf16 %v9834_v56 }
 0x1dd   :  { %1880 = vmatpush1.msra.mxu0 %v751_v1  ;;  %1915 = vmatprep.mubr.f32.mxu0 %v15588_v22  ;;  %v9857_v1 = vld [vmem:[%s15057_s11 + $0xe8] sm:$0xff]   ;;  %v8860_v14 = vunpack.c.h.bf16 %v9841_v8 }
 0x1de   :  { %1881 = vmatprep.subr.mxu0 %v736_v16  ;;  %10125 = vmatpush3.msra.mxu1 %v8899_v57  ;;  %v8864_v16 = vunpack.c.h.bf16 %v9842_v10  ;;  %v8832_v57 = vunpack.c.h.bf16 %v9834_v56  ;;  %v9840_v56 = vld [vmem:[%s15057_s11 + $0x60] sm:$0xff]  }
 0x1df   :  { %1882 = vmatpush1.msra.mxu0 %v735_v7  ;;  %10126 = vmatprep.subr.mxu1 %v8928_v63  ;;  %v8863_v7 = vunpack.c.l.bf16 %v9842_v10  ;;  %v9833_v63 = vld [vmem:[%s15057_s11 + $0x28] sm:$0xff]   ;;  %v8923_v10 = vunpack.c.l.bf16 %v9857_v1  ;;  %v8856_v37 = vunpack.c.h.bf16 %v9840_v56 }
 0x1e0   :  { %8418 = vmatmul.mubr.msk.f32.vlgmr.msra.gmra.mxu0 %vm647_vm0, %v12503_v19  ;;  %10084 = vmatprep.subr.mxu0 %v8868_v48  ;;  %v8924_v48 = vunpack.c.h.bf16 %v9857_v1  ;;  %v8827_v34 = vunpack.c.l.bf16 %v9833_v63 }
 0x1e1   :  { %1921 = vmatprep.mubr.f32.mxu0 %v15588_v22  ;;  %10085 = vmatpush3.msra.mxu0 %v8836_v60  ;;  %v9856_v60 = vld [vmem:[%s15057_s11 + $0xe0] sm:$0xff]  }
 0x1e2   :  { %10086 = vmatprep.subr.mxu0 %v8867_v25  ;;  %10127 = vmatpush3.msra.mxu1 %v8896_v54  ;;  %v9848_v25 = vld [vmem:[%s15057_s11 + $0xa0] sm:$0xff]   ;;  %v8828_v54 = vunpack.c.h.bf16 %v9833_v63  ;;  %v8920_v1 = vunpack.c.h.bf16 %v9856_v60 }
 0x1e3   :  { %10087 = vmatpush3.msra.mxu0 %v8835_v4  ;;  %10128 = vmatprep.subr.mxu1 %v8927_v28  ;;  %v8891_v4 = vunpack.c.l.bf16 %v9849_v51  ;;  %v8859_v28 = vunpack.c.l.bf16 %v9841_v8  ;;  %v8888_v26 = vunpack.c.h.bf16 %v9848_v25  ;;  %v8919_v51 = vunpack.c.l.bf16 %v9856_v60 }
 0x1e4   :  { %8419 = vmatmul.mubr.msk.f32.gmra.mxu0 %vm647_vm0, %v12516_v13  ;;  %10088 = vmatprep.subr.mxu0 %v8864_v16  ;;  %v9832_v16 = vld [vmem:[%s15057_s11 + $0x20] sm:$0xff]  }
 0x1e5   :  { %10089 = vmatpush3.msra.mxu0 %v8832_v57  ;;  %10129 = vmatpush3.msra.mxu1 %v8895_v2  ;;  %v9855_v57 = vld [vmem:[%s15057_s11 + $0xd8] sm:$0xff]   ;;  %v8824_v8 = vunpack.c.h.bf16 %v9832_v16 }
 0x1e6   :  { %10090 = vmatprep.subr.mxu0 %v8863_v7  ;;  %10130 = vmatprep.subr.mxu1 %v8924_v48  ;;  %v9839_v2 = vld [vmem:[%s15057_s11 + $0x58] sm:$0xff]   ;;  %v8887_v7 = vunpack.c.l.bf16 %v9848_v25  ;;  %v8916_v63 = vunpack.c.h.bf16 %v9855_v57  ;;  %v8823_v48 = vunpack.c.l.bf16 %v9832_v16 }
 0x1e7   :  { %10091 = vmatpush3.msra.mxu0 %v8831_v31  ;;  %10131 = vmatpush3.msra.mxu1 %v8892_v20  ;;  %v8855_v31 = vunpack.c.l.bf16 %v9840_v56  ;;  %v9831_v20 = vld [vmem:[%s15057_s11 + $0x18] sm:$0xff]   ;;  %v8852_v60 = vunpack.c.h.bf16 %v9839_v2  ;;  %v8851_v25 = vunpack.c.l.bf16 %v9839_v2  ;;  %v9837_v56 = vld [vmem:[%s15057_s11 + $0x48] sm:$0xff]   ;;  %v8915_v2 = vunpack.c.l.bf16 %v9855_v57  ;;  %v8806_v57 = vld [vmem:[%s15057_s11] sm:$0xff]  }
 0x1e8   :  { %10092 = vmatprep.subr.mxu0 %v8860_v14  ;;  %10132 = vmatprep.subr.mxu1 %v8923_v10  ;;  %v8820_v14 = vunpack.c.h.bf16 %v9831_v20  ;;  %v9838_v10 = vld [vmem:[%s15057_s11 + $0x50] sm:$0xff]   ;;  %v8844_v16 = vunpack.c.h.bf16 %v9837_v56 }
 0x1e9   :  { %10093 = vmatpush3.msra.mxu0 %v8828_v54  ;;  %10133 = vmatpush3.msra.mxu1 %v8891_v4  ;;  %v9830_v54 = vld [vmem:[%s15057_s11 + $0x10] sm:$0xff]   ;;  %v8847_v4 = vunpack.c.l.bf16 %v9838_v10 }
 0x1ea   :  { %10094 = vmatprep.subr.mxu0 %v8859_v28  ;;  %10134 = vmatprep.subr.mxu1 %v8920_v1  ;;  %v8815_v28 = vunpack.c.l.bf16 %v9830_v54  ;;  %v9829_v1 = vld [vmem:[%s15057_s11 + $0x8] sm:$0xff]  }
 0x1eb   :  { %10095 = vmatpush3.msra.mxu0 %v8827_v34  ;;  %10135 = vmatpush3.msra.mxu1 %v8888_v26  ;;  %v8819_v34 = vunpack.c.l.bf16 %v9831_v20  ;;  %v8848_v26 = vunpack.c.h.bf16 %v9838_v10  ;;  %v8811_v20 = vunpack.c.l.bf16 %v9829_v1 }
 0x1ec   :  { %10096 = vmatprep.subr.mxu0 %v8856_v37  ;;  %10136 = vmatprep.subr.mxu1 %v8919_v51  ;;  %v8816_v37 = vunpack.c.h.bf16 %v9830_v54  ;;  %v9847_v51 = vld [vmem:[%s15057_s11 + $0x98] sm:$0xff]  }
 0x1ed   :  { %10097 = vmatpush3.msra.mxu0 %v8824_v8  ;;  %10137 = vmatpush3.msra.mxu1 %v8887_v7  ;;  %v8843_v8 = vunpack.c.l.bf16 %v9837_v56  ;;  %v8812_v7 = vunpack.c.h.bf16 %v9829_v1  ;;  %v8807_v56 = vunpack.c.l.bf16 %v8806_v57 }
 0x1ee   :  { %10098 = vmatprep.subr.mxu0 %v8855_v31  ;;  %10138 = vmatprep.subr.mxu1 %v8916_v63  ;;  %v8884_v31 = vunpack.c.h.bf16 %v9847_v51  ;;  %v9836_v63 = vld [vmem:[%s15057_s11 + $0x40] sm:$0xff]  }
 0x1ef   :  { %10099 = vmatpush3.msra.mxu0 %v8823_v48  ;;  %v9854_v48 = vld [vmem:[%s15057_s11 + $0xd0] sm:$0xff]   ;;  %v8839_v54 = vunpack.c.l.bf16 %v9836_v63 }
 0x1f0   :  { %10100 = vmatprep.subr.mxu0 %v8852_v60  ;;  %10139 = vmatpush3.msra.mxu1 %v8884_v31  ;;  %v8883_v60 = vunpack.c.l.bf16 %v9847_v51  ;;  %v8912_v10 = vunpack.c.h.bf16 %v9854_v48 }
 0x1f1   :  { %10101 = vmatpush3.msra.mxu0 %v8820_v14  ;;  %v8840_v14 = vunpack.c.h.bf16 %v9836_v63  ;;  %10140 = vmatprep.subr.mxu1 %v8915_v2 }
 0x1f2   :  { %10102 = vmatprep.subr.mxu0 %v8851_v25  ;;  %10141 = vmatpush3.msra.mxu1 %v8883_v60  ;;  %v9846_v25 = vld [vmem:[%s15057_s11 + $0x90] sm:$0xff]  }
 0x1f3   :  { %10103 = vmatpush3.msra.mxu0 %v8819_v34  ;;  %10142 = vmatprep.subr.mxu1 %v8912_v10  ;;  %v8911_v34 = vunpack.c.l.bf16 %v9854_v48  ;;  %v9844_v48 = vld [vmem:[%s15057_s11 + $0x80] sm:$0xff]  }
 0x1f4   :  { %10104 = vmatprep.subr.mxu0 %v8848_v26  ;;  %v8808_v26 = vunpack.c.h.bf16 %v8806_v57  ;;  %v8872_v60 = vunpack.c.h.bf16 %v9844_v48  ;;  %v8871_v10 = vunpack.c.l.bf16 %v9844_v48  ;;  %v12713_v57 = vld [vmem:[%s15057_s11 + $0x1f8] sm:$0xff]  }
 0x1f5   :  { %10105 = vmatpush3.msra.mxu0 %v8816_v37  ;;  %v8880_v37 = vunpack.c.h.bf16 %v9846_v25 }
 0x1f6   :  { %10106 = vmatprep.subr.mxu0 %v8847_v4  ;;  %v8879_v4 = vunpack.c.l.bf16 %v9846_v25  ;;  %v9060_v25 = vunpack.c.h.bf16 %v12713_v57 }
 0x1f7   :  { %10107 = vmatpush3.msra.mxu0 %v8815_v28  ;;  %v9853_v28 = vld [vmem:[%s15057_s11 + $0xc8] sm:$0xff]   ;;  %10143 = vmatpush3.msra.mxu1 %v8880_v37  ;;  %v12724_v37 = vld [vmem:[%s15056_s10] sm:$0xff] }
 0x1f8   :  { %10108 = vmatprep.subr.mxu0 %v8844_v16  ;;  %v9875_v16 = vld [vmem:[%s15057_s11 + $0x178] sm:$0xff]   ;;  %v8908_v1 = vunpack.c.h.bf16 %v9853_v28  ;;  %10144 = vmatprep.subr.mxu1 %v8911_v34 }
 0x1f9   :  { %10109 = vmatpush3.msra.mxu0 %v8812_v7  ;;  %v8996_v51 = vunpack.c.h.bf16 %v9875_v16  ;;  %10145 = vmatpush3.msra.mxu1 %v8879_v4  ;;  %v8907_v7 = vunpack.c.l.bf16 %v9853_v28 }
 0x1fa   :  { %10110 = vmatprep.subr.mxu0 %v8843_v8  ;;  %v9845_v8 = vld [vmem:[%s15057_s11 + $0x88] sm:$0xff]   ;;  %10146 = vmatprep.subr.mxu1 %v8908_v1 }
 0x1fb   :  { %10111 = vmatpush3.msra.mxu0 %v8811_v20  ;;  %v8876_v2 = vunpack.c.h.bf16 %v9845_v8  ;;  %v8875_v31 = vunpack.c.l.bf16 %v9845_v8  ;;  %v9852_v20 = vld [vmem:[%s15057_s11 + $0xc0] sm:$0xff]  }
 0x1fc   :  { %10112 = vmatprep.subr.mxu0 %v8840_v14  ;;  %v8904_v63 = vunpack.c.h.bf16 %v9852_v20  ;;  %v8903_v14 = vunpack.c.l.bf16 %v9852_v20 }
 0x1fd   :  { %10113 = vmatpush3.msra.mxu0 %v8808_v26  ;;  %10147 = vmatpush3.msra.mxu1 %v8876_v2  ;;  %v9867_v2 = vld [vmem:[%s15057_s11 + $0x138] sm:$0xff]  }
 0x1fe   :  { %10114 = vmatprep.subr.mxu0 %v8839_v54  ;;  %10148 = vmatprep.subr.mxu1 %v8907_v7  ;;  %v1303_v54 = vlaneseq  ;;  %v8964_v48 = vunpack.c.h.bf16 %v9867_v2  ;;  %v8963_v32 = vunpack.c.l.bf16 %v9867_v2  ;;  %v9873_v2 = vld [vmem:[%s15057_s11 + $0x168] sm:$0xff]  }
 0x1ff   :  { %10115 = vmatpush3.msra.mxu0 %v8807_v56  ;;  %10149 = vmatpush3.msra.mxu1 %v8875_v31  ;;  %v8988_v44 = vunpack.c.h.bf16 %v9873_v2 }
 0x200   :  { %10160 = vmatprep.subr.mxu0 %v8996_v51  ;;  %10150 = vmatprep.subr.mxu1 %v8904_v63  ;;  %v12716_v34 = vshrl.u32 %v1303_v54, 7 }
 0x201   :  { %10151 = vmatpush3.msra.mxu1 %v8872_v60  ;;  %v9874_v60 = vld [vmem:[%s15057_s11 + $0x170] sm:$0xff]  }
 0x202   :  { %10152 = vmatprep.subr.mxu1 %v8903_v14  ;;  %v12719_v26 = vsub.s32 0, %v12716_v34  ;;  %v12727_v56 = vsub.s32 1, %v12716_v34  ;;  %v12737_v63 = vsub.s32 2, %v12716_v34  ;;  %v8992_v40 = vunpack.c.h.bf16 %v9874_v60 }
 0x203   :  { %10153 = vmatpush3.msra.mxu1 %v8871_v10  ;;  %v8995_v10 = vunpack.c.l.bf16 %v9875_v16 }
 0x204   :  { %10198 = vmatprep.subr.mxu1 %v9060_v25  ;;  %v1306_v4 = vrot.slane %v12724_v37, %v12719_v26  ;;  %v1310_v28 = vrot.slane %v12724_v37, %v12727_v56  ;;  %v12743_v25 = vsub.s32 3, %v12716_v34  ;;  %v1314_v38 = vrot.slane %v12724_v37, %v12737_v63 }
 0x206   :  { %v1318_v16 = vrot.slane %v12724_v37, %v12743_v25 }
 0x279   :  { %v1455_v1 = vpop.f32.mrf.mxu0 }
 0x27a   :  { %v1456_v51 = vadd.f32 %v1455_v1, %v1306_v4 }
 0x27b   :  { %v1457_v8 = vpop.f32.mrf.mxu0 }
 0x27c   :  { %v1458_v7 = vadd.f32 %v1457_v8, %v1310_v28  ;;  %v2005_v14 = vmax.f32 %v1456_v51, 0.0  ;;  %v9866_v8 = vld [vmem:[%s15057_s11 + $0x130] sm:$0xff]  }
 0x27e   :  { %v2006_v31 = vmax.f32 %v1458_v7, 0.0  ;;  %v1461_v20 = vpop.f32.mrf.mxu0 }
 0x27f   :  { %v1462_v54 = vadd.f32 %v1461_v20, %v1306_v4  ;;  %v8960_v4 = vunpack.c.h.bf16 %v9866_v8 }
 0x280   :  { %v1463_v1 = vpop.f32.mrf.mxu0  ;;  %2108 = vmatprep.mubr.f32.mxu0 %v2006_v31 }
 0x281   :  { %v1464_v7 = vadd.f32 %v1463_v1, %v1310_v28  ;;  %2109 = vmatmul.mubr.f32.vlgmr.msra.gmra.mxu0 %v2005_v14  ;;  %v2021_v31 = vmax.f32 %v1462_v54, 0.0  ;;  %v8991_v28 = vunpack.c.l.bf16 %v9874_v60  ;;  %v9865_v14 = vld [vmem:[%s15057_s11 + $0x128] sm:$0xff]   ;;  %v12761_v1 = vpop.f32.mrf.mxu1 }
 0x282   :  { %10161 = vmatpush3.msra.mxu0 %v8964_v48  ;;  %v12759_v48 = vsub.s32 7, %v12716_v34  ;;  %v8956_v54 = vunpack.c.h.bf16 %v9865_v14 }
 0x283   :  { %v2022_v51 = vmax.f32 %v1464_v7, 0.0  ;;  %10162 = vmatprep.subr.mxu0 %v8995_v10  ;;  %v8959_v10 = vunpack.c.l.bf16 %v9866_v8  ;;  %v9864_v8 = vld [vmem:[%s15057_s11 + $0x120] sm:$0xff]   ;;  %v1688_v49 = vpop.f32.mrf.mxu1 }
 0x284   :  { %v1532_v20 = vpop.f32.mrf.mxu0  ;;  %10163 = vmatpush3.msra.mxu0 %v8963_v32  ;;  %v9883_v32 = vld [vmem:[%s15057_s11 + $0x1b8] sm:$0xff]  }
 0x285   :  { %2113 = vmatprep.mubr.f32.mxu0 %v2022_v51  ;;  %10164 = vmatprep.subr.mxu0 %v8992_v40  ;;  %v1533_v7 = vadd.f32 %v1532_v20, %v1314_v38  ;;  %v8987_v40 = vunpack.c.l.bf16 %v9873_v2  ;;  %v12774_v51 = vrot.slane %v12724_v37, %v12759_v48  ;;  %v9028_v20 = vunpack.c.h.bf16 %v9883_v32 }
 0x286   :  { %v1534_v43 = vpop.f32.mrf.mxu0  ;;  %2114 = vmatmul.mubr.f32.gmra.mxu0 %v2021_v31  ;;  %v9059_v2 = vunpack.c.l.bf16 %v12713_v57 }
 0x287   :  { %v1535_v60 = vadd.f32 %v1534_v43, %v1318_v16  ;;  %10165 = vmatpush3.msra.mxu0 %v8960_v4  ;;  %v8955_v43 = vunpack.c.l.bf16 %v9865_v14  ;;  %v9890_v4 = vld [vmem:[%s15057_s11 + $0x1f0] sm:$0xff]   ;;  %v2007_v55 = vmax.f32 %v1533_v7, 0.0  ;;  %v9027_v14 = vunpack.c.l.bf16 %v9883_v32 }
 0x288   :  { %10166 = vmatprep.subr.mxu0 %v8991_v28  ;;  %v9056_v7 = vunpack.c.h.bf16 %v9890_v4  ;;  %v1689_v57 = vadd.f32 %v1688_v49, %v12774_v51  ;;  %v9055_v32 = vunpack.c.l.bf16 %v9890_v4 }
 0x289   :  { %v2008_v31 = vmax.f32 %v1535_v60, 0.0  ;;  %10167 = vmatpush3.msra.mxu0 %v8959_v10  ;;  %v12784_v10 = vsub.s32 5, %v12716_v34  ;;  %v8952_v60 = vunpack.c.h.bf16 %v9864_v8 }
 0x28a   :  { %v1538_v28 = vpop.f32.mrf.mxu0  ;;  %10168 = vmatprep.subr.mxu0 %v8988_v44  ;;  %v8983_v44 = vunpack.c.l.bf16 %v9872_v46  ;;  %v9863_v46 = vld [vmem:[%s15057_s11 + $0x118] sm:$0xff]  }
 0x28b   :  { %2183 = vmatprep.mubr.f32.mxu1 %v2008_v31  ;;  %10169 = vmatpush3.msra.mxu0 %v8956_v54  ;;  %v1539_v3 = vadd.f32 %v1538_v28, %v1314_v38  ;;  %v9871_v54 = vld [vmem:[%s15057_s11 + $0x158] sm:$0xff]   ;;  %v9889_v38 = vld [vmem:[%s15057_s11 + $0x1e8] sm:$0xff]   ;;  %v9023_v31 = vunpack.c.l.bf16 %v9882_v61  ;;  %v8948_v4 = vunpack.c.h.bf16 %v9863_v46 }
 0x28c   :  { %v1540_v47 = vpop.f32.mrf.mxu0  ;;  %2184 = vmatmul.mubr.f32.vlgmr.msra.gmra.mxu1 %v2007_v55  ;;  %10170 = vmatprep.subr.mxu0 %v8987_v40  ;;  %v8951_v55 = vunpack.c.l.bf16 %v9864_v8 }
 0x28d   :  { %v1541_v6 = vadd.f32 %v1540_v47, %v1318_v16  ;;  %10199 = vmatpush3.msra.mxu1 %v9028_v20  ;;  %10171 = vmatpush3.msra.mxu0 %v8955_v43  ;;  %v12798_v47 = vrot.slane %v12724_v37, %v12784_v10  ;;  %v2023_v16 = vmax.f32 %v1539_v3, 0.0  ;;  %v8980_v20 = vunpack.c.h.bf16 %v9871_v54  ;;  %v9870_v3 = vld [vmem:[%s15057_s11 + $0x150] sm:$0xff]  }
 0x28e   :  { %10200 = vmatprep.subr.mxu1 %v9059_v2  ;;  %10172 = vmatprep.subr.mxu0 %v8984_v0  ;;  %v9881_v0 = vld [vmem:[%s15057_s11 + $0x1a8] sm:$0xff]   ;;  %v2012_v43 = vmax.f32 %v1689_v57, 0.0  ;;  %v8979_v2 = vunpack.c.l.bf16 %v9871_v54 }
 0x28f   :  { %v2024_v49 = vmax.f32 %v1541_v6, 0.0  ;;  %10201 = vmatpush3.msra.mxu1 %v9027_v14  ;;  %10173 = vmatpush3.msra.mxu0 %v8952_v60  ;;  %v9052_v6 = vunpack.c.h.bf16 %v9889_v38  ;;  %v9020_v8 = vunpack.c.h.bf16 %v9881_v0  ;;  %v9888_v14 = vld [vmem:[%s15057_s11 + $0x1e0] sm:$0xff]   ;;  %v9862_v60 = vld [vmem:[%s15057_s11 + $0x110] sm:$0xff]   ;;  %v9019_v57 = vunpack.c.l.bf16 %v9881_v0 }
 0x290   :  { %v12803_v40 = vpop.f32.mrf.mxu0  ;;  %10202 = vmatprep.subr.mxu1 %v9056_v7  ;;  %10174 = vmatprep.subr.mxu0 %v8983_v44  ;;  %v9880_v7 = vld [vmem:[%s15057_s11 + $0x1a0] sm:$0xff]   ;;  %v8947_v44 = vunpack.c.l.bf16 %v9863_v46  ;;  %v12825_v46 = vsub.s32 4, %v12716_v34 }
 0x291   :  { %2188 = vmatprep.mubr.f32.mxu1 %v2024_v49  ;;  %10203 = vmatpush3.msra.mxu1 %v9024_v52  ;;  %v9051_v52 = vunpack.c.l.bf16 %v9889_v38  ;;  %v9048_v49 = vunpack.c.h.bf16 %v9888_v14  ;;  %v8944_v38 = vunpack.c.h.bf16 %v9862_v60 }
 0x292   :  { %v1611_v28 = vpop.f32.mrf.mxu0  ;;  %2189 = vmatmul.mubr.f32.gmra.mxu1 %v2023_v16  ;;  %10204 = vmatprep.subr.mxu1 %v9055_v32  ;;  %v8976_v32 = vunpack.c.h.bf16 %v9870_v3  ;;  %v9869_v16 = vld [vmem:[%s15057_s11 + $0x148] sm:$0xff]  }
 0x293   :  { %v1612_v61 = vadd.f32 %v1611_v28, %v12798_v47  ;;  %2333 = vmatprep.mubr.f32.mxu1 %v2012_v43  ;;  %10175 = vmatpush3.msra.mxu0 %v8951_v55  ;;  %v9016_v55 = vunpack.c.h.bf16 %v9880_v7  ;;  %v9047_v43 = vunpack.c.l.bf16 %v9888_v14  ;;  %v8943_v28 = vunpack.c.l.bf16 %v9862_v60 }
 0x294   :  { %10205 = vmatpush3.msra.mxu1 %v9023_v31  ;;  %10176 = vmatprep.subr.mxu0 %v8980_v20  ;;  %v9887_v31 = vld [vmem:[%s15057_s11 + $0x1d8] sm:$0xff]   ;;  %v12827_v0 = vpop.f32.mrf.mxu0  ;;  %v8975_v20 = vunpack.c.l.bf16 %v9870_v3  ;;  %v1322_v60 = vrot.slane %v12724_v37, %v12825_v46 }
 0x295   :  { %v2010_v54 = vmax.f32 %v1612_v61, 0.0  ;;  %10206 = vmatprep.subr.mxu1 %v9052_v6  ;;  %10177 = vmatpush3.msra.mxu0 %v8948_v4  ;;  %v9861_v6 = vld [vmem:[%s15057_s11 + $0x108] sm:$0xff]   ;;  %v9879_v4 = vld [vmem:[%s15057_s11 + $0x198] sm:$0xff]   ;;  %v9044_v61 = vunpack.c.h.bf16 %v9887_v31 }
 0x296   :  { %10207 = vmatpush3.msra.mxu1 %v9020_v8  ;;  %10178 = vmatprep.subr.mxu0 %v8979_v2  ;;  %v9015_v8 = vunpack.c.l.bf16 %v9880_v7  ;;  %v8972_v2 = vunpack.c.h.bf16 %v9869_v16  ;;  %v8940_v3 = vunpack.c.h.bf16 %v9861_v6  ;;  %v9012_v14 = vunpack.c.h.bf16 %v9879_v4  ;;  %v1617_v7 = vpop.f32.mrf.mxu0 }
 0x297   :  { %2258 = vmatprep.mubr.f32.mxu0 %v2010_v54  ;;  %10208 = vmatprep.subr.mxu1 %v9051_v52  ;;  %v9868_v52 = vld [vmem:[%s15057_s11 + $0x140] sm:$0xff]   ;;  %v9886_v54 = vld [vmem:[%s15057_s11 + $0x1d0] sm:$0xff]  }
 0x298   :  { %10179 = vmatpush3.msra.mxu0 %v8947_v44  ;;  %10209 = vmatpush3.msra.mxu1 %v9019_v57  ;;  %v8971_v44 = vunpack.c.l.bf16 %v9869_v16  ;;  %v9043_v57 = vunpack.c.l.bf16 %v9887_v31  ;;  %v8968_v9 = vunpack.c.h.bf16 %v9868_v52  ;;  %v9040_v58 = vunpack.c.h.bf16 %v9886_v54  ;;  %v12853_v12 = vpop.f32.mrf.mxu0 }
 0x299   :  { %10180 = vmatprep.subr.mxu0 %v8976_v32  ;;  %10210 = vmatprep.subr.mxu1 %v9048_v49  ;;  %v9860_v32 = vld [vmem:[%s15057_s11 + $0x100] sm:$0xff]   ;;  %v9878_v49 = vld [vmem:[%s15057_s11 + $0x190] sm:$0xff]  }
 0x29a   :  { %10181 = vmatpush3.msra.mxu0 %v8944_v38  ;;  %10211 = vmatpush3.msra.mxu1 %v9016_v55  ;;  %v8939_v38 = vunpack.c.l.bf16 %v9861_v6  ;;  %v9011_v55 = vunpack.c.l.bf16 %v9879_v4  ;;  %v8936_v16 = vunpack.c.h.bf16 %v9860_v32  ;;  %v9008_v31 = vunpack.c.h.bf16 %v9878_v49 }
 0x29b   :  { %10182 = vmatprep.subr.mxu0 %v8975_v20  ;;  %10212 = vmatprep.subr.mxu1 %v9047_v43  ;;  %v9885_v20 = vld [vmem:[%s15057_s11 + $0x1c8] sm:$0xff]   ;;  %v1610_v43 = vadd.f32 %v12803_v40, %v1322_v60  ;;  %v8967_v6 = vunpack.c.l.bf16 %v9868_v52  ;;  %v9039_v4 = vunpack.c.l.bf16 %v9886_v54  ;;  %v12868_v52 = vpop.f32.mrf.mxu1 }
 0x29c   :  { %10183 = vmatpush3.msra.mxu0 %v8943_v28  ;;  %10213 = vmatpush3.msra.mxu1 %v9015_v8  ;;  %v9907_v28 = vld [vmem:[%s15057_s11 + $0x278] sm:$0xff]   ;;  %v1618_v8 = vadd.f32 %v1617_v7, %v12798_v47  ;;  %v9877_v40 = vld [vmem:[%s15057_s11 + $0x188] sm:$0xff]   ;;  %v9036_v54 = vunpack.c.h.bf16 %v9885_v20 }
 0x29d   :  { %10184 = vmatprep.subr.mxu0 %v8972_v2  ;;  %10214 = vmatprep.subr.mxu1 %v9044_v61  ;;  %v8935_v2 = vunpack.c.l.bf16 %v9860_v32  ;;  %v9007_v61 = vunpack.c.l.bf16 %v9878_v49  ;;  %v12873_v47 = vld [vmem:[%s15056_s10 + $0x8] sm:$0xff]  ;;  %v9004_v32 = vunpack.c.h.bf16 %v9877_v40  ;;  %v9123_v50 = vunpack.c.l.bf16 %v9907_v28 }
 0x29e   :  { %10185 = vmatpush3.msra.mxu0 %v8940_v3  ;;  %10215 = vmatpush3.msra.mxu1 %v9012_v14  ;;  %v9899_v3 = vld [vmem:[%s15057_s11 + $0x238] sm:$0xff]   ;;  %v12866_v14 = vsub.s32 6, %v12716_v34  ;;  %v12877_v7 = vrot.slane %v12873_v47, %v12727_v56  ;;  %v1765_v34 = vpop.f32.mrf.mxu0 }
 0x29f   :  { %10186 = vmatprep.subr.mxu0 %v8971_v44  ;;  %10216 = vmatprep.subr.mxu1 %v9043_v57  ;;  %v9124_v44 = vunpack.c.h.bf16 %v9907_v28  ;;  %v2009_v57 = vmax.f32 %v1610_v43, 0.0  ;;  %v9092_v49 = vunpack.c.h.bf16 %v9899_v3 }
 0x2a0   :  { %10187 = vmatpush3.msra.mxu0 %v8939_v38  ;;  %10217 = vmatpush3.msra.mxu1 %v9011_v55  ;;  %v9884_v38 = vld [vmem:[%s15057_s11 + $0x1c0] sm:$0xff]   ;;  %v9035_v55 = vunpack.c.l.bf16 %v9885_v20  ;;  %v1330_v43 = vrot.slane %v12724_v37, %v12866_v14  ;;  %v9898_v20 = vld [vmem:[%s15057_s11 + $0x230] sm:$0xff]  }
 0x2a1   :  { %10188 = vmatprep.subr.mxu0 %v8968_v9  ;;  %10218 = vmatprep.subr.mxu1 %v9040_v58  ;;  %v1616_v9 = vadd.f32 %v12827_v0, %v1322_v60  ;;  %v2026_v58 = vmax.f32 %v1618_v8, 0.0  ;;  %v9003_v0 = vunpack.c.l.bf16 %v9877_v40  ;;  %v9091_v60 = vunpack.c.l.bf16 %v9899_v3  ;;  %v9905_v40 = vld [vmem:[%s15057_s11 + $0x268] sm:$0xff]  }
 0x2a2   :  { %10189 = vmatpush3.msra.mxu0 %v8936_v16  ;;  %10219 = vmatpush3.msra.mxu1 %v9008_v31  ;;  %v9906_v16 = vld [vmem:[%s15057_s11 + $0x270] sm:$0xff]   ;;  %v9876_v31 = vld [vmem:[%s15057_s11 + $0x180] sm:$0xff]   ;;  %v9032_v28 = vunpack.c.h.bf16 %v9884_v38  ;;  %v9088_v37 = vunpack.c.h.bf16 %v9898_v20  ;;  %v1687_v3 = vadd.f32 %v12761_v1, %v1330_v43  ;;  %v9897_v1 = vld [vmem:[%s15057_s11 + $0x228] sm:$0xff]  }
 0x2a3   :  { %10190 = vmatprep.subr.mxu0 %v8967_v6  ;;  %10220 = vmatprep.subr.mxu1 %v9039_v4  ;;  %v1694_v6 = vpop.f32.mrf.mxu1  ;;  %v1766_v4 = vadd.f32 %v1765_v34, %v12877_v7  ;;  %v9120_v8 = vunpack.c.h.bf16 %v9906_v16  ;;  %v9923_v34 = vld [vmem:[%s15057_s11 + $0x2f8] sm:$0xff]  }
 0x2a4   :  { %10191 = vmatpush3.msra.mxu0 %v8935_v2  ;;  %10221 = vmatpush3.msra.mxu1 %v9007_v61  ;;  %v9000_v2 = vunpack.c.h.bf16 %v9876_v31  ;;  %v2025_v61 = vmax.f32 %v1616_v9, 0.0  ;;  %v9087_v9 = vunpack.c.l.bf16 %v9898_v20  ;;  %v1693_v20 = vadd.f32 %v12868_v52, %v1330_v43  ;;  %v9914_v52 = vld [vmem:[%s15057_s11 + $0x2b0] sm:$0xff]  }
 0x2a5   :  { %2259 = vmatmul.mubr.f32.vlgmr.msra.gmra.mxu0 %v2009_v57  ;;  %10222 = vmatprep.subr.mxu1 %v9036_v54  ;;  %v12899_v54 = vpop.f32.mrf.mxu1  ;;  %v9119_v57 = vunpack.c.l.bf16 %v9906_v16  ;;  %v2011_v16 = vmax.f32 %v1687_v3, 0.0 }
 0x2a6   :  { %10236 = vmatprep.subr.mxu0 %v9124_v44  ;;  %2263 = vmatprep.mubr.f32.mxu0 %v2026_v58  ;;  %v9031_v44 = vunpack.c.l.bf16 %v9884_v38  ;;  %v9915_v38 = vld [vmem:[%s15057_s11 + $0x2b8] sm:$0xff]   ;;  %v9116_v58 = vunpack.c.h.bf16 %v9905_v40 }
 0x2a7   :  { %10223 = vmatpush3.msra.mxu1 %v9004_v32  ;;  %10237 = vmatpush3.msra.mxu0 %v9092_v49  ;;  %v1695_v32 = vadd.f32 %v1694_v6, %v12774_v51  ;;  %v8999_v49 = vunpack.c.l.bf16 %v9876_v31  ;;  %v9188_v51 = vunpack.c.h.bf16 %v9923_v34  ;;  %v1842_v31 = vpop.f32.mrf.mxu1  ;;  %v9084_v6 = vunpack.c.h.bf16 %v9897_v1 }
 0x2a8   :  { %10224 = vmatprep.subr.mxu1 %v9035_v55  ;;  %10238 = vmatprep.subr.mxu0 %v9123_v50  ;;  %v2014_v50 = vmax.f32 %v1766_v4, 0.0  ;;  %v12913_v55 = vrot.slane %v12873_v47, %v12743_v25  ;;  %v9155_v3 = vunpack.c.l.bf16 %v9915_v38 }
 0x2a9   :  { %10225 = vmatpush3.msra.mxu1 %v9003_v0  ;;  %10239 = vmatpush3.msra.mxu0 %v9091_v60  ;;  %v9156_v0 = vunpack.c.h.bf16 %v9915_v38  ;;  %v9904_v60 = vld [vmem:[%s15057_s11 + $0x260] sm:$0xff]   ;;  %v2028_v4 = vmax.f32 %v1695_v32, 0.0  ;;  %v9152_v32 = vunpack.c.h.bf16 %v9914_v52  ;;  %v9895_v38 = vld [vmem:[%s15057_s11 + $0x218] sm:$0xff]  }
 0x2aa   :  { %2264 = vmatmul.mubr.f32.gmra.mxu0 %v2025_v61  ;;  %10226 = vmatprep.subr.mxu1 %v9032_v28  ;;  %v9115_v28 = vunpack.c.l.bf16 %v9905_v40  ;;  %v9896_v61 = vld [vmem:[%s15057_s11 + $0x220] sm:$0xff]   ;;  %v1843_v43 = vadd.f32 %v1842_v31, %v12913_v55  ;;  %v9112_v40 = vunpack.c.h.bf16 %v9904_v60  ;;  %v9151_v31 = vunpack.c.l.bf16 %v9914_v52 }
 0x2ab   :  { %10240 = vmatprep.subr.mxu0 %v9120_v8  ;;  %10227 = vmatpush3.msra.mxu1 %v9000_v2  ;;  %v9187_v8 = vunpack.c.l.bf16 %v9923_v34  ;;  %v9922_v2 = vld [vmem:[%s15057_s11 + $0x2f0] sm:$0xff]   ;;  %v2027_v34 = vmax.f32 %v1693_v20, 0.0 }
 0x2ac   :  { %10241 = vmatpush3.msra.mxu0 %v9088_v37  ;;  %2408 = vmatprep.mubr.f32.mxu0 %v2014_v50  ;;  %v9083_v37 = vunpack.c.l.bf16 %v9897_v1  ;;  %v9903_v50 = vld [vmem:[%s15057_s11 + $0x258] sm:$0xff]   ;;  %v9183_v1 = vunpack.c.l.bf16 %v9922_v2 }
 0x2ad   :  { %10228 = vmatprep.subr.mxu1 %v9031_v44  ;;  %10242 = vmatprep.subr.mxu0 %v9119_v57  ;;  %v9184_v44 = vunpack.c.h.bf16 %v9922_v2  ;;  %v9080_v57 = vunpack.c.h.bf16 %v9896_v61 }
 0x2ae   :  { %10229 = vmatpush3.msra.mxu1 %v8999_v49  ;;  %10243 = vmatpush3.msra.mxu0 %v9087_v9  ;;  %v9921_v49 = vld [vmem:[%s15057_s11 + $0x2e8] sm:$0xff]   ;;  %v9111_v9 = vunpack.c.l.bf16 %v9904_v60  ;;  %v9076_v60 = vunpack.c.h.bf16 %v9895_v38 }
 0x2af   :  { %2334 = vmatmul.mubr.f32.vlgmr.msra.gmra.mxu1 %v2011_v16  ;;  %10244 = vmatprep.subr.mxu0 %v9116_v58  ;;  %v9913_v58 = vld [vmem:[%s15057_s11 + $0x2a8] sm:$0xff]   ;;  %v9079_v16 = vunpack.c.l.bf16 %v9896_v61  ;;  %v9179_v2 = vunpack.c.l.bf16 %v9921_v49  ;;  %v9894_v61 = vld [vmem:[%s15057_s11 + $0x210] sm:$0xff]  }
 0x2b0   :  { %10274 = vmatprep.subr.mxu1 %v9188_v51  ;;  %2338 = vmatprep.mubr.f32.mxu1 %v2028_v4  ;;  %v2016_v51 = vmax.f32 %v1843_v43, 0.0  ;;  %v9148_v20 = vunpack.c.h.bf16 %v9913_v58  ;;  %v9902_v4 = vld [vmem:[%s15057_s11 + $0x250] sm:$0xff]   ;;  %v9147_v52 = vunpack.c.l.bf16 %v9913_v58  ;;  %v9071_v58 = vunpack.c.l.bf16 %v9894_v61 }
 0x2b1   :  { %10245 = vmatpush3.msra.mxu0 %v9084_v6  ;;  %10275 = vmatpush3.msra.mxu1 %v9156_v0  ;;  %v9108_v6 = vunpack.c.h.bf16 %v9903_v50  ;;  %v9180_v0 = vunpack.c.h.bf16 %v9921_v49  ;;  %v9104_v43 = vunpack.c.h.bf16 %v9902_v4  ;;  %v9103_v49 = vunpack.c.l.bf16 %v9902_v4 }
 0x2b2   :  { %10246 = vmatprep.subr.mxu0 %v9115_v28  ;;  %10276 = vmatprep.subr.mxu1 %v9187_v8  ;;  %v9920_v28 = vld [vmem:[%s15057_s11 + $0x2e0] sm:$0xff]   ;;  %v9107_v8 = vunpack.c.l.bf16 %v9903_v50  ;;  %v12959_v50 = vpop.f32.mrf.mxu0  ;;  %v1338_v4 = vrot.slane %v12873_v47, %v12719_v26 }
 0x2b3   :  { %10247 = vmatpush3.msra.mxu0 %v9083_v37  ;;  %10277 = vmatpush3.msra.mxu1 %v9155_v3  ;;  %v9912_v37 = vld [vmem:[%s15057_s11 + $0x2a0] sm:$0xff]   ;;  %v9075_v3 = vunpack.c.l.bf16 %v9895_v38  ;;  %v9911_v38 = vld [vmem:[%s15057_s11 + $0x298] sm:$0xff]  }
 0x2b4   :  { %2339 = vmatmul.mubr.f32.gmra.mxu1 %v2027_v34  ;;  %10248 = vmatprep.subr.mxu0 %v9112_v40  ;;  %v9176_v40 = vunpack.c.h.bf16 %v9920_v28  ;;  %v9901_v34 = vld [vmem:[%s15057_s11 + $0x248] sm:$0xff]  }
 0x2b5   :  { %10278 = vmatprep.subr.mxu1 %v9184_v44  ;;  %10249 = vmatpush3.msra.mxu0 %v9080_v57  ;;  %v9072_v44 = vunpack.c.h.bf16 %v9894_v61  ;;  %v9144_v57 = vunpack.c.h.bf16 %v9912_v37  ;;  %v9892_v61 = vld [vmem:[%s15057_s11 + $0x200] sm:$0xff]  }
 0x2b6   :  { %10279 = vmatpush3.msra.mxu1 %v9152_v32  ;;  %2483 = vmatprep.mubr.f32.mxu1 %v2016_v51  ;;  %v9919_v32 = vld [vmem:[%s15057_s11 + $0x2d8] sm:$0xff]   ;;  %v9143_v51 = vunpack.c.l.bf16 %v9912_v37  ;;  %v9910_v37 = vld [vmem:[%s15057_s11 + $0x290] sm:$0xff]  }
 0x2b7   :  { %10250 = vmatprep.subr.mxu0 %v9111_v9  ;;  %10280 = vmatprep.subr.mxu1 %v9183_v1  ;;  %v9175_v9 = vunpack.c.l.bf16 %v9920_v28  ;;  %v9893_v1 = vld [vmem:[%s15057_s11 + $0x208] sm:$0xff]   ;;  %v1771_v28 = vpop.f32.mrf.mxu0 }
 0x2b8   :  { %10251 = vmatpush3.msra.mxu0 %v9079_v16  ;;  %10281 = vmatpush3.msra.mxu1 %v9151_v31  ;;  %v9100_v16 = vunpack.c.h.bf16 %v9901_v34  ;;  %v9172_v31 = vunpack.c.h.bf16 %v9919_v32 }
 0x2b9   :  { %10252 = vmatprep.subr.mxu0 %v9108_v6  ;;  %10282 = vmatprep.subr.mxu1 %v9180_v0  ;;  %v9068_v6 = vunpack.c.h.bf16 %v9893_v1  ;;  %v9140_v0 = vunpack.c.h.bf16 %v9911_v38 }
 0x2ba   :  { %10253 = vmatpush3.msra.mxu0 %v9076_v60  ;;  %10283 = vmatpush3.msra.mxu1 %v9148_v20  ;;  %v9900_v60 = vld [vmem:[%s15057_s11 + $0x240] sm:$0xff]   ;;  %v9918_v20 = vld [vmem:[%s15057_s11 + $0x2d0] sm:$0xff]  }
 0x2bb   :  { %10254 = vmatprep.subr.mxu0 %v9107_v8  ;;  %10284 = vmatprep.subr.mxu1 %v9179_v2  ;;  %v9099_v8 = vunpack.c.l.bf16 %v9901_v34  ;;  %v9171_v2 = vunpack.c.l.bf16 %v9919_v32  ;;  %v9917_v34 = vld [vmem:[%s15057_s11 + $0x2c8] sm:$0xff]   ;;  %v1764_v32 = vadd.f32 %v12853_v12, %v1338_v4 }
 0x2bc   :  { %10255 = vmatpush3.msra.mxu0 %v9075_v3  ;;  %10285 = vmatpush3.msra.mxu1 %v9147_v52  ;;  %v9067_v3 = vunpack.c.l.bf16 %v9893_v1  ;;  %v9139_v52 = vunpack.c.l.bf16 %v9911_v38  ;;  %v9167_v1 = vunpack.c.l.bf16 %v9918_v20  ;;  %v9939_v38 = vld [vmem:[%s15057_s11 + $0x378] sm:$0xff]   ;;  %v9909_v12 = vld [vmem:[%s15057_s11 + $0x288] sm:$0xff]  }
 0x2bd   :  { %10256 = vmatprep.subr.mxu0 %v9104_v43  ;;  %10286 = vmatprep.subr.mxu1 %v9176_v40  ;;  %v9096_v43 = vunpack.c.h.bf16 %v9900_v60  ;;  %v9168_v40 = vunpack.c.h.bf16 %v9918_v20  ;;  %v2013_v20 = vmax.f32 %v1764_v32, 0.0 }
 0x2be   :  { %10257 = vmatpush3.msra.mxu0 %v9072_v44  ;;  %10287 = vmatpush3.msra.mxu1 %v9144_v57  ;;  %v9064_v44 = vunpack.c.h.bf16 %v9892_v61  ;;  %v9136_v57 = vunpack.c.h.bf16 %v9910_v37 }
 0x2bf   :  { %10258 = vmatprep.subr.mxu0 %v9103_v49  ;;  %10288 = vmatprep.subr.mxu1 %v9175_v9  ;;  %v12985_v49 = vpop.f32.mrf.mxu0  ;;  %v9095_v9 = vunpack.c.l.bf16 %v9900_v60  ;;  %v9252_v60 = vunpack.c.h.bf16 %v9939_v38 }
 0x2c0   :  { %10259 = vmatpush3.msra.mxu0 %v9071_v58  ;;  %10289 = vmatpush3.msra.mxu1 %v9143_v51  ;;  %v1772_v58 = vadd.f32 %v1771_v28, %v12877_v7  ;;  %v9063_v51 = vunpack.c.l.bf16 %v9892_v61  ;;  %v13001_v7 = vrot.slane %v12873_v47, %v12784_v10  ;;  %v9916_v61 = vld [vmem:[%s15057_s11 + $0x2c0] sm:$0xff]  }
 0x2c1   :  { %10260 = vmatprep.subr.mxu0 %v9100_v16  ;;  %10290 = vmatprep.subr.mxu1 %v9172_v31  ;;  %v9135_v16 = vunpack.c.l.bf16 %v9910_v37  ;;  %v9931_v31 = vld [vmem:[%s15057_s11 + $0x338] sm:$0xff]   ;;  %v1919_v28 = vpop.f32.mrf.mxu0  ;;  %v1770_v37 = vadd.f32 %v12959_v50, %v1338_v4  ;;  %v9131_v50 = vunpack.c.l.bf16 %v9909_v12 }
 0x2c2   :  { %10261 = vmatpush3.msra.mxu0 %v9068_v6  ;;  %10291 = vmatpush3.msra.mxu1 %v9140_v0  ;;  %v12997_v6 = vpop.f32.mrf.mxu1  ;;  %v9164_v0 = vunpack.c.h.bf16 %v9917_v34  ;;  %v9219_v4 = vunpack.c.l.bf16 %v9931_v31 }
 0x2c3   :  { %10262 = vmatprep.subr.mxu0 %v9099_v8  ;;  %10292 = vmatprep.subr.mxu1 %v9171_v2  ;;  %v9132_v8 = vunpack.c.h.bf16 %v9909_v12  ;;  %v9220_v2 = vunpack.c.h.bf16 %v9931_v31  ;;  %v9937_v12 = vld [vmem:[%s15057_s11 + $0x368] sm:$0xff]  }
 0x2c4   :  { %10263 = vmatpush3.msra.mxu0 %v9067_v3  ;;  %10293 = vmatpush3.msra.mxu1 %v9139_v52  ;;  %v2030_v3 = vmax.f32 %v1772_v58, 0.0  ;;  %v9163_v52 = vunpack.c.l.bf16 %v9917_v34  ;;  %v1848_v32 = vpop.f32.mrf.mxu1  ;;  %v9930_v34 = vld [vmem:[%s15057_s11 + $0x330] sm:$0xff]  }
 0x2c5   :  { %10264 = vmatprep.subr.mxu0 %v9096_v43  ;;  %10294 = vmatprep.subr.mxu1 %v9168_v40  ;;  %v9251_v43 = vunpack.c.l.bf16 %v9939_v38  ;;  %v9938_v40 = vld [vmem:[%s15057_s11 + $0x370] sm:$0xff]  }
 0x2c6   :  { %10265 = vmatpush3.msra.mxu0 %v9064_v44  ;;  %10295 = vmatpush3.msra.mxu1 %v9136_v57  ;;  %v9908_v44 = vld [vmem:[%s15057_s11 + $0x280] sm:$0xff]   ;;  %v1346_v57 = vrot.slane %v12873_v47, %v12737_v63  ;;  %v9248_v38 = vunpack.c.h.bf16 %v9938_v40 }
 0x2c7   :  { %10266 = vmatprep.subr.mxu0 %v9095_v9  ;;  %10296 = vmatprep.subr.mxu1 %v9167_v1  ;;  %v1920_v9 = vadd.f32 %v1919_v28, %v13001_v7  ;;  %v9160_v1 = vunpack.c.h.bf16 %v9916_v61  ;;  %v9128_v58 = vunpack.c.h.bf16 %v9908_v44  ;;  %v9955_v28 = vld [vmem:[%s15057_s11 + $0x3f8] sm:$0xff]  }
 0x2c8   :  { %10267 = vmatpush3.msra.mxu0 %v9063_v51  ;;  %10297 = vmatpush3.msra.mxu1 %v9135_v16  ;;  %v2029_v51 = vmax.f32 %v1770_v37, 0.0  ;;  %v9216_v16 = vunpack.c.h.bf16 %v9930_v34  ;;  %v1841_v31 = vadd.f32 %v12899_v54, %v1346_v57  ;;  %v9127_v37 = vunpack.c.l.bf16 %v9908_v44  ;;  %v9929_v54 = vld [vmem:[%s15057_s11 + $0x328] sm:$0xff]  }
 0x2c9   :  { %2409 = vmatmul.mubr.f32.vlgmr.msra.gmra.mxu0 %v2013_v20  ;;  %10298 = vmatprep.subr.mxu1 %v9164_v0  ;;  %v13023_v0 = vpop.f32.mrf.mxu1  ;;  %v9247_v20 = vunpack.c.l.bf16 %v9938_v40 }
 0x2ca   :  { %10312 = vmatprep.subr.mxu0 %v9252_v60  ;;  %2413 = vmatprep.mubr.f32.mxu0 %v2030_v3  ;;  %v9159_v60 = vunpack.c.l.bf16 %v9916_v61  ;;  %v9215_v3 = vunpack.c.l.bf16 %v9930_v34  ;;  %v9947_v61 = vld [vmem:[%s15057_s11 + $0x3b8] sm:$0xff]   ;;  %v2015_v40 = vmax.f32 %v1841_v31, 0.0  ;;  %v1847_v34 = vadd.f32 %v12997_v6, %v1346_v57  ;;  %v9946_v6 = vld [vmem:[%s15057_s11 + $0x3b0] sm:$0xff]  }
 0x2cb   :  { %10299 = vmatpush3.msra.mxu1 %v9132_v8  ;;  %10313 = vmatpush3.msra.mxu0 %v9220_v2  ;;  %v1849_v8 = vadd.f32 %v1848_v32, %v12913_v55  ;;  %v2018_v2 = vmax.f32 %v1920_v9, 0.0  ;;  %v9316_v55 = vunpack.c.h.bf16 %v9955_v28  ;;  %v1996_v44 = vpop.f32.mrf.mxu1  ;;  %v9212_v32 = vunpack.c.h.bf16 %v9929_v54 }
 0x2cc   :  { %10300 = vmatprep.subr.mxu1 %v9163_v52  ;;  %10314 = vmatprep.subr.mxu0 %v9251_v43  ;;  %v9244_v52 = vunpack.c.h.bf16 %v9937_v12  ;;  %v13037_v43 = vrot.slane %v12873_v47, %v12759_v48  ;;  %v9283_v31 = vunpack.c.l.bf16 %v9947_v61 }
 0x2cd   :  { %10301 = vmatpush3.msra.mxu1 %v9131_v50  ;;  %10315 = vmatpush3.msra.mxu0 %v9219_v4  ;;  %v9284_v50 = vunpack.c.h.bf16 %v9947_v61  ;;  %v9936_v4 = vld [vmem:[%s15057_s11 + $0x360] sm:$0xff]   ;;  %v2032_v9 = vmax.f32 %v1849_v8, 0.0  ;;  %v9280_v8 = vunpack.c.h.bf16 %v9946_v6  ;;  %v9927_v61 = vld [vmem:[%s15057_s11 + $0x318] sm:$0xff]  }
 0x2ce   :  { %2414 = vmatmul.mubr.f32.gmra.mxu0 %v2029_v51  ;;  %10302 = vmatprep.subr.mxu1 %v9160_v1  ;;  %v9243_v1 = vunpack.c.l.bf16 %v9937_v12  ;;  %v9928_v51 = vld [vmem:[%s15057_s11 + $0x320] sm:$0xff]   ;;  %v1997_v57 = vadd.f32 %v1996_v44, %v13037_v43  ;;  %v9240_v12 = vunpack.c.h.bf16 %v9936_v4  ;;  %v9279_v44 = vunpack.c.l.bf16 %v9946_v6 }
 0x2cf   :  { %10316 = vmatprep.subr.mxu0 %v9248_v38  ;;  %10303 = vmatpush3.msra.mxu1 %v9128_v58  ;;  %v9315_v38 = vunpack.c.l.bf16 %v9955_v28  ;;  %v9954_v58 = vld [vmem:[%s15057_s11 + $0x3f0] sm:$0xff]   ;;  %v2031_v28 = vmax.f32 %v1847_v34, 0.0 }
 0x2d0   :  { %10317 = vmatpush3.msra.mxu0 %v9216_v16  ;;  %2558 = vmatprep.mubr.f32.mxu0 %v2018_v2  ;;  %v9211_v16 = vunpack.c.l.bf16 %v9929_v54  ;;  %v9935_v2 = vld [vmem:[%s15057_s11 + $0x358] sm:$0xff]   ;;  %v9311_v54 = vunpack.c.l.bf16 %v9954_v58 }
 0x2d1   :  { %10304 = vmatprep.subr.mxu1 %v9159_v60  ;;  %10318 = vmatprep.subr.mxu0 %v9247_v20  ;;  %v9312_v60 = vunpack.c.h.bf16 %v9954_v58  ;;  %v9208_v20 = vunpack.c.h.bf16 %v9928_v51 }
 0x2d2   :  { %10305 = vmatpush3.msra.mxu1 %v9127_v37  ;;  %10319 = vmatpush3.msra.mxu0 %v9215_v3  ;;  %v9953_v37 = vld [vmem:[%s15057_s11 + $0x3e8] sm:$0xff]   ;;  %v9239_v3 = vunpack.c.l.bf16 %v9936_v4  ;;  %v9204_v4 = vunpack.c.h.bf16 %v9927_v61 }
 0x2d3   :  { %2484 = vmatmul.mubr.f32.vlgmr.msra.gmra.mxu1 %v2015_v40  ;;  %10320 = vmatprep.subr.mxu0 %v9244_v52  ;;  %v9945_v52 = vld [vmem:[%s15057_s11 + $0x3a8] sm:$0xff]   ;;  %v9207_v40 = vunpack.c.l.bf16 %v9928_v51  ;;  %v9307_v58 = vunpack.c.l.bf16 %v9953_v37  ;;  %v9926_v51 = vld [vmem:[%s15057_s11 + $0x310] sm:$0xff]  }
 0x2d4   :  { %10350 = vmatprep.subr.mxu1 %v9316_v55  ;;  %2488 = vmatprep.mubr.f32.mxu1 %v2032_v9  ;;  %v2020_v55 = vmax.f32 %v1997_v57, 0.0  ;;  %v9276_v34 = vunpack.c.h.bf16 %v9945_v52  ;;  %v9934_v9 = vld [vmem:[%s15057_s11 + $0x350] sm:$0xff]   ;;  %v9275_v6 = vunpack.c.l.bf16 %v9945_v52 }
 0x2d5   :  { %10321 = vmatpush3.msra.mxu0 %v9212_v32  ;;  %10351 = vmatpush3.msra.mxu1 %v9284_v50  ;;  %v9236_v32 = vunpack.c.h.bf16 %v9935_v2  ;;  %v9308_v50 = vunpack.c.h.bf16 %v9953_v37  ;;  %v9232_v57 = vunpack.c.h.bf16 %v9934_v9 }
 0x2d6   :  { %10322 = vmatprep.subr.mxu0 %v9243_v1  ;;  %10352 = vmatprep.subr.mxu1 %v9315_v38  ;;  %v9952_v1 = vld [vmem:[%s15057_s11 + $0x3e0] sm:$0xff]   ;;  %v9235_v38 = vunpack.c.l.bf16 %v9935_v2  ;;  %v9231_v2 = vunpack.c.l.bf16 %v9934_v9  ;;  %v1354_v9 = vrot.slane %v12873_v47, %v12825_v46 }
 0x2d7   :  { %10323 = vmatpush3.msra.mxu0 %v9211_v16  ;;  %10353 = vmatpush3.msra.mxu1 %v9283_v31  ;;  %v9944_v16 = vld [vmem:[%s15057_s11 + $0x3a0] sm:$0xff]   ;;  %v9203_v31 = vunpack.c.l.bf16 %v9927_v61  ;;  %v9303_v37 = vunpack.c.l.bf16 %v9952_v1  ;;  %v9199_v61 = vunpack.c.l.bf16 %v9926_v51 }
 0x2d8   :  { %2489 = vmatmul.mubr.f32.gmra.mxu1 %v2031_v28  ;;  %10324 = vmatprep.subr.mxu0 %v9240_v12  ;;  %v9304_v12 = vunpack.c.h.bf16 %v9952_v1  ;;  %v9933_v28 = vld [vmem:[%s15057_s11 + $0x348] sm:$0xff]   ;;  %v9271_v52 = vunpack.c.l.bf16 %v9944_v16 }
 0x2d9   :  { %10354 = vmatprep.subr.mxu1 %v9312_v60  ;;  %10325 = vmatpush3.msra.mxu0 %v9208_v20  ;;  %v9200_v60 = vunpack.c.h.bf16 %v9926_v51  ;;  %v9272_v20 = vunpack.c.h.bf16 %v9944_v16  ;;  %v9227_v1 = vunpack.c.l.bf16 %v9933_v28  ;;  %v9942_v51 = vld [vmem:[%s15057_s11 + $0x390] sm:$0xff]  }
 0x2da   :  { %10355 = vmatpush3.msra.mxu1 %v9280_v8  ;;  %2633 = vmatprep.mubr.f32.mxu1 %v2020_v55  ;;  %v9951_v8 = vld [vmem:[%s15057_s11 + $0x3d8] sm:$0xff]   ;;  %v1923_v55 = vpop.f32.mrf.mxu0 }
 0x2db   :  { %10326 = vmatprep.subr.mxu0 %v9239_v3  ;;  %10356 = vmatprep.subr.mxu1 %v9311_v54  ;;  %v9925_v3 = vld [vmem:[%s15057_s11 + $0x308] sm:$0xff]   ;;  %v9943_v54 = vld [vmem:[%s15057_s11 + $0x398] sm:$0xff]  }
 0x2dc   :  { %10327 = vmatpush3.msra.mxu0 %v9207_v40  ;;  %10357 = vmatpush3.msra.mxu1 %v9279_v44  ;;  %v9228_v40 = vunpack.c.h.bf16 %v9933_v28  ;;  %v9300_v44 = vunpack.c.h.bf16 %v9951_v8  ;;  %v9195_v16 = vunpack.c.l.bf16 %v9925_v3  ;;  %v9949_v28 = vld [vmem:[%s15057_s11 + $0x3c8] sm:$0xff]  }
 0x2dd   :  { %10328 = vmatprep.subr.mxu0 %v9236_v32  ;;  %10358 = vmatprep.subr.mxu1 %v9308_v50  ;;  %v9196_v32 = vunpack.c.h.bf16 %v9925_v3  ;;  %v9268_v50 = vunpack.c.h.bf16 %v9943_v54  ;;  %v9941_v3 = vld [vmem:[%s15057_s11 + $0x388] sm:$0xff]  }
 0x2de   :  { %10329 = vmatpush3.msra.mxu0 %v9204_v4  ;;  %10359 = vmatpush3.msra.mxu1 %v9276_v34  ;;  %v9932_v4 = vld [vmem:[%s15057_s11 + $0x340] sm:$0xff]   ;;  %v9950_v34 = vld [vmem:[%s15057_s11 + $0x3d0] sm:$0xff]  }
 0x2df   :  { %10330 = vmatprep.subr.mxu0 %v9235_v38  ;;  %10360 = vmatprep.subr.mxu1 %v9307_v58  ;;  %v9299_v38 = vunpack.c.l.bf16 %v9951_v8  ;;  %v9924_v58 = vld [vmem:[%s15057_s11 + $0x300] sm:$0xff]   ;;  %v1918_v8 = vadd.f32 %v12985_v49, %v1354_v9  ;;  %v9260_v49 = vunpack.c.h.bf16 %v9941_v3 }
 0x2e0   :  { %10331 = vmatpush3.msra.mxu0 %v9203_v31  ;;  %10361 = vmatpush3.msra.mxu1 %v9275_v6  ;;  %v9267_v31 = vunpack.c.l.bf16 %v9943_v54  ;;  %v1925_v6 = vpop.f32.mrf.mxu0 }
 0x2e1   :  { %10332 = vmatprep.subr.mxu0 %v9232_v57  ;;  %10362 = vmatprep.subr.mxu1 %v9304_v12  ;;  %v9224_v57 = vunpack.c.h.bf16 %v9932_v4  ;;  %v9296_v12 = vunpack.c.h.bf16 %v9950_v34  ;;  %v1926_v54 = vadd.f32 %v1925_v6, %v13001_v7  ;;  %v1924_v7 = vadd.f32 %v1923_v55, %v1354_v9 }
 0x2e2   :  { %10333 = vmatpush3.msra.mxu0 %v9200_v60  ;;  %10363 = vmatpush3.msra.mxu1 %v9272_v20  ;;  %v9192_v60 = vunpack.c.h.bf16 %v9924_v58  ;;  %v9264_v20 = vunpack.c.h.bf16 %v9942_v51 }
 0x2e3   :  { %10334 = vmatprep.subr.mxu0 %v9231_v2  ;;  %10364 = vmatprep.subr.mxu1 %v9303_v37  ;;  %v9223_v2 = vunpack.c.l.bf16 %v9932_v4  ;;  %v9295_v37 = vunpack.c.l.bf16 %v9950_v34  ;;  %v2017_v4 = vmax.f32 %v1918_v8, 0.0  ;;  %v9291_v34 = vunpack.c.l.bf16 %v9949_v28 }
 0x2e4   :  { %10335 = vmatpush3.msra.mxu0 %v9199_v61  ;;  %10365 = vmatpush3.msra.mxu1 %v9271_v52  ;;  %v9191_v61 = vunpack.c.l.bf16 %v9924_v58  ;;  %v9263_v52 = vunpack.c.l.bf16 %v9942_v51  ;;  %v9259_v58 = vunpack.c.l.bf16 %v9941_v3  ;;  %v2033_v9 = vmax.f32 %v1924_v7, 0.0 }
 0x2e5   :  { %10336 = vmatprep.subr.mxu0 %v9228_v40  ;;  %10366 = vmatprep.subr.mxu1 %v9300_v44  ;;  %v2000_v40 = vpop.f32.mrf.mxu1  ;;  %v9292_v44 = vunpack.c.h.bf16 %v9949_v28 }
 0x2e6   :  { %10337 = vmatpush3.msra.mxu0 %v9196_v32  ;;  %10367 = vmatpush3.msra.mxu1 %v9268_v50  ;;  %v9948_v32 = vld [vmem:[%s15057_s11 + $0x3c0] sm:$0xff]   ;;  %v1362_v50 = vrot.slane %v12873_v47, %v12866_v14 }
 0x2e7   :  { %10338 = vmatprep.subr.mxu0 %v9227_v1  ;;  %10368 = vmatprep.subr.mxu1 %v9299_v38  ;;  %v9940_v1 = vld [vmem:[%s15057_s11 + $0x380] sm:$0xff]   ;;  %v2034_v38 = vmax.f32 %v1926_v54, 0.0  ;;  %v2002_v51 = vpop.f32.mrf.mxu1 }
 0x2e8   :  { %10339 = vmatpush3.msra.mxu0 %v9195_v16  ;;  %10369 = vmatpush3.msra.mxu1 %v9267_v31  ;;  %v9288_v16 = vunpack.c.h.bf16 %v9948_v32  ;;  %v9256_v47 = vunpack.c.h.bf16 %v9940_v1  ;;  %v1995_v55 = vadd.f32 %v13023_v0, %v1362_v50  ;;  %v9287_v31 = vunpack.c.l.bf16 %v9948_v32 }
 0x2e9   :  { %10340 = vmatprep.subr.mxu0 %v9224_v57  ;;  %10370 = vmatprep.subr.mxu1 %v9296_v12  ;;  %v2003_v6 = vadd.f32 %v2002_v51, %v13037_v43  ;;  %v9255_v57 = vunpack.c.l.bf16 %v9940_v1 }
 0x2ea   :  { %10341 = vmatpush3.msra.mxu0 %v9192_v60  ;;  %10371 = vmatpush3.msra.mxu1 %v9264_v20  ;;  %v2019_v12 = vmax.f32 %v1995_v55, 0.0  ;;  %v2001_v60 = vadd.f32 %v2000_v40, %v1362_v50 }
 0x2eb   :  { %10342 = vmatprep.subr.mxu0 %v9223_v2  ;;  %10372 = vmatprep.subr.mxu1 %v9295_v37  ;;  %v2036_v20 = vmax.f32 %v2003_v6, 0.0 }
 0x2ec   :  { %10343 = vmatpush3.msra.mxu0 %v9191_v61  ;;  %10373 = vmatpush3.msra.mxu1 %v9263_v52  ;;  %v2035_v28 = vmax.f32 %v2001_v60, 0.0 }
 0x2ed   :  { %2559 = vmatmul.mubr.f32.vlgmr.msra.gmra.mxu0 %v2017_v4  ;;  %10374 = vmatprep.subr.mxu1 %v9292_v44 }
 0x2ee   :  { %2563 = vmatprep.mubr.f32.mxu0 %v2034_v38  ;;  %10375 = vmatpush3.msra.mxu1 %v9260_v49 }
 0x2ef   :  { %10376 = vmatprep.subr.mxu1 %v9291_v34 }
 0x2f0   :  { %10377 = vmatpush3.msra.mxu1 %v9259_v58 }
 0x2f1   :  { %2564 = vmatmul.mubr.f32.gmra.mxu0 %v2033_v9  ;;  %10378 = vmatprep.subr.mxu1 %v9288_v16  ;;  %v8422_v16 = vld [vmem:[%s15058_s12] ss:$0 sm:$0xff] }
 0x2f2   :  { %10379 = vmatpush3.msra.mxu1 %v9256_v47 }
 0x2f3   :  { %10380 = vmatprep.subr.mxu1 %v9287_v31 }
 0x2f4   :  { %10381 = vmatpush3.msra.mxu1 %v9255_v57 }
 0x2f5   :  { %2634 = vmatmul.mubr.f32.vlgmr.msra.gmra.mxu1 %v2019_v12 }
 0x2f6   :  { %2638 = vmatprep.mubr.f32.mxu1 %v2036_v20 }
 0x2f9   :  { %2639 = vmatmul.mubr.f32.gmra.mxu1 %v2035_v28 }
 0x341   :  { %v10116_v0 = vpop.f32.mrf.mxu0 }
 0x343   :  { %v10117_v8 = vpop.f32.mrf.mxu0 }
 0x344   :  { %v10118_v51 = vadd.f32 %v10117_v8, %v10116_v0 }
 0x346   :  { %v10119_v2 = vpop.f32.mrf.mxu0  ;;  %v2111_v31 = vadd.f32 %v10118_v51, %v8422_v16 }
 0x348   :  { %v10120_v3 = vpop.f32.mrf.mxu0 }
 0x349   :  { %v10121_v6 = vadd.f32 %v10120_v3, %v10119_v2 }
 0x34b   :  { %v2116_v18 = vadd.f32 %v10121_v6, %v8422_v16 }
 0x34c   :  { %v10154_v37 = vpop.f32.mrf.mxu1 }
 0x34e   :  { %v10155_v43 = vpop.f32.mrf.mxu1 }
 0x34f   :  { %v10156_v47 = vadd.f32 %v10155_v43, %v10154_v37 }
 0x351   :  { %v2186_v60 = vadd.f32 %v10156_v47, %v2111_v31 }
 0x352   :  { %v10157_v61 = vpop.f32.mrf.mxu1 }
 0x354   :  { %v10158_v44 = vpop.f32.mrf.mxu1 }
 0x355   :  { %v10159_v20 = vadd.f32 %v10158_v44, %v10157_v61 }
 0x357   :  { %v2191_v62 = vadd.f32 %v10159_v20, %v2116_v18  ;;  %v2702_v20 = vld [vmem:[%s15589_s24 + $0x30] sm:$0xff] }
 0x365   :  { %v10192_v54 = vpop.f32.mrf.mxu0 }
 0x367   :  { %v10193_v52 = vpop.f32.mrf.mxu0 }
 0x368   :  { %v10194_v57 = vadd.f32 %v10193_v52, %v10192_v54 }
 0x36a   :  { %v10195_v49 = vpop.f32.mrf.mxu0  ;;  %v2261_v53 = vadd.f32 %v10194_v57, %v2186_v60  ;;  %v2698_v60 = vld [vmem:[%s15589_s24 + $0x10] sm:$0xff] }
 0x36c   :  { %v10196_v40 = vpop.f32.mrf.mxu0 }
 0x36d   :  { %v10197_v21 = vadd.f32 %v10196_v40, %v10195_v49 }
 0x36f   :  { %v10230_v32 = vpop.f32.mrf.mxu1  ;;  %v2266_v27 = vadd.f32 %v10197_v21, %v2191_v62 }
 0x371   :  { %v10231_v50 = vpop.f32.mrf.mxu1 }
 0x372   :  { %v10232_v28 = vadd.f32 %v10231_v50, %v10230_v32 }
 0x374   :  { %v10233_v7 = vpop.f32.mrf.mxu1  ;;  %v2336_v24 = vadd.f32 %v10232_v28, %v2261_v53  ;;  %v2697_v28 = vld [vmem:[%s15589_s24 + $0x8] sm:$0xff] }
 0x376   :  { %v10234_v1 = vpop.f32.mrf.mxu1 }
 0x377   :  { %v10235_v5 = vadd.f32 %v10234_v1, %v10233_v7 }
 0x379   :  { %v2341_v61 = vadd.f32 %v10235_v5, %v2266_v27 }
 0x389   :  { %v10268_v4 = vpop.f32.mrf.mxu0 }
 0x38b   :  { %v10269_v34 = vpop.f32.mrf.mxu0 }
 0x38c   :  { %v10270_v0 = vadd.f32 %v10269_v34, %v10268_v4 }
 0x38e   :  { %v10271_v38 = vpop.f32.mrf.mxu0  ;;  %v2411_v51 = vadd.f32 %v10270_v0, %v2336_v24  ;;  %v2701_v0 = vld [vmem:[%s15589_s24 + $0x28] sm:$0xff] }
 0x390   :  { %v10272_v55 = vpop.f32.mrf.mxu0 }
 0x391   :  { %v10273_v2 = vadd.f32 %v10272_v55, %v10271_v38 }
 0x393   :  { %v10306_v58 = vpop.f32.mrf.mxu1  ;;  %v2416_v16 = vadd.f32 %v10273_v2, %v2341_v61 }
 0x395   :  { %v10307_v9 = vpop.f32.mrf.mxu1 }
 0x396   :  { %v10308_v37 = vadd.f32 %v10307_v9, %v10306_v58 }
 0x398   :  { %v10309_v15 = vpop.f32.mrf.mxu1  ;;  %v2486_v44 = vadd.f32 %v10308_v37, %v2411_v51  ;;  %v2700_v37 = vld [vmem:[%s15589_s24 + $0x20] sm:$0xff] }
 0x39a   :  { %v10310_v43 = vpop.f32.mrf.mxu1 }
 0x39b   :  { %v10311_v32 = vadd.f32 %v10310_v43, %v10309_v15  ;;  %v2707_v43 = vld [vmem:[%s15589_s24 + $0x58] sm:$0xff] }
 0x39d   :  { %v2491_v18 = vadd.f32 %v10311_v32, %v2416_v16  ;;  %v8423_v32 = vld [vmem:[%s15059_s13 + $0x2] ss:$0 sm:$0xff] }
 0x39e   :  { %v8424_v16 = vld [vmem:[%s15060_s14 + $0x2] ss:$0 sm:$0xff] }
 0x3ad   :  { %v10344_v12 = vpop.f32.mrf.mxu0 }
 0x3af   :  { %v10345_v59 = vpop.f32.mrf.mxu0 }
 0x3b0   :  { %v10346_v3 = vadd.f32 %v10345_v59, %v10344_v12  ;;  %v2703_v12 = vld [vmem:[%s15589_s24 + $0x38] sm:$0xff] }
 0x3b1   :  { %v10347_v8 = vpop.f32.mrf.mxu0  ;;  %10841 = vmatprep.subr.mxu1 %v2703_v12 }
 0x3b2   :  { %v2561_v47 = vadd.f32 %v10346_v3, %v2486_v44  ;;  %10842 = vmatpush3.msra.mxu1 %v2703_v12 }
 0x3b3   :  { %v10348_v54 = vpop.f32.mrf.mxu0  ;;  %10843 = vmatprep.subr.mxu1 %v2702_v20 }
 0x3b4   :  { %v10349_v49 = vadd.f32 %v10348_v54, %v10347_v8  ;;  %10844 = vmatpush3.msra.mxu1 %v2702_v20  ;;  %v2696_v8 = vld [vmem:[%s15589_s24] sm:$0xff] }
 0x3b5   :  { %v10382_v52 = vpop.f32.mrf.mxu1  ;;  %10845 = vmatprep.subr.mxu1 %v2701_v0 }
 0x3b6   :  { %v2566_v34 = vadd.f32 %v10349_v49, %v2491_v18  ;;  %10846 = vmatpush3.msra.mxu1 %v2701_v0  ;;  %v13242_v0 = vld [vmem:[%s15590_s28 + $0x8] sm:$0xff] }
 0x3b7   :  { %v10383_v50 = vpop.f32.mrf.mxu1  ;;  %10847 = vmatprep.subr.mxu1 %v2700_v37 }
 0x3b8   :  { %v10384_v40 = vadd.f32 %v10383_v50, %v10382_v52  ;;  %10848 = vmatpush3.msra.mxu1 %v2700_v37 }
 0x3b9   :  { %v10385_v4 = vpop.f32.mrf.mxu1 }
 0x3ba   :  { %v2636_v53 = vadd.f32 %v10384_v40, %v2561_v47 }
 0x3bb   :  { %v10386_v7 = vpop.f32.mrf.mxu1 }
 0x3bc   :  { %v10387_v1 = vadd.f32 %v10386_v7, %v10385_v4  ;;  %v2644_v21 = vadd.f32 %v2636_v53, %v12503_v19  ;;  %v2706_v7 = vld [vmem:[%s15589_s24 + $0x50] sm:$0xff] }
 0x3be   :  { %v2641_v24 = vadd.f32 %v10387_v1, %v2566_v34  ;;  %v2646_v59 = vsel %vm647_vm0, %v2644_v21, 0.0  ;;  %v2705_v34 = vld [vmem:[%s15589_s24 + $0x48] sm:$0xff]  ;;  %v2704_v1 = vld [vmem:[%s15589_s24 + $0x40] sm:$0xff] }
 0x3bf   :  { %2647 = vadd.xlane.f32.xlu0 %v2646_v59 }
 0x3c0   :  { %v2645_v5 = vadd.f32 %v2641_v24, %v12516_v13  ;;  %v2699_v13 = vld [vmem:[%s15589_s24 + $0x18] sm:$0xff]  ;;  %s10998_s24 = smov 120  }
 0x3c1   :  { %10830 = vmatprep.subr.mxu0 %v2699_v13 }
 0x3c2   :  { %v2649_v15 = vsel %vm647_vm0, %v2645_v5, 0.0  ;;  %10831 = vmatpush3.msra.mxu0 %v2699_v13 }
 0x3c3   :  { %2650 = vadd.xlane.f32.xlu1 %v2649_v15  ;;  %10832 = vmatprep.subr.mxu0 %v2698_v60  ;;  %v8431_v15 = vld [vmem:[%s15052_s6] ss:$0 sm:$0xff] }
 0x3c4   :  { %10833 = vmatpush3.msra.mxu0 %v2698_v60 }
 0x3c5   :  { %10834 = vmatprep.subr.mxu0 %v2697_v28 }
 0x3c6   :  { %10835 = vmatpush3.msra.mxu0 %v2697_v28 }
 0x3c7   :  { %10836 = vmatprep.subr.mxu0 %v2696_v8 }
 0x3c8   :  { %10837 = vmatpush3.msra.mxu0 %v2696_v8 }
 0x3c9   :  { %10852 = vmatprep.subr.mxu0 %v2707_v43 }
 0x448   :  { %v2648_v27 = vpop.xlane.xlu0 %2647 }
 0x449   :  { %v2652_v62 = vmul.f32 0.03125, %v2648_v27 }
 0x44b   :  { %v2654_v38 = vsub.f32 %v2644_v21, %v2652_v62  ;;  %v8434_v21 = vld [vmem:[%s15052_s6 + $0x1] ss:$0 sm:$0xff] }
 0x44c   :  { %v2651_v58 = vpop.xlane.xlu1 %2650 }
 0x44d   :  { %v2653_v55 = vmul.f32 0.03125, %v2651_v58  ;;  %v2656_v9 = vmul.f32 %v2654_v38, %v2654_v38 }
 0x44f   :  { %v2655_v31 = vsub.f32 %v2645_v5, %v2653_v55  ;;  %v2658_v6 = vsel %vm647_vm0, %v2656_v9, 0.0  ;;  %v8437_v55 = vld [vmem:[%s15052_s6 + $0x2] ss:$0 sm:$0xff] }
 0x450   :  { %2659 = vadd.xlane.f32.xlu0 %v2658_v6 }
 0x451   :  { %v2657_v19 = vmul.f32 %v2655_v31, %v2655_v31 }
 0x453   :  { %v2661_v57 = vsel %vm647_vm0, %v2657_v19, 0.0 }
 0x454   :  { %2662 = vadd.xlane.f32.xlu1 %v2661_v57 }
 0x4d9   :  { %v2660_v51 = vpop.xlane.xlu0 %2659 }
 0x4da   :  { %v2664_v2 = vmul.f32 0.03125, %v2660_v51 }
 0x4dc   :  { %v2666_v3 = vadd.f32 1e-05, %v2664_v2 }
 0x4dd   :  { %v2663_v54 = vpop.xlane.xlu1 %2662 }
 0x4de   :  { %10947 = vrsqrt.f32 %v2666_v3  ;;  %v2665_v52 = vmul.f32 0.03125, %v2663_v54 }
 0x4e0   :  { %v2667_v61 = vadd.f32 1e-05, %v2665_v52 }
 0x4e2   :  { %10949 = vrsqrt.f32 %v2667_v61 }
 0x4eb   :  { %v10948_v44 = vpop.eup %10947 }
 0x4ec   :  { %v2670_v50 = vmul.f32 %v10948_v44, %v2654_v38 }
 0x4ee   :  { %v2678_v47 = vmul.f32 %v8423_v32, %v2670_v50 }
 0x4ef   :  { %v10950_v49 = vpop.eup %10949 }
 0x4f0   :  { %v2671_v40 = vmul.f32 %v10950_v49, %v2655_v31  ;;  %v13163_v4 = vadd.f32 %v8424_v16, %v2678_v47 }
 0x4f2   :  { %v2679_v18 = vmul.f32 %v8423_v32, %v2671_v40  ;;  %10838 = vmatprep.mubr.msk.f32.mxu0 %vm647_vm0, %v13163_v4  ;;  %10849 = vmatprep.mubr.msk.f32.mxu1 %vm647_vm0, %v13163_v4 }
 0x4f4   :  { %v13169_v53 = vadd.f32 %v8424_v16, %v2679_v18 }
 0x4f6   :  { %10839 = vmatmul.mubr.msk.f32.vlgmr.msra.gmra.mxu0 %vm647_vm0, %v13169_v53  ;;  %10850 = vmatmul.mubr.msk.f32.vlgmr.msra.gmra.mxu1 %vm647_vm0, %v13169_v53 }
 0x4f7   :  { %10853 = vmatpush3.msra.mxu0 %v2707_v43  ;;  %10860 = vmatprep.mubr.msk.f32.mxu0 %vm647_vm0, %v13163_v4  ;;  %v13247_v43 = vld [vmem:[%s15590_s28] sm:$0xff] }
 0x4f8   :  { %10854 = vmatprep.subr.mxu0 %v2706_v7 }
 0x4f9   :  { %10855 = vmatpush3.msra.mxu0 %v2706_v7 }
 0x4fa   :  { %10856 = vmatprep.subr.mxu0 %v2705_v34 }
 0x4fb   :  { %10857 = vmatpush3.msra.mxu0 %v2705_v34 }
 0x4fc   :  { %10858 = vmatprep.subr.mxu0 %v2704_v1 }
 0x4fd   :  { %10859 = vmatpush3.msra.mxu0 %v2704_v1 }
 0x4fe   :  { %10861 = vmatmul.mubr.msk.f32.vlgmr.msra.gmra.mxu0 %vm647_vm0, %v13169_v53 }
 0x5b6   :  { %v10840_v24 = vpop.f32.mrf.mxu0  ;;  %v10851_v59 = vpop.f32.mrf.mxu1 }
 0x5b7   :  { %v13191_v5 = vadd.f32 %v10851_v59, %v8434_v21  ;;  %v13217_v31 = vadd.f32 %v10840_v24, %v8431_v15 }
 0x5b8   :  { %v2794_v27 = vpop.f32.mrf.mxu0  ;;  %v2875_v62 = vpop.f32.mrf.mxu1 }
 0x5b9   :  { %v13196_v38 = vadd.f32 %v8431_v15, %v2794_v27  ;;  %v13198_v58 = vadd.f32 %v8434_v21, %v2875_v62  ;;  %3167 = vrot.lane.b32.xlu0 %v13191_v5, %s10998_s24  ;;  %10863 = vmatprep.subr.msk.mxu1 %vm2965_vm1, %v13191_v5 }
 0x5ba   :  { %10864 = vmatpush3.xpose.msk.msra.mxu1 %vm2965_vm1, %v13191_v5 }
 0x5bb   :  { %3165 = vrot.lane.b32.xlu1 %v13198_v58, %s10998_s24  ;;  %10865 = vmatprep.subr.msk.mxu1 %vm2965_vm1, %v13198_v58 }
 0x5bc   :  { %10867 = vmatprep.mubr.msk.f32.mxu1 %vm2965_vm1, %v13196_v38 }
 0x5be   :  { %v10862_v9 = vpop.f32.mrf.mxu0  ;;  %10866 = vmatpush3.xpose.msk.msra.mxu1 %vm2965_vm1, %v13198_v58 }
 0x5bf   :  { %v13219_v6 = vadd.f32 %v10862_v9, %v8437_v55  ;;  %3161 = vrot.lane.b32.xlu1 %v13196_v38, %s10998_s24 }
 0x5c0   :  { %v2956_v19 = vpop.f32.mrf.mxu0 }
 0x5c1   :  { %v13223_v57 = vadd.f32 %v8437_v55, %v2956_v19  ;;  %10870 = vmatprep.subr.mxu0 %v13219_v6  ;;  %10868 = vmatmul.mubr.msk.f32.vlgmr.msra.gmra.mxu1 %vm2965_vm1, %v13217_v31 }
 0x5c2   :  { %10871 = vmatpush3.msra.mxu0 %v13219_v6 }
 0x5c3   :  { %10872 = vmatprep.subr.mxu0 %v13223_v57  ;;  %3163 = vrot.lane.b32.xlu1 %v13217_v31, %s10998_s24 }
 0x5c4   :  { %10873 = vmatpush3.msra.mxu0 %v13223_v57 }
 0x62b   :  { %v3168_v13 = vpop.permute.xlu0 %3167 }
 0x62c   :  { %10877 = vmatprep.subr.msk.mxu1 %vm2965_vm1, %v3168_v13 }
 0x62d   :  { %v3166_v12 = vpop.permute.xlu1 %3165  ;;  %10878 = vmatpush3.xpose.msk.msra.mxu1 %vm2965_vm1, %v3168_v13 }
 0x62e   :  { %10879 = vmatprep.subr.msk.mxu1 %vm2965_vm1, %v3166_v12 }
 0x631   :  { %v3162_v60 = vpop.permute.xlu1 %3161  ;;  %10880 = vmatpush3.xpose.msk.msra.mxu1 %vm2965_vm1, %v3166_v12 }
 0x632   :  { %10881 = vmatprep.mubr.msk.f32.mxu1 %vm2965_vm1, %v3162_v60 }
 0x635   :  { %v3164_v20 = vpop.permute.xlu1 %3163 }
 0x636   :  { %10882 = vmatmul.mubr.msk.f32.vlgmr.msra.gmra.mxu1 %vm2965_vm1, %v3164_v20 }
 0x681   :  { %v10869_v28 = vpop.f32.mrf.mxu1 }
 0x682   :  { %v3054_v8 = vmul.f32 0.35355338, %v10869_v28 }
 0x683   :  { %v3044_v37 = vpop.f32.mrf.mxu1 }
 0x684   :  { %v3053_v51 = vmul.f32 0.35355338, %v3044_v37  ;;  %v3056_v2 = vadd.f32 %v3054_v8, %v13242_v0 }
 0x686   :  { %v3061_v3 = vsel %vm3057_vm2, %v3056_v2, -inf  ;;  %v3055_v54 = vadd.f32 %v3053_v51, %v13247_v43 }
 0x687   :  { %3062 = vmax.xlane.f32.xlu1 %v3061_v3 }
 0x688   :  { %v3058_v52 = vsel %vm3057_vm2, %v3055_v54, -inf }
 0x689   :  { %3059 = vmax.xlane.f32.xlu0 %v3058_v52 }
 0x6f6   :  { %v10883_v61 = vpop.f32.mrf.mxu1 }
 0x6f7   :  { %v3253_v32 = vmul.f32 0.35355338, %v10883_v61 }
 0x6f8   :  { %v3243_v44 = vpop.f32.mrf.mxu1 }
 0x6f9   :  { %v3252_v50 = vmul.f32 0.35355338, %v3243_v44  ;;  %v3255_v49 = vadd.f32 %v3253_v32, %v13242_v0 }
 0x6fb   :  { %v3254_v16 = vadd.f32 %v3252_v50, %v13247_v43  ;;  %v3259_v40 = vsel %vm3057_vm2, %v3255_v49, -inf  ;;  %v2712_v50 = vld [vmem:[%s15053_s7 + $0x8] sm:$0xff] }
 0x6fd   :  { %v3256_v47 = vsel %vm3057_vm2, %v3254_v16, -inf }
 0x6fe   :  { %3257 = vmax.xlane.f32.xlu0 %v3256_v47 }
 0x702   :  { %3260 = vmax.xlane.f32.xlu0 %v3259_v40 }
 0x710   :  { %v3063_v18 = vpop.xlane.xlu1 %3062 }
 0x711   :  { %v3065_v7 = vsub.f32 %v3056_v2, %v3063_v18 }
 0x712   :  { %v3060_v34 = vpop.xlane.xlu0 %3059 }
 0x713   :  { %v3068_v1 = vmul.f32 1.442695, %v3065_v7  ;;  %v3064_v21 = vsub.f32 %v3055_v54, %v3060_v34 }
 0x715   :  { %10951 = vpow2.f32 %v3068_v1  ;;  %v3066_v24 = vmul.f32 1.442695, %v3064_v21 }
 0x717   :  { %10953 = vpow2.f32 %v3066_v24 }
 0x722   :  { %v10952_v59 = vpop.eup %10951 }
 0x723   :  { %v3073_v15 = vsel %vm3057_vm2, %v10952_v59, 0.0 }
 0x724   :  { %v10954_v27 = vpop.eup %10953  ;;  %3074 = vadd.xlane.f32.xlu1 %v3073_v15 }
 0x725   :  { %v3070_v62 = vsel %vm3057_vm2, %v10954_v27, 0.0 }
 0x726   :  { %3071 = vadd.xlane.f32.xlu0 %v3070_v62 }
 0x787   :  { %v3258_v55 = vpop.xlane.xlu0 %3257 }
 0x788   :  { %v3262_v9 = vsub.f32 %v3254_v16, %v3258_v55 }
 0x78a   :  { %v3264_v19 = vmul.f32 1.442695, %v3262_v9 }
 0x78b   :  { %v3261_v13 = vpop.xlane.xlu0 %3260 }
 0x78c   :  { %10955 = vpow2.f32 %v3264_v19  ;;  %v3263_v12 = vsub.f32 %v3255_v49, %v3261_v13  ;;  %v2711_v49 = vld [vmem:[%s15053_s7] sm:$0xff] }
 0x78e   :  { %v3266_v60 = vmul.f32 1.442695, %v3263_v12 }
 0x790   :  { %10957 = vpow2.f32 %v3266_v60 }
 0x799   :  { %v10956_v20 = vpop.eup %10955 }
 0x79a   :  { %v3268_v28 = vsel %vm3057_vm2, %v10956_v20, 0.0 }
 0x79b   :  { %3269 = vadd.xlane.f32.xlu0 %v3268_v28 }
 0x79d   :  { %v10958_v8 = vpop.eup %10957 }
 0x79e   :  { %v3271_v37 = vsel %vm3057_vm2, %v10958_v8, 0.0 }
 0x79f   :  { %3272 = vadd.xlane.f32.xlu1 %v3271_v37 }
 0x7ad   :  { %v3075_v51 = vpop.xlane.xlu1 %3074 }
 0x7ae   :  { %10959 = vrcp.f32 %v3075_v51 }
 0x7af   :  { %v3072_v2 = vpop.xlane.xlu0 %3071 }
 0x7b0   :  { %10961 = vrcp.f32 %v3072_v2  ;;  %3280 = vrot.lane.b32.xlu1 %v13223_v57, %s10998_s24 }
 0x7b1   :  { %3282 = vrot.lane.b32.xlu0 %v13219_v6, %s10998_s24 }
 0x7b4   :  { %3535 = vrot.lane.b32.xlu1 %v13191_v5, %s10999_s30 }
 0x7b5   :  { %3529 = vrot.lane.b32.xlu0 %v13196_v38, %s10999_s30 }
 0x7b8   :  { %3533 = vrot.lane.b32.xlu1 %v13198_v58, %s10999_s30 }
 0x7b9   :  { %3822 = vrot.lane.b32.xlu0 %v13191_v5, %s11000_s5 }
 0x7bb   :  { %v10960_v3 = vpop.eup %10959 }
 0x7bc   :  { %3531 = vrot.lane.b32.xlu1 %v13217_v31, %s10999_s30  ;;  %v3079_v61 = vmul.f32 %v10960_v3, %v10952_v59 }
 0x7bd   :  { %v10962_v54 = vpop.eup %10961  ;;  %3816 = vrot.lane.b32.xlu0 %v13196_v38, %s11000_s5 }
 0x7be   :  { %v3078_v52 = vmul.f32 %v10962_v54, %v10954_v27 }
 0x7c0   :  { %3820 = vrot.lane.b32.xlu1 %v13198_v58, %s11000_s5  ;;  %10874 = vmatprep.mubr.msk.f32.mxu0 %vm3057_vm2, %v3078_v52 }
 0x7c1   :  { %10875 = vmatmul.mubr.msk.f32.vlgmr.msra.gmra.mxu0 %vm3057_vm2, %v3079_v61 }
 0x7c4   :  { %3818 = vrot.lane.b32.xlu1 %v13217_v31, %s11000_s5 }
 0x824   :  { %v3270_v5 = vpop.xlane.xlu0 %3269 }
 0x825   :  { %10963 = vrcp.f32 %v3270_v5 }
 0x828   :  { %v3273_v44 = vpop.xlane.xlu1 %3272  ;;  %v3283_v32 = vpop.permute.xlu0 %3282 }
 0x829   :  { %10965 = vrcp.f32 %v3273_v44  ;;  %10884 = vmatprep.subr.mxu0 %v3283_v32 }
 0x82a   :  { %10885 = vmatpush3.msra.mxu0 %v3283_v32 }
 0x82c   :  { %v3281_v38 = vpop.permute.xlu1 %3280  ;;  %v3530_v21 = vpop.permute.xlu0 %3529 }
 0x82d   :  { %10886 = vmatprep.subr.mxu0 %v3281_v38 }
 0x82e   :  { %10887 = vmatpush3.msra.mxu0 %v3281_v38 }
 0x82f   :  { %10891 = vmatprep.subr.mxu0 %v2712_v50 }
 0x830   :  { %v3536_v7 = vpop.permute.xlu1 %3535  ;;  %v3823_v59 = vpop.permute.xlu0 %3822 }
 0x832   :  { %v10964_v58 = vpop.eup %10963 }
 0x833   :  { %v3276_v16 = vmul.f32 %v10964_v58, %v10956_v20 }
 0x834   :  { %v3534_v24 = vpop.permute.xlu1 %3533  ;;  %v3817_v27 = vpop.permute.xlu0 %3816 }
 0x835   :  { %10888 = vmatprep.mubr.msk.f32.mxu0 %vm3057_vm2, %v3276_v16 }
 0x836   :  { %v10966_v31 = vpop.eup %10965 }
 0x837   :  { %v3277_v47 = vmul.f32 %v10966_v31, %v10958_v8 }
 0x838   :  { %v3532_v15 = vpop.permute.xlu1 %3531 }
 0x839   :  { %10889 = vmatmul.mubr.msk.f32.vlgmr.msra.gmra.mxu0 %vm3057_vm2, %v3277_v47 }
 0x83a   :  { %10892 = vmatpush3.msra.mxu0 %v2712_v50 }
 0x83b   :  { %10896 = vmatprep.subr.mxu0 %v2711_v49 }
 0x83c   :  { %v3821_v62 = vpop.permute.xlu1 %3820 }
 0x840   :  { %v3819_v55 = vpop.permute.xlu1 %3818 }
 0x881   :  { %v10876_v40 = vpop.f32.mrf.mxu0 }
 0x883   :  { %v3152_v18 = vpop.f32.mrf.mxu0 }
 0x8f9   :  { %v10890_v34 = vpop.f32.mrf.mxu0 }
 0x8fb   :  { %v3358_v1 = vpop.f32.mrf.mxu0 }
 0x8fc   :  { %10893 = vmatprep.mubr.msk.f32.mxu0 %vm2965_vm1, %v3358_v1 }
 0x8fd   :  { %10894 = vmatmul.mubr.msk.f32.vlgmr.msra.gmra.mxu0 %vm2965_vm1, %v10890_v34 }
 0x8fe   :  { %10897 = vmatpush3.msra.mxu0 %v2711_v49  ;;  %10898 = vmatprep.mubr.msk.f32.mxu0 %vm2965_vm1, %v3152_v18 }
 0x8ff   :  { %10901 = vmatprep.subr.msk.mxu0 %vm2965_vm1, %v3536_v7 }
 0x901   :  { %10899 = vmatmul.mubr.msk.f32.vlgmr.msra.gmra.mxu0 %vm2965_vm1, %v10876_v40 }
 0x902   :  { %10902 = vmatpush3.xpose.msk.msra.mxu0 %vm2965_vm1, %v3536_v7  ;;  %10905 = vmatprep.mubr.msk.f32.mxu0 %vm2965_vm1, %v3530_v21 }
 0x903   :  { %10903 = vmatprep.subr.msk.mxu0 %vm2965_vm1, %v3534_v24 }
 0x906   :  { %10904 = vmatpush3.xpose.msk.msra.mxu0 %vm2965_vm1, %v3534_v24 }
 0x907   :  { %10920 = vmatprep.subr.msk.mxu0 %vm2965_vm1, %v3823_v59 }
 0x909   :  { %10906 = vmatmul.mubr.msk.f32.vlgmr.msra.gmra.mxu0 %vm2965_vm1, %v3532_v15 }
 0x90a   :  { %10921 = vmatpush3.xpose.msk.msra.mxu0 %vm2965_vm1, %v3823_v59  ;;  %10924 = vmatprep.mubr.msk.f32.mxu0 %vm2965_vm1, %v3817_v27 }
 0x90b   :  { %10922 = vmatprep.subr.msk.mxu0 %vm2965_vm1, %v3821_v62 }
 0x90e   :  { %10923 = vmatpush3.xpose.msk.msra.mxu0 %vm2965_vm1, %v3821_v62 }
 0x911   :  { %10925 = vmatmul.mubr.msk.f32.vlgmr.msra.gmra.mxu0 %vm2965_vm1, %v3819_v55 }
 0x912   :  { %4967 = vmatprep.mubr.f32.mxu0 %v15588_v22 }
 0x9bd   :  { %v10895_v9 = vpop.f32.mrf.mxu0 }
 0x9bf   :  { %v3439_v19 = vpop.f32.mrf.mxu0 }
 0x9c1   :  { %v10900_v13 = vpop.f32.mrf.mxu0 }
 0x9c2   :  { %v13308_v12 = vadd.f32 %v10900_v13, %v10895_v9 }
 0x9c3   :  { %v3520_v60 = vpop.f32.mrf.mxu0 }
 0x9c4   :  { %v13310_v20 = vadd.f32 %v3520_v60, %v3439_v19 }
 0x9c9   :  { %v10907_v28 = vpop.f32.mrf.mxu0 }
 0x9ca   :  { %v3621_v8 = vmul.f32 0.35355338, %v10907_v28 }
 0x9cb   :  { %v3611_v37 = vpop.f32.mrf.mxu0 }
 0x9cc   :  { %v3620_v51 = vmul.f32 0.35355338, %v3611_v37  ;;  %v3623_v2 = vadd.f32 %v3621_v8, %v13242_v0 }
 0x9ce   :  { %v3627_v3 = vsel %vm3057_vm2, %v3623_v2, -inf  ;;  %v3622_v54 = vadd.f32 %v3620_v51, %v13247_v43 }
 0x9cf   :  { %3628 = vmax.xlane.f32.xlu1 %v3627_v3 }
 0x9d0   :  { %v3624_v52 = vsel %vm3057_vm2, %v3622_v54, -inf }
 0x9d1   :  { %3625 = vmax.xlane.f32.xlu0 %v3624_v52  ;;  %v10926_v61 = vpop.f32.mrf.mxu0 }
 0x9d2   :  { %v3908_v59 = vmul.f32 0.35355338, %v10926_v61 }
 0x9d3   :  { %v3898_v5 = vpop.f32.mrf.mxu0 }
 0x9d4   :  { %v3907_v44 = vmul.f32 0.35355338, %v3898_v5  ;;  %v3910_v15 = vadd.f32 %v3908_v59, %v13242_v0  ;;  %v2713_v0 = vld [vmem:[%s15053_s7 + $0x10] sm:$0xff] }
 0x9d6   :  { %v3909_v32 = vadd.f32 %v3907_v44, %v13247_v43  ;;  %v3914_v27 = vsel %vm3057_vm2, %v3910_v15, -inf }
 0x9d8   :  { %v3911_v38 = vsel %vm3057_vm2, %v3909_v32, -inf }
 0x9e0   :  { %3646 = vrot.lane.b32.xlu1 %v13223_v57, %s10999_s30 }
 0xa04   :  { %3912 = vmax.xlane.f32.xlu1 %v3911_v38 }
 0xa58   :  { %v3629_v50 = vpop.xlane.xlu1 %3628 }
 0xa59   :  { %v3631_v58 = vsub.f32 %v3623_v2, %v3629_v50 }
 0xa5a   :  { %v3626_v16 = vpop.xlane.xlu0 %3625 }
 0xa5b   :  { %v3634_v31 = vmul.f32 1.442695, %v3631_v58  ;;  %v3630_v47 = vsub.f32 %v3622_v54, %v3626_v16 }
 0xa5c   :  { %v3647_v43 = vpop.permute.xlu1 %3646 }
 0xa5d   :  { %10967 = vpow2.f32 %v3634_v31  ;;  %v3632_v49 = vmul.f32 1.442695, %v3630_v47 }
 0xa5f   :  { %10969 = vpow2.f32 %v3632_v49 }
 0xa6a   :  { %v10968_v40 = vpop.eup %10967 }
 0xa6b   :  { %v3639_v18 = vsel %vm3057_vm2, %v10968_v40, 0.0 }
 0xa6c   :  { %v10970_v7 = vpop.eup %10969  ;;  %3640 = vadd.xlane.f32.xlu0 %v3639_v18 }
 0xa6d   :  { %v3636_v34 = vsel %vm3057_vm2, %v10970_v7, 0.0 }
 0xa70   :  { %3637 = vadd.xlane.f32.xlu0 %v3636_v34 }
 0xa86   :  { %3648 = vrot.lane.b32.xlu0 %v13219_v6, %s10999_s30 }
 0xa8d   :  { %v3913_v1 = vpop.xlane.xlu1 %3912 }
 0xa8e   :  { %v3917_v21 = vsub.f32 %v3909_v32, %v3913_v1 }
 0xa90   :  { %v3919_v24 = vmul.f32 1.442695, %v3917_v21 }
 0xa92   :  { %10971 = vpow2.f32 %v3919_v24 }
 0xa9f   :  { %v10972_v62 = vpop.eup %10971 }
 0xaa0   :  { %v3923_v55 = vsel %vm3057_vm2, %v10972_v62, 0.0 }
 0xaa5   :  { %3915 = vmax.xlane.f32.xlu0 %v3914_v27 }
 0xaa9   :  { %3924 = vadd.xlane.f32.xlu0 %v3923_v55 }
 0xabf   :  { %3935 = vrot.lane.b32.xlu0 %v13219_v6, %s11000_s5 }
 0xaf5   :  { %v3641_v9 = vpop.xlane.xlu0 %3640 }
 0xaf6   :  { %10973 = vrcp.f32 %v3641_v9 }
 0xaf9   :  { %v3638_v19 = vpop.xlane.xlu0 %3637 }
 0xafa   :  { %10975 = vrcp.f32 %v3638_v19 }
 0xafd   :  { %v3649_v13 = vpop.permute.xlu0 %3648 }
 0xafe   :  { %10908 = vmatprep.subr.mxu1 %v3649_v13 }
 0xaff   :  { %10909 = vmatpush3.msra.mxu1 %v3649_v13 }
 0xb00   :  { %10910 = vmatprep.subr.mxu1 %v3647_v43 }
 0xb01   :  { %10911 = vmatpush3.msra.mxu1 %v3647_v43  ;;  %v8472_v43 = vld [vmem:[%s15054_s8] ss:$0 sm:$0xff] }
 0xb02   :  { %10915 = vmatprep.subr.mxu1 %v2713_v0 }
 0xb03   :  { %v10974_v60 = vpop.eup %10973 }
 0xb04   :  { %v3645_v37 = vmul.f32 %v10974_v60, %v10968_v40 }
 0xb07   :  { %v10976_v28 = vpop.eup %10975 }
 0xb08   :  { %v3644_v8 = vmul.f32 %v10976_v28, %v10970_v7 }
 0xb0a   :  { %10912 = vmatprep.mubr.msk.f32.mxu1 %vm3057_vm2, %v3644_v8 }
 0xb0b   :  { %10913 = vmatmul.mubr.msk.f32.vlgmr.msra.gmra.mxu1 %vm3057_vm2, %v3645_v37 }
 0xb0c   :  { %10916 = vmatpush3.msra.mxu1 %v2713_v0 }
 0xb2e   :  { %v3916_v6 = vpop.xlane.xlu0 %3915 }
 0xb2f   :  { %v3918_v51 = vsub.f32 %v3910_v15, %v3916_v6 }
 0xb31   :  { %v3921_v2 = vmul.f32 1.442695, %v3918_v51 }
 0xb32   :  { %v3925_v3 = vpop.xlane.xlu0 %3924 }
 0xb33   :  { %10977 = vpow2.f32 %v3921_v2 }
 0xb34   :  { %10979 = vrcp.f32 %v3925_v3 }
 0xb36   :  { %v3936_v54 = vpop.permute.xlu0 %3935 }
 0xb37   :  { %10927 = vmatprep.subr.mxu1 %v3936_v54 }
 0xb40   :  { %v10978_v52 = vpop.eup %10977 }
 0xb41   :  { %v3926_v61 = vsel %vm3057_vm2, %v10978_v52, 0.0  ;;  %v10980_v5 = vpop.eup %10979 }
 0xb42   :  { %3927 = vadd.xlane.f32.xlu1 %v3926_v61  ;;  %v3931_v50 = vmul.f32 %v10980_v5, %v10972_v62  ;;  %v8473_v5 = vld [vmem:[%s15059_s13 + $0x3] ss:$0 sm:$0xff] }
 0xb53   :  { %3933 = vrot.lane.b32.xlu1 %v13223_v57, %s11000_s5  ;;  %v2714_v57 = vld [vmem:[%s15053_s7 + $0x18] sm:$0xff] }
 0xbcb   :  { %v10914_v44 = vpop.f32.mrf.mxu1  ;;  %v3928_v32 = vpop.xlane.xlu1 %3927 }
 0xbcc   :  { %10981 = vrcp.f32 %v3928_v32 }
 0xbcd   :  { %v3724_v38 = vpop.f32.mrf.mxu1 }
 0xbce   :  { %10917 = vmatprep.mubr.msk.f32.mxu1 %vm2965_vm1, %v3724_v38  ;;  %v8474_v38 = vld [vmem:[%s15060_s14 + $0x3] ss:$0 sm:$0xff] }
 0xbcf   :  { %10918 = vmatmul.mubr.msk.f32.vlgmr.msra.gmra.mxu1 %vm2965_vm1, %v10914_v44  ;;  %v3934_v58 = vpop.permute.xlu1 %3933 }
 0xbd0   :  { %10928 = vmatpush3.msra.mxu1 %v3936_v54  ;;  %10931 = vmatprep.mubr.msk.f32.mxu1 %vm3057_vm2, %v3931_v50 }
 0xbd1   :  { %10929 = vmatprep.subr.mxu1 %v3934_v58 }
 0xbd2   :  { %10930 = vmatpush3.msra.mxu1 %v3934_v58 }
 0xbd3   :  { %10934 = vmatprep.subr.mxu1 %v2714_v57 }
 0xbd9   :  { %v10982_v16 = vpop.eup %10981 }
 0xbda   :  { %v3932_v31 = vmul.f32 %v10982_v16, %v10978_v52  ;;  %v8476_v16 = vld [vmem:[%s15587_s4 + $0x18] sm:$0xff] }
 0xbdc   :  { %10932 = vmatmul.mubr.msk.f32.vlgmr.msra.gmra.mxu1 %vm3057_vm2, %v3932_v31 }
 0xbdd   :  { %10935 = vmatpush3.msra.mxu1 %v2714_v57 }
 0xc8f   :  { %v10919_v47 = vpop.f32.mrf.mxu1 }
 0xc90   :  { %v3815_v49 = vadd.f32 %v10919_v47, %v13308_v12  ;;  %v8475_v47 = vld [vmem:[%s15587_s4 + $0x10] sm:$0xff] }
 0xc91   :  { %v3805_v40 = vpop.f32.mrf.mxu1 }
 0xc92   :  { %v3814_v18 = vadd.f32 %v3805_v40, %v13310_v20 }
 0xc9c   :  { %v10933_v7 = vpop.f32.mrf.mxu1 }
 0xc9e   :  { %v4011_v34 = vpop.f32.mrf.mxu1 }
 0xc9f   :  { %10936 = vmatprep.mubr.msk.f32.mxu1 %vm2965_vm1, %v4011_v34 }
 0xca0   :  { %10937 = vmatmul.mubr.msk.f32.vlgmr.msra.gmra.mxu1 %vm2965_vm1, %v10933_v7 }
 0xca1   :  { %5044 = vmatprep.mubr.f32.mxu1 %v15588_v22 }
 0xd60   :  { %v10938_v1 = vpop.f32.mrf.mxu1 }
 0xd61   :  { %v4102_v21 = vadd.f32 %v10938_v1, %v3815_v49 }
 0xd62   :  { %v4092_v24 = vpop.f32.mrf.mxu1 }
 0xd63   :  { %v4110_v59 = vadd.f32 %v8472_v43, %v4102_v21  ;;  %v4101_v12 = vadd.f32 %v4092_v24, %v3814_v18 }
 0xd65   :  { %v4109_v15 = vadd.f32 %v8472_v43, %v4101_v12  ;;  %v4112_v20 = vadd.f32 %v4110_v59, %v13169_v53 }
 0xd67   :  { %v4116_v27 = vsel %vm647_vm0, %v4112_v20, 0.0  ;;  %v4111_v62 = vadd.f32 %v4109_v15, %v13163_v4 }
 0xd68   :  { %4117 = vadd.xlane.f32.xlu0 %v4116_v27 }
 0xd69   :  { %v4113_v55 = vsel %vm647_vm0, %v4111_v62, 0.0 }
 0xd6a   :  { %4114 = vadd.xlane.f32.xlu1 %v4113_v55  ;;  %v8503_v55 = vld [vmem:[%s15055_s9 + $0x1c0] sm:$0xff] }
 0xdf1   :  { %v4118_v9 = vpop.xlane.xlu0 %4117 }
 0xdf2   :  { %v4120_v19 = vmul.f32 0.03125, %v4118_v9  ;;  %v8504_v9 = vld [vmem:[%s15055_s9 + $0x1c8] sm:$0xff] }
 0xdf3   :  { %v4115_v13 = vpop.xlane.xlu1 %4114 }
 0xdf4   :  { %v4122_v0 = vsub.f32 %v4112_v20, %v4120_v19  ;;  %v4119_v60 = vmul.f32 0.03125, %v4115_v13  ;;  %v4284_v19 = vunpack.c.h.bf16 %v8503_v55  ;;  %v4286_v13 = vunpack.c.h.bf16 %v8504_v9 }
 0xdf6   :  { %v4121_v28 = vsub.f32 %v4111_v62, %v4119_v60  ;;  %v4124_v8 = vmul.f32 %v4122_v0, %v4122_v0  ;;  %v4285_v60 = vunpack.c.l.bf16 %v8504_v9  ;;  %4927 = vmatprep.subr.mxu0 %v4284_v19  ;;  %5004 = vmatprep.subr.mxu1 %v4286_v13  ;;  %v8478_v9 = vld [vmem:[%s15060_s14 + $0x4] ss:$0 sm:$0xff] }
 0xdf8   :  { %v4128_v37 = vsel %vm647_vm0, %v4124_v8, 0.0  ;;  %v4123_v6 = vmul.f32 %v4121_v28, %v4121_v28  ;;  %v8496_v8 = vld [vmem:[%s15055_s9 + $0x188] sm:$0xff]  ;;  %5005 = vmatpush1.msra.mxu1 %v4285_v60 }
 0xdf9   :  { %4129 = vadd.xlane.f32.xlu1 %v4128_v37 }
 0xdfa   :  { %v4125_v53 = vsel %vm647_vm0, %v4123_v6, 0.0  ;;  %v4270_v6 = vunpack.c.h.bf16 %v8496_v8 }
 0xdfb   :  { %4126 = vadd.xlane.f32.xlu0 %v4125_v53 }
 0xdfc   :  { %5006 = vmatprep.subr.mxu1 %v4270_v6 }
 0xe82   :  { %v4130_v51 = vpop.xlane.xlu1 %4129 }
 0xe83   :  { %v4132_v4 = vmul.f32 0.03125, %v4130_v51  ;;  %v4269_v51 = vunpack.c.l.bf16 %v8496_v8  ;;  %v8490_v8 = vld [vmem:[%s15055_s9 + $0x158] sm:$0xff] }
 0xe84   :  { %v4127_v2 = vpop.xlane.xlu0 %4126 }
 0xe85   :  { %v4134_v3 = vadd.f32 1e-05, %v4132_v4  ;;  %v4131_v54 = vmul.f32 0.03125, %v4127_v2  ;;  %v8487_v4 = vld [vmem:[%s15055_s9 + $0x140] sm:$0xff]  ;;  %v8488_v2 = vld [vmem:[%s15055_s9 + $0x148] sm:$0xff]  ;;  %5007 = vmatpush1.msra.mxu1 %v4269_v51  ;;  %v8482_v51 = vld [vmem:[%s15055_s9 + $0x118] sm:$0xff] }
 0xe87   :  { %10983 = vrsqrt.f32 %v4134_v3  ;;  %v4133_v52 = vadd.f32 1e-05, %v4131_v54  ;;  %v4252_v3 = vunpack.c.h.bf16 %v8487_v4  ;;  %v4254_v54 = vunpack.c.h.bf16 %v8488_v2 }
 0xe89   :  { %10985 = vrsqrt.f32 %v4133_v52  ;;  %v4251_v52 = vunpack.c.l.bf16 %v8487_v4  ;;  %5008 = vmatprep.subr.mxu1 %v4254_v54 }
 0xe94   :  { %v10984_v61 = vpop.eup %10983 }
 0xe95   :  { %v4138_v44 = vmul.f32 %v10984_v61, %v4122_v0  ;;  %v4283_v0 = vunpack.c.l.bf16 %v8503_v55  ;;  %v4253_v61 = vunpack.c.l.bf16 %v8488_v2  ;;  %v4258_v2 = vunpack.c.h.bf16 %v8490_v8 }
 0xe96   :  { %v10986_v32 = vpop.eup %10985 }
 0xe97   :  { %v4146_v50 = vmul.f32 %v8473_v5, %v4138_v44  ;;  %v4137_v58 = vmul.f32 %v10986_v32, %v4121_v28  ;;  %v8495_v28 = vld [vmem:[%s15055_s9 + $0x180] sm:$0xff]  ;;  %4928 = vmatpush1.msra.mxu0 %v4283_v0  ;;  %v8480_v44 = vld [vmem:[%s15055_s9 + $0x108] sm:$0xff]  ;;  %5009 = vmatpush1.msra.mxu1 %v4253_v61 }
 0xe98   :  { %v4268_v37 = vunpack.c.h.bf16 %v8495_v28  ;;  %v4267_v53 = vunpack.c.l.bf16 %v8495_v28  ;;  %v8489_v28 = vld [vmem:[%s15055_s9 + $0x150] sm:$0xff] }
 0xe99   :  { %v4154_v31 = vadd.f32 %v8474_v38, %v4146_v50  ;;  %v4145_v57 = vmul.f32 %v8473_v5, %v4137_v58  ;;  %v8479_v5 = vld [vmem:[%s15055_s9 + $0x100] sm:$0xff]  ;;  %v4237_v58 = vunpack.c.l.bf16 %v8480_v44  ;;  %v4256_v4 = vunpack.c.h.bf16 %v8489_v28 }
 0xe9a   :  { %4929 = vmatprep.subr.mxu0 %v4268_v37  ;;  %v4236_v32 = vunpack.c.h.bf16 %v8479_v5  ;;  %v4235_v50 = vunpack.c.l.bf16 %v8479_v5  ;;  %v4255_v54 = vunpack.c.l.bf16 %v8489_v28  ;;  %v4242_v5 = vunpack.c.h.bf16 %v8482_v51  ;;  %v8502_v28 = vld [vmem:[%s15055_s9 + $0x1b8] sm:$0xff] }
 0xe9b   :  { %v4159_v49 = vadd.f32 %v8476_v16, %v4154_v31  ;;  %v4153_v40 = vadd.f32 %v8474_v38, %v4145_v57  ;;  %4930 = vmatpush1.msra.mxu0 %v4267_v53  ;;  %v4238_v38 = vunpack.c.h.bf16 %v8480_v44  ;;  %v8505_v16 = vld [vmem:[%s15055_s9 + $0x1d0] sm:$0xff]  ;;  %v8506_v31 = vld [vmem:[%s15055_s9 + $0x1d8] sm:$0xff] }
 0xe9c   :  { %4931 = vmatprep.subr.mxu0 %v4252_v3  ;;  %v4288_v57 = vunpack.c.h.bf16 %v8505_v16  ;;  %v4289_v19 = vunpack.c.l.bf16 %v8506_v31  ;;  %v8481_v53 = vld [vmem:[%s15055_s9 + $0x110] sm:$0xff] }
 0xe9d   :  { %v4163_v18 = vsel %vm647_vm0, %v4159_v49, 0.0  ;;  %v4158_v7 = vadd.f32 %v8475_v47, %v4153_v40  ;;  %4932 = vmatpush1.msra.mxu0 %v4251_v52  ;;  %5010 = vmatprep.subr.mxu1 %v4238_v38  ;;  %v4290_v47 = vunpack.c.h.bf16 %v8506_v31  ;;  %v4257_v52 = vunpack.c.l.bf16 %v8490_v8  ;;  %v8508_v38 = vld [vmem:[%s15055_s9 + $0x1e8] sm:$0xff] }
 0xe9e   :  { %4164 = vadd.xlane.f32.xlu1 %v4163_v18  ;;  %4933 = vmatprep.subr.mxu0 %v4236_v32  ;;  %v4240_v61 = vunpack.c.h.bf16 %v8481_v53  ;;  %v4239_v44 = vunpack.c.l.bf16 %v8481_v53  ;;  %v8507_v32 = vld [vmem:[%s15055_s9 + $0x1e0] sm:$0xff] }
 0xe9f   :  { %v4160_v34 = vsel %vm647_vm0, %v4158_v7, 0.0  ;;  %4934 = vmatpush1.msra.mxu0 %v4235_v50  ;;  %5011 = vmatpush1.msra.mxu1 %v4237_v58  ;;  %v4241_v50 = vunpack.c.l.bf16 %v8482_v51  ;;  %v8499_v58 = vld [vmem:[%s15055_s9 + $0x1a0] sm:$0xff]  ;;  %v4292_v31 = vunpack.c.h.bf16 %v8507_v32 }
 0xea0   :  { %4161 = vadd.xlane.f32.xlu0 %v4160_v34  ;;  %5081 = vmatprep.subr.mxu0 %v4288_v57  ;;  %v4294_v57 = vunpack.c.h.bf16 %v8508_v38 }
 0xea1   :  { %5158 = vmatprep.subr.mxu1 %v4290_v47  ;;  %v4291_v47 = vunpack.c.l.bf16 %v8507_v32 }
 0xf27   :  { %v4165_v43 = vpop.xlane.xlu1 %4164 }
 0xf28   :  { %v4167_v1 = vmul.f32 0.03125, %v4165_v43 }
 0xf29   :  { %v4162_v21 = vpop.xlane.xlu0 %4161 }
 0xf2a   :  { %v13372_v24 = vsub.f32 %v4159_v49, %v4167_v1  ;;  %v4166_v59 = vmul.f32 0.03125, %v4162_v21 }
 0xf2c   :  { %v13374_v12 = vsub.f32 %v4158_v7, %v4166_v59  ;;  %v4171_v15 = vmul.f32 %v13372_v24, %v13372_v24 }
 0xf2e   :  { %v4175_v20 = vsel %vm647_vm0, %v4171_v15, 0.0  ;;  %v4170_v27 = vmul.f32 %v13374_v12, %v13374_v12  ;;  %v8477_v15 = vld [vmem:[%s15059_s13 + $0x4] ss:$0 sm:$0xff] }
 0xf2f   :  { %4176 = vadd.xlane.f32.xlu1 %v4175_v20 }
 0xf30   :  { %v4172_v62 = vsel %vm647_vm0, %v4170_v27, 0.0  ;;  %v8497_v27 = vld [vmem:[%s15055_s9 + $0x190] sm:$0xff] }
 0xf31   :  { %4173 = vadd.xlane.f32.xlu0 %v4172_v62  ;;  %v8498_v62 = vld [vmem:[%s15055_s9 + $0x198] sm:$0xff]  ;;  %v4272_v0 = vunpack.c.h.bf16 %v8497_v27  ;;  %v4271_v37 = vunpack.c.l.bf16 %v8497_v27 }
 0xf32   :  { %v4274_v60 = vunpack.c.h.bf16 %v8498_v62  ;;  %v4273_v6 = vunpack.c.l.bf16 %v8498_v62 }
 0xfb8   :  { %v4177_v49 = vpop.xlane.xlu1 %4176 }
 0xfb9   :  { %v4179_v40 = vmul.f32 0.03125, %v4177_v49  ;;  %v4293_v49 = vunpack.c.l.bf16 %v8508_v38 }
 0xfba   :  { %v4174_v18 = vpop.xlane.xlu0 %4173 }
 0xfbb   :  { %v4181_v7 = vadd.f32 1e-05, %v4179_v40  ;;  %v4178_v34 = vmul.f32 0.03125, %v4174_v18  ;;  %v4276_v40 = vunpack.c.h.bf16 %v8499_v58 }
 0xfbd   :  { %v4180_v43 = vadd.f32 1e-05, %v4178_v34  ;;  %10987 = vrsqrt.f32 %v4181_v7  ;;  %v8491_v7 = vld [vmem:[%s15055_s9 + $0x160] sm:$0xff]  ;;  %v8492_v34 = vld [vmem:[%s15055_s9 + $0x168] sm:$0xff] }
 0xfbe   :  { %v4259_v27 = vunpack.c.l.bf16 %v8491_v7  ;;  %v4261_v62 = vunpack.c.l.bf16 %v8492_v34 }
 0xfbf   :  { %10989 = vrsqrt.f32 %v4180_v43  ;;  %v4275_v43 = vunpack.c.l.bf16 %v8499_v58 }
 0xfca   :  { %v10988_v1 = vpop.eup %10987 }
 0xfcb   :  { %v4185_v20 = vmul.f32 %v10988_v1, %v13372_v24 }
 0xfcc   :  { %v10990_v21 = vpop.eup %10989 }
 0xfcd   :  { %v4184_v59 = vmul.f32 %v10990_v21, %v13374_v12  ;;  %v4287_v12 = vunpack.c.l.bf16 %v8505_v16  ;;  %v4193_v24 = vmul.f32 %v8477_v15, %v4185_v20  ;;  %v8500_v16 = vld [vmem:[%s15055_s9 + $0x1a8] sm:$0xff]  ;;  %v8483_v21 = vld [vmem:[%s15055_s9 + $0x120] sm:$0xff]  ;;  %v4262_v20 = vunpack.c.h.bf16 %v8492_v34 }
 0xfce   :  { %v4278_v18 = vunpack.c.h.bf16 %v8500_v16  ;;  %v4277_v1 = vunpack.c.l.bf16 %v8500_v16 }
 0xfcf   :  { %v4192_v55 = vmul.f32 %v8477_v15, %v4184_v59  ;;  %v13444_v3 = vadd.f32 %v8478_v9, %v4193_v24  ;;  %v8484_v59 = vld [vmem:[%s15055_s9 + $0x128] sm:$0xff]  ;;  %v4260_v15 = vunpack.c.h.bf16 %v8491_v7  ;;  %v8501_v24 = vld [vmem:[%s15055_s9 + $0x1b0] sm:$0xff]  ;;  %v9979_v7 = vld [vmem:[%s15057_s11 + $0x4b8] sm:$0xff]  }
 0xfd0   :  { %v4280_v51 = vunpack.c.h.bf16 %v8501_v24 }
 0xfd1   :  { %v13426_v13 = vadd.f32 %v8478_v9, %v4192_v55  ;;  %v4244_v55 = vunpack.c.h.bf16 %v8483_v21  ;;  %v4246_v9 = vunpack.c.h.bf16 %v8484_v59 }
 0xfd3   :  { %8769 = vmatmul.mubr.msk.f32.vlgmr.msra.gmra.mxu0 %vm647_vm0, %v13426_v13  ;;  %8771 = vmatmul.mubr.msk.f32.vlgmr.msra.gmra.mxu1 %vm647_vm0, %v13426_v13 }
 0xfd4   :  { %5082 = vmatpush1.msra.mxu0 %v4287_v12  ;;  %5159 = vmatpush1.msra.mxu1 %v4289_v19  ;;  %v4243_v12 = vunpack.c.l.bf16 %v8483_v21  ;;  %v8509_v19 = vld [vmem:[%s15055_s9 + $0x1f0] sm:$0xff]  ;;  %v9412_v21 = vunpack.c.h.bf16 %v9979_v7 }
 0xfd5   :  { %5083 = vmatprep.subr.mxu0 %v4272_v0  ;;  %5160 = vmatprep.subr.mxu1 %v4274_v60  ;;  %v8510_v0 = vld [vmem:[%s15055_s9 + $0x1f8] sm:$0xff]  ;;  %v4245_v60 = vunpack.c.l.bf16 %v8484_v59  ;;  %v4296_v8 = vunpack.c.h.bf16 %v8509_v19  ;;  %v9970_v59 = vld [vmem:[%s15057_s11 + $0x470] sm:$0xff]  }
 0xfd6   :  { %4973 = vmatprep.mubr.f32.mxu0 %v15588_v22  ;;  %5050 = vmatprep.mubr.f32.mxu1 %v15588_v22  ;;  %v4297_v53 = vunpack.c.l.bf16 %v8510_v0 }
 0xfd7   :  { %5084 = vmatpush1.msra.mxu0 %v4271_v37  ;;  %5161 = vmatpush1.msra.mxu1 %v4273_v6  ;;  %v4298_v37 = vunpack.c.h.bf16 %v8510_v0  ;;  %v4295_v6 = vunpack.c.l.bf16 %v8509_v19  ;;  %v9376_v19 = vunpack.c.h.bf16 %v9970_v59 }
 0xfd8   :  { %8770 = vmatmul.mubr.msk.f32.gmra.mxu0 %vm647_vm0, %v13444_v3  ;;  %8772 = vmatmul.mubr.msk.f32.gmra.mxu1 %vm647_vm0, %v13444_v3 }
 0xfd9   :  { %5085 = vmatprep.subr.mxu0 %v4256_v4  ;;  %5162 = vmatprep.subr.mxu1 %v4258_v2  ;;  %v4282_v4 = vunpack.c.h.bf16 %v8502_v28  ;;  %v8493_v2 = vld [vmem:[%s15055_s9 + $0x170] sm:$0xff] }
 0xfda   :  { %5086 = vmatpush1.msra.mxu0 %v4255_v54  ;;  %5163 = vmatpush1.msra.mxu1 %v4257_v52  ;;  %v8494_v54 = vld [vmem:[%s15055_s9 + $0x178] sm:$0xff]  ;;  %v4279_v52 = vunpack.c.l.bf16 %v8501_v24  ;;  %v4264_v32 = vunpack.c.h.bf16 %v8493_v2 }
 0xfdb   :  { %5087 = vmatprep.subr.mxu0 %v4240_v61  ;;  %5164 = vmatprep.subr.mxu1 %v4242_v5  ;;  %v4281_v61 = vunpack.c.l.bf16 %v8502_v28  ;;  %v8485_v5 = vld [vmem:[%s15055_s9 + $0x130] sm:$0xff]  ;;  %v4266_v38 = vunpack.c.h.bf16 %v8494_v54  ;;  %v4265_v58 = vunpack.c.l.bf16 %v8494_v54  ;;  %v9969_v28 = vld [vmem:[%s15057_s11 + $0x468] sm:$0xff]  }
 0xfdc   :  { %5088 = vmatpush1.msra.mxu0 %v4239_v44  ;;  %5121 = vmatprep.mubr.f32.mxu0 %v15588_v22  ;;  %v8486_v44 = vld [vmem:[%s15055_s9 + $0x138] sm:$0xff]  ;;  %v4248_v16 = vunpack.c.h.bf16 %v8485_v5  ;;  %v9372_v54 = vunpack.c.h.bf16 %v9969_v28 }
 0xfdd   :  { %5165 = vmatpush1.msra.mxu1 %v4241_v50  ;;  %5198 = vmatprep.mubr.f32.mxu1 %v15588_v22  ;;  %v4263_v50 = vunpack.c.l.bf16 %v8493_v2 }
 0xfde   :  { %8773 = vmatmul.mubr.msk.f32.vlgmr.msra.gmra.mxu0 %vm647_vm0, %v13426_v13  ;;  %8775 = vmatmul.mubr.msk.f32.vlgmr.msra.gmra.mxu1 %vm647_vm0, %v13426_v13 }
 0xfdf   :  { %5235 = vmatprep.subr.mxu0 %v4292_v31  ;;  %5312 = vmatprep.subr.mxu1 %v4294_v57  ;;  %v4250_v31 = vunpack.c.h.bf16 %v8486_v44  ;;  %v4247_v57 = vunpack.c.l.bf16 %v8485_v5 }
 0xfe0   :  { %5236 = vmatpush1.msra.mxu0 %v4291_v47  ;;  %5313 = vmatpush1.msra.mxu1 %v4293_v49  ;;  %v4249_v47 = vunpack.c.l.bf16 %v8486_v44  ;;  %v9971_v49 = vld [vmem:[%s15057_s11 + $0x478] sm:$0xff]   ;;  %v9968_v44 = vld [vmem:[%s15057_s11 + $0x460] sm:$0xff]  }
 0xfe1   :  { %5237 = vmatprep.subr.mxu0 %v4276_v40  ;;  %5314 = vmatprep.subr.mxu1 %v4278_v18  ;;  %v9987_v40 = vld [vmem:[%s15057_s11 + $0x4f8] sm:$0xff]   ;;  %v9380_v34 = vunpack.c.h.bf16 %v9971_v49 }
 0xfe2   :  { %5127 = vmatprep.mubr.f32.mxu0 %v15588_v22  ;;  %5204 = vmatprep.mubr.f32.mxu1 %v15588_v22  ;;  %v9963_v18 = vld [vmem:[%s15057_s11 + $0x438] sm:$0xff]  }
 0xfe3   :  { %5238 = vmatpush1.msra.mxu0 %v4275_v43  ;;  %5315 = vmatpush1.msra.mxu1 %v4277_v1  ;;  %v9444_v43 = vunpack.c.h.bf16 %v9987_v40  ;;  %v9348_v1 = vunpack.c.h.bf16 %v9963_v18 }
 0xfe4   :  { %8774 = vmatmul.mubr.msk.f32.gmra.mxu0 %vm647_vm0, %v13444_v3  ;;  %8776 = vmatmul.mubr.msk.f32.gmra.mxu1 %vm647_vm0, %v13444_v3 }
 0xfe5   :  { %5239 = vmatprep.subr.mxu0 %v4260_v15  ;;  %5316 = vmatprep.subr.mxu1 %v4262_v20  ;;  %v9986_v15 = vld [vmem:[%s15057_s11 + $0x4f0] sm:$0xff]   ;;  %v9379_v20 = vunpack.c.l.bf16 %v9971_v49 }
 0xfe6   :  { %5240 = vmatpush1.msra.mxu0 %v4259_v27  ;;  %5317 = vmatpush1.msra.mxu1 %v4261_v62  ;;  %v9443_v27 = vunpack.c.l.bf16 %v9987_v40  ;;  %v9962_v62 = vld [vmem:[%s15057_s11 + $0x430] sm:$0xff]   ;;  %v9440_v0 = vunpack.c.h.bf16 %v9986_v15 }
 0xfe7   :  { %5241 = vmatprep.subr.mxu0 %v4244_v55  ;;  %5318 = vmatprep.subr.mxu1 %v4246_v9  ;;  %v9978_v55 = vld [vmem:[%s15057_s11 + $0x4b0] sm:$0xff]   ;;  %v9347_v9 = vunpack.c.l.bf16 %v9963_v18 }
 0xfe8   :  { %5242 = vmatpush1.msra.mxu0 %v4243_v12  ;;  %5275 = vmatprep.mubr.f32.mxu0 %v15588_v22  ;;  %v9411_v12 = vunpack.c.l.bf16 %v9979_v7  ;;  %v9408_v24 = vunpack.c.h.bf16 %v9978_v55  ;;  %v9407_v2 = vunpack.c.l.bf16 %v9978_v55  ;;  %v9967_v7 = vld [vmem:[%s15057_s11 + $0x458] sm:$0xff]  }
 0xfe9   :  { %5319 = vmatpush1.msra.mxu1 %v4245_v60  ;;  %5352 = vmatprep.mubr.f32.mxu1 %v15588_v22  ;;  %v9344_v60 = vunpack.c.h.bf16 %v9962_v62 }
 0xfea   :  { %8777 = vmatmul.mubr.msk.f32.vlgmr.msra.gmra.mxu0 %vm647_vm0, %v13426_v13  ;;  %8779 = vmatmul.mubr.msk.f32.vlgmr.msra.gmra.mxu1 %vm647_vm0, %v13426_v13 }
 0xfeb   :  { %5389 = vmatprep.subr.mxu0 %v4296_v8  ;;  %5466 = vmatprep.subr.mxu1 %v4298_v37  ;;  %v9985_v8 = vld [vmem:[%s15057_s11 + $0x4e8] sm:$0xff]   ;;  %v9375_v37 = vunpack.c.l.bf16 %v9970_v59  ;;  %v9975_v59 = vld [vmem:[%s15057_s11 + $0x498] sm:$0xff]  }
 0xfec   :  { %5390 = vmatpush1.msra.mxu0 %v4295_v6  ;;  %5467 = vmatpush1.msra.mxu1 %v4297_v53  ;;  %v9439_v6 = vunpack.c.l.bf16 %v9986_v15  ;;  %v9961_v53 = vld [vmem:[%s15057_s11 + $0x428] sm:$0xff]  }
 0xfed   :  { %5391 = vmatprep.subr.mxu0 %v4280_v51  ;;  %5468 = vmatprep.subr.mxu1 %v4282_v4  ;;  %v9977_v51 = vld [vmem:[%s15057_s11 + $0x4a8] sm:$0xff]   ;;  %v9343_v4 = vunpack.c.l.bf16 %v9962_v62 }
 0xfee   :  { %5281 = vmatprep.mubr.f32.mxu0 %v15588_v22  ;;  %5358 = vmatprep.mubr.f32.mxu1 %v15588_v22  ;;  %v9404_v5 = vunpack.c.h.bf16 %v9977_v51 }
 0xfef   :  { %5392 = vmatpush1.msra.mxu0 %v4279_v52  ;;  %5469 = vmatpush1.msra.mxu1 %v4281_v61  ;;  %v9436_v52 = vunpack.c.h.bf16 %v9985_v8  ;;  %v9340_v61 = vunpack.c.h.bf16 %v9961_v53 }
 0xff0   :  { %8778 = vmatmul.mubr.msk.f32.gmra.mxu0 %vm647_vm0, %v13444_v3  ;;  %8780 = vmatmul.mubr.msk.f32.gmra.mxu1 %vm647_vm0, %v13444_v3 }
 0xff1   :  { %5393 = vmatprep.subr.mxu0 %v4264_v32  ;;  %5470 = vmatprep.subr.mxu1 %v4266_v38  ;;  %v9984_v32 = vld [vmem:[%s15057_s11 + $0x4e0] sm:$0xff]   ;;  %v9371_v38 = vunpack.c.l.bf16 %v9969_v28  ;;  %v9974_v28 = vld [vmem:[%s15057_s11 + $0x490] sm:$0xff]  }
 0xff2   :  { %5394 = vmatpush1.msra.mxu0 %v4263_v50  ;;  %5471 = vmatpush1.msra.mxu1 %v4265_v58  ;;  %v9435_v50 = vunpack.c.l.bf16 %v9985_v8  ;;  %v9960_v58 = vld [vmem:[%s15057_s11 + $0x420] sm:$0xff]   ;;  %v9432_v49 = vunpack.c.h.bf16 %v9984_v32 }
 0xff3   :  { %5395 = vmatprep.subr.mxu0 %v4248_v16  ;;  %5472 = vmatprep.subr.mxu1 %v4250_v31  ;;  %v9976_v16 = vld [vmem:[%s15057_s11 + $0x4a0] sm:$0xff]   ;;  %v9339_v31 = vunpack.c.l.bf16 %v9961_v53  ;;  %v9336_v40 = vunpack.c.h.bf16 %v9960_v58  ;;  %v9335_v15 = vunpack.c.l.bf16 %v9960_v58  ;;  %v9973_v58 = vld [vmem:[%s15057_s11 + $0x488] sm:$0xff]  }
 0xff4   :  { %5396 = vmatpush1.msra.mxu0 %v4247_v57  ;;  %5429 = vmatprep.mubr.f32.mxu0 %v15588_v22  ;;  %v9403_v57 = vunpack.c.l.bf16 %v9977_v51  ;;  %v9400_v18 = vunpack.c.h.bf16 %v9976_v16 }
 0xff5   :  { %5473 = vmatpush1.msra.mxu1 %v4249_v47  ;;  %5506 = vmatprep.mubr.f32.mxu1 %v15588_v22  ;;  %v9368_v47 = vunpack.c.h.bf16 %v9968_v44 }
 0xff6   :  { %8781 = vmatmul.mubr.msk.f32.vlgmr.msra.gmra.mxu0 %vm647_vm0, %v13426_v13  ;;  %8783 = vmatmul.mubr.msk.f32.vlgmr.msra.gmra.mxu1 %vm647_vm0, %v13426_v13 }
 0xff7   :  { %5435 = vmatprep.mubr.f32.mxu0 %v15588_v22  ;;  %5512 = vmatprep.mubr.f32.mxu1 %v15588_v22 }
 0xff8   :  { %10450 = vmatprep.subr.mxu0 %v9380_v34  ;;  %10488 = vmatprep.subr.mxu1 %v9444_v43  ;;  %v9983_v34 = vld [vmem:[%s15057_s11 + $0x4d8] sm:$0xff]   ;;  %v9367_v43 = vunpack.c.l.bf16 %v9968_v44  ;;  %v9391_v44 = vunpack.c.l.bf16 %v9974_v28 }
 0xff9   :  { %10451 = vmatpush3.msra.mxu0 %v9348_v1  ;;  %10489 = vmatpush3.msra.mxu1 %v9412_v21  ;;  %v9431_v1 = vunpack.c.l.bf16 %v9984_v32  ;;  %v9959_v21 = vld [vmem:[%s15057_s11 + $0x418] sm:$0xff]   ;;  %v9428_v62 = vunpack.c.h.bf16 %v9983_v34 }
 0xffa   :  { %8782 = vmatmul.mubr.msk.f32.gmra.mxu0 %vm647_vm0, %v13444_v3  ;;  %8784 = vmatmul.mubr.msk.f32.gmra.mxu1 %vm647_vm0, %v13444_v3  ;;  %v9332_v55 = vunpack.c.h.bf16 %v9959_v21  ;;  %v9331_v8 = vunpack.c.l.bf16 %v9959_v21  ;;  %v9972_v21 = vld [vmem:[%s15057_s11 + $0x480] sm:$0xff]  }
 0xffb   :  { %10452 = vmatprep.subr.mxu0 %v9379_v20  ;;  %10490 = vmatprep.subr.mxu1 %v9443_v27  ;;  %v9399_v20 = vunpack.c.l.bf16 %v9976_v16  ;;  %v9364_v27 = vunpack.c.h.bf16 %v9967_v7 }
 0xffc   :  { %10453 = vmatpush3.msra.mxu0 %v9347_v9  ;;  %10491 = vmatpush3.msra.mxu1 %v9411_v12  ;;  %v9396_v9 = vunpack.c.h.bf16 %v9975_v59  ;;  %v9966_v12 = vld [vmem:[%s15057_s11 + $0x450] sm:$0xff]  }
 0xffd   :  { %10454 = vmatprep.subr.mxu0 %v9376_v19  ;;  %10492 = vmatprep.subr.mxu1 %v9440_v0  ;;  %v9982_v19 = vld [vmem:[%s15057_s11 + $0x4d0] sm:$0xff]   ;;  %v9363_v0 = vunpack.c.l.bf16 %v9967_v7  ;;  %v9980_v7 = vld [vmem:[%s15057_s11 + $0x4c0] sm:$0xff]  }
 0xffe   :  { %10455 = vmatpush3.msra.mxu0 %v9344_v60  ;;  %10493 = vmatpush3.msra.mxu1 %v9408_v24  ;;  %v9427_v60 = vunpack.c.l.bf16 %v9983_v34  ;;  %v9958_v24 = vld [vmem:[%s15057_s11 + $0x410] sm:$0xff]   ;;  %v9424_v53 = vunpack.c.h.bf16 %v9982_v19 }
 0xfff   :  { %10456 = vmatprep.subr.mxu0 %v9375_v37  ;;  %10494 = vmatprep.subr.mxu1 %v9439_v6  ;;  %v9395_v37 = vunpack.c.l.bf16 %v9975_v59  ;;  %v9360_v6 = vunpack.c.h.bf16 %v9966_v12  ;;  %v9328_v51 = vunpack.c.h.bf16 %v9958_v24 }
0x1000   :  { %10457 = vmatpush3.msra.mxu0 %v9343_v4  ;;  %10495 = vmatpush3.msra.mxu1 %v9407_v2  ;;  %v9392_v4 = vunpack.c.h.bf16 %v9974_v28  ;;  %v9965_v2 = vld [vmem:[%s15057_s11 + $0x448] sm:$0xff]  }
0x1001   :  { %10458 = vmatprep.subr.mxu0 %v9372_v54  ;;  %10496 = vmatprep.subr.mxu1 %v9436_v52  ;;  %v9981_v54 = vld [vmem:[%s15057_s11 + $0x4c8] sm:$0xff]   ;;  %v9359_v52 = vunpack.c.l.bf16 %v9966_v12  ;;  %v9356_v32 = vunpack.c.h.bf16 %v9965_v2  ;;  %v9355_v16 = vunpack.c.l.bf16 %v9965_v2  ;;  %v10019_v12 = vld [vmem:[%s15057_s11 + $0x5f8] sm:$0xff]  }
0x1002   :  { %10459 = vmatpush3.msra.mxu0 %v9340_v61  ;;  %10497 = vmatpush3.msra.mxu1 %v9404_v5  ;;  %v9423_v61 = vunpack.c.l.bf16 %v9982_v19  ;;  %v9327_v5 = vunpack.c.l.bf16 %v9958_v24 }
0x1003   :  { %10460 = vmatprep.subr.mxu0 %v9371_v38  ;;  %10498 = vmatprep.subr.mxu1 %v9435_v50  ;;  %v9420_v38 = vunpack.c.h.bf16 %v9981_v54  ;;  %v9957_v50 = vld [vmem:[%s15057_s11 + $0x408] sm:$0xff]  }
0x1004   :  { %10461 = vmatpush3.msra.mxu0 %v9339_v31  ;;  %10499 = vmatpush3.msra.mxu1 %v9403_v57  ;;  %v9419_v31 = vunpack.c.l.bf16 %v9981_v54  ;;  %v9324_v57 = vunpack.c.h.bf16 %v9957_v50 }
0x1005   :  { %10462 = vmatprep.subr.mxu0 %v9368_v47  ;;  %10500 = vmatprep.subr.mxu1 %v9432_v49  ;;  %v9388_v47 = vunpack.c.h.bf16 %v9973_v58  ;;  %v9323_v49 = vunpack.c.l.bf16 %v9957_v50 }
0x1006   :  { %10463 = vmatpush3.msra.mxu0 %v9336_v40  ;;  %10501 = vmatpush3.msra.mxu1 %v9400_v18  ;;  %v9387_v40 = vunpack.c.l.bf16 %v9973_v58  ;;  %v9964_v18 = vld [vmem:[%s15057_s11 + $0x440] sm:$0xff]  }
0x1007   :  { %10464 = vmatprep.subr.mxu0 %v9367_v43  ;;  %10502 = vmatprep.subr.mxu1 %v9431_v1  ;;  %v9352_v34 = vunpack.c.h.bf16 %v9964_v18  ;;  %v9416_v43 = vunpack.c.h.bf16 %v9980_v7  ;;  %v9956_v1 = vld [vmem:[%s15057_s11 + $0x400] sm:$0xff]   ;;  %v9351_v59 = vunpack.c.l.bf16 %v9964_v18  ;;  %v10002_v18 = vld [vmem:[%s15057_s11 + $0x570] sm:$0xff]  }
0x1008   :  { %10465 = vmatpush3.msra.mxu0 %v9335_v15  ;;  %10503 = vmatpush3.msra.mxu1 %v9399_v20  ;;  %v9415_v15 = vunpack.c.l.bf16 %v9980_v7  ;;  %v9320_v20 = vunpack.c.h.bf16 %v9956_v1  ;;  %v10018_v7 = vld [vmem:[%s15057_s11 + $0x5f0] sm:$0xff]  }
0x1009   :  { %10466 = vmatprep.subr.mxu0 %v9364_v27  ;;  %10504 = vmatprep.subr.mxu1 %v9428_v62  ;;  %v9384_v27 = vunpack.c.h.bf16 %v9972_v21  ;;  %v9319_v62 = vunpack.c.l.bf16 %v9956_v1 }
0x100a   :  { %10467 = vmatpush3.msra.mxu0 %v9332_v55  ;;  %10505 = vmatpush3.msra.mxu1 %v9396_v9  ;;  %v9383_v55 = vunpack.c.l.bf16 %v9972_v21  ;;  %v10003_v9 = vld [vmem:[%s15057_s11 + $0x578] sm:$0xff]  }
0x100b   :  { %10468 = vmatprep.subr.mxu0 %v9363_v0  ;;  %10506 = vmatprep.subr.mxu1 %v9427_v60  ;;  %v9508_v19 = vunpack.c.h.bf16 %v10003_v9  ;;  %v9572_v0 = vunpack.c.h.bf16 %v10019_v12  ;;  %v13641_v60 = vld [vmem:[%s15056_s10 + $0x10] sm:$0xff] }
0x100c   :  { %10469 = vmatpush3.msra.mxu0 %v9331_v8  ;;  %10507 = vmatpush3.msra.mxu1 %v9395_v37  ;;  %v4820_v24 = vrot.slane %v13641_v60, %v12719_v26  ;;  %v4828_v28 = vrot.slane %v13641_v60, %v12737_v63  ;;  %v4824_v8 = vrot.slane %v13641_v60, %v12727_v56 }
0x100d   :  { %10470 = vmatprep.subr.mxu0 %v9360_v6  ;;  %10508 = vmatprep.subr.mxu1 %v9424_v53  ;;  %v4832_v37 = vrot.slane %v13641_v60, %v12743_v25 }
0x100e   :  { %10471 = vmatpush3.msra.mxu0 %v9328_v51  ;;  %10509 = vmatpush3.msra.mxu1 %v9392_v4 }
0x100f   :  { %10472 = vmatprep.subr.mxu0 %v9359_v52  ;;  %10510 = vmatprep.subr.mxu1 %v9423_v61  ;;  %v9995_v52 = vld [vmem:[%s15057_s11 + $0x538] sm:$0xff]  }
0x1010   :  { %10473 = vmatpush3.msra.mxu0 %v9327_v5  ;;  %10511 = vmatpush3.msra.mxu1 %v9391_v44  ;;  %v10011_v61 = vld [vmem:[%s15057_s11 + $0x5b8] sm:$0xff]   ;;  %v9475_v21 = vunpack.c.l.bf16 %v9995_v52 }
0x1011   :  { %10474 = vmatprep.subr.mxu0 %v9356_v32  ;;  %10512 = vmatprep.subr.mxu1 %v9420_v38 }
0x1012   :  { %10475 = vmatpush3.msra.mxu0 %v9324_v57  ;;  %10513 = vmatpush3.msra.mxu1 %v9388_v47 }
0x1013   :  { %10476 = vmatprep.subr.mxu0 %v9355_v16  ;;  %10514 = vmatprep.subr.mxu1 %v9419_v31  ;;  %v9476_v16 = vunpack.c.h.bf16 %v9995_v52  ;;  %v9540_v31 = vunpack.c.h.bf16 %v10011_v61  ;;  %v9567_v52 = vunpack.c.l.bf16 %v10018_v7 }
0x1014   :  { %10477 = vmatpush3.msra.mxu0 %v9323_v49  ;;  %10515 = vmatpush3.msra.mxu1 %v9387_v40  ;;  %v9507_v49 = vunpack.c.l.bf16 %v10003_v9  ;;  %v9571_v40 = vunpack.c.l.bf16 %v10019_v12  ;;  %v9504_v9 = vunpack.c.h.bf16 %v10002_v18  ;;  %v9568_v12 = vunpack.c.h.bf16 %v10018_v7 }
0x1015   :  { %10478 = vmatprep.subr.mxu0 %v9352_v34  ;;  %10516 = vmatprep.subr.mxu1 %v9416_v43 }
0x1016   :  { %10479 = vmatpush3.msra.mxu0 %v9320_v20  ;;  %10517 = vmatpush3.msra.mxu1 %v9384_v27 }
0x1017   :  { %10480 = vmatprep.subr.mxu0 %v9351_v59  ;;  %10518 = vmatprep.subr.mxu1 %v9415_v15  ;;  %v9539_v59 = vunpack.c.l.bf16 %v10011_v61  ;;  %v10017_v61 = vld [vmem:[%s15057_s11 + $0x5e8] sm:$0xff]  }
0x1018   :  { %10481 = vmatpush3.msra.mxu0 %v9319_v62  ;;  %10519 = vmatpush3.msra.mxu1 %v9383_v55  ;;  %v9994_v62 = vld [vmem:[%s15057_s11 + $0x530] sm:$0xff]  }
0x1019   :  { %10526 = vmatprep.subr.mxu0 %v9508_v19  ;;  %10564 = vmatprep.subr.mxu1 %v9572_v0  ;;  %v10010_v55 = vld [vmem:[%s15057_s11 + $0x5b0] sm:$0xff]  }
0x1093   :  { %v4969_v6 = vpop.f32.mrf.mxu0  ;;  %v5046_v53 = vpop.f32.mrf.mxu1 }
0x1094   :  { %v4970_v51 = vadd.f32 %v4969_v6, %v4820_v24  ;;  %v5047_v4 = vadd.f32 %v5046_v53, %v4828_v28  ;;  %v9472_v6 = vunpack.c.h.bf16 %v9994_v62  ;;  %v9536_v53 = vunpack.c.h.bf16 %v10010_v55 }
0x1095   :  { %v4971_v2 = vpop.f32.mrf.mxu0  ;;  %v5048_v54 = vpop.f32.mrf.mxu1 }
0x1096   :  { %v4972_v5 = vadd.f32 %v4971_v2, %v4824_v8  ;;  %v5049_v44 = vadd.f32 %v5048_v54, %v4832_v37  ;;  %v5519_v57 = vmax.f32 %v4970_v51, 0.0  ;;  %v5521_v47 = vmax.f32 %v5047_v4, 0.0  ;;  %v10001_v51 = vld [vmem:[%s15057_s11 + $0x568] sm:$0xff]  }
0x1097   :  { %v9503_v54 = vunpack.c.l.bf16 %v10002_v18 }
0x1098   :  { %v5520_v32 = vmax.f32 %v4972_v5, 0.0  ;;  %v5522_v38 = vmax.f32 %v5049_v44, 0.0  ;;  %v4975_v50 = vpop.f32.mrf.mxu0  ;;  %v5052_v58 = vpop.f32.mrf.mxu1 }
0x1099   :  { %v4976_v34 = vadd.f32 %v4975_v50, %v4820_v24  ;;  %v5053_v15 = vadd.f32 %v5052_v58, %v4828_v28  ;;  %v13671_v24 = vrot.slane %v13641_v60, %v12784_v10  ;;  %v13675_v28 = vrot.slane %v13641_v60, %v12759_v48  ;;  %v9993_v50 = vld [vmem:[%s15057_s11 + $0x528] sm:$0xff]  }
0x109a   :  { %v4977_v43 = vpop.f32.mrf.mxu0  ;;  %v5054_v1 = vpop.f32.mrf.mxu1  ;;  %5623 = vmatprep.mubr.f32.mxu0 %v5520_v32  ;;  %5698 = vmatprep.mubr.f32.mxu1 %v5522_v38  ;;  %v9471_v32 = vunpack.c.l.bf16 %v9994_v62  ;;  %v9535_v38 = vunpack.c.l.bf16 %v10010_v55  ;;  %v10009_v58 = vld [vmem:[%s15057_s11 + $0x5a8] sm:$0xff]   ;;  %v9468_v18 = vunpack.c.h.bf16 %v9993_v50 }
0x109b   :  { %v4978_v20 = vadd.f32 %v4977_v43, %v4824_v8  ;;  %v5055_v27 = vadd.f32 %v5054_v1, %v4832_v37  ;;  %5624 = vmatmul.mubr.f32.vlgmr.msra.gmra.mxu0 %v5519_v57  ;;  %5699 = vmatmul.mubr.f32.vlgmr.msra.gmra.mxu1 %v5521_v47  ;;  %v5535_v4 = vmax.f32 %v4976_v34, 0.0  ;;  %v5537_v2 = vmax.f32 %v5053_v15, 0.0  ;;  %v10000_v34 = vld [vmem:[%s15057_s11 + $0x560] sm:$0xff]  }
0x109c   :  { %10527 = vmatpush3.msra.mxu0 %v9476_v16  ;;  %10565 = vmatpush3.msra.mxu1 %v9540_v31  ;;  %v9500_v57 = vunpack.c.h.bf16 %v10001_v51  ;;  %v9564_v47 = vunpack.c.h.bf16 %v10017_v61  ;;  %v9532_v7 = vunpack.c.h.bf16 %v10009_v58  ;;  %v10016_v43 = vld [vmem:[%s15057_s11 + $0x5e0] sm:$0xff]   ;;  %v9499_v1 = vunpack.c.l.bf16 %v10001_v51  ;;  %v9991_v51 = vld [vmem:[%s15057_s11 + $0x518] sm:$0xff]  }
0x109d   :  { %v5536_v19 = vmax.f32 %v4978_v20, 0.0  ;;  %v5538_v0 = vmax.f32 %v5055_v27, 0.0  ;;  %10528 = vmatprep.subr.mxu0 %v9507_v49  ;;  %10566 = vmatprep.subr.mxu1 %v9571_v40  ;;  %v10008_v15 = vld [vmem:[%s15057_s11 + $0x5a0] sm:$0xff]   ;;  %v9467_v20 = vunpack.c.l.bf16 %v9993_v50  ;;  %v9531_v27 = vunpack.c.l.bf16 %v10009_v58 }
0x109e   :  { %v13677_v8 = vpop.f32.mrf.mxu0  ;;  %v13679_v37 = vpop.f32.mrf.mxu1  ;;  %10529 = vmatpush3.msra.mxu0 %v9475_v21  ;;  %10567 = vmatpush3.msra.mxu1 %v9539_v59  ;;  %v9563_v21 = vunpack.c.l.bf16 %v10017_v61  ;;  %v9992_v59 = vld [vmem:[%s15057_s11 + $0x520] sm:$0xff]   ;;  %v9496_v62 = vunpack.c.h.bf16 %v10000_v34  ;;  %v9560_v55 = vunpack.c.h.bf16 %v10016_v43 }
0x109f   :  { %5628 = vmatprep.mubr.f32.mxu0 %v5536_v19  ;;  %5703 = vmatprep.mubr.f32.mxu1 %v5538_v0  ;;  %v9999_v19 = vld [vmem:[%s15057_s11 + $0x558] sm:$0xff]  }
0x10a0   :  { %v5125_v5 = vpop.f32.mrf.mxu0  ;;  %v5202_v44 = vpop.f32.mrf.mxu1  ;;  %10530 = vmatprep.subr.mxu0 %v9504_v9  ;;  %10568 = vmatprep.subr.mxu1 %v9568_v12  ;;  %v9464_v9 = vunpack.c.h.bf16 %v9992_v59  ;;  %v9528_v12 = vunpack.c.h.bf16 %v10008_v15  ;;  %v10015_v0 = vld [vmem:[%s15057_s11 + $0x5d8] sm:$0xff]   ;;  %v9491_v50 = vunpack.c.l.bf16 %v9999_v19 }
0x10a1   :  { %v5126_v16 = vadd.f32 %v5125_v5, %v13671_v24  ;;  %v5203_v31 = vadd.f32 %v5202_v44, %v13675_v28  ;;  %5629 = vmatmul.mubr.f32.gmra.mxu0 %v5535_v4  ;;  %5704 = vmatmul.mubr.f32.gmra.mxu1 %v5537_v2  ;;  %v10007_v4 = vld [vmem:[%s15057_s11 + $0x598] sm:$0xff]   ;;  %v9463_v2 = vunpack.c.l.bf16 %v9992_v59  ;;  %v9556_v61 = vunpack.c.h.bf16 %v10015_v0  ;;  %v9989_v59 = vld [vmem:[%s15057_s11 + $0x508] sm:$0xff]  }
0x10a2   :  { %10531 = vmatpush3.msra.mxu0 %v9472_v6  ;;  %10569 = vmatpush3.msra.mxu1 %v9536_v53  ;;  %v9495_v6 = vunpack.c.l.bf16 %v10000_v34  ;;  %v9559_v53 = vunpack.c.l.bf16 %v10016_v43  ;;  %v9460_v5 = vunpack.c.h.bf16 %v9991_v51  ;;  %v9524_v44 = vunpack.c.h.bf16 %v10007_v4  ;;  %v9997_v34 = vld [vmem:[%s15057_s11 + $0x548] sm:$0xff]  }
0x10a3   :  { %v5524_v49 = vmax.f32 %v5126_v16, 0.0  ;;  %v5526_v40 = vmax.f32 %v5203_v31, 0.0  ;;  %10532 = vmatprep.subr.mxu0 %v9503_v54  ;;  %10570 = vmatprep.subr.mxu1 %v9567_v52  ;;  %v9527_v54 = vunpack.c.l.bf16 %v10008_v15  ;;  %v9492_v52 = vunpack.c.h.bf16 %v9999_v19  ;;  %v9990_v16 = vld [vmem:[%s15057_s11 + $0x510] sm:$0xff]   ;;  %v10013_v43 = vld [vmem:[%s15057_s11 + $0x5c8] sm:$0xff]  }
0x10a4   :  { %10533 = vmatpush3.msra.mxu0 %v9471_v32  ;;  %10571 = vmatpush3.msra.mxu1 %v9535_v38  ;;  %v9998_v32 = vld [vmem:[%s15057_s11 + $0x550] sm:$0xff]   ;;  %v9555_v58 = vunpack.c.l.bf16 %v10015_v0  ;;  %v10005_v15 = vld [vmem:[%s15057_s11 + $0x588] sm:$0xff]   ;;  %v9452_v19 = vunpack.c.h.bf16 %v9989_v59 }
0x10a5   :  { %10534 = vmatprep.subr.mxu0 %v9500_v57  ;;  %5773 = vmatprep.mubr.f32.mxu0 %v5524_v49  ;;  %v10014_v38 = vld [vmem:[%s15057_s11 + $0x5d0] sm:$0xff]   ;;  %v9459_v57 = vunpack.c.l.bf16 %v9991_v51  ;;  %v9488_v49 = vunpack.c.h.bf16 %v9998_v32  ;;  %v9516_v0 = vunpack.c.h.bf16 %v10005_v15  ;;  %v4836_v51 = vrot.slane %v13641_v60, %v12825_v46 }
0x10a6   :  { %10572 = vmatprep.subr.mxu1 %v9564_v47  ;;  %5848 = vmatprep.mubr.f32.mxu1 %v5526_v40  ;;  %v10006_v31 = vld [vmem:[%s15057_s11 + $0x590] sm:$0xff]   ;;  %v9523_v47 = vunpack.c.l.bf16 %v10007_v4  ;;  %v9552_v40 = vunpack.c.h.bf16 %v10014_v38  ;;  %v4844_v4 = vrot.slane %v13641_v60, %v12866_v14 }
0x10a7   :  { %10535 = vmatpush3.msra.mxu0 %v9468_v18  ;;  %10573 = vmatpush3.msra.mxu1 %v9532_v7  ;;  %v9456_v18 = vunpack.c.h.bf16 %v9990_v16  ;;  %v9520_v7 = vunpack.c.h.bf16 %v10006_v31 }
0x10a8   :  { %10536 = vmatprep.subr.mxu0 %v9499_v1  ;;  %10574 = vmatprep.subr.mxu1 %v9563_v21  ;;  %v9487_v1 = vunpack.c.l.bf16 %v9998_v32  ;;  %v9551_v21 = vunpack.c.l.bf16 %v10014_v38  ;;  %v9515_v32 = vunpack.c.l.bf16 %v10005_v15  ;;  %v13786_v15 = vld [vmem:[%s15056_s10 + $0x18] sm:$0xff] }
0x10a9   :  { %10537 = vmatpush3.msra.mxu0 %v9467_v20  ;;  %10575 = vmatpush3.msra.mxu1 %v9531_v27  ;;  %v13743_v20 = vpop.f32.mrf.mxu0  ;;  %v9455_v27 = vunpack.c.l.bf16 %v9990_v16 }
0x10aa   :  { %10538 = vmatprep.subr.mxu0 %v9496_v62  ;;  %10576 = vmatprep.subr.mxu1 %v9560_v55  ;;  %v9519_v62 = vunpack.c.l.bf16 %v10006_v31  ;;  %v13745_v55 = vpop.f32.mrf.mxu1  ;;  %v5124_v31 = vadd.f32 %v13677_v8, %v4836_v51 }
0x10ab   :  { %10539 = vmatpush3.msra.mxu0 %v9464_v9  ;;  %10577 = vmatpush3.msra.mxu1 %v9528_v12  ;;  %v9484_v9 = vunpack.c.h.bf16 %v9997_v34  ;;  %v9548_v12 = vunpack.c.h.bf16 %v10013_v43 }
0x10ac   :  { %10540 = vmatprep.subr.mxu0 %v9495_v6  ;;  %10578 = vmatprep.subr.mxu1 %v9559_v53  ;;  %v9996_v6 = vld [vmem:[%s15057_s11 + $0x540] sm:$0xff]   ;;  %v5208_v38 = vpop.f32.mrf.mxu1 }
0x10ad   :  { %10541 = vmatpush3.msra.mxu0 %v9463_v2  ;;  %10579 = vmatpush3.msra.mxu1 %v9527_v54  ;;  %v10012_v53 = vld [vmem:[%s15057_s11 + $0x5c0] sm:$0xff]   ;;  %v9483_v2 = vunpack.c.l.bf16 %v9997_v34  ;;  %v9547_v54 = vunpack.c.l.bf16 %v10013_v43  ;;  %v9480_v60 = vunpack.c.h.bf16 %v9996_v6  ;;  %v5209_v43 = vadd.f32 %v5208_v38, %v13675_v28  ;;  %v10050_v38 = vld [vmem:[%s15057_s11 + $0x6f0] sm:$0xff]  }
0x10ae   :  { %10542 = vmatprep.subr.mxu0 %v9492_v52  ;;  %10580 = vmatprep.subr.mxu1 %v9556_v61  ;;  %v9988_v52 = vld [vmem:[%s15057_s11 + $0x500] sm:$0xff]  }
0x10af   :  { %10543 = vmatpush3.msra.mxu0 %v9460_v5  ;;  %10581 = vmatpush3.msra.mxu1 %v9524_v44  ;;  %v10004_v61 = vld [vmem:[%s15057_s11 + $0x580] sm:$0xff]   ;;  %v5131_v5 = vpop.f32.mrf.mxu0  ;;  %v9451_v44 = vunpack.c.l.bf16 %v9989_v59  ;;  %v9447_v34 = vunpack.c.l.bf16 %v9988_v52  ;;  %v10043_v59 = vld [vmem:[%s15057_s11 + $0x6b8] sm:$0xff]  }
0x10b0   :  { %10544 = vmatprep.subr.mxu0 %v9491_v50  ;;  %10582 = vmatprep.subr.mxu1 %v9555_v58  ;;  %v9544_v50 = vunpack.c.h.bf16 %v10012_v53  ;;  %v9448_v58 = vunpack.c.h.bf16 %v9988_v52  ;;  %v9512_v16 = vunpack.c.h.bf16 %v10004_v61  ;;  %v9511_v8 = vunpack.c.l.bf16 %v10004_v61 }
0x10b1   :  { %10545 = vmatpush3.msra.mxu0 %v9459_v57  ;;  %10583 = vmatpush3.msra.mxu1 %v9523_v47  ;;  %v5201_v57 = vadd.f32 %v13679_v37, %v4844_v4  ;;  %v9479_v47 = vunpack.c.l.bf16 %v9996_v6  ;;  %v5132_v37 = vadd.f32 %v5131_v5, %v13671_v24  ;;  %v9668_v6 = vunpack.c.h.bf16 %v10043_v59 }
0x10b2   :  { %10546 = vmatprep.subr.mxu0 %v9488_v49  ;;  %10584 = vmatprep.subr.mxu1 %v9552_v40  ;;  %v9543_v49 = vunpack.c.l.bf16 %v10012_v53  ;;  %v10035_v40 = vld [vmem:[%s15057_s11 + $0x678] sm:$0xff]   ;;  %v5207_v52 = vadd.f32 %v13745_v55, %v4844_v4  ;;  %v5542_v5 = vmax.f32 %v5209_v43, 0.0  ;;  %v10025_v43 = vld [vmem:[%s15057_s11 + $0x628] sm:$0xff]  }
0x10b3   :  { %10547 = vmatpush3.msra.mxu0 %v9456_v18  ;;  %10585 = vmatpush3.msra.mxu1 %v9520_v7  ;;  %v10051_v18 = vld [vmem:[%s15057_s11 + $0x6f8] sm:$0xff]   ;;  %v13771_v7 = vpop.f32.mrf.mxu0  ;;  %v9636_v24 = vunpack.c.h.bf16 %v10035_v40  ;;  %v9635_v53 = vunpack.c.l.bf16 %v10035_v40  ;;  %v5540_v61 = vmax.f32 %v5132_v37, 0.0  ;;  %v10033_v40 = vld [vmem:[%s15057_s11 + $0x668] sm:$0xff]   ;;  %v9695_v37 = vunpack.c.l.bf16 %v10050_v38 }
0x10b4   :  { %10548 = vmatprep.subr.mxu0 %v9487_v1  ;;  %10586 = vmatprep.subr.mxu1 %v9551_v21  ;;  %v13775_v1 = vpop.f32.mrf.mxu1  ;;  %v10027_v21 = vld [vmem:[%s15057_s11 + $0x638] sm:$0xff]   ;;  %v9700_v28 = vunpack.c.h.bf16 %v10051_v18 }
0x10b5   :  { %10549 = vmatpush3.msra.mxu0 %v9455_v27  ;;  %10587 = vmatpush3.msra.mxu1 %v9519_v62  ;;  %v5523_v27 = vmax.f32 %v5124_v31, 0.0  ;;  %v5525_v62 = vmax.f32 %v5201_v57, 0.0  ;;  %v5541_v57 = vmax.f32 %v5207_v52, 0.0  ;;  %v10024_v52 = vld [vmem:[%s15057_s11 + $0x620] sm:$0xff]  }
0x10b6   :  { %10550 = vmatprep.subr.mxu0 %v9484_v9  ;;  %10588 = vmatprep.subr.mxu1 %v9548_v12  ;;  %v13790_v9 = vrot.slane %v13786_v15, %v12727_v56  ;;  %v13794_v12 = vrot.slane %v13786_v15, %v12743_v25 }
0x10b7   :  { %10551 = vmatpush3.msra.mxu0 %v9452_v19  ;;  %10589 = vmatpush3.msra.mxu1 %v9516_v0  ;;  %v5279_v19 = vpop.f32.mrf.mxu0  ;;  %v9604_v0 = vunpack.c.h.bf16 %v10027_v21 }
0x10b8   :  { %10552 = vmatprep.subr.mxu0 %v9483_v2  ;;  %10590 = vmatprep.subr.mxu1 %v9547_v54  ;;  %v9699_v2 = vunpack.c.l.bf16 %v10051_v18  ;;  %v5130_v54 = vadd.f32 %v13743_v20, %v4836_v51  ;;  %v10026_v20 = vld [vmem:[%s15057_s11 + $0x630] sm:$0xff]   ;;  %v5280_v55 = vadd.f32 %v5279_v19, %v13790_v9  ;;  %v10049_v18 = vld [vmem:[%s15057_s11 + $0x6e8] sm:$0xff]   ;;  %v9596_v19 = vunpack.c.h.bf16 %v10025_v43 }
0x10b9   :  { %10553 = vmatpush3.msra.mxu0 %v9451_v44  ;;  %10591 = vmatpush3.msra.mxu1 %v9515_v32  ;;  %v5356_v44 = vpop.f32.mrf.mxu1  ;;  %v10034_v32 = vld [vmem:[%s15057_s11 + $0x670] sm:$0xff]  }
0x10ba   :  { %10554 = vmatprep.subr.mxu0 %v9480_v60  ;;  %10592 = vmatprep.subr.mxu1 %v9544_v50  ;;  %v9603_v60 = vunpack.c.l.bf16 %v10027_v21  ;;  %v9667_v50 = vunpack.c.l.bf16 %v10043_v59  ;;  %v10042_v51 = vld [vmem:[%s15057_s11 + $0x6b0] sm:$0xff]   ;;  %v5357_v4 = vadd.f32 %v5356_v44, %v13794_v12  ;;  %v5539_v31 = vmax.f32 %v5130_v54, 0.0  ;;  %v10041_v21 = vld [vmem:[%s15057_s11 + $0x6a8] sm:$0xff]  }
0x10bb   :  { %10555 = vmatpush3.msra.mxu0 %v9448_v58  ;;  %10593 = vmatpush3.msra.mxu1 %v9512_v16  ;;  %v9632_v58 = vunpack.c.h.bf16 %v10034_v32  ;;  %v9696_v16 = vunpack.c.h.bf16 %v10050_v38  ;;  %v9691_v54 = vunpack.c.l.bf16 %v10049_v18  ;;  %v9659_v44 = vunpack.c.l.bf16 %v10041_v21 }
0x10bc   :  { %10556 = vmatprep.subr.mxu0 %v9479_v47  ;;  %10594 = vmatprep.subr.mxu1 %v9543_v49  ;;  %v9600_v47 = vunpack.c.h.bf16 %v10026_v20  ;;  %v9664_v49 = vunpack.c.h.bf16 %v10042_v51  ;;  %v5530_v59 = vmax.f32 %v5357_v4, 0.0 }
0x10bd   :  { %10557 = vmatpush3.msra.mxu0 %v9447_v34  ;;  %10595 = vmatpush3.msra.mxu1 %v9511_v8  ;;  %v5528_v34 = vmax.f32 %v5280_v55, 0.0  ;;  %v9631_v8 = vunpack.c.l.bf16 %v10034_v32  ;;  %v10047_v55 = vld [vmem:[%s15057_s11 + $0x6d8] sm:$0xff]  }
0x10be   :  { %5774 = vmatmul.mubr.f32.vlgmr.msra.gmra.mxu0 %v5523_v27  ;;  %5849 = vmatmul.mubr.f32.vlgmr.msra.gmra.mxu1 %v5525_v62  ;;  %v9628_v27 = vunpack.c.h.bf16 %v10033_v40  ;;  %v9692_v62 = vunpack.c.h.bf16 %v10049_v18 }
0x10bf   :  { %10602 = vmatprep.subr.mxu0 %v9636_v24  ;;  %10640 = vmatprep.subr.mxu1 %v9700_v28  ;;  %v9599_v24 = vunpack.c.l.bf16 %v10026_v20  ;;  %v9663_v28 = vunpack.c.l.bf16 %v10042_v51  ;;  %v10031_v20 = vld [vmem:[%s15057_s11 + $0x658] sm:$0xff]  }
0x10c0   :  { %5778 = vmatprep.mubr.f32.mxu0 %v5540_v61  ;;  %5853 = vmatprep.mubr.f32.mxu1 %v5542_v5  ;;  %v10040_v61 = vld [vmem:[%s15057_s11 + $0x6a0] sm:$0xff]   ;;  %v9595_v5 = vunpack.c.l.bf16 %v10025_v43  ;;  %v9683_v43 = vunpack.c.l.bf16 %v10047_v55 }
0x10c1   :  { %10603 = vmatpush3.msra.mxu0 %v9604_v0  ;;  %10641 = vmatpush3.msra.mxu1 %v9668_v6  ;;  %v9660_v0 = vunpack.c.h.bf16 %v10041_v21  ;;  %v10032_v6 = vld [vmem:[%s15057_s11 + $0x660] sm:$0xff]   ;;  %v10022_v21 = vld [vmem:[%s15057_s11 + $0x610] sm:$0xff]  }
0x10c2   :  { %10604 = vmatprep.subr.mxu0 %v9635_v53  ;;  %10642 = vmatprep.subr.mxu1 %v9699_v2  ;;  %v10048_v53 = vld [vmem:[%s15057_s11 + $0x6e0] sm:$0xff]   ;;  %v9627_v2 = vunpack.c.l.bf16 %v10033_v40  ;;  %v9624_v32 = vunpack.c.h.bf16 %v10032_v6  ;;  %v9623_v51 = vunpack.c.l.bf16 %v10032_v6  ;;  %v10029_v6 = vld [vmem:[%s15057_s11 + $0x648] sm:$0xff]  }
0x10c3   :  { %10605 = vmatpush3.msra.mxu0 %v9603_v60  ;;  %10643 = vmatpush3.msra.mxu1 %v9667_v50  ;;  %v9688_v38 = vunpack.c.h.bf16 %v10048_v53  ;;  %v9592_v60 = vunpack.c.h.bf16 %v10024_v52  ;;  %v9656_v50 = vunpack.c.h.bf16 %v10040_v61  ;;  %v9687_v4 = vunpack.c.l.bf16 %v10048_v53  ;;  %v10045_v53 = vld [vmem:[%s15057_s11 + $0x6c8] sm:$0xff]  }
0x10c4   :  { %5779 = vmatmul.mubr.f32.gmra.mxu0 %v5539_v31  ;;  %5854 = vmatmul.mubr.f32.gmra.mxu1 %v5541_v57  ;;  %v9591_v31 = vunpack.c.l.bf16 %v10024_v52  ;;  %v9655_v57 = vunpack.c.l.bf16 %v10040_v61  ;;  %v10021_v52 = vld [vmem:[%s15057_s11 + $0x608] sm:$0xff]  }
0x10c5   :  { %10606 = vmatprep.subr.mxu0 %v9632_v58  ;;  %10644 = vmatprep.subr.mxu1 %v9696_v16  ;;  %v10023_v58 = vld [vmem:[%s15057_s11 + $0x618] sm:$0xff]   ;;  %v10037_v61 = vld [vmem:[%s15057_s11 + $0x688] sm:$0xff]  }
0x10c6   :  { %10607 = vmatpush3.msra.mxu0 %v9600_v47  ;;  %5923 = vmatprep.mubr.f32.mxu0 %v5528_v34  ;;  %v10039_v16 = vld [vmem:[%s15057_s11 + $0x698] sm:$0xff]   ;;  %v9620_v47 = vunpack.c.h.bf16 %v10031_v20  ;;  %v9588_v40 = vunpack.c.h.bf16 %v10023_v58  ;;  %v10030_v34 = vld [vmem:[%s15057_s11 + $0x650] sm:$0xff]  }
0x10c7   :  { %10645 = vmatpush3.msra.mxu1 %v9664_v49  ;;  %5998 = vmatprep.mubr.f32.mxu1 %v5530_v59  ;;  %v9684_v49 = vunpack.c.h.bf16 %v10047_v55  ;;  %v9652_v18 = vunpack.c.h.bf16 %v10039_v16  ;;  %v10038_v59 = vld [vmem:[%s15057_s11 + $0x690] sm:$0xff]   ;;  %v9644_v55 = vunpack.c.h.bf16 %v10037_v61 }
0x10c8   :  { %10608 = vmatprep.subr.mxu0 %v9631_v8  ;;  %10646 = vmatprep.subr.mxu1 %v9695_v37  ;;  %v10046_v8 = vld [vmem:[%s15057_s11 + $0x6d0] sm:$0xff]   ;;  %v9619_v37 = vunpack.c.l.bf16 %v10031_v20  ;;  %v9580_v20 = vunpack.c.h.bf16 %v10021_v52 }
0x10c9   :  { %10609 = vmatpush3.msra.mxu0 %v9599_v24  ;;  %10647 = vmatpush3.msra.mxu1 %v9663_v28  ;;  %v9587_v24 = vunpack.c.l.bf16 %v10023_v58  ;;  %v9651_v28 = vunpack.c.l.bf16 %v10039_v16  ;;  %v4852_v58 = vrot.slane %v13786_v15, %v12719_v26  ;;  %v4860_v16 = vrot.slane %v13786_v15, %v12737_v63 }
0x10ca   :  { %10610 = vmatprep.subr.mxu0 %v9628_v27  ;;  %10648 = vmatprep.subr.mxu1 %v9692_v62  ;;  %v9616_v27 = vunpack.c.h.bf16 %v10030_v34  ;;  %v9680_v62 = vunpack.c.h.bf16 %v10046_v8 }
0x10cb   :  { %10611 = vmatpush3.msra.mxu0 %v9596_v19  ;;  %10649 = vmatpush3.msra.mxu1 %v9660_v0  ;;  %v9584_v19 = vunpack.c.h.bf16 %v10022_v21  ;;  %v9648_v0 = vunpack.c.h.bf16 %v10038_v59 }
0x10cc   :  { %10612 = vmatprep.subr.mxu0 %v9627_v2  ;;  %10650 = vmatprep.subr.mxu1 %v9691_v54  ;;  %v9615_v2 = vunpack.c.l.bf16 %v10030_v34  ;;  %v9679_v54 = vunpack.c.l.bf16 %v10046_v8  ;;  %v9643_v34 = vunpack.c.l.bf16 %v10037_v61  ;;  %v10075_v61 = vld [vmem:[%s15057_s11 + $0x7b8] sm:$0xff]  }
0x10cd   :  { %10613 = vmatpush3.msra.mxu0 %v9595_v5  ;;  %10651 = vmatpush3.msra.mxu1 %v9659_v44  ;;  %v13872_v5 = vpop.f32.mrf.mxu0  ;;  %v9583_v44 = vunpack.c.l.bf16 %v10022_v21 }
0x10ce   :  { %10614 = vmatprep.subr.mxu0 %v9624_v32  ;;  %10652 = vmatprep.subr.mxu1 %v9688_v38  ;;  %v9647_v32 = vunpack.c.l.bf16 %v10038_v59  ;;  %v13874_v38 = vpop.f32.mrf.mxu1 }
0x10cf   :  { %10615 = vmatpush3.msra.mxu0 %v9592_v60  ;;  %10653 = vmatpush3.msra.mxu1 %v9656_v50  ;;  %v9612_v60 = vunpack.c.h.bf16 %v10029_v6  ;;  %v9676_v50 = vunpack.c.h.bf16 %v10045_v53 }
0x10d0   :  { %10616 = vmatprep.subr.mxu0 %v9623_v51  ;;  %10654 = vmatprep.subr.mxu1 %v9687_v4  ;;  %v10028_v51 = vld [vmem:[%s15057_s11 + $0x640] sm:$0xff]   ;;  %v5362_v8 = vpop.f32.mrf.mxu1 }
0x10d1   :  { %10617 = vmatpush3.msra.mxu0 %v9591_v31  ;;  %10655 = vmatpush3.msra.mxu1 %v9655_v57  ;;  %v10044_v4 = vld [vmem:[%s15057_s11 + $0x6c0] sm:$0xff]   ;;  %v9611_v31 = vunpack.c.l.bf16 %v10029_v6  ;;  %v9675_v57 = vunpack.c.l.bf16 %v10045_v53 }
0x10d2   :  { %10618 = vmatprep.subr.mxu0 %v9620_v47  ;;  %10656 = vmatprep.subr.mxu1 %v9684_v49  ;;  %v10020_v47 = vld [vmem:[%s15057_s11 + $0x600] sm:$0xff]  }
0x10d3   :  { %10619 = vmatpush3.msra.mxu0 %v9588_v40  ;;  %10657 = vmatpush3.msra.mxu1 %v9652_v18  ;;  %v10036_v49 = vld [vmem:[%s15057_s11 + $0x680] sm:$0xff]   ;;  %v5285_v40 = vpop.f32.mrf.mxu0  ;;  %v9579_v18 = vunpack.c.l.bf16 %v10021_v52  ;;  %v9576_v21 = vunpack.c.h.bf16 %v10020_v47  ;;  %v9575_v53 = vunpack.c.l.bf16 %v10020_v47  ;;  %v10059_v52 = vld [vmem:[%s15057_s11 + $0x738] sm:$0xff]   ;;  %v5361_v47 = vadd.f32 %v13874_v38, %v4860_v16 }
0x10d4   :  { %10620 = vmatprep.subr.mxu0 %v9619_v37  ;;  %10658 = vmatprep.subr.mxu1 %v9683_v43  ;;  %v9608_v37 = vunpack.c.h.bf16 %v10028_v51  ;;  %v9672_v43 = vunpack.c.h.bf16 %v10044_v4  ;;  %v9640_v59 = vunpack.c.h.bf16 %v10036_v49 }
0x10d5   :  { %10621 = vmatpush3.msra.mxu0 %v9587_v24  ;;  %10659 = vmatpush3.msra.mxu1 %v9651_v28  ;;  %v5278_v24 = vadd.f32 %v13771_v7, %v4852_v58  ;;  %v5355_v28 = vadd.f32 %v13775_v1, %v4860_v16  ;;  %v13900_v6 = vpop.f32.mrf.mxu0  ;;  %v9639_v7 = vunpack.c.l.bf16 %v10036_v49  ;;  %v5286_v1 = vadd.f32 %v5285_v40, %v13790_v9 }
0x10d6   :  { %10622 = vmatprep.subr.mxu0 %v9616_v27  ;;  %10660 = vmatprep.subr.mxu1 %v9680_v62  ;;  %v9607_v27 = vunpack.c.l.bf16 %v10028_v51  ;;  %v9671_v62 = vunpack.c.l.bf16 %v10044_v4  ;;  %v9796_v51 = vunpack.c.h.bf16 %v10075_v61 }
0x10d7   :  { %10623 = vmatpush3.msra.mxu0 %v9584_v19  ;;  %10661 = vmatpush3.msra.mxu1 %v9648_v0  ;;  %v10067_v19 = vld [vmem:[%s15057_s11 + $0x778] sm:$0xff]   ;;  %v5529_v9 = vmax.f32 %v5355_v28, 0.0  ;;  %v5544_v49 = vmax.f32 %v5286_v1, 0.0  ;;  %v10057_v1 = vld [vmem:[%s15057_s11 + $0x728] sm:$0xff]  }
0x10d8   :  { %10624 = vmatprep.subr.mxu0 %v9615_v2  ;;  %10662 = vmatprep.subr.mxu1 %v9679_v54  ;;  %v10083_v0 = vld [vmem:[%s15057_s11 + $0x7f8] sm:$0xff]   ;;  %v5363_v2 = vadd.f32 %v5362_v8, %v13794_v12  ;;  %v13904_v54 = vpop.f32.mrf.mxu1  ;;  %v13914_v12 = vrot.slane %v13786_v15, %v12784_v10  ;;  %v9763_v4 = vunpack.c.l.bf16 %v10067_v19  ;;  %v9731_v8 = vunpack.c.l.bf16 %v10059_v52 }
0x10d9   :  { %10625 = vmatpush3.msra.mxu0 %v9583_v44  ;;  %10663 = vmatpush3.msra.mxu1 %v9647_v32  ;;  %v9764_v44 = vunpack.c.h.bf16 %v10067_v19  ;;  %v9828_v32 = vunpack.c.h.bf16 %v10083_v0  ;;  %v10081_v19 = vld [vmem:[%s15057_s11 + $0x7e8] sm:$0xff]  }
0x10da   :  { %10626 = vmatprep.subr.mxu0 %v9612_v60  ;;  %10664 = vmatprep.subr.mxu1 %v9676_v50  ;;  %v5527_v60 = vmax.f32 %v5278_v24, 0.0  ;;  %v13918_v50 = vrot.slane %v13786_v15, %v12759_v48  ;;  %v5546_v40 = vmax.f32 %v5363_v2, 0.0  ;;  %v10066_v48 = vld [vmem:[%s15057_s11 + $0x770] sm:$0xff]   ;;  %v5545_v24 = vmax.f32 %v5361_v47, 0.0  ;;  %v10073_v2 = vld [vmem:[%s15057_s11 + $0x7a8] sm:$0xff]   ;;  %v10072_v47 = vld [vmem:[%s15057_s11 + $0x7a0] sm:$0xff]  }
0x10db   :  { %10627 = vmatpush3.msra.mxu0 %v9580_v20  ;;  %10665 = vmatpush3.msra.mxu1 %v9644_v55  ;;  %v5433_v20 = vpop.f32.mrf.mxu0  ;;  %v9732_v55 = vunpack.c.h.bf16 %v10059_v52 }
0x10dc   :  { %10628 = vmatprep.subr.mxu0 %v9611_v31  ;;  %10666 = vmatprep.subr.mxu1 %v9675_v57  ;;  %v9827_v31 = vunpack.c.l.bf16 %v10083_v0  ;;  %v5284_v57 = vadd.f32 %v13872_v5, %v4852_v58  ;;  %v10058_v5 = vld [vmem:[%s15057_s11 + $0x730] sm:$0xff]   ;;  %v5434_v38 = vadd.f32 %v5433_v20, %v13914_v12  ;;  %v9788_v20 = vunpack.c.h.bf16 %v10073_v2 }
0x10dd   :  { %10629 = vmatpush3.msra.mxu0 %v9579_v18  ;;  %10667 = vmatpush3.msra.mxu1 %v9643_v34  ;;  %v5510_v18 = vpop.f32.mrf.mxu1  ;;  %v10082_v34 = vld [vmem:[%s15057_s11 + $0x7f0] sm:$0xff]   ;;  %v9728_v28 = vunpack.c.h.bf16 %v10058_v5 }
0x10de   :  { %10630 = vmatprep.subr.mxu0 %v9608_v37  ;;  %10668 = vmatprep.subr.mxu1 %v9672_v43  ;;  %v9795_v37 = vunpack.c.l.bf16 %v10075_v61  ;;  %v10074_v58 = vld [vmem:[%s15057_s11 + $0x7b0] sm:$0xff]   ;;  %v5511_v16 = vadd.f32 %v5510_v18, %v13918_v50  ;;  %v9760_v43 = vunpack.c.h.bf16 %v10066_v48  ;;  %v5532_v0 = vmax.f32 %v5434_v38, 0.0 }
0x10df   :  { %10631 = vmatpush3.msra.mxu0 %v9576_v21  ;;  %10669 = vmatpush3.msra.mxu1 %v9640_v59  ;;  %v9824_v21 = vunpack.c.h.bf16 %v10082_v34  ;;  %v5543_v59 = vmax.f32 %v5284_v57, 0.0  ;;  %v9727_v61 = vunpack.c.l.bf16 %v10058_v5  ;;  %v10056_v57 = vld [vmem:[%s15057_s11 + $0x720] sm:$0xff]   ;;  %v10079_v5 = vld [vmem:[%s15057_s11 + $0x7d8] sm:$0xff]  }
0x10e0   :  { %10632 = vmatprep.subr.mxu0 %v9607_v27  ;;  %10670 = vmatprep.subr.mxu1 %v9671_v62  ;;  %v9792_v27 = vunpack.c.h.bf16 %v10074_v58  ;;  %v10065_v62 = vld [vmem:[%s15057_s11 + $0x768] sm:$0xff]   ;;  %v5534_v52 = vmax.f32 %v5511_v16, 0.0  ;;  %v10055_v16 = vld [vmem:[%s15057_s11 + $0x718] sm:$0xff]  }
0x10e1   :  { %10633 = vmatpush3.msra.mxu0 %v9575_v53  ;;  %10671 = vmatpush3.msra.mxu1 %v9639_v7  ;;  %v9759_v53 = vunpack.c.l.bf16 %v10066_v48  ;;  %v9823_v7 = vunpack.c.l.bf16 %v10082_v34  ;;  %v9720_v34 = vunpack.c.h.bf16 %v10056_v57 }
0x10e2   :  { %5924 = vmatmul.mubr.f32.vlgmr.msra.gmra.mxu0 %v5527_v60  ;;  %5999 = vmatmul.mubr.f32.vlgmr.msra.gmra.mxu1 %v5529_v9  ;;  %v9820_v60 = vunpack.c.h.bf16 %v10081_v19  ;;  %v9724_v9 = vunpack.c.h.bf16 %v10057_v1 }
0x10e3   :  { %10678 = vmatprep.subr.mxu0 %v9764_v44  ;;  %10716 = vmatprep.subr.mxu1 %v9828_v32  ;;  %v9791_v44 = vunpack.c.l.bf16 %v10074_v58  ;;  %v9756_v32 = vunpack.c.h.bf16 %v10065_v62 }
0x10e4   :  { %5928 = vmatprep.mubr.f32.mxu0 %v5544_v49  ;;  %6003 = vmatprep.mubr.f32.mxu1 %v5546_v40  ;;  %v9723_v49 = vunpack.c.l.bf16 %v10057_v1  ;;  %v9787_v40 = vunpack.c.l.bf16 %v10073_v2  ;;  %v10054_v1 = vld [vmem:[%s15057_s11 + $0x710] sm:$0xff]  }
0x10e5   :  { %10679 = vmatpush3.msra.mxu0 %v9732_v55  ;;  %10717 = vmatpush3.msra.mxu1 %v9796_v51  ;;  %v10064_v55 = vld [vmem:[%s15057_s11 + $0x760] sm:$0xff]   ;;  %v10070_v2 = vld [vmem:[%s15057_s11 + $0x790] sm:$0xff]  }
0x10e6   :  { %10680 = vmatprep.subr.mxu0 %v9763_v4  ;;  %10718 = vmatprep.subr.mxu1 %v9827_v31  ;;  %v10080_v51 = vld [vmem:[%s15057_s11 + $0x7e0] sm:$0xff]   ;;  %v9755_v4 = vunpack.c.l.bf16 %v10065_v62  ;;  %v9819_v31 = vunpack.c.l.bf16 %v10081_v19  ;;  %v9752_v18 = vunpack.c.h.bf16 %v10064_v55  ;;  %v9751_v38 = vunpack.c.l.bf16 %v10064_v55  ;;  %v10062_v19 = vld [vmem:[%s15057_s11 + $0x750] sm:$0xff]   ;;  %v10077_v55 = vld [vmem:[%s15057_s11 + $0x7c8] sm:$0xff]  }
0x10e7   :  { %10681 = vmatpush3.msra.mxu0 %v9731_v8  ;;  %10719 = vmatpush3.msra.mxu1 %v9795_v37  ;;  %v9816_v48 = vunpack.c.h.bf16 %v10080_v51  ;;  %v9784_v8 = vunpack.c.h.bf16 %v10072_v47  ;;  %v10063_v37 = vld [vmem:[%s15057_s11 + $0x758] sm:$0xff]   ;;  %v9815_v58 = vunpack.c.l.bf16 %v10080_v51  ;;  %v9743_v51 = vunpack.c.l.bf16 %v10062_v19 }
0x10e8   :  { %5929 = vmatmul.mubr.f32.gmra.mxu0 %v5543_v59  ;;  %6004 = vmatmul.mubr.f32.gmra.mxu1 %v5545_v24  ;;  %v9783_v59 = vunpack.c.l.bf16 %v10072_v47  ;;  %v9748_v24 = vunpack.c.h.bf16 %v10063_v37  ;;  %v9711_v47 = vunpack.c.l.bf16 %v10054_v1 }
0x10e9   :  { %10682 = vmatprep.subr.mxu0 %v9760_v43  ;;  %10720 = vmatprep.subr.mxu1 %v9824_v21  ;;  %v10071_v43 = vld [vmem:[%s15057_s11 + $0x798] sm:$0xff]   ;;  %v9719_v21 = vunpack.c.l.bf16 %v10056_v57  ;;  %v10069_v57 = vld [vmem:[%s15057_s11 + $0x788] sm:$0xff]  }
0x10ea   :  { %10683 = vmatpush3.msra.mxu0 %v9728_v28  ;;  %6073 = vmatprep.mubr.f32.mxu0 %v5532_v0  ;;  %v9812_v28 = vunpack.c.h.bf16 %v10079_v5  ;;  %v9780_v62 = vunpack.c.h.bf16 %v10071_v43  ;;  %v10078_v0 = vld [vmem:[%s15057_s11 + $0x7d0] sm:$0xff]  }
0x10eb   :  { %10721 = vmatpush3.msra.mxu1 %v9792_v27  ;;  %6148 = vmatprep.mubr.f32.mxu1 %v5534_v52  ;;  %v9716_v27 = vunpack.c.h.bf16 %v10055_v16  ;;  %v9715_v52 = vunpack.c.l.bf16 %v10055_v16  ;;  %v4876_v16 = vrot.slane %v13786_v15, %v12866_v14 }
0x10ec   :  { %10684 = vmatprep.subr.mxu0 %v9759_v53  ;;  %10722 = vmatprep.subr.mxu1 %v9823_v7  ;;  %v9747_v53 = vunpack.c.l.bf16 %v10063_v37  ;;  %v9811_v7 = vunpack.c.l.bf16 %v10079_v5  ;;  %v9772_v37 = vunpack.c.h.bf16 %v10069_v57  ;;  %v10060_v5 = vld [vmem:[%s15057_s11 + $0x740] sm:$0xff]  }
0x10ed   :  { %10685 = vmatpush3.msra.mxu0 %v9727_v61  ;;  %10723 = vmatpush3.msra.mxu1 %v9791_v44  ;;  %v9779_v61 = vunpack.c.l.bf16 %v10071_v43  ;;  %v9744_v44 = vunpack.c.h.bf16 %v10062_v19  ;;  %v9736_v14 = vunpack.c.h.bf16 %v10060_v5 }
0x10ee   :  { %10686 = vmatprep.subr.mxu0 %v9756_v32  ;;  %10724 = vmatprep.subr.mxu1 %v9820_v60  ;;  %v9808_v32 = vunpack.c.h.bf16 %v10078_v0  ;;  %v9712_v60 = vunpack.c.h.bf16 %v10054_v1  ;;  %v5509_v1 = vadd.f32 %v13904_v54, %v4876_v16 }
0x10ef   :  { %10687 = vmatpush3.msra.mxu0 %v9724_v9  ;;  %10725 = vmatpush3.msra.mxu1 %v9788_v20  ;;  %v9776_v9 = vunpack.c.h.bf16 %v10070_v2  ;;  %v10061_v20 = vld [vmem:[%s15057_s11 + $0x748] sm:$0xff]  }
0x10f0   :  { %10688 = vmatprep.subr.mxu0 %v9755_v4  ;;  %10726 = vmatprep.subr.mxu1 %v9819_v31  ;;  %v9807_v4 = vunpack.c.l.bf16 %v10078_v0  ;;  %v10053_v31 = vld [vmem:[%s15057_s11 + $0x708] sm:$0xff]   ;;  %v9739_v43 = vunpack.c.l.bf16 %v10061_v20 }
0x10f1   :  { %10689 = vmatpush3.msra.mxu0 %v9723_v49  ;;  %10727 = vmatpush3.msra.mxu1 %v9787_v40  ;;  %v9775_v49 = vunpack.c.l.bf16 %v10070_v2  ;;  %v5437_v40 = vpop.f32.mrf.mxu0  ;;  %v9735_v2 = vunpack.c.l.bf16 %v10060_v5 }
0x10f2   :  { %10690 = vmatprep.subr.mxu0 %v9752_v18  ;;  %10728 = vmatprep.subr.mxu1 %v9816_v48  ;;  %v5514_v18 = vpop.f32.mrf.mxu1  ;;  %v9740_v48 = vunpack.c.h.bf16 %v10061_v20 }
0x10f3   :  { %10691 = vmatpush3.msra.mxu0 %v9720_v34  ;;  %10729 = vmatpush3.msra.mxu1 %v9784_v8  ;;  %v9804_v34 = vunpack.c.h.bf16 %v10077_v55  ;;  %v9708_v8 = vunpack.c.h.bf16 %v10053_v31  ;;  %v5515_v54 = vadd.f32 %v5514_v18, %v4876_v16 }
0x10f4   :  { %10692 = vmatprep.subr.mxu0 %v9751_v38  ;;  %10730 = vmatprep.subr.mxu1 %v9815_v58  ;;  %v10076_v38 = vld [vmem:[%s15057_s11 + $0x7c0] sm:$0xff]   ;;  %v4868_v58 = vrot.slane %v13786_v15, %v12825_v46  ;;  %v5516_v19 = vpop.f32.mrf.mxu1 }
0x10f5   :  { %10693 = vmatpush3.msra.mxu0 %v9719_v21  ;;  %10731 = vmatpush3.msra.mxu1 %v9783_v59  ;;  %v9803_v21 = vunpack.c.l.bf16 %v10077_v55  ;;  %v10052_v59 = vld [vmem:[%s15057_s11 + $0x700] sm:$0xff]   ;;  %v9800_v15 = vunpack.c.h.bf16 %v10076_v38 }
0x10f6   :  { %10694 = vmatprep.subr.mxu0 %v9748_v24  ;;  %10732 = vmatprep.subr.mxu1 %v9812_v28  ;;  %v10068_v24 = vld [vmem:[%s15057_s11 + $0x780] sm:$0xff]   ;;  %v9707_v28 = vunpack.c.l.bf16 %v10053_v31  ;;  %v9704_v0 = vunpack.c.h.bf16 %v10052_v59  ;;  %v5438_v20 = vadd.f32 %v5437_v40, %v4868_v58 }
0x10f7   :  { %10695 = vmatpush3.msra.mxu0 %v9716_v27  ;;  %10733 = vmatpush3.msra.mxu1 %v9780_v62  ;;  %v9771_v27 = vunpack.c.l.bf16 %v10069_v57  ;;  %v5439_v62 = vpop.f32.mrf.mxu0 }
0x10f8   :  { %10696 = vmatprep.subr.mxu0 %v9747_v53  ;;  %10734 = vmatprep.subr.mxu1 %v9811_v7  ;;  %v9768_v53 = vunpack.c.h.bf16 %v10068_v24  ;;  %v5432_v7 = vadd.f32 %v13900_v6, %v4868_v58  ;;  %v5533_v6 = vmax.f32 %v5509_v1, 0.0 }
0x10f9   :  { %10697 = vmatpush3.msra.mxu0 %v9715_v52  ;;  %10735 = vmatpush3.msra.mxu1 %v9779_v61  ;;  %v9799_v52 = vunpack.c.l.bf16 %v10076_v38  ;;  %v5440_v61 = vadd.f32 %v5439_v62, %v13914_v12  ;;  %v5547_v12 = vmax.f32 %v5438_v20, 0.0 }
0x10fa   :  { %10698 = vmatprep.subr.mxu0 %v9744_v44  ;;  %10736 = vmatprep.subr.mxu1 %v9808_v32  ;;  %v5517_v44 = vadd.f32 %v5516_v19, %v13918_v50  ;;  %v9703_v32 = vunpack.c.l.bf16 %v10052_v59  ;;  %v5549_v50 = vmax.f32 %v5515_v54, 0.0 }
0x10fb   :  { %10699 = vmatpush3.msra.mxu0 %v9712_v60  ;;  %10737 = vmatpush3.msra.mxu1 %v9776_v9  ;;  %v9767_v60 = vunpack.c.l.bf16 %v10068_v24  ;;  %v5531_v9 = vmax.f32 %v5432_v7, 0.0  ;;  %v5548_v55 = vmax.f32 %v5440_v61, 0.0 }
0x10fc   :  { %10700 = vmatprep.subr.mxu0 %v9743_v51  ;;  %10738 = vmatprep.subr.mxu1 %v9807_v4  ;;  %v5550_v51 = vmax.f32 %v5517_v44, 0.0 }
0x10fd   :  { %10701 = vmatpush3.msra.mxu0 %v9711_v47  ;;  %10739 = vmatpush3.msra.mxu1 %v9775_v49 }
0x10fe   :  { %10702 = vmatprep.subr.mxu0 %v9740_v48  ;;  %10740 = vmatprep.subr.mxu1 %v9804_v34 }
0x10ff   :  { %10703 = vmatpush3.msra.mxu0 %v9708_v8  ;;  %10741 = vmatpush3.msra.mxu1 %v9772_v37 }
0x1100   :  { %10704 = vmatprep.subr.mxu0 %v9739_v43  ;;  %10742 = vmatprep.subr.mxu1 %v9803_v21  ;;  %v8786_v21 = vld [vmem:[%s15058_s12 + $0x1] ss:$0 sm:$0xff] }
0x1101   :  { %10705 = vmatpush3.msra.mxu0 %v9707_v28  ;;  %10743 = vmatpush3.msra.mxu1 %v9771_v27 }
0x1102   :  { %10706 = vmatprep.subr.mxu0 %v9736_v14  ;;  %10744 = vmatprep.subr.mxu1 %v9800_v15 }
0x1103   :  { %10707 = vmatpush3.msra.mxu0 %v9704_v0  ;;  %10745 = vmatpush3.msra.mxu1 %v9768_v53 }
0x1104   :  { %10708 = vmatprep.subr.mxu0 %v9735_v2  ;;  %10746 = vmatprep.subr.mxu1 %v9799_v52 }
0x1105   :  { %10709 = vmatpush3.msra.mxu0 %v9703_v32  ;;  %10747 = vmatpush3.msra.mxu1 %v9767_v60 }
0x1106   :  { %6074 = vmatmul.mubr.f32.vlgmr.msra.gmra.mxu0 %v5531_v9  ;;  %6149 = vmatmul.mubr.f32.vlgmr.msra.gmra.mxu1 %v5533_v6 }
0x1107   :  { %6078 = vmatprep.mubr.f32.mxu0 %v5548_v55  ;;  %6153 = vmatprep.mubr.f32.mxu1 %v5550_v51 }
0x110a   :  { %6079 = vmatmul.mubr.f32.gmra.mxu0 %v5547_v12  ;;  %6154 = vmatmul.mubr.f32.gmra.mxu1 %v5549_v50 }
0x110b   :  { %6337 = vmatprep.mubr.f32.mxu0 %v15588_v22  ;;  %6414 = vmatprep.mubr.f32.mxu1 %v15588_v22 }
0x115b   :  { %v10482_v4 = vpop.f32.mrf.mxu0  ;;  %v10520_v31 = vpop.f32.mrf.mxu1 }
0x115d   :  { %v10483_v57 = vpop.f32.mrf.mxu0  ;;  %v10521_v47 = vpop.f32.mrf.mxu1 }
0x115e   :  { %v10484_v43 = vadd.f32 %v10483_v57, %v10482_v4  ;;  %v10522_v14 = vadd.f32 %v10521_v47, %v10520_v31 }
0x1160   :  { %v5626_v27 = vadd.f32 %v10484_v43, %v8786_v21 }
0x1161   :  { %v10485_v49 = vpop.f32.mrf.mxu0  ;;  %v10523_v40 = vpop.f32.mrf.mxu1 }
0x1162   :  { %v5701_v53 = vadd.f32 %v10522_v14, %v5626_v27 }
0x1163   :  { %v10486_v18 = vpop.f32.mrf.mxu0  ;;  %v10524_v48 = vpop.f32.mrf.mxu1 }
0x1164   :  { %v10487_v62 = vadd.f32 %v10486_v18, %v10485_v49  ;;  %v10525_v2 = vadd.f32 %v10524_v48, %v10523_v40 }
0x1166   :  { %v5631_v7 = vadd.f32 %v10487_v62, %v8786_v21 }
0x1168   :  { %v5706_v32 = vadd.f32 %v10525_v2, %v5631_v7 }
0x117e   :  { %v10558_v34 = vpop.f32.mrf.mxu0  ;;  %v10596_v8 = vpop.f32.mrf.mxu1 }
0x1180   :  { %v10559_v37 = vpop.f32.mrf.mxu0  ;;  %v10597_v5 = vpop.f32.mrf.mxu1 }
0x1181   :  { %v10560_v15 = vadd.f32 %v10559_v37, %v10558_v34  ;;  %v10598_v60 = vadd.f32 %v10597_v5, %v10596_v8 }
0x1183   :  { %v5776_v52 = vadd.f32 %v10560_v15, %v5701_v53 }
0x1184   :  { %v10561_v38 = vpop.f32.mrf.mxu0  ;;  %v10599_v58 = vpop.f32.mrf.mxu1 }
0x1185   :  { %v5851_v20 = vadd.f32 %v10598_v60, %v5776_v52 }
0x1186   :  { %v10562_v16 = vpop.f32.mrf.mxu0  ;;  %v10600_v59 = vpop.f32.mrf.mxu1 }
0x1187   :  { %v10563_v61 = vadd.f32 %v10562_v16, %v10561_v38  ;;  %v10601_v51 = vadd.f32 %v10600_v59, %v10599_v58 }
0x1189   :  { %v5781_v54 = vadd.f32 %v10563_v61, %v5706_v32 }
0x118b   :  { %v5856_v57 = vadd.f32 %v10601_v51, %v5781_v54  ;;  %v6224_v54 = vld [vmem:[%s15061_s15 + $0x68] sm:$0xff]  ;;  %v6223_v51 = vld [vmem:[%s15061_s15 + $0x60] sm:$0xff] }
0x11a2   :  { %v10634_v24 = vpop.f32.mrf.mxu0  ;;  %v10672_v28 = vpop.f32.mrf.mxu1 }
0x11a4   :  { %v10635_v19 = vpop.f32.mrf.mxu0  ;;  %v10673_v0 = vpop.f32.mrf.mxu1 }
0x11a5   :  { %v10636_v9 = vadd.f32 %v10635_v19, %v10634_v24  ;;  %v10674_v47 = vadd.f32 %v10673_v0, %v10672_v28 }
0x11a7   :  { %v5926_v12 = vadd.f32 %v10636_v9, %v5851_v20  ;;  %v6232_v9 = vld [vmem:[%s15061_s15 + $0xa8] sm:$0xff]  ;;  %v6231_v20 = vld [vmem:[%s15061_s15 + $0xa0] sm:$0xff] }
0x11a8   :  { %v10637_v1 = vpop.f32.mrf.mxu0  ;;  %v10675_v44 = vpop.f32.mrf.mxu1  ;;  %6374 = vmatprep.subr.mxu1 %v6232_v9  ;;  %v6216_v9 = vld [vmem:[%s15061_s15 + $0x28] sm:$0xff] }
0x11a9   :  { %v6001_v40 = vadd.f32 %v10674_v47, %v5926_v12  ;;  %6375 = vmatpush1.msra.mxu1 %v6231_v20  ;;  %v6218_v12 = vld [vmem:[%s15061_s15 + $0x38] sm:$0xff]  ;;  %v6219_v47 = vld [vmem:[%s15061_s15 + $0x40] sm:$0xff] }
0x11aa   :  { %v10638_v6 = vpop.f32.mrf.mxu0  ;;  %v10676_v55 = vpop.f32.mrf.mxu1  ;;  %v6235_v20 = vld [vmem:[%s15062_s16] sm:$0x3f] }
0x11ab   :  { %v10639_v50 = vadd.f32 %v10638_v6, %v10637_v1  ;;  %v10677_v8 = vadd.f32 %v10676_v55, %v10675_v44  ;;  %v6229_v6 = vld [vmem:[%s15061_s15 + $0x90] sm:$0xff]  ;;  %v6226_v55 = vld [vmem:[%s15061_s15 + $0x78] sm:$0xff] }
0x11ac   :  { %6376 = vmatprep.subr.mxu1 %v6226_v55  ;;  %v6248_v55 = vrot.slane %v6235_v20, %v12737_v63 }
0x11ad   :  { %v5931_v48 = vadd.f32 %v10639_v50, %v5856_v57  ;;  %v6225_v50 = vld [vmem:[%s15061_s15 + $0x70] sm:$0xff]  ;;  %v6212_v57 = vld [vmem:[%s15061_s15 + $0x8] sm:$0xff] }
0x11ae   :  { %6377 = vmatpush1.msra.mxu1 %v6225_v50 }
0x11af   :  { %v6006_v24 = vadd.f32 %v10677_v8, %v5931_v48  ;;  %v6234_v48 = vld [vmem:[%s15061_s15 + $0xb8] sm:$0xff] }
0x11c6   :  { %v10710_v4 = vpop.f32.mrf.mxu0  ;;  %v10748_v31 = vpop.f32.mrf.mxu1 }
0x11c8   :  { %v10711_v49 = vpop.f32.mrf.mxu0  ;;  %v10749_v18 = vpop.f32.mrf.mxu1 }
0x11c9   :  { %v10712_v34 = vadd.f32 %v10711_v49, %v10710_v4  ;;  %v10750_v16 = vadd.f32 %v10749_v18, %v10748_v31  ;;  %v6217_v4 = vld [vmem:[%s15061_s15 + $0x30] sm:$0xff]  ;;  %v6220_v31 = vld [vmem:[%s15061_s15 + $0x48] sm:$0xff]  ;;  %v6211_v49 = vld [vmem:[%s15061_s15] sm:$0xff] }
0x11ca   :  { %v10713_v37 = vpop.f32.mrf.mxu0  ;;  %v10751_v38 = vpop.f32.mrf.mxu1  ;;  %6378 = vmatprep.subr.mxu1 %v6220_v31  ;;  %v6214_v18 = vld [vmem:[%s15061_s15 + $0x18] sm:$0xff] }
0x11cb   :  { %v6076_v5 = vadd.f32 %v10712_v34, %v6001_v40  ;;  %6379 = vmatpush1.msra.mxu1 %v6219_v47  ;;  %v6213_v40 = vld [vmem:[%s15061_s15 + $0x10] sm:$0xff] }
0x11cc   :  { %v10714_v43 = vpop.f32.mrf.mxu0  ;;  %v10752_v21 = vpop.f32.mrf.mxu1  ;;  %6380 = vmatprep.subr.mxu1 %v6214_v18 }
0x11cd   :  { %v6151_v58 = vadd.f32 %v10750_v16, %v6076_v5  ;;  %v10715_v59 = vadd.f32 %v10714_v43, %v10713_v37  ;;  %v10753_v62 = vadd.f32 %v10752_v21, %v10751_v38  ;;  %6381 = vmatpush1.msra.mxu1 %v6213_v40  ;;  %v8787_v21 = vld [vmem:[%s15059_s13 + $0x5] ss:$0 sm:$0xff] }
0x11cf   :  { %v6081_v27 = vadd.f32 %v10715_v59, %v6006_v24  ;;  %v6159_v19 = vadd.f32 %v6151_v58, %v13426_v13  ;;  %v8788_v58 = vld [vmem:[%s15060_s14 + $0x5] ss:$0 sm:$0xff] }
0x11d1   :  { %v6156_v28 = vadd.f32 %v10753_v62, %v6081_v27  ;;  %v6161_v14 = vsel %vm647_vm0, %v6159_v19, 0.0  ;;  %v6203_v62 = vld [vmem:[%s15591_s22] sm:$0xff] }
0x11d2   :  { %6162 = vadd.xlane.f32.xlu0 %v6161_v14  ;;  %v6207_v14 = vld [vmem:[%s15592_s1] sm:$0xff] }
0x11d3   :  { %v6160_v15 = vadd.f32 %v6156_v28, %v13444_v3  ;;  %v6230_v3 = vld [vmem:[%s15061_s15 + $0x98] sm:$0xff] }
0x11d4   :  { %6297 = vmatprep.subr.mxu0 %v6230_v3  ;;  %v6221_v3 = vld [vmem:[%s15061_s15 + $0x50] sm:$0xff] }
0x11d5   :  { %v6164_v0 = vsel %vm647_vm0, %v6160_v15, 0.0  ;;  %6298 = vmatpush1.msra.mxu0 %v6229_v6  ;;  %v6215_v6 = vld [vmem:[%s15061_s15 + $0x20] sm:$0xff] }
0x11d6   :  { %6165 = vadd.xlane.f32.xlu1 %v6164_v0  ;;  %6299 = vmatprep.subr.mxu0 %v6224_v54  ;;  %v6240_v54 = vrot.slane %v6235_v20, %v12719_v26 }
0x11d7   :  { %6300 = vmatpush1.msra.mxu0 %v6223_v51  ;;  %v6244_v51 = vrot.slane %v6235_v20, %v12727_v56 }
0x11d8   :  { %6301 = vmatprep.subr.mxu0 %v6218_v12  ;;  %v6252_v12 = vrot.slane %v6235_v20, %v12743_v25 }
0x11d9   :  { %6302 = vmatpush1.msra.mxu0 %v6217_v4 }
0x11da   :  { %6303 = vmatprep.subr.mxu0 %v6212_v57 }
0x11db   :  { %6304 = vmatpush1.msra.mxu0 %v6211_v49 }
0x11dc   :  { %6451 = vmatprep.subr.mxu0 %v6234_v48 }
0x125b   :  { %v6163_v53 = vpop.xlane.xlu0 %6162 }
0x125c   :  { %v6167_v7 = vmul.f32 0.03125, %v6163_v53  ;;  %v6204_v53 = vld [vmem:[%s15591_s22 + $0x8] sm:$0xff] }
0x125e   :  { %v6169_v1 = vsub.f32 %v6159_v19, %v6167_v7 }
0x125f   :  { %v6166_v2 = vpop.xlane.xlu1 %6165 }
0x1260   :  { %v6168_v52 = vmul.f32 0.03125, %v6166_v2  ;;  %v6171_v61 = vmul.f32 %v6169_v1, %v6169_v1 }
0x1262   :  { %v6170_v44 = vsub.f32 %v6160_v15, %v6168_v52  ;;  %v6173_v32 = vsel %vm647_vm0, %v6171_v61, 0.0  ;;  %v6228_v52 = vld [vmem:[%s15061_s15 + $0x88] sm:$0xff] }
0x1263   :  { %6174 = vadd.xlane.f32.xlu0 %v6173_v32  ;;  %v6208_v61 = vld [vmem:[%s15592_s1 + $0x8] sm:$0xff] }
0x1264   :  { %v6172_v13 = vmul.f32 %v6170_v44, %v6170_v44 }
0x1266   :  { %v6176_v60 = vsel %vm647_vm0, %v6172_v13, 0.0  ;;  %v6222_v13 = vld [vmem:[%s15061_s15 + $0x58] sm:$0xff] }
0x1267   :  { %6177 = vadd.xlane.f32.xlu1 %v6176_v60 }
0x12ec   :  { %v6175_v34 = vpop.xlane.xlu0 %6174 }
0x12ed   :  { %v6179_v37 = vmul.f32 0.03125, %v6175_v34 }
0x12ef   :  { %v6181_v38 = vadd.f32 1e-05, %v6179_v37 }
0x12f0   :  { %v6178_v8 = vpop.xlane.xlu1 %6177 }
0x12f1   :  { %10991 = vrsqrt.f32 %v6181_v38  ;;  %v6180_v5 = vmul.f32 0.03125, %v6178_v8 }
0x12f3   :  { %v6182_v16 = vadd.f32 1e-05, %v6180_v5 }
0x12f5   :  { %10993 = vrsqrt.f32 %v6182_v16 }
0x12fe   :  { %v10992_v43 = vpop.eup %10991 }
0x12ff   :  { %v6185_v24 = vmul.f32 %v10992_v43, %v6169_v1  ;;  %v6233_v1 = vld [vmem:[%s15061_s15 + $0xb0] sm:$0xff]  ;;  %v6256_v43 = vrot.slane %v6235_v20, %v12825_v46 }
0x1301   :  { %v6193_v59 = vmul.f32 %v8787_v21, %v6185_v24 }
0x1302   :  { %v10994_v27 = vpop.eup %10993 }
0x1303   :  { %v6201_v19 = vadd.f32 %v8788_v58, %v6193_v59  ;;  %v6186_v28 = vmul.f32 %v10994_v27, %v6170_v44  ;;  %v6227_v44 = vld [vmem:[%s15061_s15 + $0x80] sm:$0xff] }
0x1305   :  { %v6205_v15 = vmul.f32 %v6203_v62, %v6201_v19  ;;  %v6194_v0 = vmul.f32 %v8787_v21, %v6186_v28  ;;  %v6260_v62 = vrot.slane %v6235_v20, %v12784_v10  ;;  %v6870_v20 = vunpack.c.h.bf16 %v11324_v42 }
0x1307   :  { %v6209_v7 = vadd.f32 %v6207_v14, %v6205_v15  ;;  %v6202_v2 = vadd.f32 %v8788_v58, %v6194_v0 }
0x1309   :  { %8789 = vmatmul.mubr.msk.f32.vlgmr.msra.gmra.mxu0 %vm647_vm0, %v6209_v7  ;;  %8791 = vmatmul.mubr.msk.f32.vlgmr.msra.gmra.mxu1 %vm647_vm0, %v6209_v7  ;;  %v6206_v32 = vmul.f32 %v6204_v53, %v6202_v2 }
0x130a   :  { %6452 = vmatpush1.msra.mxu0 %v6233_v1  ;;  %6343 = vmatprep.mubr.f32.mxu0 %v15588_v22 }
0x130b   :  { %6453 = vmatprep.subr.mxu0 %v6228_v52  ;;  %6420 = vmatprep.mubr.f32.mxu1 %v15588_v22  ;;  %v6210_v60 = vadd.f32 %v6208_v61, %v6206_v32 }
0x130c   :  { %6454 = vmatpush1.msra.mxu0 %v6227_v44 }
0x130d   :  { %6455 = vmatprep.subr.mxu0 %v6222_v13  ;;  %8790 = vmatmul.mubr.msk.f32.gmra.mxu0 %vm647_vm0, %v6210_v60 }
0x130e   :  { %8792 = vmatmul.mubr.msk.f32.gmra.mxu1 %vm647_vm0, %v6210_v60  ;;  %6456 = vmatpush1.msra.mxu0 %v6221_v3 }
0x130f   :  { %6457 = vmatprep.subr.mxu0 %v6216_v9  ;;  %6491 = vmatprep.mubr.f32.mxu0 %v15588_v22  ;;  %v6876_v9 = vunpack.c.h.bf16 %v11339_v45 }
0x1310   :  { %6458 = vmatpush1.msra.mxu0 %v6215_v6  ;;  %v6875_v6 = vunpack.c.l.bf16 %v11339_v45 }
0x1311   :  { %8793 = vmatmul.mubr.msk.f32.vlgmr.msra.gmra.mxu0 %vm647_vm0, %v6209_v7 }
0x1312   :  { %6497 = vmatprep.mubr.f32.mxu0 %v15588_v22 }
0x1315   :  { %8794 = vmatmul.mubr.msk.f32.gmra.mxu0 %vm647_vm0, %v6210_v60 }
0x13c9   :  { %v6339_v50 = vpop.f32.mrf.mxu0  ;;  %v6416_v4 = vpop.f32.mrf.mxu1 }
0x13ca   :  { %v6340_v31 = vadd.f32 %v6339_v50, %v6240_v54  ;;  %v6417_v57 = vadd.f32 %v6416_v4, %v6248_v55 }
0x13cb   :  { %v6341_v47 = vpop.f32.mrf.mxu0  ;;  %v6418_v49 = vpop.f32.mrf.mxu1 }
0x13cc   :  { %v14134_v18 = vmax.f32 %v6340_v31, 0.0  ;;  %v14136_v40 = vmax.f32 %v6417_v57, 0.0  ;;  %v6342_v48 = vadd.f32 %v6341_v47, %v6244_v51  ;;  %v6419_v34 = vadd.f32 %v6418_v49, %v6252_v12 }
0x13cd   :  { %v6345_v37 = vpop.f32.mrf.mxu0 }
0x13ce   :  { %v14138_v38 = vmax.f32 %v6342_v48, 0.0  ;;  %v14140_v8 = vmax.f32 %v6419_v34, 0.0  ;;  %v6346_v5 = vadd.f32 %v6345_v37, %v6240_v54  ;;  %v6422_v16 = vpop.f32.mrf.mxu1  ;;  %v7068_v54 = vunpack.c.h.bf16 %v11819_v41 }
0x13cf   :  { %v6423_v21 = vadd.f32 %v6422_v16, %v6248_v55  ;;  %v6347_v24 = vpop.f32.mrf.mxu0 }
0x13d0   :  { %v14143_v58 = vmax.f32 %v6346_v5, 0.0  ;;  %v6348_v59 = vadd.f32 %v6347_v24, %v6244_v51  ;;  %v6424_v27 = vpop.f32.mrf.mxu1  ;;  %7416 = vmatprep.mubr.f32.mxu1 %v14138_v38  ;;  %7493 = vmatprep.mubr.f32.mxu0 %v14140_v8 }
0x13d1   :  { %v14146_v19 = vmax.f32 %v6423_v21, 0.0  ;;  %v6425_v28 = vadd.f32 %v6424_v27, %v6252_v12  ;;  %v6493_v14 = vpop.f32.mrf.mxu0 }
0x13d2   :  { %v14148_v15 = vmax.f32 %v6348_v59, 0.0  ;;  %v6494_v0 = vadd.f32 %v6493_v14, %v6256_v43 }
0x13d3   :  { %v14150_v53 = vmax.f32 %v6425_v28, 0.0  ;;  %v6495_v7 = vpop.f32.mrf.mxu0 }
0x13d4   :  { %v14152_v1 = vmax.f32 %v6494_v0, 0.0  ;;  %v6496_v2 = vadd.f32 %v6495_v7, %v6260_v62 }
0x13d5   :  { %v6499_v52 = vpop.f32.mrf.mxu0 }
0x13d6   :  { %v14154_v61 = vmax.f32 %v6496_v2, 0.0  ;;  %v6500_v44 = vadd.f32 %v6499_v52, %v6256_v43 }
0x13d7   :  { %v6501_v32 = vpop.f32.mrf.mxu0 }
0x13d8   :  { %v14156_v13 = vmax.f32 %v6500_v44, 0.0  ;;  %v6502_v60 = vadd.f32 %v6501_v32, %v6260_v62 }
0x13da   :  { %v14158_v3 = vmax.f32 %v6502_v60, 0.0 }
0x13db   :  { %10995 = dma.done.wait [#allocation3], 33792 }
0x13dc   :  { %10996 = vsyncadd [#allocation3], 4294933504  ;;  %v6869_v55 = vunpack.c.l.bf16 %v11324_v42  ;;  %v7067_v51 = vunpack.c.l.bf16 %v11819_v41  ;;  %v7062_v12 = vunpack.c.h.bf16 %v11804_v35  ;;  %7352 = vmatprep.subr.mxu1 %v6876_v9  ;;  %7429 = vmatprep.subr.mxu0 %v7068_v54  ;;  %v6864_v45 = vunpack.c.h.bf16 %v11309_v39  ;;  %v15593_v5 = vld [vmem:[#allocation33_spill] sm:$0xff]  ;;  %v15594_v43 = vld [vmem:[#allocation123_spill] sm:$0xff] }
0x13dd   :  { %v7061_v50 = vunpack.c.l.bf16 %v11804_v35  ;;  %v7056_v4 = vunpack.c.h.bf16 %v11789_v29  ;;  %7353 = vmatpush1.msra.mxu1 %v6875_v6  ;;  %v6863_v31 = vunpack.c.l.bf16 %v11309_v39  ;;  %v7055_v57 = vunpack.c.l.bf16 %v11789_v29  ;;  %v15595_v24 = vld [vmem:[#allocation30_spill] sm:$0xff]  ;;  %v15596_v27 = vld [vmem:[#allocation120_spill] sm:$0xff]  ;;  %v15597_v28 = vld [vmem:[#allocation27_spill] sm:$0xff] }
0x13de   :  { %7430 = vmatpush1.msra.mxu0 %v7067_v51  ;;  %7354 = vmatprep.subr.mxu1 %v6870_v20  ;;  %v6858_v41 = vunpack.c.h.bf16 %v11294_v36  ;;  %v7050_v42 = vunpack.c.h.bf16 %v11774_v23  ;;  %v6857_v47 = vunpack.c.l.bf16 %v11294_v36  ;;  %v7049_v35 = vunpack.c.l.bf16 %v11774_v23  ;;  %v15598_v0 = vld [vmem:[#allocation117_spill] sm:$0xff]  ;;  %v15599_v44 = vld [vmem:[#allocation24_spill] sm:$0xff]  ;;  %v15600_v60 = vld [vmem:[#allocation114_spill] sm:$0xff] }
0x13df   :  { %7431 = vmatprep.subr.mxu0 %v7062_v12  ;;  %7355 = vmatpush1.msra.mxu1 %v6869_v55  ;;  %v6852_v49 = vunpack.c.h.bf16 %v11279_v33  ;;  %v7044_v39 = vunpack.c.h.bf16 %v11759_v17  ;;  %v6851_v29 = vunpack.c.l.bf16 %v11279_v33  ;;  %v7043_v48 = vunpack.c.l.bf16 %v11759_v17  ;;  %v15601_v54 = vld [vmem:[#allocation21_spill] sm:$0xff]  ;;  %v15602_v51 = vld [vmem:[#allocation111_spill] sm:$0xff] }
0x13e0   :  { %7432 = vmatpush1.msra.mxu0 %v7061_v50  ;;  %7356 = vmatprep.subr.mxu1 %v6864_v45  ;;  %v6846_v34 = vunpack.c.h.bf16 %v11264_v30  ;;  %v7038_v36 = vunpack.c.h.bf16 %v11744_v11  ;;  %v6845_v23 = vunpack.c.l.bf16 %v11264_v30  ;;  %v7037_v37 = vunpack.c.l.bf16 %v11744_v11 }
0x13e1   :  { %7433 = vmatprep.subr.mxu0 %v7056_v4  ;;  %7357 = vmatpush1.msra.mxu1 %v6863_v31  ;;  %v6840_v16 = vunpack.c.h.bf16 %v15593_v5  ;;  %v7032_v33 = vunpack.c.h.bf16 %v15594_v43  ;;  %v6839_v17 = vunpack.c.l.bf16 %v15593_v5  ;;  %v7031_v21 = vunpack.c.l.bf16 %v15594_v43  ;;  %v15603_v4 = vld [vmem:[#allocation18_spill] sm:$0xff] }
0x13e2   :  { %7434 = vmatpush1.msra.mxu0 %v7055_v57  ;;  %7358 = vmatprep.subr.mxu1 %v6858_v41  ;;  %v6834_v59 = vunpack.c.h.bf16 %v15595_v24  ;;  %v7026_v30 = vunpack.c.h.bf16 %v15596_v27  ;;  %v6833_v11 = vunpack.c.l.bf16 %v15595_v24  ;;  %v7025_v62 = vunpack.c.l.bf16 %v15596_v27  ;;  %v15604_v57 = vld [vmem:[#allocation108_spill] sm:$0xff] }
0x13e3   :  { %7435 = vmatprep.subr.mxu0 %v7050_v42  ;;  %7359 = vmatpush1.msra.mxu1 %v6857_v47  ;;  %v6828_v14 = vunpack.c.h.bf16 %v15597_v28  ;;  %v7020_v7 = vunpack.c.h.bf16 %v15598_v0  ;;  %v6827_v2 = vunpack.c.l.bf16 %v15597_v28  ;;  %v7019_v52 = vunpack.c.l.bf16 %v15598_v0 }
0x13e4   :  { %7436 = vmatpush1.msra.mxu0 %v7049_v35  ;;  %7360 = vmatprep.subr.mxu1 %v6852_v49  ;;  %v6822_v32 = vunpack.c.h.bf16 %v15599_v44  ;;  %v7014_v9 = vunpack.c.h.bf16 %v15600_v60  ;;  %v6821_v6 = vunpack.c.l.bf16 %v15599_v44  ;;  %v7013_v20 = vunpack.c.l.bf16 %v15600_v60  ;;  %v15605_v35 = vld [vmem:[#allocation15_spill] sm:$0xff] }
0x13e5   :  { %7437 = vmatprep.subr.mxu0 %v7044_v39  ;;  %7361 = vmatpush1.msra.mxu1 %v6851_v29  ;;  %v6816_v55 = vunpack.c.h.bf16 %v15601_v54  ;;  %v7008_v12 = vunpack.c.h.bf16 %v15602_v51  ;;  %v6815_v45 = vunpack.c.l.bf16 %v15601_v54  ;;  %v7007_v50 = vunpack.c.l.bf16 %v15602_v51  ;;  %v15606_v39 = vld [vmem:[#allocation105_spill] sm:$0xff] }
0x13e6   :  { %7438 = vmatpush1.msra.mxu0 %v7043_v48  ;;  %7362 = vmatprep.subr.mxu1 %v6846_v34  ;;  %v6810_v31 = vunpack.c.h.bf16 %v15603_v4  ;;  %v7002_v41 = vunpack.c.h.bf16 %v15604_v57  ;;  %v6809_v42 = vunpack.c.l.bf16 %v15603_v4  ;;  %v7001_v47 = vunpack.c.l.bf16 %v15604_v57 }
0x13e7   :  { %7439 = vmatprep.subr.mxu0 %v7038_v36  ;;  %7363 = vmatpush1.msra.mxu1 %v6845_v23  ;;  %v6804_v49 = vunpack.c.h.bf16 %v15605_v35  ;;  %v6996_v29 = vunpack.c.h.bf16 %v15606_v39  ;;  %v6803_v48 = vunpack.c.l.bf16 %v15605_v35  ;;  %v6995_v34 = vunpack.c.l.bf16 %v15606_v39  ;;  %v15607_v36 = vld [vmem:[#allocation12_spill] sm:$0xff] }
0x13e8   :  { %7440 = vmatpush1.msra.mxu0 %v7037_v37  ;;  %7364 = vmatprep.subr.mxu1 %v6840_v16  ;;  %v6798_v23 = vunpack.c.h.bf16 %v15607_v36  ;;  %v15608_v37 = vld [vmem:[#allocation102_spill] sm:$0xff]  ;;  %v6797_v16 = vunpack.c.l.bf16 %v15607_v36  ;;  %vm7345_vm3 = vcmask 523264   ;;  %vm8383_vm4 = vcmask 539648  }
0x13e9   :  { %7441 = vmatprep.subr.mxu0 %v7032_v33  ;;  %7365 = vmatpush1.msra.mxu1 %v6839_v17  ;;  %v6990_v5 = vunpack.c.h.bf16 %v15608_v37  ;;  %v6989_v43 = vunpack.c.l.bf16 %v15608_v37  ;;  %v15609_v33 = vld [vmem:[#allocation9_spill] sm:$0xff] }
0x13ea   :  { %7442 = vmatpush1.msra.mxu0 %v7031_v21  ;;  %7366 = vmatprep.subr.mxu1 %v6834_v59  ;;  %v6792_v17 = vunpack.c.h.bf16 %v15609_v33  ;;  %v15610_v21 = vld [vmem:[#allocation99_spill] sm:$0xff]  ;;  %v6791_v59 = vunpack.c.l.bf16 %v15609_v33 }
0x13eb   :  { %7443 = vmatprep.subr.mxu0 %v7026_v30  ;;  %7367 = vmatpush1.msra.mxu1 %v6833_v11  ;;  %v6984_v24 = vunpack.c.h.bf16 %v15610_v21  ;;  %v6983_v27 = vunpack.c.l.bf16 %v15610_v21  ;;  %v15611_v30 = vld [vmem:[#allocation6_spill] sm:$0xff] }
0x13ec   :  { %7444 = vmatpush1.msra.mxu0 %v7025_v62  ;;  %7368 = vmatprep.subr.mxu1 %v6828_v14  ;;  %v6786_v11 = vunpack.c.h.bf16 %v15611_v30  ;;  %v15612_v62 = vld [vmem:[#allocation96_spill] sm:$0xff]  ;;  %v6785_v14 = vunpack.c.l.bf16 %v15611_v30 }
0x13ed   :  { %7445 = vmatprep.subr.mxu0 %v7020_v7  ;;  %7369 = vmatpush1.msra.mxu1 %v6827_v2  ;;  %v6978_v28 = vunpack.c.h.bf16 %v15612_v62  ;;  %v6977_v0 = vunpack.c.l.bf16 %v15612_v62  ;;  %v15613_v7 = vld [vmem:[#allocation93_spill] sm:$0xff] }
0x13ee   :  { %7446 = vmatpush1.msra.mxu0 %v7019_v52  ;;  %7370 = vmatprep.subr.mxu1 %v6822_v32  ;;  %v6972_v2 = vunpack.c.h.bf16 %v15613_v7  ;;  %v15614_v52 = vld [vmem:[#allocation183_spill] sm:$0xff]  ;;  %v6971_v32 = vunpack.c.l.bf16 %v15613_v7 }
0x13ef   :  { %7447 = vmatprep.subr.mxu0 %v7014_v9  ;;  %7371 = vmatpush1.msra.mxu1 %v6821_v6  ;;  %v7164_v44 = vunpack.c.h.bf16 %v15614_v52  ;;  %v7163_v60 = vunpack.c.l.bf16 %v15614_v52  ;;  %v15615_v9 = vld [vmem:[#allocation90_spill] sm:$0xff] }
0x13f0   :  { %7448 = vmatpush1.msra.mxu0 %v7013_v20  ;;  %7372 = vmatprep.subr.mxu1 %v6816_v55  ;;  %v6966_v6 = vunpack.c.h.bf16 %v15615_v9  ;;  %v15616_v20 = vld [vmem:[#allocation180_spill] sm:$0xff]  ;;  %v6965_v55 = vunpack.c.l.bf16 %v15615_v9 }
0x13f1   :  { %7449 = vmatprep.subr.mxu0 %v7008_v12  ;;  %7373 = vmatpush1.msra.mxu1 %v6815_v45  ;;  %v7158_v54 = vunpack.c.h.bf16 %v15616_v20  ;;  %v7157_v51 = vunpack.c.l.bf16 %v15616_v20  ;;  %v15617_v12 = vld [vmem:[#allocation87_spill] sm:$0xff] }
0x13f2   :  { %7450 = vmatpush1.msra.mxu0 %v7007_v50  ;;  %7374 = vmatprep.subr.mxu1 %v6810_v31  ;;  %v6960_v45 = vunpack.c.h.bf16 %v15617_v12  ;;  %v15618_v50 = vld [vmem:[#allocation177_spill] sm:$0xff]  ;;  %v6959_v31 = vunpack.c.l.bf16 %v15617_v12 }
0x13f3   :  { %7451 = vmatprep.subr.mxu0 %v7002_v41  ;;  %7375 = vmatpush1.msra.mxu1 %v6809_v42  ;;  %v7152_v4 = vunpack.c.h.bf16 %v15618_v50  ;;  %v7151_v57 = vunpack.c.l.bf16 %v15618_v50  ;;  %v15619_v41 = vld [vmem:[#allocation84_spill] sm:$0xff] }
0x13f4   :  { %7452 = vmatpush1.msra.mxu0 %v7001_v47  ;;  %7376 = vmatprep.subr.mxu1 %v6804_v49  ;;  %v6954_v42 = vunpack.c.h.bf16 %v15619_v41  ;;  %v15620_v47 = vld [vmem:[#allocation174_spill] sm:$0xff]  ;;  %v6953_v49 = vunpack.c.l.bf16 %v15619_v41 }
0x13f5   :  { %7453 = vmatprep.subr.mxu0 %v6996_v29  ;;  %7377 = vmatpush1.msra.mxu1 %v6803_v48  ;;  %v7146_v35 = vunpack.c.h.bf16 %v15620_v47  ;;  %v7145_v39 = vunpack.c.l.bf16 %v15620_v47  ;;  %v15621_v29 = vld [vmem:[#allocation81_spill] sm:$0xff] }
0x13f6   :  { %7454 = vmatpush1.msra.mxu0 %v6995_v34  ;;  %7378 = vmatprep.subr.mxu1 %v6798_v23  ;;  %v6948_v48 = vunpack.c.h.bf16 %v15621_v29  ;;  %v15622_v34 = vld [vmem:[#allocation171_spill] sm:$0xff]  ;;  %v6947_v23 = vunpack.c.l.bf16 %v15621_v29 }
0x13f7   :  { %7455 = vmatprep.subr.mxu0 %v6990_v5  ;;  %7379 = vmatpush1.msra.mxu1 %v6797_v16  ;;  %v7140_v36 = vunpack.c.h.bf16 %v15622_v34  ;;  %v7139_v37 = vunpack.c.l.bf16 %v15622_v34  ;;  %v15623_v5 = vld [vmem:[#allocation78_spill] sm:$0xff] }
0x13f8   :  { %7456 = vmatpush1.msra.mxu0 %v6989_v43  ;;  %7380 = vmatprep.subr.mxu1 %v6792_v17  ;;  %v6942_v16 = vunpack.c.h.bf16 %v15623_v5  ;;  %v15624_v43 = vld [vmem:[#allocation168_spill] sm:$0xff]  ;;  %v6941_v17 = vunpack.c.l.bf16 %v15623_v5 }
0x13f9   :  { %7457 = vmatprep.subr.mxu0 %v6984_v24  ;;  %7381 = vmatpush1.msra.mxu1 %v6791_v59  ;;  %v7134_v33 = vunpack.c.h.bf16 %v15624_v43  ;;  %v7133_v21 = vunpack.c.l.bf16 %v15624_v43  ;;  %v15625_v24 = vld [vmem:[#allocation75_spill] sm:$0xff] }
0x13fa   :  { %7458 = vmatpush1.msra.mxu0 %v6983_v27  ;;  %7382 = vmatprep.subr.mxu1 %v6786_v11  ;;  %v6936_v59 = vunpack.c.h.bf16 %v15625_v24  ;;  %v15626_v27 = vld [vmem:[#allocation165_spill] sm:$0xff]  ;;  %v6935_v11 = vunpack.c.l.bf16 %v15625_v24 }
0x13fb   :  { %7459 = vmatprep.subr.mxu0 %v6978_v28  ;;  %7383 = vmatpush1.msra.mxu1 %v6785_v14  ;;  %v7128_v30 = vunpack.c.h.bf16 %v15626_v27  ;;  %v7127_v62 = vunpack.c.l.bf16 %v15626_v27  ;;  %v15627_v28 = vld [vmem:[#allocation72_spill] sm:$0xff] }
0x13fc   :  { %7460 = vmatpush1.msra.mxu0 %v6977_v0  ;;  %7384 = vmatprep.subr.mxu1 %v6972_v2  ;;  %v6930_v14 = vunpack.c.h.bf16 %v15627_v28  ;;  %v15628_v0 = vld [vmem:[#allocation162_spill] sm:$0xff]  ;;  %v6929_v2 = vunpack.c.l.bf16 %v15627_v28 }
0x13fd   :  { %7461 = vmatprep.subr.mxu0 %v7164_v44  ;;  %7385 = vmatpush2.msra.mxu1 %v6971_v32  ;;  %v7122_v7 = vunpack.c.h.bf16 %v15628_v0  ;;  %v7121_v52 = vunpack.c.l.bf16 %v15628_v0  ;;  %v15629_v44 = vld [vmem:[#allocation69_spill] sm:$0xff] }
0x13fe   :  { %7462 = vmatpush2.msra.mxu0 %v7163_v60  ;;  %7386 = vmatprep.subr.mxu1 %v6966_v6  ;;  %v6924_v32 = vunpack.c.h.bf16 %v15629_v44  ;;  %v15630_v60 = vld [vmem:[#allocation159_spill] sm:$0xff]  ;;  %v6923_v6 = vunpack.c.l.bf16 %v15629_v44 }
0x13ff   :  { %7463 = vmatprep.subr.mxu0 %v7158_v54  ;;  %7387 = vmatpush2.msra.mxu1 %v6965_v55  ;;  %v7116_v9 = vunpack.c.h.bf16 %v15630_v60  ;;  %v7115_v20 = vunpack.c.l.bf16 %v15630_v60  ;;  %v15631_v54 = vld [vmem:[#allocation66_spill] sm:$0xff] }
0x1400   :  { %7464 = vmatpush2.msra.mxu0 %v7157_v51  ;;  %7388 = vmatprep.subr.mxu1 %v6960_v45  ;;  %v6918_v55 = vunpack.c.h.bf16 %v15631_v54  ;;  %v15632_v51 = vld [vmem:[#allocation156_spill] sm:$0xff]  ;;  %v6917_v45 = vunpack.c.l.bf16 %v15631_v54 }
0x1401   :  { %7465 = vmatprep.subr.mxu0 %v7152_v4  ;;  %7389 = vmatpush2.msra.mxu1 %v6959_v31  ;;  %v7110_v12 = vunpack.c.h.bf16 %v15632_v51  ;;  %v7109_v50 = vunpack.c.l.bf16 %v15632_v51  ;;  %v15633_v4 = vld [vmem:[#allocation63_spill] sm:$0xff]  ;;  %v15646_v54 = vld [vmem:[#allocation228_spill] sm:$0xff]  ;;  %v15647_v51 = vld [vmem:[#allocation46_spill] sm:$0xff] }
0x1402   :  { %7466 = vmatpush2.msra.mxu0 %v7151_v57  ;;  %7390 = vmatprep.subr.mxu1 %v6954_v42  ;;  %v6912_v31 = vunpack.c.h.bf16 %v15633_v4  ;;  %v15634_v57 = vld [vmem:[#allocation153_spill] sm:$0xff]  ;;  %v6911_v42 = vunpack.c.l.bf16 %v15633_v4 }
0x1403   :  { %7467 = vmatprep.subr.mxu0 %v7146_v35  ;;  %7391 = vmatpush2.msra.mxu1 %v6953_v49  ;;  %v7104_v41 = vunpack.c.h.bf16 %v15634_v57  ;;  %v7103_v47 = vunpack.c.l.bf16 %v15634_v57  ;;  %v15635_v35 = vld [vmem:[#allocation60_spill] sm:$0xff]  ;;  %v15648_v4 = vld [vmem:[#allocation225_spill] sm:$0xff] }
0x1404   :  { %7468 = vmatpush2.msra.mxu0 %v7145_v39  ;;  %7392 = vmatprep.subr.mxu1 %v6948_v48  ;;  %v6906_v49 = vunpack.c.h.bf16 %v15635_v35  ;;  %v15636_v39 = vld [vmem:[#allocation150_spill] sm:$0xff]  ;;  %v6905_v48 = vunpack.c.l.bf16 %v15635_v35  ;;  %v15649_v57 = vld [vmem:[#allocation44_spill] sm:$0xff] }
0x1405   :  { %7469 = vmatprep.subr.mxu0 %v7140_v36  ;;  %7393 = vmatpush2.msra.mxu1 %v6947_v23  ;;  %v7098_v29 = vunpack.c.h.bf16 %v15636_v39  ;;  %v7097_v34 = vunpack.c.l.bf16 %v15636_v39  ;;  %v15637_v36 = vld [vmem:[#allocation57_spill] sm:$0xff]  ;;  %v15650_v35 = vld [vmem:[#allocation222_spill] sm:$0xff] }
0x1406   :  { %7470 = vmatpush2.msra.mxu0 %v7139_v37  ;;  %7394 = vmatprep.subr.mxu1 %v6942_v16  ;;  %v6900_v23 = vunpack.c.h.bf16 %v15637_v36  ;;  %v15638_v37 = vld [vmem:[#allocation147_spill] sm:$0xff]  ;;  %v6899_v16 = vunpack.c.l.bf16 %v15637_v36  ;;  %v15651_v39 = vld [vmem:[#allocation42_spill] sm:$0xff] }
0x1407   :  { %7471 = vmatprep.subr.mxu0 %v7134_v33  ;;  %7395 = vmatpush2.msra.mxu1 %v6941_v17  ;;  %v7092_v5 = vunpack.c.h.bf16 %v15638_v37  ;;  %v7091_v43 = vunpack.c.l.bf16 %v15638_v37  ;;  %v15639_v33 = vld [vmem:[#allocation54_spill] sm:$0xff]  ;;  %v15652_v36 = vld [vmem:[#allocation219_spill] sm:$0xff]  ;;  %v15653_v37 = vld [vmem:[#allocation40_spill] sm:$0xff] }
0x1408   :  { %7472 = vmatpush2.msra.mxu0 %v7133_v21  ;;  %7396 = vmatprep.subr.mxu1 %v6936_v59  ;;  %v6894_v17 = vunpack.c.h.bf16 %v15639_v33  ;;  %v15640_v21 = vld [vmem:[#allocation144_spill] sm:$0xff]  ;;  %v6893_v59 = vunpack.c.l.bf16 %v15639_v33 }
0x1409   :  { %7473 = vmatprep.subr.mxu0 %v7128_v30  ;;  %7397 = vmatpush2.msra.mxu1 %v6935_v11  ;;  %v7086_v24 = vunpack.c.h.bf16 %v15640_v21  ;;  %v7085_v27 = vunpack.c.l.bf16 %v15640_v21  ;;  %v15641_v30 = vld [vmem:[#allocation51_spill] sm:$0xff]  ;;  %v15654_v33 = vld [vmem:[#allocation216_spill] sm:$0xff]  ;;  %v15655_v21 = vld [vmem:[#allocation38_spill] sm:$0xff] }
0x140a   :  { %7474 = vmatpush2.msra.mxu0 %v7127_v62  ;;  %7398 = vmatprep.subr.mxu1 %v6930_v14  ;;  %v6888_v11 = vunpack.c.h.bf16 %v15641_v30  ;;  %v15642_v62 = vld [vmem:[#allocation141_spill] sm:$0xff]  ;;  %v6887_v14 = vunpack.c.l.bf16 %v15641_v30 }
0x140b   :  { %7475 = vmatprep.subr.mxu0 %v7122_v7  ;;  %7399 = vmatpush2.msra.mxu1 %v6929_v2  ;;  %v7080_v28 = vunpack.c.h.bf16 %v15642_v62  ;;  %v7079_v0 = vunpack.c.l.bf16 %v15642_v62  ;;  %v15643_v7 = vld [vmem:[#allocation48_spill] sm:$0xff]  ;;  %v15656_v30 = vld [vmem:[#allocation213_spill] sm:$0xff] }
0x140c   :  { %7476 = vmatpush2.msra.mxu0 %v7121_v52  ;;  %7400 = vmatprep.subr.mxu1 %v6924_v32  ;;  %v6882_v2 = vunpack.c.h.bf16 %v15643_v7  ;;  %v15644_v52 = vld [vmem:[#allocation138_spill] sm:$0xff]  ;;  %v6881_v32 = vunpack.c.l.bf16 %v15643_v7  ;;  %v15657_v62 = vld [vmem:[#allocation36_spill] sm:$0xff] }
0x140d   :  { %7477 = vmatprep.subr.mxu0 %v7116_v9  ;;  %7401 = vmatpush2.msra.mxu1 %v6923_v6  ;;  %v7074_v44 = vunpack.c.h.bf16 %v15644_v52  ;;  %v7073_v60 = vunpack.c.l.bf16 %v15644_v52  ;;  %v15645_v9 = vld [vmem:[#allocation231_spill] sm:$0xff]  ;;  %v15658_v7 = vld [vmem:[#allocation210_spill] sm:$0xff] }
0x140e   :  { %7478 = vmatpush2.msra.mxu0 %v7115_v20  ;;  %7402 = vmatprep.subr.mxu1 %v6918_v55  ;;  %v7260_v6 = vunpack.c.h.bf16 %v15645_v9  ;;  %v7259_v20 = vunpack.c.l.bf16 %v15645_v9  ;;  %v7254_v55 = vunpack.c.h.bf16 %v15646_v54  ;;  %v15659_v52 = vld [vmem:[#allocation34_spill] sm:$0xff]  ;;  %v15660_v9 = vld [vmem:[#allocation207_spill] sm:$0xff] }
0x140f   :  { %7479 = vmatprep.subr.mxu0 %v7110_v12  ;;  %7403 = vmatpush2.msra.mxu1 %v6917_v45  ;;  %v6878_v12 = vunpack.c.h.bf16 %v15647_v51  ;;  %v7253_v45 = vunpack.c.l.bf16 %v15646_v54 }
0x1410   :  { %7480 = vmatpush2.msra.mxu0 %v7109_v50  ;;  %7404 = vmatprep.subr.mxu1 %v6912_v31  ;;  %v6877_v50 = vunpack.c.l.bf16 %v15647_v51  ;;  %v7248_v31 = vunpack.c.h.bf16 %v15648_v4 }
0x1411   :  { %7481 = vmatprep.subr.mxu0 %v7104_v41  ;;  %7405 = vmatpush2.msra.mxu1 %v6911_v42  ;;  %v6872_v41 = vunpack.c.h.bf16 %v15649_v57  ;;  %v7247_v42 = vunpack.c.l.bf16 %v15648_v4 }
0x1412   :  { %7482 = vmatpush2.msra.mxu0 %v7103_v47  ;;  %7406 = vmatprep.subr.mxu1 %v6906_v49  ;;  %v6871_v47 = vunpack.c.l.bf16 %v15649_v57  ;;  %v7242_v49 = vunpack.c.h.bf16 %v15650_v35 }
0x1413   :  { %7483 = vmatprep.subr.mxu0 %v7098_v29  ;;  %7407 = vmatpush2.msra.mxu1 %v6905_v48  ;;  %v6866_v29 = vunpack.c.h.bf16 %v15651_v39  ;;  %v7241_v48 = vunpack.c.l.bf16 %v15650_v35 }
0x1414   :  { %7484 = vmatpush2.msra.mxu0 %v7097_v34  ;;  %7408 = vmatprep.subr.mxu1 %v6900_v23  ;;  %v6865_v34 = vunpack.c.l.bf16 %v15651_v39  ;;  %v7236_v23 = vunpack.c.h.bf16 %v15652_v36 }
0x1415   :  { %7485 = vmatprep.subr.mxu0 %v7092_v5  ;;  %7409 = vmatpush2.msra.mxu1 %v6899_v16  ;;  %v6860_v5 = vunpack.c.h.bf16 %v15653_v37  ;;  %v7235_v16 = vunpack.c.l.bf16 %v15652_v36 }
0x1416   :  { %7486 = vmatpush2.msra.mxu0 %v7091_v43  ;;  %7410 = vmatprep.subr.mxu1 %v6894_v17  ;;  %v6859_v43 = vunpack.c.l.bf16 %v15653_v37  ;;  %v7230_v17 = vunpack.c.h.bf16 %v15654_v33 }
0x1417   :  { %7487 = vmatprep.subr.mxu0 %v7086_v24  ;;  %7411 = vmatpush2.msra.mxu1 %v6893_v59  ;;  %v6854_v24 = vunpack.c.h.bf16 %v15655_v21  ;;  %v7229_v59 = vunpack.c.l.bf16 %v15654_v33 }
0x1418   :  { %7488 = vmatpush2.msra.mxu0 %v7085_v27  ;;  %7412 = vmatprep.subr.mxu1 %v6888_v11  ;;  %v6853_v27 = vunpack.c.l.bf16 %v15655_v21  ;;  %v7224_v11 = vunpack.c.h.bf16 %v15656_v30 }
0x1419   :  { %7489 = vmatprep.subr.mxu0 %v7080_v28  ;;  %7413 = vmatpush2.msra.mxu1 %v6887_v14  ;;  %v6848_v28 = vunpack.c.h.bf16 %v15657_v62  ;;  %v7223_v14 = vunpack.c.l.bf16 %v15656_v30 }
0x141a   :  { %7490 = vmatpush2.msra.mxu0 %v7079_v0  ;;  %7414 = vmatprep.subr.mxu1 %v6882_v2  ;;  %v6847_v0 = vunpack.c.l.bf16 %v15657_v62  ;;  %v7218_v2 = vunpack.c.h.bf16 %v15658_v7 }
0x141b   :  { %7491 = vmatprep.subr.mxu0 %v7074_v44  ;;  %7415 = vmatpush2.msra.mxu1 %v6881_v32  ;;  %v6842_v44 = vunpack.c.h.bf16 %v15659_v52  ;;  %v7217_v32 = vunpack.c.l.bf16 %v15658_v7 }
0x141c   :  { %7492 = vmatpush2.msra.mxu0 %v7073_v60  ;;  %7417 = vmatmul.mubr.f32.vlgmr.msra.gmra.mxu1 %v14134_v18  ;;  %v6841_v60 = vunpack.c.l.bf16 %v15659_v52 }
0x141d   :  { %7506 = vmatprep.subr.mxu1 %v7260_v6  ;;  %7494 = vmatmul.mubr.f32.vlgmr.msra.gmra.mxu0 %v14136_v40  ;;  %v7212_v6 = vunpack.c.h.bf16 %v15660_v9 }
0x141e   :  { %7507 = vmatpush1.msra.mxu1 %v7259_v20  ;;  %7583 = vmatprep.subr.mxu0 %v6878_v12  ;;  %v15661_v20 = vld [vmem:[#allocation31_spill] sm:$0xff]  ;;  %v15662_v12 = vld [vmem:[#allocation204_spill] sm:$0xff] }
0x141f   :  { %7508 = vmatprep.subr.mxu1 %v7254_v55  ;;  %7584 = vmatpush1.msra.mxu0 %v6877_v50  ;;  %v6836_v54 = vunpack.c.h.bf16 %v15661_v20  ;;  %v7211_v55 = vunpack.c.l.bf16 %v15660_v9  ;;  %v6835_v51 = vunpack.c.l.bf16 %v15661_v20  ;;  %v15663_v50 = vld [vmem:[#allocation28_spill] sm:$0xff] }
0x1420   :  { %7509 = vmatpush1.msra.mxu1 %v7253_v45  ;;  %7585 = vmatprep.subr.mxu0 %v6872_v41  ;;  %v7206_v45 = vunpack.c.h.bf16 %v15662_v12  ;;  %v6830_v4 = vunpack.c.h.bf16 %v15663_v50  ;;  %v6829_v57 = vunpack.c.l.bf16 %v15663_v50  ;;  %v15664_v41 = vld [vmem:[#allocation201_spill] sm:$0xff] }
0x1421   :  { %7510 = vmatprep.subr.mxu1 %v7248_v31  ;;  %7586 = vmatpush1.msra.mxu0 %v6871_v47  ;;  %v7205_v31 = vunpack.c.l.bf16 %v15662_v12  ;;  %v15665_v47 = vld [vmem:[#allocation25_spill] sm:$0xff] }
0x1422   :  { %7511 = vmatpush1.msra.mxu1 %v7247_v42  ;;  %7587 = vmatprep.subr.mxu0 %v6866_v29  ;;  %v7200_v42 = vunpack.c.h.bf16 %v15664_v41  ;;  %v6824_v35 = vunpack.c.h.bf16 %v15665_v47  ;;  %v6823_v39 = vunpack.c.l.bf16 %v15665_v47  ;;  %v15666_v29 = vld [vmem:[#allocation198_spill] sm:$0xff] }
0x1423   :  { %7512 = vmatprep.subr.mxu1 %v7242_v49  ;;  %7588 = vmatpush1.msra.mxu0 %v6865_v34  ;;  %v7199_v49 = vunpack.c.l.bf16 %v15664_v41  ;;  %v15667_v34 = vld [vmem:[#allocation22_spill] sm:$0xff] }
0x1424   :  { %7513 = vmatpush1.msra.mxu1 %v7241_v48  ;;  %7589 = vmatprep.subr.mxu0 %v6860_v5  ;;  %v7194_v48 = vunpack.c.h.bf16 %v15666_v29  ;;  %v6818_v36 = vunpack.c.h.bf16 %v15667_v34  ;;  %v6817_v37 = vunpack.c.l.bf16 %v15667_v34  ;;  %v15668_v5 = vld [vmem:[#allocation195_spill] sm:$0xff] }
0x1425   :  { %7514 = vmatprep.subr.mxu1 %v7236_v23  ;;  %7590 = vmatpush1.msra.mxu0 %v6859_v43  ;;  %v7193_v23 = vunpack.c.l.bf16 %v15666_v29  ;;  %v15669_v43 = vld [vmem:[#allocation19_spill] sm:$0xff] }
0x1426   :  { %7515 = vmatpush1.msra.mxu1 %v7235_v16  ;;  %7591 = vmatprep.subr.mxu0 %v6854_v24  ;;  %v7188_v16 = vunpack.c.h.bf16 %v15668_v5  ;;  %v6812_v33 = vunpack.c.h.bf16 %v15669_v43  ;;  %v6811_v21 = vunpack.c.l.bf16 %v15669_v43  ;;  %v15670_v24 = vld [vmem:[#allocation192_spill] sm:$0xff] }
0x1427   :  { %7516 = vmatprep.subr.mxu1 %v7230_v17  ;;  %7592 = vmatpush1.msra.mxu0 %v6853_v27  ;;  %v7187_v17 = vunpack.c.l.bf16 %v15668_v5  ;;  %v15671_v27 = vld [vmem:[#allocation16_spill] sm:$0xff] }
0x1428   :  { %7517 = vmatpush1.msra.mxu1 %v7229_v59  ;;  %7593 = vmatprep.subr.mxu0 %v6848_v28  ;;  %v7182_v59 = vunpack.c.h.bf16 %v15670_v24  ;;  %v6806_v30 = vunpack.c.h.bf16 %v15671_v27  ;;  %v6805_v62 = vunpack.c.l.bf16 %v15671_v27  ;;  %v15672_v28 = vld [vmem:[#allocation189_spill] sm:$0xff] }
0x1429   :  { %7518 = vmatprep.subr.mxu1 %v7224_v11  ;;  %7594 = vmatpush1.msra.mxu0 %v6847_v0  ;;  %v7181_v11 = vunpack.c.l.bf16 %v15670_v24  ;;  %v15673_v0 = vld [vmem:[#allocation13_spill] sm:$0xff] }
0x142a   :  { %7519 = vmatpush1.msra.mxu1 %v7223_v14  ;;  %7595 = vmatprep.subr.mxu0 %v6842_v44  ;;  %v7176_v14 = vunpack.c.h.bf16 %v15672_v28  ;;  %v6800_v7 = vunpack.c.h.bf16 %v15673_v0  ;;  %v6799_v52 = vunpack.c.l.bf16 %v15673_v0  ;;  %v15674_v44 = vld [vmem:[#allocation186_spill] sm:$0xff] }
0x142b   :  { %7520 = vmatprep.subr.mxu1 %v7218_v2  ;;  %7596 = vmatpush1.msra.mxu0 %v6841_v60  ;;  %v7175_v2 = vunpack.c.l.bf16 %v15672_v28  ;;  %v15675_v60 = vld [vmem:[#allocation10_spill] sm:$0xff] }
0x142c   :  { %7521 = vmatpush1.msra.mxu1 %v7217_v32  ;;  %7597 = vmatprep.subr.mxu0 %v6836_v54  ;;  %v7170_v32 = vunpack.c.h.bf16 %v15674_v44  ;;  %v6794_v9 = vunpack.c.h.bf16 %v15675_v60  ;;  %v6793_v20 = vunpack.c.l.bf16 %v15675_v60  ;;  %v15676_v54 = vld [vmem:[#allocation255_spill] sm:$0xff] }
0x142d   :  { %7522 = vmatprep.subr.mxu1 %v7212_v6  ;;  %7598 = vmatpush1.msra.mxu0 %v6835_v51  ;;  %v7169_v6 = vunpack.c.l.bf16 %v15674_v44  ;;  %v15677_v51 = vld [vmem:[#allocation7_spill] sm:$0xff] }
0x142e   :  { %7523 = vmatpush1.msra.mxu1 %v7211_v55  ;;  %7599 = vmatprep.subr.mxu0 %v6830_v4  ;;  %v7308_v55 = vunpack.c.h.bf16 %v15676_v54  ;;  %v6788_v12 = vunpack.c.h.bf16 %v15677_v51  ;;  %v6787_v50 = vunpack.c.l.bf16 %v15677_v51  ;;  %v15678_v4 = vld [vmem:[#allocation252_spill] sm:$0xff] }
0x142f   :  { %7524 = vmatprep.subr.mxu1 %v7206_v45  ;;  %7600 = vmatpush1.msra.mxu0 %v6829_v57  ;;  %v7307_v45 = vunpack.c.l.bf16 %v15676_v54  ;;  %v15679_v57 = vld [vmem:[#allocation94_spill] sm:$0xff] }
0x1430   :  { %7525 = vmatpush1.msra.mxu1 %v7205_v31  ;;  %7601 = vmatprep.subr.mxu0 %v6824_v35  ;;  %v7302_v31 = vunpack.c.h.bf16 %v15678_v4  ;;  %v6974_v41 = vunpack.c.h.bf16 %v15679_v57  ;;  %v6973_v47 = vunpack.c.l.bf16 %v15679_v57  ;;  %v15680_v35 = vld [vmem:[#allocation249_spill] sm:$0xff] }
0x1431   :  { %7526 = vmatprep.subr.mxu1 %v7200_v42  ;;  %7602 = vmatpush1.msra.mxu0 %v6823_v39  ;;  %v7301_v42 = vunpack.c.l.bf16 %v15678_v4  ;;  %v15681_v39 = vld [vmem:[#allocation91_spill] sm:$0xff] }
0x1432   :  { %7527 = vmatpush1.msra.mxu1 %v7199_v49  ;;  %7603 = vmatprep.subr.mxu0 %v6818_v36  ;;  %v7296_v49 = vunpack.c.h.bf16 %v15680_v35  ;;  %v6968_v29 = vunpack.c.h.bf16 %v15681_v39  ;;  %v6967_v34 = vunpack.c.l.bf16 %v15681_v39  ;;  %v15682_v36 = vld [vmem:[#allocation246_spill] sm:$0xff] }
0x1433   :  { %7528 = vmatprep.subr.mxu1 %v7194_v48  ;;  %7604 = vmatpush1.msra.mxu0 %v6817_v37  ;;  %v7295_v48 = vunpack.c.l.bf16 %v15680_v35  ;;  %v15683_v37 = vld [vmem:[#allocation88_spill] sm:$0xff] }
0x1434   :  { %7529 = vmatpush1.msra.mxu1 %v7193_v23  ;;  %7605 = vmatprep.subr.mxu0 %v6812_v33  ;;  %v7290_v23 = vunpack.c.h.bf16 %v15682_v36  ;;  %v6962_v5 = vunpack.c.h.bf16 %v15683_v37  ;;  %v6961_v43 = vunpack.c.l.bf16 %v15683_v37  ;;  %v15684_v33 = vld [vmem:[#allocation243_spill] sm:$0xff] }
0x1435   :  { %7530 = vmatprep.subr.mxu1 %v7188_v16  ;;  %7606 = vmatpush1.msra.mxu0 %v6811_v21  ;;  %v7289_v16 = vunpack.c.l.bf16 %v15682_v36  ;;  %v15685_v21 = vld [vmem:[#allocation85_spill] sm:$0xff] }
0x1436   :  { %7531 = vmatpush1.msra.mxu1 %v7187_v17  ;;  %7607 = vmatprep.subr.mxu0 %v6806_v30  ;;  %v7284_v17 = vunpack.c.h.bf16 %v15684_v33  ;;  %v6956_v24 = vunpack.c.h.bf16 %v15685_v21  ;;  %v6955_v27 = vunpack.c.l.bf16 %v15685_v21  ;;  %v15686_v30 = vld [vmem:[#allocation240_spill] sm:$0xff] }
0x1437   :  { %7532 = vmatprep.subr.mxu1 %v7182_v59  ;;  %7608 = vmatpush1.msra.mxu0 %v6805_v62  ;;  %v7283_v59 = vunpack.c.l.bf16 %v15684_v33  ;;  %v15687_v62 = vld [vmem:[#allocation82_spill] sm:$0xff] }
0x1438   :  { %7533 = vmatpush1.msra.mxu1 %v7181_v11  ;;  %7609 = vmatprep.subr.mxu0 %v6800_v7  ;;  %v7278_v11 = vunpack.c.h.bf16 %v15686_v30  ;;  %v6950_v28 = vunpack.c.h.bf16 %v15687_v62  ;;  %v6949_v0 = vunpack.c.l.bf16 %v15687_v62  ;;  %v15688_v7 = vld [vmem:[#allocation237_spill] sm:$0xff] }
0x1439   :  { %7534 = vmatprep.subr.mxu1 %v7176_v14  ;;  %7610 = vmatpush1.msra.mxu0 %v6799_v52  ;;  %v7277_v14 = vunpack.c.l.bf16 %v15686_v30  ;;  %v15689_v52 = vld [vmem:[#allocation79_spill] sm:$0xff] }
0x143a   :  { %7535 = vmatpush1.msra.mxu1 %v7175_v2  ;;  %7611 = vmatprep.subr.mxu0 %v6794_v9  ;;  %v7272_v2 = vunpack.c.h.bf16 %v15688_v7  ;;  %v6944_v44 = vunpack.c.h.bf16 %v15689_v52  ;;  %v6943_v60 = vunpack.c.l.bf16 %v15689_v52  ;;  %v15690_v9 = vld [vmem:[#allocation234_spill] sm:$0xff] }
0x143b   :  { %7536 = vmatprep.subr.mxu1 %v7170_v32  ;;  %7612 = vmatpush1.msra.mxu0 %v6793_v20  ;;  %v7271_v32 = vunpack.c.l.bf16 %v15688_v7  ;;  %v15691_v20 = vld [vmem:[#allocation76_spill] sm:$0xff] }
0x143c   :  { %7537 = vmatpush1.msra.mxu1 %v7169_v6  ;;  %7613 = vmatprep.subr.mxu0 %v6788_v12  ;;  %v7266_v6 = vunpack.c.h.bf16 %v15690_v9  ;;  %v6938_v54 = vunpack.c.h.bf16 %v15691_v20  ;;  %v6937_v51 = vunpack.c.l.bf16 %v15691_v20  ;;  %v15692_v12 = vld [vmem:[#allocation73_spill] sm:$0xff] }
0x143d   :  { %7554 = vmatprep.subr.mxu1 %v7308_v55  ;;  %7614 = vmatpush1.msra.mxu0 %v6787_v50  ;;  %v7265_v55 = vunpack.c.l.bf16 %v15690_v9  ;;  %v15693_v50 = vld [vmem:[#allocation136_spill] sm:$0xff] }
0x143e   :  { %7555 = vmatpush2.msra.mxu1 %v7307_v45  ;;  %7615 = vmatprep.subr.mxu0 %v6974_v41  ;;  %v6932_v45 = vunpack.c.h.bf16 %v15692_v12  ;;  %v7070_v4 = vunpack.c.h.bf16 %v15693_v50  ;;  %v7069_v57 = vunpack.c.l.bf16 %v15693_v50  ;;  %v15694_v41 = vld [vmem:[#allocation70_spill] sm:$0xff] }
0x143f   :  { %7556 = vmatprep.subr.mxu1 %v7302_v31  ;;  %7616 = vmatpush2.msra.mxu0 %v6973_v47  ;;  %v6931_v31 = vunpack.c.l.bf16 %v15692_v12  ;;  %v15695_v47 = vld [vmem:[#allocation134_spill] sm:$0xff] }
0x1440   :  { %7557 = vmatpush2.msra.mxu1 %v7301_v42  ;;  %7617 = vmatprep.subr.mxu0 %v6968_v29  ;;  %v6926_v42 = vunpack.c.h.bf16 %v15694_v41  ;;  %v7064_v35 = vunpack.c.h.bf16 %v15695_v47  ;;  %v7063_v39 = vunpack.c.l.bf16 %v15695_v47  ;;  %v15696_v29 = vld [vmem:[#allocation67_spill] sm:$0xff] }
0x1441   :  { %7558 = vmatprep.subr.mxu1 %v7296_v49  ;;  %7618 = vmatpush2.msra.mxu0 %v6967_v34  ;;  %v6925_v49 = vunpack.c.l.bf16 %v15694_v41  ;;  %v15697_v34 = vld [vmem:[#allocation132_spill] sm:$0xff] }
0x1442   :  { %7559 = vmatpush2.msra.mxu1 %v7295_v48  ;;  %7619 = vmatprep.subr.mxu0 %v6962_v5  ;;  %v6920_v48 = vunpack.c.h.bf16 %v15696_v29  ;;  %v7058_v36 = vunpack.c.h.bf16 %v15697_v34  ;;  %v7057_v37 = vunpack.c.l.bf16 %v15697_v34  ;;  %v15698_v5 = vld [vmem:[#allocation64_spill] sm:$0xff] }
0x1443   :  { %7560 = vmatprep.subr.mxu1 %v7290_v23  ;;  %7620 = vmatpush2.msra.mxu0 %v6961_v43  ;;  %v6919_v23 = vunpack.c.l.bf16 %v15696_v29  ;;  %v15699_v43 = vld [vmem:[#allocation130_spill] sm:$0xff] }
0x1444   :  { %7561 = vmatpush2.msra.mxu1 %v7289_v16  ;;  %7621 = vmatprep.subr.mxu0 %v6956_v24  ;;  %v6914_v16 = vunpack.c.h.bf16 %v15698_v5  ;;  %v7052_v33 = vunpack.c.h.bf16 %v15699_v43  ;;  %v7051_v21 = vunpack.c.l.bf16 %v15699_v43  ;;  %v15700_v24 = vld [vmem:[#allocation61_spill] sm:$0xff] }
0x1445   :  { %7562 = vmatprep.subr.mxu1 %v7284_v17  ;;  %7622 = vmatpush2.msra.mxu0 %v6955_v27  ;;  %v6913_v17 = vunpack.c.l.bf16 %v15698_v5  ;;  %v15701_v27 = vld [vmem:[#allocation128_spill] sm:$0xff] }
0x1446   :  { %7563 = vmatpush2.msra.mxu1 %v7283_v59  ;;  %7422 = vmatprep.mubr.f32.mxu1 %v14148_v15  ;;  %v6908_v59 = vunpack.c.h.bf16 %v15700_v24  ;;  %v7046_v30 = vunpack.c.h.bf16 %v15701_v27  ;;  %v7045_v62 = vunpack.c.l.bf16 %v15701_v27 }
0x1447   :  { %7564 = vmatprep.subr.mxu1 %v7278_v11  ;;  %7623 = vmatprep.subr.mxu0 %v6950_v28  ;;  %v6907_v11 = vunpack.c.l.bf16 %v15700_v24  ;;  %v15702_v28 = vld [vmem:[#allocation58_spill] sm:$0xff] }
0x1448   :  { %7423 = vmatmul.mubr.f32.gmra.mxu1 %v14143_v58  ;;  %7624 = vmatpush2.msra.mxu0 %v6949_v0  ;;  %v15703_v0 = vld [vmem:[#allocation126_spill] sm:$0xff] }
0x1449   :  { %7565 = vmatpush2.msra.mxu1 %v7277_v14  ;;  %7499 = vmatprep.mubr.f32.mxu0 %v14150_v53  ;;  %v6902_v14 = vunpack.c.h.bf16 %v15702_v28  ;;  %v7040_v7 = vunpack.c.h.bf16 %v15703_v0  ;;  %v7039_v52 = vunpack.c.l.bf16 %v15703_v0 }
0x144a   :  { %7566 = vmatprep.subr.mxu1 %v7272_v2  ;;  %7625 = vmatprep.subr.mxu0 %v6944_v44  ;;  %v6901_v2 = vunpack.c.l.bf16 %v15702_v28  ;;  %v15704_v44 = vld [vmem:[#allocation55_spill] sm:$0xff] }
0x144b   :  { %7500 = vmatmul.mubr.f32.gmra.mxu0 %v14146_v19  ;;  %7567 = vmatpush2.msra.mxu1 %v7271_v32  ;;  %v6896_v32 = vunpack.c.h.bf16 %v15704_v44 }
0x144c   :  { %7626 = vmatpush2.msra.mxu0 %v6943_v60  ;;  %7568 = vmatprep.subr.mxu1 %v7266_v6  ;;  %v15705_v60 = vld [vmem:[#allocation124_spill] sm:$0xff]  ;;  %v6895_v6 = vunpack.c.l.bf16 %v15704_v44 }
0x144d   :  { %7627 = vmatprep.subr.mxu0 %v6938_v54  ;;  %7569 = vmatpush2.msra.mxu1 %v7265_v55  ;;  %v7034_v9 = vunpack.c.h.bf16 %v15705_v60  ;;  %v7033_v20 = vunpack.c.l.bf16 %v15705_v60  ;;  %v15706_v54 = vld [vmem:[#allocation52_spill] sm:$0xff] }
0x144e   :  { %8795 = vmatprep.mubr.msk.f32.mxu1 %vm7345_vm3, %v14154_v61  ;;  %7628 = vmatpush2.msra.mxu0 %v6937_v51  ;;  %v6890_v55 = vunpack.c.h.bf16 %v15706_v54  ;;  %v15707_v51 = vld [vmem:[#allocation121_spill] sm:$0xff] }
0x144f   :  { %7571 = vmatmul.mubr.f32.vlgmr.msra.gmra.mxu1 %v14152_v1  ;;  %7629 = vmatprep.subr.mxu0 %v6932_v45  ;;  %v7028_v12 = vunpack.c.h.bf16 %v15707_v51  ;;  %v6889_v45 = vunpack.c.l.bf16 %v15706_v54  ;;  %v7027_v50 = vunpack.c.l.bf16 %v15707_v51 }
0x1450   :  { %7660 = vmatprep.subr.mxu1 %v7070_v4  ;;  %7630 = vmatpush2.msra.mxu0 %v6931_v31  ;;  %v15708_v4 = vld [vmem:[#allocation49_spill] sm:$0xff] }
0x1451   :  { %7661 = vmatpush1.msra.mxu1 %v7069_v57  ;;  %7631 = vmatprep.subr.mxu0 %v6926_v42  ;;  %v6884_v31 = vunpack.c.h.bf16 %v15708_v4  ;;  %v15709_v57 = vld [vmem:[#allocation118_spill] sm:$0xff]  ;;  %v6883_v42 = vunpack.c.l.bf16 %v15708_v4 }
0x1452   :  { %7662 = vmatprep.subr.mxu1 %v7064_v35  ;;  %8796 = vmatprep.mubr.msk.f32.mxu1 %vm7345_vm3, %v14158_v3  ;;  %v7022_v41 = vunpack.c.h.bf16 %v15709_v57  ;;  %v7021_v47 = vunpack.c.l.bf16 %v15709_v57  ;;  %v15710_v35 = vld [vmem:[#allocation115_spill] sm:$0xff] }
0x1453   :  { %7632 = vmatpush2.msra.mxu0 %v6925_v49  ;;  %7663 = vmatpush1.msra.mxu1 %v7063_v39  ;;  %v7016_v49 = vunpack.c.h.bf16 %v15710_v35  ;;  %v15711_v39 = vld [vmem:[#allocation232_spill] sm:$0xff] }
0x1454   :  { %7633 = vmatprep.subr.mxu0 %v6920_v48  ;;  %7577 = vmatmul.mubr.f32.gmra.mxu1 %v14156_v13  ;;  %v7262_v29 = vunpack.c.h.bf16 %v15711_v39  ;;  %v7015_v48 = vunpack.c.l.bf16 %v15710_v35  ;;  %v7261_v34 = vunpack.c.l.bf16 %v15711_v39 }
0x1455   :  { %7664 = vmatprep.subr.mxu1 %v7058_v36  ;;  %7634 = vmatpush2.msra.mxu0 %v6919_v23  ;;  %v15712_v36 = vld [vmem:[#allocation112_spill] sm:$0xff] }
0x1456   :  { %7665 = vmatpush1.msra.mxu1 %v7057_v37  ;;  %7635 = vmatprep.subr.mxu0 %v6914_v16  ;;  %v7010_v23 = vunpack.c.h.bf16 %v15712_v36  ;;  %v15713_v37 = vld [vmem:[#allocation229_spill] sm:$0xff]  ;;  %v7009_v16 = vunpack.c.l.bf16 %v15712_v36 }
0x1457   :  { %7666 = vmatprep.subr.mxu1 %v7052_v33  ;;  %7636 = vmatpush2.msra.mxu0 %v6913_v17  ;;  %v7256_v5 = vunpack.c.h.bf16 %v15713_v37  ;;  %v7255_v43 = vunpack.c.l.bf16 %v15713_v37  ;;  %v15714_v33 = vld [vmem:[#allocation109_spill] sm:$0xff] }
0x1458   :  { %7667 = vmatpush1.msra.mxu1 %v7051_v21  ;;  %7637 = vmatprep.subr.mxu0 %v6908_v59  ;;  %v7004_v17 = vunpack.c.h.bf16 %v15714_v33  ;;  %v15715_v21 = vld [vmem:[#allocation226_spill] sm:$0xff]  ;;  %v7003_v59 = vunpack.c.l.bf16 %v15714_v33 }
0x1459   :  { %7668 = vmatprep.subr.mxu1 %v7046_v30  ;;  %7638 = vmatpush2.msra.mxu0 %v6907_v11  ;;  %v7250_v24 = vunpack.c.h.bf16 %v15715_v21  ;;  %v7249_v27 = vunpack.c.l.bf16 %v15715_v21  ;;  %v15716_v30 = vld [vmem:[#allocation106_spill] sm:$0xff] }
0x145a   :  { %7669 = vmatpush1.msra.mxu1 %v7045_v62  ;;  %7639 = vmatprep.subr.mxu0 %v6902_v14  ;;  %v6998_v11 = vunpack.c.h.bf16 %v15716_v30  ;;  %v15717_v62 = vld [vmem:[#allocation223_spill] sm:$0xff]  ;;  %v6997_v14 = vunpack.c.l.bf16 %v15716_v30 }
0x145b   :  { %7670 = vmatprep.subr.mxu1 %v7040_v7  ;;  %7640 = vmatpush2.msra.mxu0 %v6901_v2  ;;  %v7244_v28 = vunpack.c.h.bf16 %v15717_v62  ;;  %v7243_v0 = vunpack.c.l.bf16 %v15717_v62  ;;  %v15718_v7 = vld [vmem:[#allocation103_spill] sm:$0xff] }
0x145c   :  { %7671 = vmatpush1.msra.mxu1 %v7039_v52  ;;  %7641 = vmatprep.subr.mxu0 %v6896_v32  ;;  %v6992_v2 = vunpack.c.h.bf16 %v15718_v7  ;;  %v15719_v52 = vld [vmem:[#allocation220_spill] sm:$0xff]  ;;  %v6991_v32 = vunpack.c.l.bf16 %v15718_v7 }
0x145d   :  { %7672 = vmatprep.subr.mxu1 %v7034_v9  ;;  %7642 = vmatpush2.msra.mxu0 %v6895_v6  ;;  %v7238_v44 = vunpack.c.h.bf16 %v15719_v52  ;;  %v7237_v60 = vunpack.c.l.bf16 %v15719_v52  ;;  %v15720_v9 = vld [vmem:[#allocation100_spill] sm:$0xff] }
0x145e   :  { %7673 = vmatpush1.msra.mxu1 %v7033_v20  ;;  %7643 = vmatprep.subr.mxu0 %v6890_v55  ;;  %v6986_v6 = vunpack.c.h.bf16 %v15720_v9  ;;  %v15721_v20 = vld [vmem:[#allocation217_spill] sm:$0xff]  ;;  %v6985_v55 = vunpack.c.l.bf16 %v15720_v9 }
0x145f   :  { %7674 = vmatprep.subr.mxu1 %v7028_v12  ;;  %7644 = vmatpush2.msra.mxu0 %v6889_v45  ;;  %v7232_v54 = vunpack.c.h.bf16 %v15721_v20  ;;  %v7231_v51 = vunpack.c.l.bf16 %v15721_v20  ;;  %v15722_v12 = vld [vmem:[#allocation97_spill] sm:$0xff] }
0x1460   :  { %7675 = vmatpush1.msra.mxu1 %v7027_v50  ;;  %7645 = vmatprep.subr.mxu0 %v6884_v31  ;;  %v6980_v45 = vunpack.c.h.bf16 %v15722_v12  ;;  %v15723_v50 = vld [vmem:[#allocation214_spill] sm:$0xff]  ;;  %v6979_v31 = vunpack.c.l.bf16 %v15722_v12 }
0x1461   :  { %7676 = vmatprep.subr.mxu1 %v7022_v41  ;;  %7646 = vmatpush2.msra.mxu0 %v6883_v42  ;;  %v7226_v4 = vunpack.c.h.bf16 %v15723_v50  ;;  %v7225_v57 = vunpack.c.l.bf16 %v15723_v50  ;;  %v15724_v41 = vld [vmem:[#allocation184_spill] sm:$0xff] }
0x1462   :  { %7677 = vmatpush1.msra.mxu1 %v7021_v47  ;;  %7647 = vmatprep.mubr.f32.mxu0 %v14138_v38  ;;  %v7166_v42 = vunpack.c.h.bf16 %v15724_v41  ;;  %v15725_v47 = vld [vmem:[#allocation211_spill] sm:$0xff] }
0x1463   :  { %7678 = vmatprep.subr.mxu1 %v7016_v49  ;;  %7737 = vmatprep.subr.mxu0 %v7262_v29  ;;  %v7220_v35 = vunpack.c.h.bf16 %v15725_v47  ;;  %v7165_v49 = vunpack.c.l.bf16 %v15724_v41  ;;  %v7219_v39 = vunpack.c.l.bf16 %v15725_v47  ;;  %v15726_v29 = vld [vmem:[#allocation181_spill] sm:$0xff] }
0x1464   :  { %7648 = vmatmul.mubr.f32.vlgmr.msra.gmra.mxu0 %v14134_v18  ;;  %7679 = vmatpush1.msra.mxu1 %v7015_v48  ;;  %v7160_v48 = vunpack.c.h.bf16 %v15726_v29 }
0x1465   :  { %7738 = vmatpush1.msra.mxu0 %v7261_v34  ;;  %7680 = vmatprep.subr.mxu1 %v7010_v23  ;;  %v15727_v34 = vld [vmem:[#allocation208_spill] sm:$0xff]  ;;  %v7159_v23 = vunpack.c.l.bf16 %v15726_v29 }
0x1466   :  { %7739 = vmatprep.subr.mxu0 %v7256_v5  ;;  %7681 = vmatpush1.msra.mxu1 %v7009_v16  ;;  %v7214_v36 = vunpack.c.h.bf16 %v15727_v34  ;;  %v7213_v37 = vunpack.c.l.bf16 %v15727_v34  ;;  %v15728_v5 = vld [vmem:[#allocation178_spill] sm:$0xff] }
0x1467   :  { %7740 = vmatpush1.msra.mxu0 %v7255_v43  ;;  %7682 = vmatprep.subr.mxu1 %v7004_v17  ;;  %v7154_v16 = vunpack.c.h.bf16 %v15728_v5  ;;  %v15729_v43 = vld [vmem:[#allocation205_spill] sm:$0xff]  ;;  %v7153_v17 = vunpack.c.l.bf16 %v15728_v5 }
0x1468   :  { %7741 = vmatprep.subr.mxu0 %v7250_v24  ;;  %7683 = vmatpush1.msra.mxu1 %v7003_v59  ;;  %v7208_v33 = vunpack.c.h.bf16 %v15729_v43  ;;  %v7207_v21 = vunpack.c.l.bf16 %v15729_v43  ;;  %v15730_v24 = vld [vmem:[#allocation175_spill] sm:$0xff] }
0x1469   :  { %7742 = vmatpush1.msra.mxu0 %v7249_v27  ;;  %7684 = vmatprep.subr.mxu1 %v6998_v11  ;;  %v7148_v59 = vunpack.c.h.bf16 %v15730_v24  ;;  %v15731_v27 = vld [vmem:[#allocation202_spill] sm:$0xff]  ;;  %v7147_v11 = vunpack.c.l.bf16 %v15730_v24 }
0x146a   :  { %7743 = vmatprep.subr.mxu0 %v7244_v28  ;;  %7685 = vmatpush1.msra.mxu1 %v6997_v14  ;;  %v7202_v30 = vunpack.c.h.bf16 %v15731_v27  ;;  %v7201_v62 = vunpack.c.l.bf16 %v15731_v27  ;;  %v15732_v28 = vld [vmem:[#allocation172_spill] sm:$0xff] }
0x146b   :  { %7744 = vmatpush1.msra.mxu0 %v7243_v0  ;;  %7686 = vmatprep.subr.mxu1 %v6992_v2  ;;  %v7142_v14 = vunpack.c.h.bf16 %v15732_v28  ;;  %v15733_v0 = vld [vmem:[#allocation199_spill] sm:$0xff]  ;;  %v7141_v2 = vunpack.c.l.bf16 %v15732_v28 }
0x146c   :  { %7745 = vmatprep.subr.mxu0 %v7238_v44  ;;  %7687 = vmatpush1.msra.mxu1 %v6991_v32  ;;  %v7196_v7 = vunpack.c.h.bf16 %v15733_v0  ;;  %v7195_v52 = vunpack.c.l.bf16 %v15733_v0  ;;  %v15734_v44 = vld [vmem:[#allocation169_spill] sm:$0xff] }
0x146d   :  { %7746 = vmatpush1.msra.mxu0 %v7237_v60  ;;  %7688 = vmatprep.subr.mxu1 %v6986_v6  ;;  %v7136_v32 = vunpack.c.h.bf16 %v15734_v44  ;;  %v15735_v60 = vld [vmem:[#allocation196_spill] sm:$0xff]  ;;  %v7135_v6 = vunpack.c.l.bf16 %v15734_v44 }
0x146e   :  { %7747 = vmatprep.subr.mxu0 %v7232_v54  ;;  %7689 = vmatpush1.msra.mxu1 %v6985_v55  ;;  %v7190_v9 = vunpack.c.h.bf16 %v15735_v60  ;;  %v7189_v20 = vunpack.c.l.bf16 %v15735_v60  ;;  %v15736_v54 = vld [vmem:[#allocation166_spill] sm:$0xff] }
0x146f   :  { %7748 = vmatpush1.msra.mxu0 %v7231_v51  ;;  %7690 = vmatprep.subr.mxu1 %v6980_v45  ;;  %v7130_v55 = vunpack.c.h.bf16 %v15736_v54  ;;  %v15737_v51 = vld [vmem:[#allocation193_spill] sm:$0xff]  ;;  %v7129_v45 = vunpack.c.l.bf16 %v15736_v54 }
0x1470   :  { %7749 = vmatprep.subr.mxu0 %v7226_v4  ;;  %7691 = vmatpush1.msra.mxu1 %v6979_v31  ;;  %v7184_v12 = vunpack.c.h.bf16 %v15737_v51  ;;  %v7183_v50 = vunpack.c.l.bf16 %v15737_v51  ;;  %v15738_v4 = vld [vmem:[#allocation163_spill] sm:$0xff] }
0x1471   :  { %7750 = vmatpush1.msra.mxu0 %v7225_v57  ;;  %7692 = vmatprep.subr.mxu1 %v7166_v42  ;;  %v7124_v31 = vunpack.c.h.bf16 %v15738_v4  ;;  %v15739_v57 = vld [vmem:[#allocation190_spill] sm:$0xff]  ;;  %v7123_v42 = vunpack.c.l.bf16 %v15738_v4 }
0x1472   :  { %7751 = vmatprep.subr.mxu0 %v7220_v35  ;;  %7693 = vmatpush2.msra.mxu1 %v7165_v49  ;;  %v7178_v41 = vunpack.c.h.bf16 %v15739_v57  ;;  %v7177_v47 = vunpack.c.l.bf16 %v15739_v57  ;;  %v15740_v35 = vld [vmem:[#allocation160_spill] sm:$0xff] }
0x1473   :  { %7752 = vmatpush1.msra.mxu0 %v7219_v39  ;;  %7694 = vmatprep.subr.mxu1 %v7160_v48  ;;  %v7118_v49 = vunpack.c.h.bf16 %v15740_v35  ;;  %v15741_v39 = vld [vmem:[#allocation187_spill] sm:$0xff]  ;;  %v7117_v48 = vunpack.c.l.bf16 %v15740_v35 }
0x1474   :  { %7753 = vmatprep.subr.mxu0 %v7214_v36  ;;  %7695 = vmatpush2.msra.mxu1 %v7159_v23  ;;  %v7172_v29 = vunpack.c.h.bf16 %v15741_v39  ;;  %v7171_v34 = vunpack.c.l.bf16 %v15741_v39  ;;  %v15742_v36 = vld [vmem:[#allocation157_spill] sm:$0xff] }
0x1475   :  { %7754 = vmatpush1.msra.mxu0 %v7213_v37  ;;  %7696 = vmatprep.subr.mxu1 %v7154_v16  ;;  %v7112_v23 = vunpack.c.h.bf16 %v15742_v36  ;;  %v15743_v37 = vld [vmem:[#allocation256_spill] sm:$0xff]  ;;  %v7111_v16 = vunpack.c.l.bf16 %v15742_v36 }
0x1476   :  { %7755 = vmatprep.subr.mxu0 %v7208_v33  ;;  %7697 = vmatpush2.msra.mxu1 %v7153_v17  ;;  %v7310_v5 = vunpack.c.h.bf16 %v15743_v37  ;;  %v7309_v43 = vunpack.c.l.bf16 %v15743_v37  ;;  %v15744_v33 = vld [vmem:[#allocation154_spill] sm:$0xff] }
0x1477   :  { %7756 = vmatpush1.msra.mxu0 %v7207_v21  ;;  %7698 = vmatprep.subr.mxu1 %v7148_v59  ;;  %v7106_v17 = vunpack.c.h.bf16 %v15744_v33  ;;  %v15745_v21 = vld [vmem:[#allocation253_spill] sm:$0xff]  ;;  %v7105_v59 = vunpack.c.l.bf16 %v15744_v33 }
0x1478   :  { %7757 = vmatprep.subr.mxu0 %v7202_v30  ;;  %7699 = vmatpush2.msra.mxu1 %v7147_v11  ;;  %v7304_v24 = vunpack.c.h.bf16 %v15745_v21  ;;  %v7303_v27 = vunpack.c.l.bf16 %v15745_v21  ;;  %v15746_v30 = vld [vmem:[#allocation151_spill] sm:$0xff] }
0x1479   :  { %7758 = vmatpush1.msra.mxu0 %v7201_v62  ;;  %7700 = vmatprep.subr.mxu1 %v7142_v14  ;;  %v7100_v11 = vunpack.c.h.bf16 %v15746_v30  ;;  %v15747_v62 = vld [vmem:[#allocation250_spill] sm:$0xff]  ;;  %v7099_v14 = vunpack.c.l.bf16 %v15746_v30 }
0x147a   :  { %7759 = vmatprep.subr.mxu0 %v7196_v7  ;;  %7701 = vmatpush2.msra.mxu1 %v7141_v2  ;;  %v7298_v28 = vunpack.c.h.bf16 %v15747_v62  ;;  %v7297_v0 = vunpack.c.l.bf16 %v15747_v62  ;;  %v15748_v7 = vld [vmem:[#allocation148_spill] sm:$0xff] }
0x147b   :  { %7760 = vmatpush1.msra.mxu0 %v7195_v52  ;;  %7702 = vmatprep.subr.mxu1 %v7136_v32  ;;  %v7094_v2 = vunpack.c.h.bf16 %v15748_v7  ;;  %v15749_v52 = vld [vmem:[#allocation247_spill] sm:$0xff]  ;;  %v7093_v32 = vunpack.c.l.bf16 %v15748_v7 }
0x147c   :  { %7761 = vmatprep.subr.mxu0 %v7190_v9  ;;  %7703 = vmatpush2.msra.mxu1 %v7135_v6  ;;  %v7292_v44 = vunpack.c.h.bf16 %v15749_v52  ;;  %v7291_v60 = vunpack.c.l.bf16 %v15749_v52  ;;  %v15750_v9 = vld [vmem:[#allocation145_spill] sm:$0xff] }
0x147d   :  { %7762 = vmatpush1.msra.mxu0 %v7189_v20  ;;  %7704 = vmatprep.subr.mxu1 %v7130_v55  ;;  %v7088_v6 = vunpack.c.h.bf16 %v15750_v9  ;;  %v15751_v20 = vld [vmem:[#allocation244_spill] sm:$0xff]  ;;  %v7087_v55 = vunpack.c.l.bf16 %v15750_v9 }
0x147e   :  { %7763 = vmatprep.subr.mxu0 %v7184_v12  ;;  %7705 = vmatpush2.msra.mxu1 %v7129_v45  ;;  %v7286_v54 = vunpack.c.h.bf16 %v15751_v20  ;;  %v7285_v51 = vunpack.c.l.bf16 %v15751_v20  ;;  %v15752_v12 = vld [vmem:[#allocation142_spill] sm:$0xff] }
0x147f   :  { %7764 = vmatpush1.msra.mxu0 %v7183_v50  ;;  %7706 = vmatprep.subr.mxu1 %v7124_v31  ;;  %v7082_v45 = vunpack.c.h.bf16 %v15752_v12  ;;  %v15753_v50 = vld [vmem:[#allocation241_spill] sm:$0xff]  ;;  %v7081_v31 = vunpack.c.l.bf16 %v15752_v12 }
0x1480   :  { %7765 = vmatprep.subr.mxu0 %v7178_v41  ;;  %7707 = vmatpush2.msra.mxu1 %v7123_v42  ;;  %v7280_v4 = vunpack.c.h.bf16 %v15753_v50  ;;  %v7279_v57 = vunpack.c.l.bf16 %v15753_v50  ;;  %v15754_v41 = vld [vmem:[#allocation139_spill] sm:$0xff] }
0x1481   :  { %7766 = vmatpush1.msra.mxu0 %v7177_v47  ;;  %7708 = vmatprep.subr.mxu1 %v7118_v49  ;;  %v7076_v42 = vunpack.c.h.bf16 %v15754_v41  ;;  %v15755_v47 = vld [vmem:[#allocation238_spill] sm:$0xff]  ;;  %v7075_v49 = vunpack.c.l.bf16 %v15754_v41 }
0x1482   :  { %7767 = vmatprep.subr.mxu0 %v7172_v29  ;;  %7709 = vmatpush2.msra.mxu1 %v7117_v48  ;;  %v7274_v35 = vunpack.c.h.bf16 %v15755_v47  ;;  %v7273_v39 = vunpack.c.l.bf16 %v15755_v47  ;;  %v15756_v29 = vld [vmem:[#allocation235_spill] sm:$0xff] }
0x1483   :  { %7768 = vmatpush1.msra.mxu0 %v7171_v34  ;;  %7710 = vmatprep.subr.mxu1 %v7112_v23  ;;  %v7268_v48 = vunpack.c.h.bf16 %v15756_v29  ;;  %v15757_v34 = vld [vmem:[#allocation47_spill] sm:$0xff]  ;;  %v7267_v23 = vunpack.c.l.bf16 %v15756_v29 }
0x1484   :  { %7785 = vmatprep.subr.mxu0 %v7310_v5  ;;  %7711 = vmatpush2.msra.mxu1 %v7111_v16  ;;  %v6880_v36 = vunpack.c.h.bf16 %v15757_v34  ;;  %v6879_v37 = vunpack.c.l.bf16 %v15757_v34  ;;  %v15758_v5 = vld [vmem:[#allocation45_spill] sm:$0xff] }
0x1485   :  { %7786 = vmatpush2.msra.mxu0 %v7309_v43  ;;  %7712 = vmatprep.subr.mxu1 %v7106_v17  ;;  %v6874_v16 = vunpack.c.h.bf16 %v15758_v5  ;;  %v15759_v43 = vld [vmem:[#allocation137_spill] sm:$0xff]  ;;  %v6873_v17 = vunpack.c.l.bf16 %v15758_v5 }
0x1486   :  { %7787 = vmatprep.subr.mxu0 %v7304_v24  ;;  %7713 = vmatpush2.msra.mxu1 %v7105_v59  ;;  %v7072_v33 = vunpack.c.h.bf16 %v15759_v43  ;;  %v7071_v21 = vunpack.c.l.bf16 %v15759_v43  ;;  %v15760_v24 = vld [vmem:[#allocation43_spill] sm:$0xff] }
0x1487   :  { %7788 = vmatpush2.msra.mxu0 %v7303_v27  ;;  %7714 = vmatprep.subr.mxu1 %v7100_v11  ;;  %v6868_v59 = vunpack.c.h.bf16 %v15760_v24  ;;  %v15761_v27 = vld [vmem:[#allocation135_spill] sm:$0xff]  ;;  %v6867_v11 = vunpack.c.l.bf16 %v15760_v24 }
0x1488   :  { %7789 = vmatprep.subr.mxu0 %v7298_v28  ;;  %7715 = vmatpush2.msra.mxu1 %v7099_v14  ;;  %v7066_v30 = vunpack.c.h.bf16 %v15761_v27  ;;  %v7065_v62 = vunpack.c.l.bf16 %v15761_v27  ;;  %v15762_v28 = vld [vmem:[#allocation41_spill] sm:$0xff] }
0x1489   :  { %7790 = vmatpush2.msra.mxu0 %v7297_v0  ;;  %7716 = vmatprep.subr.mxu1 %v7094_v2  ;;  %v6862_v14 = vunpack.c.h.bf16 %v15762_v28  ;;  %v15763_v0 = vld [vmem:[#allocation133_spill] sm:$0xff]  ;;  %v6861_v2 = vunpack.c.l.bf16 %v15762_v28 }
0x148a   :  { %7791 = vmatprep.subr.mxu0 %v7292_v44  ;;  %7717 = vmatpush2.msra.mxu1 %v7093_v32  ;;  %v7060_v7 = vunpack.c.h.bf16 %v15763_v0  ;;  %v7059_v52 = vunpack.c.l.bf16 %v15763_v0  ;;  %v15764_v44 = vld [vmem:[#allocation39_spill] sm:$0xff] }
0x148b   :  { %7792 = vmatpush2.msra.mxu0 %v7291_v60  ;;  %7718 = vmatprep.subr.mxu1 %v7088_v6  ;;  %v6856_v32 = vunpack.c.h.bf16 %v15764_v44  ;;  %v15765_v60 = vld [vmem:[#allocation131_spill] sm:$0xff]  ;;  %v6855_v6 = vunpack.c.l.bf16 %v15764_v44 }
0x148c   :  { %7793 = vmatprep.subr.mxu0 %v7286_v54  ;;  %7719 = vmatpush2.msra.mxu1 %v7087_v55  ;;  %v7054_v9 = vunpack.c.h.bf16 %v15765_v60  ;;  %v7053_v20 = vunpack.c.l.bf16 %v15765_v60  ;;  %v15766_v54 = vld [vmem:[#allocation37_spill] sm:$0xff] }
0x148d   :  { %7794 = vmatpush2.msra.mxu0 %v7285_v51  ;;  %7720 = vmatprep.subr.mxu1 %v7082_v45  ;;  %v6850_v55 = vunpack.c.h.bf16 %v15766_v54  ;;  %v15767_v51 = vld [vmem:[#allocation129_spill] sm:$0xff]  ;;  %v6849_v45 = vunpack.c.l.bf16 %v15766_v54 }
0x148e   :  { %7795 = vmatprep.subr.mxu0 %v7280_v4  ;;  %7653 = vmatprep.mubr.f32.mxu0 %v14148_v15  ;;  %v7048_v12 = vunpack.c.h.bf16 %v15767_v51  ;;  %v7047_v50 = vunpack.c.l.bf16 %v15767_v51  ;;  %v15768_v4 = vld [vmem:[#allocation35_spill] sm:$0xff] }
0x148f   :  { %7721 = vmatpush2.msra.mxu1 %v7081_v31  ;;  %7796 = vmatpush2.msra.mxu0 %v7279_v57  ;;  %v6844_v31 = vunpack.c.h.bf16 %v15768_v4  ;;  %v15769_v57 = vld [vmem:[#allocation127_spill] sm:$0xff] }
0x1490   :  { %7722 = vmatprep.subr.mxu1 %v7076_v42  ;;  %7654 = vmatmul.mubr.f32.gmra.mxu0 %v14143_v58  ;;  %v7042_v41 = vunpack.c.h.bf16 %v15769_v57  ;;  %v6843_v42 = vunpack.c.l.bf16 %v15768_v4  ;;  %v7041_v47 = vunpack.c.l.bf16 %v15769_v57 }
0x1491   :  { %7797 = vmatprep.subr.mxu0 %v7274_v35  ;;  %7723 = vmatpush2.msra.mxu1 %v7075_v49  ;;  %v15770_v35 = vld [vmem:[#allocation32_spill] sm:$0xff] }
0x1492   :  { %7724 = vmatprep.mubr.f32.mxu1 %v14140_v8  ;;  %7798 = vmatpush2.msra.mxu0 %v7273_v39  ;;  %v6838_v49 = vunpack.c.h.bf16 %v15770_v35  ;;  %v15771_v39 = vld [vmem:[#allocation125_spill] sm:$0xff] }
0x1493   :  { %7725 = vmatmul.mubr.f32.vlgmr.msra.gmra.mxu1 %v14136_v40  ;;  %7799 = vmatprep.subr.mxu0 %v7268_v48  ;;  %v7036_v29 = vunpack.c.h.bf16 %v15771_v39  ;;  %v6837_v48 = vunpack.c.l.bf16 %v15770_v35  ;;  %v7035_v34 = vunpack.c.l.bf16 %v15771_v39 }
0x1494   :  { %7814 = vmatprep.subr.mxu1 %v6880_v36  ;;  %7800 = vmatpush2.msra.mxu0 %v7267_v23  ;;  %v15772_v36 = vld [vmem:[#allocation29_spill] sm:$0xff] }
0x1495   :  { %8797 = vmatprep.mubr.msk.f32.mxu0 %vm7345_vm3, %v14154_v61  ;;  %7815 = vmatpush1.msra.mxu1 %v6879_v37  ;;  %v6832_v23 = vunpack.c.h.bf16 %v15772_v36  ;;  %v15773_v37 = vld [vmem:[#allocation122_spill] sm:$0xff] }
0x1496   :  { %7802 = vmatmul.mubr.f32.vlgmr.msra.gmra.mxu0 %v14152_v1  ;;  %7816 = vmatprep.subr.mxu1 %v6874_v16  ;;  %v7030_v5 = vunpack.c.h.bf16 %v15773_v37  ;;  %v6831_v16 = vunpack.c.l.bf16 %v15772_v36  ;;  %v7029_v43 = vunpack.c.l.bf16 %v15773_v37 }
0x1497   :  { %7891 = vmatprep.subr.mxu0 %v7072_v33  ;;  %7730 = vmatprep.mubr.f32.mxu1 %v14150_v53  ;;  %v15774_v33 = vld [vmem:[#allocation26_spill] sm:$0xff] }
0x1498   :  { %7817 = vmatpush1.msra.mxu1 %v6873_v17  ;;  %7892 = vmatpush1.msra.mxu0 %v7071_v21  ;;  %v6826_v17 = vunpack.c.h.bf16 %v15774_v33  ;;  %v15775_v21 = vld [vmem:[#allocation119_spill] sm:$0xff] }
0x1499   :  { %7731 = vmatmul.mubr.f32.gmra.mxu1 %v14146_v19  ;;  %7818 = vmatprep.subr.mxu1 %v6868_v59  ;;  %v7024_v24 = vunpack.c.h.bf16 %v15775_v21  ;;  %v6825_v59 = vunpack.c.l.bf16 %v15774_v33  ;;  %v7023_v27 = vunpack.c.l.bf16 %v15775_v21 }
0x149a   :  { %7893 = vmatprep.subr.mxu0 %v7066_v30  ;;  %8798 = vmatprep.mubr.msk.f32.mxu0 %vm7345_vm3, %v14158_v3  ;;  %v15776_v30 = vld [vmem:[#allocation23_spill] sm:$0xff] }
0x149b   :  { %7819 = vmatpush1.msra.mxu1 %v6867_v11  ;;  %7894 = vmatpush1.msra.mxu0 %v7065_v62  ;;  %v6820_v11 = vunpack.c.h.bf16 %v15776_v30  ;;  %v15777_v62 = vld [vmem:[#allocation116_spill] sm:$0xff] }
0x149c   :  { %7820 = vmatprep.subr.mxu1 %v6862_v14  ;;  %7808 = vmatmul.mubr.f32.gmra.mxu0 %v14156_v13  ;;  %v7018_v28 = vunpack.c.h.bf16 %v15777_v62  ;;  %v6819_v14 = vunpack.c.l.bf16 %v15776_v30  ;;  %v7017_v0 = vunpack.c.l.bf16 %v15777_v62 }
0x149d   :  { %7895 = vmatprep.subr.mxu0 %v7060_v7  ;;  %7821 = vmatpush1.msra.mxu1 %v6861_v2  ;;  %v15778_v7 = vld [vmem:[#allocation20_spill] sm:$0xff] }
0x149e   :  { %7896 = vmatpush1.msra.mxu0 %v7059_v52  ;;  %7822 = vmatprep.subr.mxu1 %v6856_v32  ;;  %v6814_v2 = vunpack.c.h.bf16 %v15778_v7  ;;  %v15779_v52 = vld [vmem:[#allocation113_spill] sm:$0xff]  ;;  %v6813_v32 = vunpack.c.l.bf16 %v15778_v7 }
0x149f   :  { %7897 = vmatprep.subr.mxu0 %v7054_v9  ;;  %7823 = vmatpush1.msra.mxu1 %v6855_v6  ;;  %v7012_v44 = vunpack.c.h.bf16 %v15779_v52  ;;  %v7011_v60 = vunpack.c.l.bf16 %v15779_v52  ;;  %v15780_v9 = vld [vmem:[#allocation17_spill] sm:$0xff] }
0x14a0   :  { %7898 = vmatpush1.msra.mxu0 %v7053_v20  ;;  %7824 = vmatprep.subr.mxu1 %v6850_v55  ;;  %v6808_v6 = vunpack.c.h.bf16 %v15780_v9  ;;  %v15781_v20 = vld [vmem:[#allocation110_spill] sm:$0xff]  ;;  %v6807_v55 = vunpack.c.l.bf16 %v15780_v9 }
0x14a1   :  { %7899 = vmatprep.subr.mxu0 %v7048_v12  ;;  %7825 = vmatpush1.msra.mxu1 %v6849_v45  ;;  %v7006_v54 = vunpack.c.h.bf16 %v15781_v20  ;;  %v7005_v51 = vunpack.c.l.bf16 %v15781_v20  ;;  %v15782_v12 = vld [vmem:[#allocation14_spill] sm:$0xff] }
0x14a2   :  { %7900 = vmatpush1.msra.mxu0 %v7047_v50  ;;  %7826 = vmatprep.subr.mxu1 %v6844_v31  ;;  %v6802_v45 = vunpack.c.h.bf16 %v15782_v12  ;;  %v15783_v50 = vld [vmem:[#allocation107_spill] sm:$0xff]  ;;  %v6801_v31 = vunpack.c.l.bf16 %v15782_v12 }
0x14a3   :  { %7901 = vmatprep.subr.mxu0 %v7042_v41  ;;  %7827 = vmatpush1.msra.mxu1 %v6843_v42  ;;  %v7000_v4 = vunpack.c.h.bf16 %v15783_v50  ;;  %v6999_v57 = vunpack.c.l.bf16 %v15783_v50  ;;  %v15784_v41 = vld [vmem:[#allocation11_spill] sm:$0xff] }
0x14a4   :  { %7902 = vmatpush1.msra.mxu0 %v7041_v47  ;;  %7828 = vmatprep.subr.mxu1 %v6838_v49  ;;  %v6796_v42 = vunpack.c.h.bf16 %v15784_v41  ;;  %v15785_v47 = vld [vmem:[#allocation104_spill] sm:$0xff]  ;;  %v6795_v49 = vunpack.c.l.bf16 %v15784_v41 }
0x14a5   :  { %7903 = vmatprep.subr.mxu0 %v7036_v29  ;;  %7829 = vmatpush1.msra.mxu1 %v6837_v48  ;;  %v6994_v35 = vunpack.c.h.bf16 %v15785_v47  ;;  %v6993_v39 = vunpack.c.l.bf16 %v15785_v47  ;;  %v15786_v29 = vld [vmem:[#allocation8_spill] sm:$0xff] }
0x14a6   :  { %7904 = vmatpush1.msra.mxu0 %v7035_v34  ;;  %7830 = vmatprep.subr.mxu1 %v6832_v23  ;;  %v6790_v48 = vunpack.c.h.bf16 %v15786_v29  ;;  %v15787_v34 = vld [vmem:[#allocation101_spill] sm:$0xff]  ;;  %v6789_v23 = vunpack.c.l.bf16 %v15786_v29 }
0x14a7   :  { %7905 = vmatprep.subr.mxu0 %v7030_v5  ;;  %7831 = vmatpush1.msra.mxu1 %v6831_v16  ;;  %v6988_v36 = vunpack.c.h.bf16 %v15787_v34  ;;  %v6987_v37 = vunpack.c.l.bf16 %v15787_v34  ;;  %v15788_v5 = vld [vmem:[#allocation95_spill] sm:$0xff] }
0x14a8   :  { %7906 = vmatpush1.msra.mxu0 %v7029_v43  ;;  %7832 = vmatprep.subr.mxu1 %v6826_v17  ;;  %v6976_v16 = vunpack.c.h.bf16 %v15788_v5  ;;  %v15789_v43 = vld [vmem:[#allocation98_spill] sm:$0xff]  ;;  %v6975_v17 = vunpack.c.l.bf16 %v15788_v5 }
0x14a9   :  { %7907 = vmatprep.subr.mxu0 %v7024_v24  ;;  %7833 = vmatpush1.msra.mxu1 %v6825_v59  ;;  %v6982_v33 = vunpack.c.h.bf16 %v15789_v43  ;;  %v6981_v21 = vunpack.c.l.bf16 %v15789_v43  ;;  %v15790_v24 = vld [vmem:[#allocation92_spill] sm:$0xff] }
0x14aa   :  { %7908 = vmatpush1.msra.mxu0 %v7023_v27  ;;  %7834 = vmatprep.subr.mxu1 %v6820_v11  ;;  %v6970_v59 = vunpack.c.h.bf16 %v15790_v24  ;;  %v15791_v27 = vld [vmem:[#allocation185_spill] sm:$0xff]  ;;  %v6969_v11 = vunpack.c.l.bf16 %v15790_v24 }
0x14ab   :  { %7909 = vmatprep.subr.mxu0 %v7018_v28  ;;  %7835 = vmatpush1.msra.mxu1 %v6819_v14  ;;  %v7168_v30 = vunpack.c.h.bf16 %v15791_v27  ;;  %v7167_v62 = vunpack.c.l.bf16 %v15791_v27  ;;  %v15792_v28 = vld [vmem:[#allocation89_spill] sm:$0xff] }
0x14ac   :  { %7910 = vmatpush1.msra.mxu0 %v7017_v0  ;;  %7836 = vmatprep.subr.mxu1 %v6814_v2  ;;  %v6964_v14 = vunpack.c.h.bf16 %v15792_v28  ;;  %v15793_v0 = vld [vmem:[#allocation182_spill] sm:$0xff]  ;;  %v6963_v2 = vunpack.c.l.bf16 %v15792_v28 }
0x14ad   :  { %7911 = vmatprep.subr.mxu0 %v7012_v44  ;;  %7837 = vmatpush1.msra.mxu1 %v6813_v32  ;;  %v7162_v7 = vunpack.c.h.bf16 %v15793_v0  ;;  %v7161_v52 = vunpack.c.l.bf16 %v15793_v0  ;;  %v15794_v44 = vld [vmem:[#allocation86_spill] sm:$0xff] }
0x14ae   :  { %7912 = vmatpush1.msra.mxu0 %v7011_v60  ;;  %7838 = vmatprep.subr.mxu1 %v6808_v6  ;;  %v6958_v32 = vunpack.c.h.bf16 %v15794_v44  ;;  %v15795_v60 = vld [vmem:[#allocation179_spill] sm:$0xff]  ;;  %v6957_v6 = vunpack.c.l.bf16 %v15794_v44 }
0x14af   :  { %7913 = vmatprep.subr.mxu0 %v7006_v54  ;;  %7839 = vmatpush1.msra.mxu1 %v6807_v55  ;;  %v7156_v9 = vunpack.c.h.bf16 %v15795_v60  ;;  %v7155_v20 = vunpack.c.l.bf16 %v15795_v60  ;;  %v15796_v54 = vld [vmem:[#allocation83_spill] sm:$0xff] }
0x14b0   :  { %7914 = vmatpush1.msra.mxu0 %v7005_v51  ;;  %7840 = vmatprep.subr.mxu1 %v6802_v45  ;;  %v6952_v55 = vunpack.c.h.bf16 %v15796_v54  ;;  %v15797_v51 = vld [vmem:[#allocation176_spill] sm:$0xff]  ;;  %v6951_v45 = vunpack.c.l.bf16 %v15796_v54 }
0x14b1   :  { %7915 = vmatprep.subr.mxu0 %v7000_v4  ;;  %7841 = vmatpush1.msra.mxu1 %v6801_v31  ;;  %v7150_v12 = vunpack.c.h.bf16 %v15797_v51  ;;  %v7149_v50 = vunpack.c.l.bf16 %v15797_v51  ;;  %v15798_v4 = vld [vmem:[#allocation80_spill] sm:$0xff] }
0x14b2   :  { %7916 = vmatpush1.msra.mxu0 %v6999_v57  ;;  %7842 = vmatprep.subr.mxu1 %v6796_v42  ;;  %v6946_v31 = vunpack.c.h.bf16 %v15798_v4  ;;  %v15799_v57 = vld [vmem:[#allocation173_spill] sm:$0xff]  ;;  %v6945_v42 = vunpack.c.l.bf16 %v15798_v4 }
0x14b3   :  { %7917 = vmatprep.subr.mxu0 %v6994_v35  ;;  %7843 = vmatpush1.msra.mxu1 %v6795_v49  ;;  %v7144_v41 = vunpack.c.h.bf16 %v15799_v57  ;;  %v7143_v47 = vunpack.c.l.bf16 %v15799_v57  ;;  %v15800_v35 = vld [vmem:[#allocation77_spill] sm:$0xff] }
0x14b4   :  { %7918 = vmatpush1.msra.mxu0 %v6993_v39  ;;  %7844 = vmatprep.subr.mxu1 %v6790_v48  ;;  %v6940_v49 = vunpack.c.h.bf16 %v15800_v35  ;;  %v15801_v39 = vld [vmem:[#allocation170_spill] sm:$0xff]  ;;  %v6939_v48 = vunpack.c.l.bf16 %v15800_v35 }
0x14b5   :  { %7919 = vmatprep.subr.mxu0 %v6988_v36  ;;  %7845 = vmatpush1.msra.mxu1 %v6789_v23  ;;  %v7138_v29 = vunpack.c.h.bf16 %v15801_v39  ;;  %v7137_v34 = vunpack.c.l.bf16 %v15801_v39  ;;  %v15802_v36 = vld [vmem:[#allocation74_spill] sm:$0xff] }
0x14b6   :  { %7920 = vmatpush1.msra.mxu0 %v6987_v37  ;;  %7846 = vmatprep.subr.mxu1 %v6976_v16  ;;  %v6934_v23 = vunpack.c.h.bf16 %v15802_v36  ;;  %v15803_v37 = vld [vmem:[#allocation167_spill] sm:$0xff]  ;;  %v6933_v16 = vunpack.c.l.bf16 %v15802_v36 }
0x14b7   :  { %7921 = vmatprep.subr.mxu0 %v6982_v33  ;;  %7847 = vmatpush2.msra.mxu1 %v6975_v17  ;;  %v7132_v5 = vunpack.c.h.bf16 %v15803_v37  ;;  %v7131_v43 = vunpack.c.l.bf16 %v15803_v37  ;;  %v15804_v33 = vld [vmem:[#allocation71_spill] sm:$0xff] }
0x14b8   :  { %7922 = vmatpush1.msra.mxu0 %v6981_v21  ;;  %7848 = vmatprep.subr.mxu1 %v6970_v59  ;;  %v6928_v17 = vunpack.c.h.bf16 %v15804_v33  ;;  %v15805_v21 = vld [vmem:[#allocation164_spill] sm:$0xff]  ;;  %v6927_v59 = vunpack.c.l.bf16 %v15804_v33 }
0x14b9   :  { %7923 = vmatprep.subr.mxu0 %v7168_v30  ;;  %7849 = vmatpush2.msra.mxu1 %v6969_v11  ;;  %v7126_v24 = vunpack.c.h.bf16 %v15805_v21  ;;  %v7125_v27 = vunpack.c.l.bf16 %v15805_v21  ;;  %v15806_v30 = vld [vmem:[#allocation68_spill] sm:$0xff] }
0x14ba   :  { %7924 = vmatpush2.msra.mxu0 %v7167_v62  ;;  %7850 = vmatprep.subr.mxu1 %v6964_v14  ;;  %v6922_v11 = vunpack.c.h.bf16 %v15806_v30  ;;  %v15807_v62 = vld [vmem:[#allocation161_spill] sm:$0xff]  ;;  %v6921_v14 = vunpack.c.l.bf16 %v15806_v30 }
0x14bb   :  { %7925 = vmatprep.subr.mxu0 %v7162_v7  ;;  %7851 = vmatpush2.msra.mxu1 %v6963_v2  ;;  %v7120_v28 = vunpack.c.h.bf16 %v15807_v62  ;;  %v7119_v0 = vunpack.c.l.bf16 %v15807_v62  ;;  %v15808_v7 = vld [vmem:[#allocation65_spill] sm:$0xff] }
0x14bc   :  { %7926 = vmatpush2.msra.mxu0 %v7161_v52  ;;  %7852 = vmatprep.subr.mxu1 %v6958_v32  ;;  %v6916_v2 = vunpack.c.h.bf16 %v15808_v7  ;;  %v15809_v52 = vld [vmem:[#allocation158_spill] sm:$0xff]  ;;  %v6915_v32 = vunpack.c.l.bf16 %v15808_v7  ;;  %v8088_v7 = vld [vmem:[%s15065_s19 + $0xf8] sm:$0xff] }
0x14bd   :  { %7927 = vmatprep.subr.mxu0 %v7156_v9  ;;  %7853 = vmatpush2.msra.mxu1 %v6957_v6  ;;  %v7114_v44 = vunpack.c.h.bf16 %v15809_v52  ;;  %v7113_v60 = vunpack.c.l.bf16 %v15809_v52  ;;  %v15810_v9 = vld [vmem:[#allocation62_spill] sm:$0xff]  ;;  %v8072_v52 = vld [vmem:[%s15065_s19 + $0x78] sm:$0xff] }
0x14be   :  { %7928 = vmatpush2.msra.mxu0 %v7155_v20  ;;  %7854 = vmatprep.subr.mxu1 %v6952_v55  ;;  %v6910_v6 = vunpack.c.h.bf16 %v15810_v9  ;;  %v15811_v20 = vld [vmem:[#allocation155_spill] sm:$0xff]  ;;  %v6909_v55 = vunpack.c.l.bf16 %v15810_v9 }
0x14bf   :  { %7929 = vmatprep.subr.mxu0 %v7150_v12  ;;  %7855 = vmatpush2.msra.mxu1 %v6951_v45  ;;  %v7108_v54 = vunpack.c.h.bf16 %v15811_v20  ;;  %v7107_v51 = vunpack.c.l.bf16 %v15811_v20  ;;  %v15812_v12 = vld [vmem:[#allocation59_spill] sm:$0xff]  ;;  %v8071_v20 = vld [vmem:[%s15065_s19 + $0x70] sm:$0xff] }
0x14c0   :  { %7930 = vmatpush2.msra.mxu0 %v7149_v50  ;;  %7856 = vmatprep.subr.mxu1 %v6946_v31  ;;  %v6904_v45 = vunpack.c.h.bf16 %v15812_v12  ;;  %v15813_v50 = vld [vmem:[#allocation152_spill] sm:$0xff]  ;;  %v6903_v31 = vunpack.c.l.bf16 %v15812_v12  ;;  %v15827_v12 = vld [vmem:[#allocation215_spill] sm:$0xff] }
0x14c1   :  { %7931 = vmatprep.subr.mxu0 %v7144_v41  ;;  %7857 = vmatpush2.msra.mxu1 %v6945_v42  ;;  %v7102_v4 = vunpack.c.h.bf16 %v15813_v50  ;;  %v7101_v57 = vunpack.c.l.bf16 %v15813_v50  ;;  %v15814_v41 = vld [vmem:[#allocation56_spill] sm:$0xff]  ;;  %v8070_v50 = vld [vmem:[%s15065_s19 + $0x68] sm:$0xff] }
0x14c2   :  { %7932 = vmatpush2.msra.mxu0 %v7143_v47  ;;  %7858 = vmatprep.subr.mxu1 %v6940_v49  ;;  %v6898_v42 = vunpack.c.h.bf16 %v15814_v41  ;;  %v15815_v47 = vld [vmem:[#allocation149_spill] sm:$0xff]  ;;  %v6897_v49 = vunpack.c.l.bf16 %v15814_v41  ;;  %v8069_v41 = vld [vmem:[%s15065_s19 + $0x60] sm:$0xff] }
0x14c3   :  { %7933 = vmatprep.subr.mxu0 %v7138_v29  ;;  %7859 = vmatpush2.msra.mxu1 %v6939_v48  ;;  %v7096_v35 = vunpack.c.h.bf16 %v15815_v47  ;;  %v7095_v39 = vunpack.c.l.bf16 %v15815_v47  ;;  %v15816_v29 = vld [vmem:[#allocation53_spill] sm:$0xff] }
0x14c4   :  { %7934 = vmatpush2.msra.mxu0 %v7137_v34  ;;  %7860 = vmatprep.subr.mxu1 %v6934_v23  ;;  %v6892_v48 = vunpack.c.h.bf16 %v15816_v29  ;;  %v15817_v34 = vld [vmem:[#allocation146_spill] sm:$0xff]  ;;  %v6891_v23 = vunpack.c.l.bf16 %v15816_v29 }
0x14c5   :  { %7935 = vmatprep.subr.mxu0 %v7132_v5  ;;  %7861 = vmatpush2.msra.mxu1 %v6933_v16  ;;  %v7090_v36 = vunpack.c.h.bf16 %v15817_v34  ;;  %v7089_v37 = vunpack.c.l.bf16 %v15817_v34  ;;  %v15818_v5 = vld [vmem:[#allocation50_spill] sm:$0xff] }
0x14c6   :  { %7936 = vmatpush2.msra.mxu0 %v7131_v43  ;;  %7862 = vmatprep.subr.mxu1 %v6928_v17  ;;  %v6886_v16 = vunpack.c.h.bf16 %v15818_v5  ;;  %v15819_v43 = vld [vmem:[#allocation143_spill] sm:$0xff]  ;;  %v6885_v17 = vunpack.c.l.bf16 %v15818_v5 }
0x14c7   :  { %7937 = vmatprep.subr.mxu0 %v7126_v24  ;;  %7863 = vmatpush2.msra.mxu1 %v6927_v59  ;;  %v7084_v33 = vunpack.c.h.bf16 %v15819_v43  ;;  %v7083_v21 = vunpack.c.l.bf16 %v15819_v43  ;;  %v15820_v24 = vld [vmem:[#allocation140_spill] sm:$0xff] }
0x14c8   :  { %7938 = vmatpush2.msra.mxu0 %v7125_v27  ;;  %7864 = vmatprep.subr.mxu1 %v6922_v11  ;;  %v7078_v59 = vunpack.c.h.bf16 %v15820_v24  ;;  %v15821_v27 = vld [vmem:[#allocation233_spill] sm:$0xff]  ;;  %v7077_v11 = vunpack.c.l.bf16 %v15820_v24  ;;  %v15832_v43 = vld [vmem:[#allocation200_spill] sm:$0xff]  ;;  %v8065_v24 = vld [vmem:[%s15065_s19 + $0x40] sm:$0xff] }
0x14c9   :  { %7939 = vmatprep.subr.mxu0 %v7120_v28  ;;  %7865 = vmatpush2.msra.mxu1 %v6921_v14  ;;  %v7264_v30 = vunpack.c.h.bf16 %v15821_v27  ;;  %v7263_v62 = vunpack.c.l.bf16 %v15821_v27  ;;  %v15822_v28 = vld [vmem:[#allocation230_spill] sm:$0xff] }
0x14ca   :  { %7940 = vmatpush2.msra.mxu0 %v7119_v0  ;;  %7866 = vmatprep.subr.mxu1 %v6916_v2  ;;  %v7258_v14 = vunpack.c.h.bf16 %v15822_v28  ;;  %v7257_v0 = vunpack.c.l.bf16 %v15822_v28  ;;  %v15823_v2 = vld [vmem:[#allocation227_spill] sm:$0xff]  ;;  %v15834_v28 = vld [vmem:[#allocation194_spill] sm:$0xff] }
0x14cb   :  { %7941 = vmatprep.subr.mxu0 %v7114_v44  ;;  %7867 = vmatpush2.msra.mxu1 %v6915_v32  ;;  %v15824_v44 = vld [vmem:[#allocation224_spill] sm:$0xff] }
0x14cc   :  { %7942 = vmatpush2.msra.mxu0 %v7113_v60  ;;  %7868 = vmatprep.subr.mxu1 %v6910_v6  ;;  %v7246_v32 = vunpack.c.h.bf16 %v15824_v44  ;;  %v8087_v60 = vld [vmem:[%s15065_s19 + $0xf0] sm:$0xff] }
0x14cd   :  { %7943 = vmatprep.subr.mxu0 %v7108_v54  ;;  %7869 = vmatpush2.msra.mxu1 %v6909_v55  ;;  %v15826_v54 = vld [vmem:[#allocation218_spill] sm:$0xff] }
0x14ce   :  { %7944 = vmatpush2.msra.mxu0 %v7107_v51  ;;  %7870 = vmatprep.subr.mxu1 %v6904_v45  ;;  %v7234_v55 = vunpack.c.h.bf16 %v15826_v54  ;;  %v8086_v51 = vld [vmem:[%s15065_s19 + $0xe8] sm:$0xff]  ;;  %v7228_v45 = vunpack.c.h.bf16 %v15827_v12 }
0x14cf   :  { %7945 = vmatprep.subr.mxu0 %v7102_v4  ;;  %7871 = vmatpush2.msra.mxu1 %v6903_v31  ;;  %v15828_v4 = vld [vmem:[#allocation212_spill] sm:$0xff] }
0x14d0   :  { %7946 = vmatpush2.msra.mxu0 %v7101_v57  ;;  %7872 = vmatprep.subr.mxu1 %v6898_v42  ;;  %v7222_v31 = vunpack.c.h.bf16 %v15828_v4  ;;  %v7221_v57 = vunpack.c.l.bf16 %v15828_v4  ;;  %v15829_v42 = vld [vmem:[#allocation209_spill] sm:$0xff]  ;;  %v15839_v4 = vld [vmem:[#allocation251_spill] sm:$0xff] }
0x14d1   :  { %7947 = vmatprep.subr.mxu0 %v7096_v35  ;;  %7873 = vmatpush2.msra.mxu1 %v6897_v49  ;;  %v7216_v47 = vunpack.c.h.bf16 %v15829_v42  ;;  %v7215_v35 = vunpack.c.l.bf16 %v15829_v42  ;;  %v8068_v49 = vld [vmem:[%s15065_s19 + $0x58] sm:$0xff]  ;;  %v8058_v42 = vld [vmem:[%s15065_s19 + $0x8] sm:$0xff] }
0x14d2   :  { %7948 = vmatpush2.msra.mxu0 %v7095_v39  ;;  %7874 = vmatprep.subr.mxu1 %v6892_v48  ;;  %v15830_v39 = vld [vmem:[#allocation206_spill] sm:$0xff]  ;;  %v8083_v48 = vld [vmem:[%s15065_s19 + $0xd0] sm:$0xff] }
0x14d3   :  { %7949 = vmatprep.subr.mxu0 %v7090_v36  ;;  %7875 = vmatpush2.msra.mxu1 %v6891_v23  ;;  %v7210_v29 = vunpack.c.h.bf16 %v15830_v39  ;;  %v7209_v34 = vunpack.c.l.bf16 %v15830_v39  ;;  %v15831_v36 = vld [vmem:[#allocation203_spill] sm:$0xff]  ;;  %v8057_v39 = vld [vmem:[%s15065_s19] sm:$0xff] }
0x14d4   :  { %7950 = vmatpush2.msra.mxu0 %v7089_v37  ;;  %7876 = vmatprep.subr.mxu1 %v6886_v16  ;;  %v7204_v23 = vunpack.c.h.bf16 %v15831_v36  ;;  %v8082_v37 = vld [vmem:[%s15065_s19 + $0xc8] sm:$0xff]  ;;  %v7203_v5 = vunpack.c.l.bf16 %v15831_v36  ;;  %v15842_v36 = vld [vmem:[#allocation242_spill] sm:$0xff] }
0x14d5   :  { %7951 = vmatprep.subr.mxu0 %v7084_v33  ;;  %7877 = vmatpush2.msra.mxu1 %v6885_v17  ;;  %v8066_v16 = vld [vmem:[%s15065_s19 + $0x48] sm:$0xff]  ;;  %v7198_v33 = vunpack.c.h.bf16 %v15832_v43  ;;  %v8081_v17 = vld [vmem:[%s15065_s19 + $0xc0] sm:$0xff] }
0x14d6   :  { %7878 = vmatprep.mubr.f32.mxu1 %v14138_v38  ;;  %7952 = vmatpush2.msra.mxu0 %v7083_v21  ;;  %v7252_v38 = vunpack.c.h.bf16 %v15823_v2  ;;  %v7197_v21 = vunpack.c.l.bf16 %v15832_v43 }
0x14d7   :  { %7879 = vmatmul.mubr.f32.vlgmr.msra.gmra.mxu1 %v14134_v18  ;;  %7953 = vmatprep.subr.mxu0 %v7078_v59  ;;  %v7251_v18 = vunpack.c.l.bf16 %v15823_v2  ;;  %v15833_v59 = vld [vmem:[#allocation197_spill] sm:$0xff]  ;;  %v8063_v2 = vld [vmem:[%s15065_s19 + $0x30] sm:$0xff] }
0x14d8   :  { %7968 = vmatprep.subr.mxu1 %v7264_v30  ;;  %7954 = vmatpush2.msra.mxu0 %v7077_v11  ;;  %v7192_v27 = vunpack.c.h.bf16 %v15833_v59  ;;  %v8080_v30 = vld [vmem:[%s15065_s19 + $0xb8] sm:$0xff]  ;;  %v7191_v11 = vunpack.c.l.bf16 %v15833_v59 }
0x14d9   :  { %7955 = vmatprep.mubr.f32.mxu0 %v14140_v8  ;;  %7969 = vmatpush1.msra.mxu1 %v7263_v62  ;;  %v7245_v8 = vunpack.c.l.bf16 %v15824_v44  ;;  %v8064_v62 = vld [vmem:[%s15065_s19 + $0x38] sm:$0xff] }
0x14da   :  { %7956 = vmatmul.mubr.f32.vlgmr.msra.gmra.mxu0 %v14136_v40  ;;  %7970 = vmatprep.subr.mxu1 %v7258_v14  ;;  %v15825_v40 = vld [vmem:[#allocation221_spill] sm:$0xff]  ;;  %v7186_v14 = vunpack.c.h.bf16 %v15834_v28 }
0x14db   :  { %10754 = vmatprep.subr.mxu0 %v8088_v7  ;;  %7971 = vmatpush1.msra.mxu1 %v7257_v0  ;;  %v7240_v9 = vunpack.c.h.bf16 %v15825_v40  ;;  %v7239_v6 = vunpack.c.l.bf16 %v15825_v40  ;;  %v8079_v0 = vld [vmem:[%s15065_s19 + $0xb0] sm:$0xff]  ;;  %v7185_v7 = vunpack.c.l.bf16 %v15834_v28  ;;  %v8077_v40 = vld [vmem:[%s15065_s19 + $0xa0] sm:$0xff] }
0x14dc   :  { %7884 = vmatprep.mubr.f32.mxu1 %v14148_v15  ;;  %7972 = vmatprep.subr.mxu1 %v7252_v38  ;;  %v7233_v15 = vunpack.c.l.bf16 %v15826_v54  ;;  %v15835_v38 = vld [vmem:[#allocation191_spill] sm:$0xff]  ;;  %v7418_v43 = vpop.f32.mrf.mxu1 }
0x14dd   :  { %10755 = vmatpush3.msra.mxu0 %v8072_v52  ;;  %7973 = vmatpush1.msra.mxu1 %v7251_v18  ;;  %v7180_v18 = vunpack.c.h.bf16 %v15835_v38  ;;  %v8078_v52 = vld [vmem:[%s15065_s19 + $0xa8] sm:$0xff]  ;;  %v7179_v44 = vunpack.c.l.bf16 %v15835_v38  ;;  %v7495_v28 = vpop.f32.mrf.mxu0 }
0x14de   :  { %10756 = vmatprep.subr.mxu0 %v8087_v60  ;;  %7974 = vmatprep.subr.mxu1 %v7246_v32  ;;  %v8062_v32 = vld [vmem:[%s15065_s19 + $0x28] sm:$0xff]  ;;  %v15836_v60 = vld [vmem:[#allocation188_spill] sm:$0xff] }
0x14df   :  { %7885 = vmatmul.mubr.f32.gmra.mxu1 %v14143_v58  ;;  %7961 = vmatprep.mubr.f32.mxu0 %v14150_v53  ;;  %v7227_v58 = vunpack.c.l.bf16 %v15827_v12  ;;  %v8085_v53 = vld [vmem:[%s15065_s19 + $0xe0] sm:$0xff] }
0x14e0   :  { %7975 = vmatpush1.msra.mxu1 %v7245_v8  ;;  %10757 = vmatpush3.msra.mxu0 %v8071_v20  ;;  %v7174_v8 = vunpack.c.h.bf16 %v15836_v60  ;;  %v15837_v20 = vld [vmem:[#allocation257_spill] sm:$0xff]  ;;  %v15838_v12 = vld [vmem:[#allocation254_spill] sm:$0xff] }
0x14e1   :  { %7976 = vmatprep.subr.mxu1 %v7240_v9  ;;  %7962 = vmatmul.mubr.f32.gmra.mxu0 %v14146_v19  ;;  %v8084_v19 = vld [vmem:[%s15065_s19 + $0xd8] sm:$0xff]  ;;  %v7173_v9 = vunpack.c.l.bf16 %v15836_v60  ;;  %v7312_v54 = vunpack.c.h.bf16 %v15837_v20 }
0x14e2   :  { %7977 = vmatpush1.msra.mxu1 %v7239_v6  ;;  %10758 = vmatprep.subr.mxu0 %v8086_v51  ;;  %v8061_v6 = vld [vmem:[%s15065_s19 + $0x20] sm:$0xff]  ;;  %v8060_v51 = vld [vmem:[%s15065_s19 + $0x18] sm:$0xff] }
0x14e3   :  { %7978 = vmatprep.subr.mxu1 %v7234_v55  ;;  %10759 = vmatpush3.msra.mxu0 %v8070_v50  ;;  %v8076_v55 = vld [vmem:[%s15065_s19 + $0x98] sm:$0xff]  ;;  %v8075_v50 = vld [vmem:[%s15065_s19 + $0x90] sm:$0xff] }
0x14e4   :  { %7979 = vmatpush1.msra.mxu1 %v7233_v15  ;;  %10760 = vmatprep.subr.mxu0 %v8085_v53  ;;  %v7311_v15 = vunpack.c.l.bf16 %v15837_v20  ;;  %v8059_v53 = vld [vmem:[%s15065_s19 + $0x10] sm:$0xff]  ;;  %v8104_v20 = vld [vmem:[%s15065_s19 + $0x178] sm:$0xff] }
0x14e5   :  { %7980 = vmatprep.subr.mxu1 %v7228_v45  ;;  %8799 = vmatprep.mubr.msk.f32.mxu1 %vm7345_vm3, %v14154_v61  ;;  %v8067_v61 = vld [vmem:[%s15065_s19 + $0x50] sm:$0xff]  ;;  %v7306_v45 = vunpack.c.h.bf16 %v15838_v12 }
0x14e6   :  { %7981 = vmatpush1.msra.mxu1 %v7227_v58  ;;  %10761 = vmatpush3.msra.mxu0 %v8069_v41  ;;  %v7305_v58 = vunpack.c.l.bf16 %v15838_v12  ;;  %v7299_v41 = vunpack.c.l.bf16 %v15839_v4 }
0x14e7   :  { %7982 = vmatprep.subr.mxu1 %v7222_v31  ;;  %10762 = vmatprep.subr.mxu0 %v8084_v19  ;;  %v7300_v31 = vunpack.c.h.bf16 %v15839_v4 }
0x14e8   :  { %7983 = vmatpush1.msra.mxu1 %v7221_v57  ;;  %10763 = vmatpush3.msra.mxu0 %v8068_v49  ;;  %v8074_v57 = vld [vmem:[%s15065_s19 + $0x88] sm:$0xff] }
0x14e9   :  { %7984 = vmatprep.subr.mxu1 %v7216_v47  ;;  %10764 = vmatprep.subr.mxu0 %v8083_v48  ;;  %v15840_v47 = vld [vmem:[#allocation248_spill] sm:$0xff] }
0x14ea   :  { %7985 = vmatpush1.msra.mxu1 %v7215_v35  ;;  %10765 = vmatpush3.msra.mxu0 %v8067_v61  ;;  %v7294_v19 = vunpack.c.h.bf16 %v15840_v47  ;;  %v8073_v35 = vld [vmem:[%s15065_s19 + $0x80] sm:$0xff]  ;;  %v7293_v49 = vunpack.c.l.bf16 %v15840_v47  ;;  %v8135_v47 = vld [vmem:[%s15065_s19 + $0x270] sm:$0xff] }
0x14eb   :  { %7986 = vmatprep.subr.mxu1 %v7210_v29  ;;  %10766 = vmatprep.subr.mxu0 %v8082_v37  ;;  %v15841_v29 = vld [vmem:[#allocation245_spill] sm:$0xff]  ;;  %v7281_v37 = vunpack.c.l.bf16 %v15842_v36 }
0x14ec   :  { %7987 = vmatpush1.msra.mxu1 %v7209_v34  ;;  %10767 = vmatpush3.msra.mxu0 %v8066_v16  ;;  %v7288_v48 = vunpack.c.h.bf16 %v15841_v29  ;;  %v8120_v34 = vld [vmem:[%s15065_s19 + $0x1f8] sm:$0xff]  ;;  %v7287_v61 = vunpack.c.l.bf16 %v15841_v29  ;;  %v8098_v29 = vld [vmem:[%s15065_s19 + $0x148] sm:$0xff] }
0x14ed   :  { %7988 = vmatprep.subr.mxu1 %v7204_v23  ;;  %10768 = vmatprep.subr.mxu0 %v8081_v17  ;;  %v7282_v23 = vunpack.c.h.bf16 %v15842_v36  ;;  %v15844_v17 = vld [vmem:[#allocation236_spill] sm:$0xff]  ;;  %v8132_v36 = vld [vmem:[%s15065_s19 + $0x258] sm:$0xff] }
0x14ee   :  { %7989 = vmatpush1.msra.mxu1 %v7203_v5  ;;  %10769 = vmatpush3.msra.mxu0 %v8065_v24  ;;  %v15843_v5 = vld [vmem:[#allocation239_spill] sm:$0xff]  ;;  %v14827_v24 = vld [vmem:[%s15064_s18] sm:$0x3f]  ;;  %v7269_v59 = vunpack.c.l.bf16 %v15844_v17 }
0x14ef   :  { %7990 = vmatprep.subr.mxu1 %v7198_v33  ;;  %10770 = vmatprep.subr.mxu0 %v8080_v30  ;;  %v7276_v16 = vunpack.c.h.bf16 %v15843_v5  ;;  %v7275_v33 = vunpack.c.l.bf16 %v15843_v5  ;;  %v7318_v30 = vrot.slane %v14827_v24, %v12719_v26  ;;  %v8131_v5 = vld [vmem:[%s15065_s19 + $0x250] sm:$0xff] }
0x14f0   :  { %7991 = vmatpush1.msra.mxu1 %v7197_v21  ;;  %10771 = vmatpush3.msra.mxu0 %v8064_v62  ;;  %v7270_v21 = vunpack.c.h.bf16 %v15844_v17  ;;  %v8110_v17 = vld [vmem:[%s15065_s19 + $0x1a8] sm:$0xff] }
0x14f1   :  { %7992 = vmatprep.subr.mxu1 %v7192_v27  ;;  %10772 = vmatprep.subr.mxu0 %v8079_v0  ;;  %v7420_v27 = vpop.f32.mrf.mxu1 }
0x14f2   :  { %7993 = vmatpush1.msra.mxu1 %v7191_v11  ;;  %10773 = vmatpush3.msra.mxu0 %v8063_v2  ;;  %v7322_v11 = vrot.slane %v14827_v24, %v12727_v56  ;;  %v7497_v2 = vpop.f32.mrf.mxu0 }
0x14f3   :  { %7994 = vmatprep.subr.mxu1 %v7186_v14  ;;  %10774 = vmatprep.subr.mxu0 %v8078_v52  ;;  %v7419_v14 = vadd.f32 %v7418_v43, %v7318_v30  ;;  %v8095_v43 = vld [vmem:[%s15065_s19 + $0x130] sm:$0xff] }
0x14f4   :  { %7995 = vmatpush1.msra.mxu1 %v7185_v7  ;;  %10775 = vmatpush3.msra.mxu0 %v8062_v32  ;;  %v7421_v7 = vadd.f32 %v7420_v27, %v7322_v11  ;;  %v8109_v27 = vld [vmem:[%s15065_s19 + $0x1a0] sm:$0xff] }
0x14f5   :  { %7996 = vmatprep.subr.mxu1 %v7180_v18  ;;  %10776 = vmatprep.subr.mxu0 %v8077_v40  ;;  %v7496_v26 = vadd.f32 %v7495_v28, %v7419_v14  ;;  %v8092_v28 = vld [vmem:[%s15065_s19 + $0x118] sm:$0xff]  ;;  %v8127_v14 = vld [vmem:[%s15065_s19 + $0x230] sm:$0xff] }
0x14f6   :  { %7997 = vmatpush1.msra.mxu1 %v7179_v44  ;;  %10777 = vmatpush3.msra.mxu0 %v8061_v6  ;;  %v7498_v56 = vadd.f32 %v7497_v2, %v7421_v7  ;;  %v8091_v7 = vld [vmem:[%s15065_s19 + $0x110] sm:$0xff]  ;;  %v8126_v2 = vld [vmem:[%s15065_s19 + $0x228] sm:$0xff] }
0x14f7   :  { %7998 = vmatprep.subr.mxu1 %v7174_v8  ;;  %10778 = vmatprep.subr.mxu0 %v8076_v55 }
0x14f8   :  { %7999 = vmatpush1.msra.mxu1 %v7173_v9  ;;  %10779 = vmatpush3.msra.mxu0 %v8060_v51  ;;  %v8103_v51 = vld [vmem:[%s15065_s19 + $0x170] sm:$0xff] }
0x14f9   :  { %8016 = vmatprep.subr.mxu1 %v7312_v54  ;;  %10780 = vmatprep.subr.mxu0 %v8075_v50  ;;  %v8102_v50 = vld [vmem:[%s15065_s19 + $0x168] sm:$0xff] }
0x14fa   :  { %8017 = vmatpush2.msra.mxu1 %v7311_v15  ;;  %10781 = vmatpush3.msra.mxu0 %v8059_v53  ;;  %v8117_v53 = vld [vmem:[%s15065_s19 + $0x1e0] sm:$0xff] }
0x14fb   :  { %8018 = vmatprep.subr.mxu1 %v7306_v45  ;;  %10782 = vmatprep.subr.mxu0 %v8074_v57  ;;  %v8118_v45 = vld [vmem:[%s15065_s19 + $0x1e8] sm:$0xff]  ;;  %v8116_v57 = vld [vmem:[%s15065_s19 + $0x1d8] sm:$0xff] }
0x14fc   :  { %8019 = vmatpush2.msra.mxu1 %v7305_v58  ;;  %10783 = vmatpush3.msra.mxu0 %v8058_v42  ;;  %v8136_v42 = vld [vmem:[%s15065_s19 + $0x278] sm:$0xff] }
0x14fd   :  { %8020 = vmatprep.subr.mxu1 %v7300_v31  ;;  %10784 = vmatprep.subr.mxu0 %v8073_v35  ;;  %v8101_v31 = vld [vmem:[%s15065_s19 + $0x160] sm:$0xff]  ;;  %v8099_v35 = vld [vmem:[%s15065_s19 + $0x150] sm:$0xff] }
0x14fe   :  { %8021 = vmatpush2.msra.mxu1 %v7299_v41  ;;  %10785 = vmatpush3.msra.mxu0 %v8057_v39  ;;  %v8100_v41 = vld [vmem:[%s15065_s19 + $0x158] sm:$0xff]  ;;  %v8114_v39 = vld [vmem:[%s15065_s19 + $0x1c8] sm:$0xff] }
0x14ff   :  { %8022 = vmatprep.subr.mxu1 %v7294_v19  ;;  %10792 = vmatprep.subr.mxu0 %v8120_v34  ;;  %v8115_v19 = vld [vmem:[%s15065_s19 + $0x1d0] sm:$0xff]  ;;  %v8113_v34 = vld [vmem:[%s15065_s19 + $0x1c0] sm:$0xff] }
0x1500   :  { %8023 = vmatpush2.msra.mxu1 %v7293_v49  ;;  %v8134_v49 = vld [vmem:[%s15065_s19 + $0x268] sm:$0xff] }
0x1501   :  { %8024 = vmatprep.subr.mxu1 %v7288_v48  ;;  %v8133_v48 = vld [vmem:[%s15065_s19 + $0x260] sm:$0xff] }
0x1502   :  { %8025 = vmatpush2.msra.mxu1 %v7287_v61  ;;  %v8097_v61 = vld [vmem:[%s15065_s19 + $0x140] sm:$0xff] }
0x1503   :  { %8026 = vmatprep.subr.mxu1 %v7282_v23  ;;  %v8112_v23 = vld [vmem:[%s15065_s19 + $0x1b8] sm:$0xff] }
0x1504   :  { %8027 = vmatpush2.msra.mxu1 %v7281_v37  ;;  %v8096_v37 = vld [vmem:[%s15065_s19 + $0x138] sm:$0xff] }
0x1505   :  { %8028 = vmatprep.subr.mxu1 %v7276_v16  ;;  %v8111_v16 = vld [vmem:[%s15065_s19 + $0x1b0] sm:$0xff] }
0x1506   :  { %8029 = vmatpush2.msra.mxu1 %v7275_v33  ;;  %v8130_v33 = vld [vmem:[%s15065_s19 + $0x248] sm:$0xff] }
0x1507   :  { %8030 = vmatprep.subr.mxu1 %v7270_v21  ;;  %v8094_v21 = vld [vmem:[%s15065_s19 + $0x128] sm:$0xff] }
0x1508   :  { %8031 = vmatpush2.msra.mxu1 %v7269_v59  ;;  %v7424_v62 = vpop.f32.mrf.mxu1  ;;  %v8129_v59 = vld [vmem:[%s15065_s19 + $0x240] sm:$0xff] }
0x1509   :  { %8033 = vmatmul.mubr.f32.vlgmr.msra.gmra.mxu1 %v14152_v1  ;;  %8308 = vmatprep.subr.mxu1 %v15588_v22  ;;  %v7425_v52 = vadd.f32 %v7424_v62, %v7318_v30  ;;  %v8093_v30 = vld [vmem:[%s15065_s19 + $0x120] sm:$0xff]  ;;  %v8108_v62 = vld [vmem:[%s15065_s19 + $0x198] sm:$0xff] }
0x150a   :  { %8800 = vmatprep.mubr.msk.f32.mxu1 %vm7345_vm3, %v14158_v3  ;;  %v7426_v0 = vpop.f32.mrf.mxu1  ;;  %8309 = vmatpush1.msra.mxu1 %v8136_v42 }
0x150b   :  { %v7501_v38 = vpop.f32.mrf.mxu0  ;;  %v7427_v60 = vadd.f32 %v7426_v0, %v7322_v11  ;;  %8310 = vmatprep.subr.mxu1 %v15588_v22  ;;  %v8128_v11 = vld [vmem:[%s15065_s19 + $0x238] sm:$0xff]  ;;  %v8107_v0 = vld [vmem:[%s15065_s19 + $0x190] sm:$0xff] }
0x150c   :  { %v7502_v9 = vadd.f32 %v7501_v38, %v7425_v52  ;;  %8311 = vmatpush1.msra.mxu1 %v8135_v47  ;;  %v8090_v38 = vld [vmem:[%s15065_s19 + $0x108] sm:$0xff]  ;;  %v8089_v52 = vld [vmem:[%s15065_s19 + $0x100] sm:$0xff] }
0x150d   :  { %8039 = vmatmul.mubr.f32.gmra.mxu1 %v14156_v13  ;;  %v7503_v8 = vpop.f32.mrf.mxu0  ;;  %v8119_v13 = vld [vmem:[%s15065_s19 + $0x1f0] sm:$0xff]  ;;  %8312 = vmatprep.subr.mxu1 %v15588_v22 }
0x150e   :  { %v7504_v54 = vadd.f32 %v7503_v8, %v7427_v60  ;;  %8313 = vmatpush1.msra.mxu1 %v8134_v49  ;;  %v8122_v60 = vld [vmem:[%s15065_s19 + $0x208] sm:$0xff]  ;;  %v8144_v8 = vld [vmem:[%s15065_s19 + $0x2b8] sm:$0xff] }
0x150f   :  { %v7572_v18 = vpop.f32.mrf.mxu1  ;;  %8314 = vmatprep.subr.mxu1 %v15588_v22 }
0x1510   :  { %v7573_v44 = vadd.f32 %v7572_v18, %v7496_v26  ;;  %8315 = vmatpush1.msra.mxu1 %v8133_v48  ;;  %v8106_v26 = vld [vmem:[%s15065_s19 + $0x188] sm:$0xff]  ;;  %v8125_v18 = vld [vmem:[%s15065_s19 + $0x220] sm:$0xff] }
0x1511   :  { %v7574_v32 = vpop.f32.mrf.mxu1  ;;  %8316 = vmatprep.subr.mxu1 %v15588_v22 }
0x1512   :  { %v7575_v1 = vadd.f32 %v7574_v32, %v7498_v56  ;;  %v8045_v6 = vmax.f32 %v7573_v44, 0.0  ;;  %8317 = vmatpush1.msra.mxu1 %v8132_v36  ;;  %v8105_v56 = vld [vmem:[%s15065_s19 + $0x180] sm:$0xff]  ;;  %v8124_v44 = vld [vmem:[%s15065_s19 + $0x218] sm:$0xff]  ;;  %v8123_v32 = vld [vmem:[%s15065_s19 + $0x210] sm:$0xff] }
0x1513   :  { %8318 = vmatprep.subr.mxu1 %v15588_v22 }
0x1514   :  { %v8046_v40 = vmax.f32 %v7575_v1, 0.0  ;;  %v7578_v3 = vpop.f32.mrf.mxu1  ;;  %8319 = vmatpush1.msra.mxu1 %v8131_v5  ;;  %v8121_v1 = vld [vmem:[%s15065_s19 + $0x200] sm:$0xff] }
0x1515   :  { %v7579_v55 = vadd.f32 %v7578_v3, %v7502_v9  ;;  %8320 = vmatprep.subr.mxu1 %v15588_v22  ;;  %v8142_v9 = vld [vmem:[%s15065_s19 + $0x2a8] sm:$0xff] }
0x1516   :  { %8222 = vmatprep.mubr.f32.mxu0 %v8046_v40  ;;  %v7580_v15 = vpop.f32.mrf.mxu1  ;;  %8321 = vmatpush1.msra.mxu1 %v8130_v33  ;;  %v8143_v40 = vld [vmem:[%s15065_s19 + $0x2b0] sm:$0xff]  ;;  %v7334_v33 = vrot.slane %v14827_v24, %v12825_v46 }
0x1517   :  { %8223 = vmatmul.mubr.f32.vlgmr.msra.gmra.mxu0 %v8045_v6  ;;  %v7581_v12 = vadd.f32 %v7580_v15, %v7504_v54  ;;  %v8051_v4 = vmax.f32 %v7579_v55, 0.0  ;;  %8322 = vmatprep.subr.mxu1 %v15588_v22  ;;  %v8141_v6 = vld [vmem:[%s15065_s19 + $0x2a0] sm:$0xff]  ;;  %v8139_v54 = vld [vmem:[%s15065_s19 + $0x290] sm:$0xff]  ;;  %v8138_v15 = vld [vmem:[%s15065_s19 + $0x288] sm:$0xff] }
0x1518   :  { %10793 = vmatpush3.msra.mxu0 %v8104_v20  ;;  %8323 = vmatpush1.msra.mxu1 %v8129_v59  ;;  %v8140_v20 = vld [vmem:[%s15065_s19 + $0x298] sm:$0xff]  ;;  %v7338_v59 = vrot.slane %v14827_v24, %v12784_v10 }
0x1519   :  { %10794 = vmatprep.subr.mxu0 %v8119_v13  ;;  %v8052_v58 = vmax.f32 %v7581_v12, 0.0  ;;  %8324 = vmatprep.subr.mxu1 %v15588_v22  ;;  %v7326_v13 = vrot.slane %v14827_v24, %v12737_v63  ;;  %v8137_v12 = vld [vmem:[%s15065_s19 + $0x280] sm:$0xff] }
0x151a   :  { %10795 = vmatpush3.msra.mxu0 %v8103_v51  ;;  %8325 = vmatpush1.msra.mxu1 %v8128_v11  ;;  %v7330_v51 = vrot.slane %v14827_v24, %v12743_v25 }
0x151b   :  { %10796 = vmatprep.subr.mxu0 %v8118_v45  ;;  %8227 = vmatprep.mubr.f32.mxu0 %v8052_v58 }
0x151c   :  { %10797 = vmatpush3.msra.mxu0 %v8102_v50  ;;  %8326 = vmatprep.subr.mxu1 %v15588_v22 }
0x151d   :  { %8228 = vmatmul.mubr.f32.gmra.mxu0 %v8051_v4  ;;  %10798 = vmatprep.subr.mxu0 %v8117_v53 }
0x151e   :  { %10799 = vmatpush3.msra.mxu0 %v8101_v31  ;;  %8327 = vmatpush1.msra.mxu1 %v8127_v14 }
0x151f   :  { %10800 = vmatprep.subr.mxu0 %v8116_v57  ;;  %8328 = vmatprep.subr.mxu1 %v15588_v22 }
0x1520   :  { %10801 = vmatpush3.msra.mxu0 %v8100_v41  ;;  %8329 = vmatpush1.msra.mxu1 %v8126_v2 }
0x1521   :  { %10802 = vmatprep.subr.mxu0 %v8115_v19  ;;  %8330 = vmatprep.subr.mxu1 %v15588_v22 }
0x1522   :  { %10803 = vmatpush3.msra.mxu0 %v8099_v35  ;;  %8331 = vmatpush1.msra.mxu1 %v8125_v18 }
0x1523   :  { %10804 = vmatprep.subr.mxu0 %v8114_v39  ;;  %8332 = vmatprep.subr.mxu1 %v15588_v22 }
0x1524   :  { %10805 = vmatpush3.msra.mxu0 %v8098_v29  ;;  %8333 = vmatpush1.msra.mxu1 %v8124_v44  ;;  %v7649_v3 = vpop.f32.mrf.mxu0 }
0x1525   :  { %10806 = vmatprep.subr.mxu0 %v8113_v34  ;;  %8334 = vmatprep.subr.mxu1 %v15588_v22  ;;  %v7650_v45 = vadd.f32 %v7649_v3, %v7326_v13 }
0x1526   :  { %10807 = vmatpush3.msra.mxu0 %v8097_v61  ;;  %8335 = vmatpush1.msra.mxu1 %v8123_v32  ;;  %v7651_v55 = vpop.f32.mrf.mxu0 }
0x1527   :  { %10808 = vmatprep.subr.mxu0 %v8112_v23  ;;  %8336 = vmatprep.subr.mxu1 %v15588_v22  ;;  %v7652_v50 = vadd.f32 %v7651_v55, %v7330_v51 }
0x1528   :  { %10809 = vmatpush3.msra.mxu0 %v8096_v37  ;;  %8337 = vmatpush1.msra.mxu1 %v8122_v60 }
0x1529   :  { %10810 = vmatprep.subr.mxu0 %v8111_v16  ;;  %8338 = vmatprep.subr.mxu1 %v15588_v22 }
0x152a   :  { %10811 = vmatpush3.msra.mxu0 %v8095_v43  ;;  %8339 = vmatpush1.msra.mxu1 %v8121_v1 }
0x152b   :  { %10812 = vmatprep.subr.mxu0 %v8110_v17  ;;  %8356 = vmatprep.subr.mxu1 %v15588_v22 }
0x152c   :  { %10813 = vmatpush3.msra.mxu0 %v8094_v21  ;;  %8357 = vmatpush2.msra.mxu1 %v8144_v8 }
0x152d   :  { %10814 = vmatprep.subr.mxu0 %v8109_v27  ;;  %8358 = vmatprep.subr.mxu1 %v15588_v22 }
0x152e   :  { %10815 = vmatpush3.msra.mxu0 %v8093_v30  ;;  %8359 = vmatpush2.msra.mxu1 %v8143_v40 }
0x152f   :  { %10816 = vmatprep.subr.mxu0 %v8108_v62  ;;  %8360 = vmatprep.subr.mxu1 %v15588_v22 }
0x1530   :  { %10817 = vmatpush3.msra.mxu0 %v8092_v28  ;;  %8361 = vmatpush2.msra.mxu1 %v8142_v9 }
0x1531   :  { %10818 = vmatprep.subr.mxu0 %v8107_v0  ;;  %8362 = vmatprep.subr.mxu1 %v15588_v22 }
0x1532   :  { %10819 = vmatpush3.msra.mxu0 %v8091_v7  ;;  %8363 = vmatpush2.msra.mxu1 %v8141_v6 }
0x1533   :  { %10820 = vmatprep.subr.mxu0 %v8106_v26  ;;  %8364 = vmatprep.subr.mxu1 %v15588_v22 }
0x1534   :  { %10821 = vmatpush3.msra.mxu0 %v8090_v38  ;;  %8365 = vmatpush2.msra.mxu1 %v8140_v20 }
0x1535   :  { %10822 = vmatprep.subr.mxu0 %v8105_v56  ;;  %8366 = vmatprep.subr.mxu1 %v15588_v22 }
0x1536   :  { %10823 = vmatpush3.msra.mxu0 %v8089_v52  ;;  %8367 = vmatpush2.msra.mxu1 %v8139_v54 }
0x1537   :  { %8368 = vmatprep.subr.mxu1 %v15588_v22 }
0x1538   :  { %8369 = vmatpush2.msra.mxu1 %v8138_v15 }
0x1539   :  { %8370 = vmatprep.subr.mxu1 %v15588_v22 }
0x153a   :  { %8371 = vmatpush2.msra.mxu1 %v8137_v12 }
0x1550   :  { %v7655_v63 = vpop.f32.mrf.mxu0 }
0x1551   :  { %v7656_v57 = vadd.f32 %v7655_v63, %v7326_v13 }
0x1552   :  { %v7657_v58 = vpop.f32.mrf.mxu0 }
0x1553   :  { %v7726_v53 = vpop.f32.mrf.mxu1  ;;  %v7658_v47 = vadd.f32 %v7657_v58, %v7330_v51 }
0x1554   :  { %v7727_v4 = vadd.f32 %v7726_v53, %v7650_v45  ;;  %v8801_v45 = vld [vmem:[%s15066_s20] ss:$0 sm:$0xff] }
0x1555   :  { %v7728_v31 = vpop.f32.mrf.mxu1 }
0x1556   :  { %v7729_v41 = vadd.f32 %v7728_v31, %v7652_v50  ;;  %v7803_v42 = vpop.f32.mrf.mxu0 }
0x1557   :  { %v7804_v25 = vadd.f32 %v7803_v42, %v7727_v4 }
0x1558   :  { %v7805_v19 = vpop.f32.mrf.mxu0 }
0x1559   :  { %v7732_v35 = vpop.f32.mrf.mxu1  ;;  %v7806_v22 = vadd.f32 %v7805_v19, %v7729_v41  ;;  %v8047_v48 = vmax.f32 %v7804_v25, 0.0 }
0x155a   :  { %v7733_v49 = vadd.f32 %v7732_v35, %v7656_v57 }
0x155b   :  { %v8048_v39 = vmax.f32 %v7806_v22, 0.0  ;;  %v7734_v29 = vpop.f32.mrf.mxu1 }
0x155c   :  { %v7735_v34 = vadd.f32 %v7734_v29, %v7658_v47  ;;  %v7809_v61 = vpop.f32.mrf.mxu0 }
0x155d   :  { %8297 = vmatprep.mubr.f32.mxu0 %v8048_v39  ;;  %v7810_v36 = vadd.f32 %v7809_v61, %v7733_v49 }
0x155e   :  { %8298 = vmatmul.mubr.f32.vlgmr.msra.gmra.mxu0 %v8047_v48  ;;  %v7811_v23 = vpop.f32.mrf.mxu0 }
0x155f   :  { %v7812_v37 = vadd.f32 %v7811_v23, %v7735_v34  ;;  %v8053_v5 = vmax.f32 %v7810_v36, 0.0 }
0x1561   :  { %v8054_v16 = vmax.f32 %v7812_v37, 0.0 }
0x1563   :  { %8302 = vmatprep.mubr.f32.mxu0 %v8054_v16 }
0x1564   :  { %8303 = vmatmul.mubr.f32.gmra.mxu0 %v8053_v5 }
0x1597   :  { %v7880_v43 = vpop.f32.mrf.mxu1 }
0x1598   :  { %v7881_v30 = vadd.f32 %v7880_v43, %v7334_v33 }
0x1599   :  { %v7882_v17 = vpop.f32.mrf.mxu1 }
0x159a   :  { %v7957_v21 = vpop.f32.mrf.mxu0  ;;  %v7883_v62 = vadd.f32 %v7882_v17, %v7338_v59 }
0x159b   :  { %v7958_v0 = vadd.f32 %v7957_v21, %v7881_v30 }
0x159c   :  { %v7959_v11 = vpop.f32.mrf.mxu0 }
0x159d   :  { %v7960_v26 = vadd.f32 %v7959_v11, %v7883_v62 }
0x159f   :  { %v7886_v27 = vpop.f32.mrf.mxu1 }
0x15a0   :  { %v7887_v7 = vadd.f32 %v7886_v27, %v7334_v33 }
0x15a1   :  { %v7888_v28 = vpop.f32.mrf.mxu1  ;;  %v7963_v14 = vpop.f32.mrf.mxu0 }
0x15a2   :  { %v7889_v38 = vadd.f32 %v7888_v28, %v7338_v59  ;;  %v7964_v44 = vadd.f32 %v7963_v14, %v7887_v7 }
0x15a3   :  { %v7965_v18 = vpop.f32.mrf.mxu0 }
0x15a4   :  { %v7966_v60 = vadd.f32 %v7965_v18, %v7889_v38 }
0x15c9   :  { %v8034_v2 = vpop.f32.mrf.mxu1 }
0x15ca   :  { %v8035_v56 = vadd.f32 %v8034_v2, %v7958_v0 }
0x15cb   :  { %v8036_v52 = vpop.f32.mrf.mxu1 }
0x15cc   :  { %v8037_v46 = vadd.f32 %v8036_v52, %v7960_v26  ;;  %v8049_v10 = vmax.f32 %v8035_v56, 0.0 }
0x15cd   :  { %v8040_v32 = vpop.f32.mrf.mxu1 }
0x15ce   :  { %v8050_v1 = vmax.f32 %v8037_v46, 0.0  ;;  %v8041_v24 = vadd.f32 %v8040_v32, %v7964_v44 }
0x15cf   :  { %v8042_v8 = vpop.f32.mrf.mxu1 }
0x15d0   :  { %v8043_v40 = vadd.f32 %v8042_v8, %v7966_v60  ;;  %8802 = vmatprep.mubr.msk.f32.mxu1 %vm7345_vm3, %v8050_v1  ;;  %v8055_v6 = vmax.f32 %v8041_v24, 0.0 }
0x15d1   :  { %8373 = vmatmul.mubr.f32.vlgmr.msra.gmra.mxu1 %v8049_v10 }
0x15d2   :  { %v8056_v9 = vmax.f32 %v8043_v40, 0.0 }
0x15d4   :  { %8803 = vmatprep.mubr.msk.f32.mxu1 %vm7345_vm3, %v8056_v9 }
0x15d5   :  { %8378 = vmatmul.mubr.f32.gmra.mxu1 %v8055_v6 }
0x15d7   :  { %v10786_v3 = vpop.f32.mrf.mxu0 }
0x15d9   :  { %v10787_v20 = vpop.f32.mrf.mxu0 }
0x15da   :  { %v10788_v12 = vadd.f32 %v10787_v20, %v10786_v3 }
0x15dc   :  { %v8225_v58 = vadd.f32 %v10788_v12, %v8801_v45 }
0x15dd   :  { %v10789_v54 = vpop.f32.mrf.mxu0 }
0x15df   :  { %v10790_v13 = vpop.f32.mrf.mxu0 }
0x15e0   :  { %v10791_v53 = vadd.f32 %v10790_v13, %v10789_v54 }
0x15e2   :  { %v8230_v41 = vadd.f32 %v10791_v53, %v8801_v45 }
0x161e   :  { %v10824_v55 = vpop.f32.mrf.mxu0 }
0x1620   :  { %v10825_v15 = vpop.f32.mrf.mxu0 }
0x1621   :  { %v10826_v63 = vadd.f32 %v10825_v15, %v10824_v55 }
0x1623   :  { %v8300_v31 = vadd.f32 %v10826_v63, %v8225_v58 }
0x1624   :  { %v10827_v51 = vpop.f32.mrf.mxu0 }
0x1626   :  { %v10828_v50 = vpop.f32.mrf.mxu0 }
0x1627   :  { %v10829_v4 = vadd.f32 %v10828_v50, %v10827_v51 }
0x1629   :  { %v8305_v25 = vadd.f32 %v10829_v4, %v8230_v41 }
0x1691   :  { %v8374_v57 = vpop.f32.mrf.mxu1 }
0x1692   :  { %v8375_v42 = vadd.f32 %v8374_v57, %v8300_v31 }
0x1693   :  { %v8376_v47 = vpop.f32.mrf.mxu1 }
0x1694   :  { %8384 = vst.msk [vmem:[%s15067_s21] sm:$0xff] %vm8383_vm4, %v8375_v42 }
0x1695   :  { %v8379_v19 = vpop.f32.mrf.mxu1 }
0x1696   :  { %v8380_v35 = vadd.f32 %v8379_v19, %v8305_v25 }
0x1697   :  { %v8381_v22 = vpop.f32.mrf.mxu1 }
0x1698   :  { %8385 = vst.msk [vmem:[%s15067_s21 + $0x8] sm:$0xff] %vm8383_vm4, %v8380_v35 }
0x1699   :  { %8390 = vsyncmov [#allocation3] }
0x169c   :  { %s8391_s27 = vpop.sfrf %8390 }
0x169d   :  { %p8804_p0 = scmp.ne.s32.totalorder %s8391_s27, 0 }
0x169f   :  { %8395 = shalt.err (%p8804_p0)  }

</bundles_post_ra>
